<compile_context>
chip_gen: v7x
topology: tpu7x:2x2x1
jax: 0.10.0
libtpu: 0.0.40
codegen_flags: <defaults>
</compile_context>

<pallas_src>
import jax
import jax.numpy as jnp
from jax.experimental import pallas as pl
from jax.experimental.pallas import tpu as pltpu

C_IN = 256      # Conv1d in_channels (fixed by the module)
L = 1024        # sequence length (fixed: fc1 = Linear(1024, 1024))
H = 1024        # fc1 out features
D_OUT = 768     # fc2 out features
CK = 32         # channel chunk for the conv reduction (8 chunks of 32 sublanes)


def mapping_kernel(x_ref, wconv_ref, bconv_ref, w1_ref, b1_ref, w2_ref, b2_ref,
                   out_ref):
    tb = x_ref.shape[0]

    # --- Conv1d(256 -> 1, k=1): y[b,l] = sum_c w[c]*x[b,c,l] + bias ------------
    # Chunked over channels so only a (tb, CK, L) product temp is ever live.
    wc = wconv_ref[0].astype(jnp.float32)                    # (C_IN, 1)
    y = jnp.zeros((tb, L), jnp.float32)
    for k in range(C_IN // CK):
        xk = x_ref[:, k * CK:(k + 1) * CK, :].astype(jnp.float32)   # (tb, CK, L)
        y = y + jnp.sum(xk * wc[k * CK:(k + 1) * CK, :], axis=1)    # (tb, L)
    y = y + bconv_ref[0]

    # --- fc1 + ReLU (Dropout p=0.25 is identity in eval mode) ------------------
    h = jnp.dot(y.astype(jnp.bfloat16), w1_ref[...],
                preferred_element_type=jnp.float32) + b1_ref[...]   # (tb, H)
    h = jnp.maximum(h, 0.0)

    # --- fc2 --------------------------------------------------------------------
    o = jnp.dot(h.astype(jnp.bfloat16), w2_ref[...],
                preferred_element_type=jnp.float32) + b2_ref[...]   # (tb, D_OUT)
    out_ref[...] = o.astype(out_ref.dtype)


def _vmem_capacity_bytes():
    try:
        return pltpu.get_tpu_info().vmem_capacity_bytes
    except Exception:
        return 64 << 20   # conservative (v7x-sized) fallback if query unavailable


def _config():
    # (max batch tile, vmem_limit_bytes)
    if _vmem_capacity_bytes() >= (100 << 20):   # v5e / v6e: 128 MiB VMEM
        return 32, 100 << 20
    return 16, 48 << 20                         # v7x (64 MiB) or unknown: keep headroom


def _choose_tile_b(B, tb_max):
    """Batch tile without padding: either the full batch, or a multiple of 8 so
    the (tb, 768) output block stays sublane-aligned (partial tail tiles are
    masked by Pallas).  For B > 8 we keep >= 2 tiles so both v7x TCs get work."""
    if B <= 8:
        return B
    if B <= tb_max:
        return min(tb_max, 8 * pl.cdiv(pl.cdiv(B, 2), 8))
    return tb_max


def mapping_forward(x, params):
    """x: (B, 256, 1024) float32 (or bfloat16) -> (B, 768) float32."""
    wconv, bconv, w1, b1, w2, b2 = params
    B = x.shape[0]
    assert x.shape[1:] == (C_IN, L)

    tb_max, vmem_limit = _config()
    tb = _choose_tile_b(B, tb_max)
    n_tiles = pl.cdiv(B, tb)

    # Whole-array VMEM residency: fetched once, single copy, no per-step DMA.
    resident = pl.BlockSpec(memory_space=pltpu.MemorySpace.VMEM)

    return pl.pallas_call(
        mapping_kernel,
        out_shape=jax.ShapeDtypeStruct((B, D_OUT), jnp.float32),
        grid=(n_tiles,),
        in_specs=[
            pl.BlockSpec((tb, C_IN, L), lambda i: (i, 0, 0)),     # x: streamed batch tiles
            resident,                                             # conv weight (1, C, 1)
            pl.BlockSpec(memory_space=pltpu.MemorySpace.SMEM),    # conv bias scalar (1,)
            resident,                                             # w1 (bf16, L x H)
            resident,                                             # b1 (1, H)
            resident,                                             # w2 (bf16, H x D_OUT)
            resident,                                             # b2 (1, D_OUT)
        ],
        out_specs=pl.BlockSpec((tb, D_OUT), lambda i: (i, 0)),
        compiler_params=pltpu.CompilerParams(
            dimension_semantics=("parallel",),   # shard batch tiles across TCs on v7x
            vmem_limit_bytes=vmem_limit,
        ),
    )(x, wconv, bconv, w1, b1, w2, b2)


def init_params(key):
    k0, k1, k2, k3, k4, k5 = jax.random.split(key, 6)
    # Conv1d(256, 1, 1): PyTorch weight (1, 256, 1); bias (1,)
    wconv = jax.random.normal(k0, (1, C_IN, 1), jnp.float32) * 0.05
    bconv = jax.random.normal(k1, (1,), jnp.float32) * 0.05
    # fc1 Linear(1024, 1024): PyTorch (out, in) pre-transposed to (in, out); bf16 weights
    w1 = (jax.random.normal(k2, (L, H), jnp.float32) * 0.02).astype(jnp.bfloat16)
    b1 = jax.random.normal(k3, (1, H), jnp.float32) * 0.02
    # fc2 Linear(1024, 768)
    w2 = (jax.random.normal(k4, (H, D_OUT), jnp.float32) * 0.02).astype(jnp.bfloat16)
    b2 = jax.random.normal(k5, (1, D_OUT), jnp.float32) * 0.02
    return wconv, bconv, w1, b1, w2, b2


def reference_forward(x, params):
    # Pure-JAX reference mirroring the kernel's mixed precision (bf16 weights,
    # bf16 matmul inputs, f32 accumulate) so the check validates the kernel.
    wconv, bconv, w1, b1, w2, b2 = params
    y = jnp.sum(x.astype(jnp.float32) * wconv, axis=1) + bconv[0]
    yb = y.astype(jnp.bfloat16).astype(jnp.float32)
    h = jnp.maximum(yb @ w1.astype(jnp.float32) + b1, 0.0)
    hb = h.astype(jnp.bfloat16).astype(jnp.float32)
    return hb @ w2.astype(jnp.float32) + b2


if __name__ == "__main__":
    key = jax.random.PRNGKey(0)
    kx, kp = jax.random.split(key)
    B = 2
    x = jax.random.normal(kx, (B, C_IN, L), jnp.float32)
    params = init_params(kp)

    out = jax.block_until_ready(mapping_forward(x, params))
    ref = reference_forward(x, params)

    assert out.shape == (B, D_OUT)
    assert jnp.allclose(out, ref, atol=2e-2, rtol=2e-2), "mismatch vs pure-JAX reference"
    print("KERNEL_OK")
</pallas_src>

<mosaic_0001>
module attributes {stable_mosaic.version = 11 : i64} {
  func.func @mapping_kernel(%arg0: i32, %arg1: memref<2x256x1024xf32, #tpu.memory_space<vmem>>, %arg2: memref<1x256x1xf32, #tpu.memory_space<vmem>>, %arg3: memref<1xf32, #tpu.memory_space<smem>>, %arg4: memref<1024x1024xbf16, #tpu.memory_space<vmem>>, %arg5: memref<1x1024xf32, #tpu.memory_space<vmem>>, %arg6: memref<1024x768xbf16, #tpu.memory_space<vmem>>, %arg7: memref<1x768xf32, #tpu.memory_space<vmem>>, %arg8: memref<2x768xf32, #tpu.memory_space<vmem>>) attributes {dimension_semantics = [#tpu.dimension_semantics<parallel>], iteration_bounds = array<i64: 1>, scalar_prefetch = 0 : i64, scratch_operands = 0 : i64, tpu.core_type = #tpu.core_type<tc>, window_params = [{transform_indices = @transform_0, window_bounds = array<i64: 2, 256, 1024>}, {pipeline_mode = #tpu.pipeline_mode<synchronous>, transform_indices = @transform_1, window_bounds = array<i64: 1, 256, 1>}, {transform_indices = @transform_2, window_bounds = array<i64: 1>}, {pipeline_mode = #tpu.pipeline_mode<synchronous>, transform_indices = @transform_3, window_bounds = array<i64: 1024, 1024>}, {pipeline_mode = #tpu.pipeline_mode<synchronous>, transform_indices = @transform_4, window_bounds = array<i64: 1, 1024>}, {pipeline_mode = #tpu.pipeline_mode<synchronous>, transform_indices = @transform_5, window_bounds = array<i64: 1024, 768>}, {pipeline_mode = #tpu.pipeline_mode<synchronous>, transform_indices = @transform_6, window_bounds = array<i64: 1, 768>}, {transform_indices = @transform_7, window_bounds = array<i64: 2, 768>}]} {
    %c0 = arith.constant 0 : index
    %c0_0 = arith.constant 0 : index
    %c0_1 = arith.constant 0 : index
    %0 = vector.load %arg2[%c0, %c0_0, %c0_1] : memref<1x256x1xf32, #tpu.memory_space<vmem>>, vector<1x256x1xf32>
    %1 = vector.shape_cast %0 : vector<1x256x1xf32> to vector<256x1xf32>
    %cst = arith.constant 0.000000e+00 : f32
    %2 = vector.broadcast %cst : f32 to vector<2x1024xf32>
    %c0_2 = arith.constant 0 : index
    %c0_3 = arith.constant 0 : index
    %c0_4 = arith.constant 0 : index
    %3 = vector.load %arg1[%c0_2, %c0_3, %c0_4] : memref<2x256x1024xf32, #tpu.memory_space<vmem>>, vector<2x32x1024xf32>
    %4 = vector.extract_strided_slice %1 {offsets = [0, 0], sizes = [32, 1], strides = [1, 1]} : vector<256x1xf32> to vector<32x1xf32>
    %5 = vector.shape_cast %4 : vector<32x1xf32> to vector<1x32x1xf32>
    %6 = vector.broadcast %5 : vector<1x32x1xf32> to vector<2x32x1024xf32>
    %7 = arith.mulf %3, %6 : vector<2x32x1024xf32>
    %cst_5 = arith.constant dense<0.000000e+00> : vector<2x1024xf32>
    %8 = vector.multi_reduction <add>, %7, %cst_5 [1] : vector<2x32x1024xf32> to vector<2x1024xf32>
    %9 = arith.addf %2, %8 : vector<2x1024xf32>
    %c0_6 = arith.constant 0 : index
    %c32 = arith.constant 32 : index
    %c0_7 = arith.constant 0 : index
    %10 = vector.load %arg1[%c0_6, %c32, %c0_7] : memref<2x256x1024xf32, #tpu.memory_space<vmem>>, vector<2x32x1024xf32>
    %11 = vector.extract_strided_slice %1 {offsets = [32, 0], sizes = [32, 1], strides = [1, 1]} : vector<256x1xf32> to vector<32x1xf32>
    %12 = vector.shape_cast %11 : vector<32x1xf32> to vector<1x32x1xf32>
    %13 = vector.broadcast %12 : vector<1x32x1xf32> to vector<2x32x1024xf32>
    %14 = arith.mulf %10, %13 : vector<2x32x1024xf32>
    %cst_8 = arith.constant dense<0.000000e+00> : vector<2x1024xf32>
    %15 = vector.multi_reduction <add>, %14, %cst_8 [1] : vector<2x32x1024xf32> to vector<2x1024xf32>
    %16 = arith.addf %9, %15 : vector<2x1024xf32>
    %c0_9 = arith.constant 0 : index
    %c64 = arith.constant 64 : index
    %c0_10 = arith.constant 0 : index
    %17 = vector.load %arg1[%c0_9, %c64, %c0_10] : memref<2x256x1024xf32, #tpu.memory_space<vmem>>, vector<2x32x1024xf32>
    %18 = vector.extract_strided_slice %1 {offsets = [64, 0], sizes = [32, 1], strides = [1, 1]} : vector<256x1xf32> to vector<32x1xf32>
    %19 = vector.shape_cast %18 : vector<32x1xf32> to vector<1x32x1xf32>
    %20 = vector.broadcast %19 : vector<1x32x1xf32> to vector<2x32x1024xf32>
    %21 = arith.mulf %17, %20 : vector<2x32x1024xf32>
    %cst_11 = arith.constant dense<0.000000e+00> : vector<2x1024xf32>
    %22 = vector.multi_reduction <add>, %21, %cst_11 [1] : vector<2x32x1024xf32> to vector<2x1024xf32>
    %23 = arith.addf %16, %22 : vector<2x1024xf32>
    %c0_12 = arith.constant 0 : index
    %c96 = arith.constant 96 : index
    %c0_13 = arith.constant 0 : index
    %24 = vector.load %arg1[%c0_12, %c96, %c0_13] : memref<2x256x1024xf32, #tpu.memory_space<vmem>>, vector<2x32x1024xf32>
    %25 = vector.extract_strided_slice %1 {offsets = [96, 0], sizes = [32, 1], strides = [1, 1]} : vector<256x1xf32> to vector<32x1xf32>
    %26 = vector.shape_cast %25 : vector<32x1xf32> to vector<1x32x1xf32>
    %27 = vector.broadcast %26 : vector<1x32x1xf32> to vector<2x32x1024xf32>
    %28 = arith.mulf %24, %27 : vector<2x32x1024xf32>
    %cst_14 = arith.constant dense<0.000000e+00> : vector<2x1024xf32>
    %29 = vector.multi_reduction <add>, %28, %cst_14 [1] : vector<2x32x1024xf32> to vector<2x1024xf32>
    %30 = arith.addf %23, %29 : vector<2x1024xf32>
    %c0_15 = arith.constant 0 : index
    %c128 = arith.constant 128 : index
    %c0_16 = arith.constant 0 : index
    %31 = vector.load %arg1[%c0_15, %c128, %c0_16] : memref<2x256x1024xf32, #tpu.memory_space<vmem>>, vector<2x32x1024xf32>
    %32 = vector.extract_strided_slice %1 {offsets = [128, 0], sizes = [32, 1], strides = [1, 1]} : vector<256x1xf32> to vector<32x1xf32>
    %33 = vector.shape_cast %32 : vector<32x1xf32> to vector<1x32x1xf32>
    %34 = vector.broadcast %33 : vector<1x32x1xf32> to vector<2x32x1024xf32>
    %35 = arith.mulf %31, %34 : vector<2x32x1024xf32>
    %cst_17 = arith.constant dense<0.000000e+00> : vector<2x1024xf32>
    %36 = vector.multi_reduction <add>, %35, %cst_17 [1] : vector<2x32x1024xf32> to vector<2x1024xf32>
    %37 = arith.addf %30, %36 : vector<2x1024xf32>
    %c0_18 = arith.constant 0 : index
    %c160 = arith.constant 160 : index
    %c0_19 = arith.constant 0 : index
    %38 = vector.load %arg1[%c0_18, %c160, %c0_19] : memref<2x256x1024xf32, #tpu.memory_space<vmem>>, vector<2x32x1024xf32>
    %39 = vector.extract_strided_slice %1 {offsets = [160, 0], sizes = [32, 1], strides = [1, 1]} : vector<256x1xf32> to vector<32x1xf32>
    %40 = vector.shape_cast %39 : vector<32x1xf32> to vector<1x32x1xf32>
    %41 = vector.broadcast %40 : vector<1x32x1xf32> to vector<2x32x1024xf32>
    %42 = arith.mulf %38, %41 : vector<2x32x1024xf32>
    %cst_20 = arith.constant dense<0.000000e+00> : vector<2x1024xf32>
    %43 = vector.multi_reduction <add>, %42, %cst_20 [1] : vector<2x32x1024xf32> to vector<2x1024xf32>
    %44 = arith.addf %37, %43 : vector<2x1024xf32>
    %c0_21 = arith.constant 0 : index
    %c192 = arith.constant 192 : index
    %c0_22 = arith.constant 0 : index
    %45 = vector.load %arg1[%c0_21, %c192, %c0_22] : memref<2x256x1024xf32, #tpu.memory_space<vmem>>, vector<2x32x1024xf32>
    %46 = vector.extract_strided_slice %1 {offsets = [192, 0], sizes = [32, 1], strides = [1, 1]} : vector<256x1xf32> to vector<32x1xf32>
    %47 = vector.shape_cast %46 : vector<32x1xf32> to vector<1x32x1xf32>
    %48 = vector.broadcast %47 : vector<1x32x1xf32> to vector<2x32x1024xf32>
    %49 = arith.mulf %45, %48 : vector<2x32x1024xf32>
    %cst_23 = arith.constant dense<0.000000e+00> : vector<2x1024xf32>
    %50 = vector.multi_reduction <add>, %49, %cst_23 [1] : vector<2x32x1024xf32> to vector<2x1024xf32>
    %51 = arith.addf %44, %50 : vector<2x1024xf32>
    %c0_24 = arith.constant 0 : index
    %c224 = arith.constant 224 : index
    %c0_25 = arith.constant 0 : index
    %52 = vector.load %arg1[%c0_24, %c224, %c0_25] : memref<2x256x1024xf32, #tpu.memory_space<vmem>>, vector<2x32x1024xf32>
    %53 = vector.extract_strided_slice %1 {offsets = [224, 0], sizes = [32, 1], strides = [1, 1]} : vector<256x1xf32> to vector<32x1xf32>
    %54 = vector.shape_cast %53 : vector<32x1xf32> to vector<1x32x1xf32>
    %55 = vector.broadcast %54 : vector<1x32x1xf32> to vector<2x32x1024xf32>
    %56 = arith.mulf %52, %55 : vector<2x32x1024xf32>
    %cst_26 = arith.constant dense<0.000000e+00> : vector<2x1024xf32>
    %57 = vector.multi_reduction <add>, %56, %cst_26 [1] : vector<2x32x1024xf32> to vector<2x1024xf32>
    %58 = arith.addf %51, %57 : vector<2x1024xf32>
    %c0_27 = arith.constant 0 : index
    %59 = memref.load %arg3[%c0_27] : memref<1xf32, #tpu.memory_space<smem>>
    %60 = vector.broadcast %59 : f32 to vector<2x1024xf32>
    %61 = arith.addf %58, %60 : vector<2x1024xf32>
    %62 = arith.truncf %61 : vector<2x1024xf32> to vector<2x1024xbf16>
    %c0_28 = arith.constant 0 : index
    %c0_29 = arith.constant 0 : index
    %63 = vector.load %arg4[%c0_28, %c0_29] : memref<1024x1024xbf16, #tpu.memory_space<vmem>>, vector<1024x1024xbf16>
    %cst_30 = arith.constant dense<0.000000e+00> : vector<2x1024xf32>
    %64 = tpu.matmul %62, %63, %cst_30 {dimension_numbers = #tpu.dot_dimension_numbers<[1], [0], [0], [1], [0, 0, 1, 1], [], []>} : vector<2x1024xbf16>, vector<1024x1024xbf16>, vector<2x1024xf32> -> vector<2x1024xf32>
    %c0_31 = arith.constant 0 : index
    %c0_32 = arith.constant 0 : index
    %65 = vector.load %arg5[%c0_31, %c0_32] : memref<1x1024xf32, #tpu.memory_space<vmem>>, vector<1x1024xf32>
    %66 = vector.broadcast %65 : vector<1x1024xf32> to vector<2x1024xf32>
    %67 = arith.addf %64, %66 : vector<2x1024xf32>
    %cst_33 = arith.constant 0.000000e+00 : f32
    %68 = vector.broadcast %cst_33 : f32 to vector<2x1024xf32>
    %69 = arith.maximumf %67, %68 : vector<2x1024xf32>
    %70 = arith.truncf %69 : vector<2x1024xf32> to vector<2x1024xbf16>
    %c0_34 = arith.constant 0 : index
    %c0_35 = arith.constant 0 : index
    %71 = vector.load %arg6[%c0_34, %c0_35] : memref<1024x768xbf16, #tpu.memory_space<vmem>>, vector<1024x768xbf16>
    %cst_36 = arith.constant dense<0.000000e+00> : vector<2x768xf32>
    %72 = tpu.matmul %70, %71, %cst_36 {dimension_numbers = #tpu.dot_dimension_numbers<[1], [0], [0], [1], [0, 0, 1, 1], [], []>} : vector<2x1024xbf16>, vector<1024x768xbf16>, vector<2x768xf32> -> vector<2x768xf32>
    %c0_37 = arith.constant 0 : index
    %c0_38 = arith.constant 0 : index
    %73 = vector.load %arg7[%c0_37, %c0_38] : memref<1x768xf32, #tpu.memory_space<vmem>>, vector<1x768xf32>
    %74 = vector.broadcast %73 : vector<1x768xf32> to vector<2x768xf32>
    %75 = arith.addf %72, %74 : vector<2x768xf32>
    %c0_39 = arith.constant 0 : index
    %c0_40 = arith.constant 0 : index
    %76 = vector.load %arg8[%c0_39, %c0_40] : memref<2x768xf32, #tpu.memory_space<vmem>>, vector<2x768xf32>
    tpu.vector_store %arg8[%c0_39, %c0_40], %75 {strides = array<i32>} : memref<2x768xf32, #tpu.memory_space<vmem>>, vector<2x768xf32>,
    return
  }
  func.func @transform_0(%arg0: i32) -> (i32, i32, i32) {
    %c0_i32 = arith.constant 0 : i32
    %c0_i32_0 = arith.constant 0 : i32
    %c0_i32_1 = arith.constant 0 : i32
    return %arg0, %c0_i32, %c0_i32_0 : i32, i32, i32
  }
  func.func @transform_1(%arg0: i32) -> (i32, i32, i32) {
    %c0_i32 = arith.constant 0 : i32
    %c0_i32_0 = arith.constant 0 : i32
    %c0_i32_1 = arith.constant 0 : i32
    %c0_i32_2 = arith.constant 0 : i32
    return %c0_i32, %c0_i32_0, %c0_i32_1 : i32, i32, i32
  }
  func.func @transform_2(%arg0: i32) -> i32 {
    %c0_i32 = arith.constant 0 : i32
    %c0_i32_0 = arith.constant 0 : i32
    return %c0_i32 : i32
  }
  func.func @transform_3(%arg0: i32) -> (i32, i32) {
    %c0_i32 = arith.constant 0 : i32
    %c0_i32_0 = arith.constant 0 : i32
    %c0_i32_1 = arith.constant 0 : i32
    return %c0_i32, %c0_i32_0 : i32, i32
  }
  func.func @transform_4(%arg0: i32) -> (i32, i32) {
    %c0_i32 = arith.constant 0 : i32
    %c0_i32_0 = arith.constant 0 : i32
    %c0_i32_1 = arith.constant 0 : i32
    return %c0_i32, %c0_i32_0 : i32, i32
  }
  func.func @transform_5(%arg0: i32) -> (i32, i32) {
    %c0_i32 = arith.constant 0 : i32
    %c0_i32_0 = arith.constant 0 : i32
    %c0_i32_1 = arith.constant 0 : i32
    return %c0_i32, %c0_i32_0 : i32, i32
  }
  func.func @transform_6(%arg0: i32) -> (i32, i32) {
    %c0_i32 = arith.constant 0 : i32
    %c0_i32_0 = arith.constant 0 : i32
    %c0_i32_1 = arith.constant 0 : i32
    return %c0_i32, %c0_i32_0 : i32, i32
  }
  func.func @transform_7(%arg0: i32) -> (i32, i32) {
    %c0_i32 = arith.constant 0 : i32
    %c0_i32_0 = arith.constant 0 : i32
    return %arg0, %c0_i32 : i32, i32
  }
}

</mosaic_0001>

<bundles_post_ra>
// kernel: tpu_custom_call.1
= control target key start
LH: loop header
LB: loop body
LE: loop exit
PB: predicated region body
PF: predicated region fallthrough
CT: control target
= control target key end

     0   :  { %13 = vsyncpa [#allocation4], 0  ;;  %s12487_s0 = inlined_call_operand.hbm [shape: f32[2,256,1024], index: 0, kind: input, shape index: {}]   ;;  %s12488_s1 = inlined_call_operand.vmem [shape: f32[1,256,1], index: 1, kind: input, shape index: {}]   ;;  %s12489_s2 = inlined_call_operand.<no memory space> [shape: f32[1], index: 2, kind: input, shape index: {}]   ;;  %s12490_s3 = inlined_call_operand.hbm [shape: bf16[1024,1024], index: 3, kind: input, shape index: {}]   ;;  %s12491_s4 = inlined_call_operand.hbm [shape: f32[1,1024], index: 4, kind: input, shape index: {}]   ;;  %s12492_s5 = inlined_call_operand.hbm [shape: bf16[1024,768], index: 5, kind: input, shape index: {}]   ;;  %s12493_s6 = inlined_call_operand.hbm [shape: f32[1,768], index: 6, kind: input, shape index: {}]   ;;  %s12494_s7 = inlined_call_operand.hbm [shape: f32[2,768], index: 7, kind: output, shape index: {}]  }
   0x1   :  { %14 = vsyncpa [#allocation7], 0 }
   0x2   :  { %15 = vsyncpa [#allocation10], 0 }
   0x3   :  { %16 = vsyncpa [#allocation5], 0  ;;  %s11071_s24 = smov [#allocation6]   ;;  %s10931_s28 = scalar_lea.hbm %s12490_s3, 65536 }
   0x4   :  { %s38_s25 = sshll.u32 %s11071_s24, 4  ;;  %p10932_p0 = scmp.ne.s32.totalorder %s12490_s3, %s10931_s28  ;;  %s39_s25 = int_to_ptr.vmem [resolvable:$true] %s38_s25 }
   0x5   :  { %p10935_p1 = scmp.lt.u32.totalorder %s10931_s28, %s12490_s3 }
   0x7   :  { %p10937_p2 = pnand %p10935_p1, %p10932_p0 }
   0x9   :  { %10940 = shalt.err (!%p10937_p2)
}
   0xa   :  { %s10941_s10 = scalar_lea.vmem %s39_s25, 65536  ;;  %p10946_p4 = scmp.lt.s32.totalorder %s39_s25, %s39_s25 }
   0xb   :  { %p10942_p3 = scmp.ne.s32.totalorder %s39_s25, %s10941_s10  ;;  %p10947_p5 = scmp.lt.s32.totalorder %s10941_s10, %s10941_s10 }
   0xd   :  { %p10948_p6 = por %p10947_p5, %p10946_p4 }
   0xf   :  { %p10949_p7 = pnand %p10948_p6, %p10942_p3 }
  0x11   :  { %10952 = shalt.err (!%p10949_p7)
}
  0x12   :  { %s11072_s11 = smov 512   ;;  %s11073_s12 = smov 32  }
  0x13   :  { %44 = dma.hbm_to_vmem [thread:$0]  %s12490_s3, 65536, %s39_s25, [#allocation7], %s11072_s11, %s11072_s11, %s11073_s12  }
  0x14   :  { %s11074_s15 = smov [#allocation9]   ;;  %s10953_s19 = scalar_lea.hbm %s12492_s5, 49152 }
  0x15   :  { %s60_s16 = sshll.u32 %s11074_s15, 4  ;;  %p10954_p8 = scmp.ne.s32.totalorder %s12492_s5, %s10953_s19  ;;  %s61_s16 = int_to_ptr.vmem [resolvable:$true] %s60_s16 }
  0x16   :  { %p10957_p9 = scmp.lt.u32.totalorder %s10953_s19, %s12492_s5 }
  0x18   :  { %p10959_p10 = pnand %p10957_p9, %p10954_p8 }
  0x1a   :  { %10962 = shalt.err (!%p10959_p10)
}
  0x1b   :  { %s10963_s24 = scalar_lea.vmem %s61_s16, 49152  ;;  %p10968_p12 = scmp.lt.s32.totalorder %s61_s16, %s61_s16 }
  0x1c   :  { %p10964_p11 = scmp.ne.s32.totalorder %s61_s16, %s10963_s24  ;;  %p10969_p13 = scmp.lt.s32.totalorder %s10963_s24, %s10963_s24 }
  0x1e   :  { %p10970_p0 = por %p10969_p13, %p10968_p12 }
  0x20   :  { %p10971_p1 = pnand %p10970_p0, %p10964_p11 }
  0x22   :  { %10974 = shalt.err (!%p10971_p1)
}
  0x23   :  { %s11075_s3 = smov 384   ;;  %s11076_s25 = smov 24  }
  0x24   :  { %66 = dma.hbm_to_vmem [thread:$0]  %s12492_s5, 49152, %s61_s16, [#allocation10], %s11075_s3, %s11075_s3, %s11076_s25  }
  0x25   :  { %s11077_s28 = smov [#allocation3]   ;;  %s10975_s9 = scalar_lea.hbm %s12487_s0, 65536 }
  0x26   :  { %s22_s29 = sshll.u32 %s11077_s28, 4  ;;  %p10976_p2 = scmp.ne.s32.totalorder %s12487_s0, %s10975_s9  ;;  %s23_s29 = int_to_ptr.vmem [resolvable:$true] %s22_s29 }
  0x27   :  { %p10979_p3 = scmp.lt.u32.totalorder %s10975_s9, %s12487_s0 }
  0x29   :  { %p10981_p4 = pnand %p10979_p3, %p10976_p2 }
  0x2b   :  { %10984 = shalt.err (!%p10981_p4)
}
  0x2c   :  { %s10985_s14 = scalar_lea.vmem %s23_s29, 65536  ;;  %p10990_p6 = scmp.lt.s32.totalorder %s23_s29, %s23_s29 }
  0x2d   :  { %p10986_p5 = scmp.ne.s32.totalorder %s23_s29, %s10985_s14  ;;  %p10991_p7 = scmp.lt.s32.totalorder %s10985_s14, %s10985_s14 }
  0x2f   :  { %p10992_p8 = por %p10991_p7, %p10990_p6 }
  0x31   :  { %p10993_p9 = pnand %p10992_p8, %p10986_p5 }
  0x33   :  { %10996 = shalt.err (!%p10993_p9)
}
  0x34   :  { %s11078_s5 = smov 1024   ;;  %s11079_s15 = smov 64  }
  0x35   :  { %28 = dma.hbm_to_vmem [thread:$0]  %s12487_s0, 65536, %s23_s29, [#allocation4], %s11078_s5, %s11078_s5, %s11079_s15  }
  0x36   :  { %s11080_s18 = smov [#allocation8]   ;;  %s11081_s20 = smov [#allocation11]  }
  0x37   :  { %s51_s19 = sshll.u32 %s11080_s18, 4  ;;  %s73_s21 = sshll.u32 %s11081_s20, 4  ;;  %s52_s19 = int_to_ptr.vmem [resolvable:$true] %s51_s19  ;;  %s74_s21 = int_to_ptr.vmem [resolvable:$true] %s73_s21 }
  0x38   :  { %s10997_s24 = scalar_lea.hbm %s12491_s4, 128 }
  0x39   :  { %p10998_p10 = scmp.ne.s32.totalorder %s12491_s4, %s10997_s24  ;;  %p11001_p11 = scmp.lt.u32.totalorder %s10997_s24, %s12491_s4 }
  0x3b   :  { %p11003_p12 = pnand %p11001_p11, %p10998_p10 }
  0x3d   :  { %11006 = shalt.err (!%p11003_p12)
}
  0x3e   :  { %s11007_s0 = scalar_lea.vmem %s52_s19, 128  ;;  %p11012_p0 = scmp.lt.s32.totalorder %s52_s19, %s52_s19 }
  0x3f   :  { %p11008_p13 = scmp.ne.s32.totalorder %s52_s19, %s11007_s0  ;;  %p11013_p1 = scmp.lt.s32.totalorder %s11007_s0, %s11007_s0 }
  0x41   :  { %p11014_p2 = por %p11013_p1, %p11012_p0 }
  0x43   :  { %p11015_p3 = pnand %p11014_p2, %p11008_p13 }
  0x45   :  { %11018 = shalt.err (!%p11015_p3)
}
  0x46   :  { %54 = dma.hbm_to_vmem [thread:$0]  %s12491_s4, 128, %s52_s19, [#allocation7]  }
  0x47   :  { %s11019_s9 = scalar_lea.hbm %s12493_s6, 96 }
  0x48   :  { %p11020_p4 = scmp.ne.s32.totalorder %s12493_s6, %s11019_s9  ;;  %p11023_p5 = scmp.lt.u32.totalorder %s11019_s9, %s12493_s6 }
  0x4a   :  { %p11025_p6 = pnand %p11023_p5, %p11020_p4 }
  0x4c   :  { %11028 = shalt.err (!%p11025_p6)
}
  0x4d   :  { %s11029_s14 = scalar_lea.vmem %s74_s21, 96  ;;  %p11034_p8 = scmp.lt.s32.totalorder %s74_s21, %s74_s21 }
  0x4e   :  { %p11030_p7 = scmp.ne.s32.totalorder %s74_s21, %s11029_s14  ;;  %p11035_p9 = scmp.lt.s32.totalorder %s11029_s14, %s11029_s14 }
  0x50   :  { %p11036_p10 = por %p11035_p9, %p11034_p8 }
  0x52   :  { %p11037_p11 = pnand %p11036_p10, %p11030_p7 }
  0x54   :  { %11040 = shalt.err (!%p11037_p11)
}
  0x55   :  { %76 = dma.hbm_to_vmem [thread:$0]  %s12493_s6, 96, %s74_s21, [#allocation10]  }
  0x56   :  { %11063 = dma.done.wait [#allocation4], 65536  }
  0x57   :  { %11064 = vsyncadd [#allocation4], 4294901760 }
  0x58   :  { %11065 = dma.done.wait [#allocation7], 65664  }
  0x59   :  { %11066 = vsyncadd [#allocation7], 4294901632 }
  0x5a   :  { %11067 = dma.done.wait [#allocation10], 49248  }
  0x5b   :  { %11068 = vsyncadd [#allocation10], 4294918048  ;;  %v11082_v0 = vmov 0   ;;  %v96_v1 = vld [vmem:[%s12488_s1 + $0x20] sm:$0xff]  ;;  %v97_v3 = vld [vmem:[%s12488_s1 + $0x28] sm:$0xff]  ;;  %vm3208_vm0 = vcmask 1041409  }
  0x5c   :  { %10353 = vset.pattern.permute.xlu1 %v11082_v0  ;;  %10352 = vset.pattern.permute.xlu0 %v11082_v0  ;;  %v92_v2 = vld [vmem:[%s12488_s1] sm:$0xff]  ;;  %v93_v4 = vld [vmem:[%s12488_s1 + $0x8] sm:$0xff]  ;;  %v98_v5 = vld [vmem:[%s12488_s1 + $0x30] sm:$0xff] }
  0x5d   :  { %498 = vperm.xlu1 %10353, %v96_v1   ;;  %190 = vperm.xlu0 %10352, %v92_v2   ;;  %v94_v6 = vld [vmem:[%s12488_s1 + $0x10] sm:$0xff]  ;;  %v101_v7 = vld [vmem:[%s12488_s1 + $0x48] sm:$0xff]  ;;  %v100_v8 = vld [vmem:[%s12488_s1 + $0x40] sm:$0xff] }
  0x5e   :  { %v99_v9 = vld [vmem:[%s12488_s1 + $0x38] sm:$0xff]  ;;  %v104_v11 = vld [vmem:[%s12488_s1 + $0x60] sm:$0xff]  ;;  %v102_v12 = vld [vmem:[%s12488_s1 + $0x50] sm:$0xff] }
  0x5f   :  { %v95_v10 = vld [vmem:[%s12488_s1 + $0x18] sm:$0xff]  ;;  %v105_v14 = vld [vmem:[%s12488_s1 + $0x68] sm:$0xff]  ;;  %v2622_v15 = vld [vmem:[#allocation6] sm:$0xff] }
  0x60   :  { %v103_v13 = vld [vmem:[%s12488_s1 + $0x58] sm:$0xff]  ;;  %v2626_v16 = vld [vmem:[#allocation6 + $0x20] sm:$0xff]  ;;  %v106_v22 = vld [vmem:[%s12488_s1 + $0x70] sm:$0xff] }
  0x61   :  { %503 = vperm.xlu1 %10353, %v97_v3   ;;  %195 = vperm.xlu0 %10352, %v93_v4   ;;  %v2878_v17 = vld [vmem:[#allocation6 + $0x800] sm:$0xff]  ;;  %v9346_v18 = vcombine.high %v2622_v15, %v2626_v16  ;;  %v9345_v20 = vcombine.low %v2622_v15, %v2626_v16  ;;  %v107_v33 = vld [vmem:[%s12488_s1 + $0x78] sm:$0xff]  ;;  %v109_v34 = vld [vmem:[%s12488_s1 + $0x88] sm:$0xff] }
  0x62   :  { %v2882_v19 = vld [vmem:[#allocation6 + $0x820] sm:$0xff]  ;;  %v110_v44 = vld [vmem:[%s12488_s1 + $0x90] sm:$0xff]  ;;  %v111_v51 = vld [vmem:[%s12488_s1 + $0x98] sm:$0xff] }
  0x63   :  { %v108_v21 = vld [vmem:[%s12488_s1 + $0x80] sm:$0xff]  ;;  %v9602_v23 = vcombine.high %v2878_v17, %v2882_v19  ;;  %v9601_v24 = vcombine.low %v2878_v17, %v2882_v19  ;;  %5793 = vmatprep.subr.bf16.mxu1 %v9346_v18  ;;  %v113_v52 = vld [vmem:[%s12488_s1 + $0xa8] sm:$0xff]  ;;  %v114_v0 = vld [vmem:[%s12488_s1 + $0xb0] sm:$0xff] }
  0x64   :  { %5794 = vmatpush1.bf16.msra.mxu1 %v9345_v20  ;;  %v2630_v25 = vld [vmem:[#allocation6 + $0x40] sm:$0xff]  ;;  %v118_v20 = vld [vmem:[%s12488_s1 + $0xd0] sm:$0xff] }
  0x65   :  { %508 = vperm.xlu1 %10353, %v98_v5   ;;  %200 = vperm.xlu0 %10352, %v94_v6   ;;  %v2634_v26 = vld [vmem:[#allocation6 + $0x60] sm:$0xff] }
  0x66   :  { %5875 = vmatprep.subr.bf16.mxu0 %v9602_v23  ;;  %v2886_v27 = vld [vmem:[#allocation6 + $0x840] sm:$0xff]  ;;  %v9354_v28 = vcombine.high %v2630_v25, %v2634_v26  ;;  %v9353_v30 = vcombine.low %v2630_v25, %v2634_v26 }
  0x67   :  { %5876 = vmatpush1.bf16.msra.mxu0 %v9601_v24  ;;  %v2890_v29 = vld [vmem:[#allocation6 + $0x860] sm:$0xff] }
  0x68   :  { %v9610_v31 = vcombine.high %v2886_v27, %v2890_v29  ;;  %v9609_v32 = vcombine.low %v2886_v27, %v2890_v29  ;;  %5795 = vmatprep.subr.bf16.mxu1 %v9354_v28  ;;  %v2638_v35 = vld [vmem:[#allocation6 + $0x80] sm:$0xff]  ;;  %v119_v29 = vld [vmem:[%s12488_s1 + $0xd8] sm:$0xff] }
  0x69   :  { %811 = vperm.xlu1 %10353, %v101_v7   ;;  %806 = vperm.xlu0 %10352, %v100_v8   ;;  %v2642_v36 = vld [vmem:[#allocation6 + $0xa0] sm:$0xff] }
  0x6a   :  { %5877 = vmatprep.subr.bf16.mxu0 %v9610_v31  ;;  %5796 = vmatpush1.bf16.msra.mxu1 %v9353_v30  ;;  %v2894_v37 = vld [vmem:[#allocation6 + $0x880] sm:$0xff]  ;;  %v9362_v38 = vcombine.high %v2638_v35, %v2642_v36  ;;  %v9361_v40 = vcombine.low %v2638_v35, %v2642_v36  ;;  %v121_v30 = vld [vmem:[%s12488_s1 + $0xe8] sm:$0xff] }
  0x6b   :  { %5878 = vmatpush1.bf16.msra.mxu0 %v9609_v32  ;;  %v2898_v39 = vld [vmem:[#allocation6 + $0x8a0] sm:$0xff] }
  0x6c   :  { %v112_v41 = vld [vmem:[%s12488_s1 + $0xa0] sm:$0xff]  ;;  %v9618_v42 = vcombine.high %v2894_v37, %v2898_v39  ;;  %v9617_v43 = vcombine.low %v2894_v37, %v2898_v39  ;;  %5797 = vmatprep.subr.bf16.mxu1 %v9362_v38  ;;  %v123_v39 = vld [vmem:[%s12488_s1 + $0xf8] sm:$0xff] }
  0x6d   :  { %513 = vperm.xlu1 %10353, %v99_v9   ;;  %205 = vperm.xlu0 %10352, %v95_v10   ;;  %v2646_v45 = vld [vmem:[#allocation6 + $0xc0] sm:$0xff]  ;;  %v115_v9 = vld [vmem:[%s12488_s1 + $0xb8] sm:$0xff]  ;;  %v117_v10 = vld [vmem:[%s12488_s1 + $0xc8] sm:$0xff] }
  0x6e   :  { %5879 = vmatprep.subr.bf16.mxu0 %v9618_v42  ;;  %5798 = vmatpush1.bf16.msra.mxu1 %v9361_v40  ;;  %v2650_v46 = vld [vmem:[#allocation6 + $0xe0] sm:$0xff]  ;;  %v122_v40 = vld [vmem:[%s12488_s1 + $0xf0] sm:$0xff] }
  0x6f   :  { %v2902_v47 = vld [vmem:[#allocation6 + $0x8c0] sm:$0xff]  ;;  %5880 = vmatpush1.bf16.msra.mxu0 %v9617_v43  ;;  %v9370_v48 = vcombine.high %v2646_v45, %v2650_v46  ;;  %v9369_v50 = vcombine.low %v2646_v45, %v2650_v46 }
  0x70   :  { %v2906_v49 = vld [vmem:[#allocation6 + $0x8e0] sm:$0xff] }
  0x71   :  { %1114 = vperm.xlu1 %10353, %v104_v11   ;;  %816 = vperm.xlu0 %10352, %v102_v12   ;;  %v9626_v53 = vcombine.high %v2902_v47, %v2906_v49  ;;  %v9625_v54 = vcombine.low %v2902_v47, %v2906_v49  ;;  %v2654_v55 = vld [vmem:[#allocation6 + $0x100] sm:$0xff] }
  0x72   :  { %5799 = vmatprep.subr.bf16.mxu1 %v9370_v48  ;;  %v2658_v56 = vld [vmem:[#allocation6 + $0x120] sm:$0xff] }
  0x73   :  { %5881 = vmatprep.subr.bf16.mxu0 %v9626_v53  ;;  %5800 = vmatpush1.bf16.msra.mxu1 %v9369_v50  ;;  %v2910_v57 = vld [vmem:[#allocation6 + $0x900] sm:$0xff]  ;;  %v9378_v58 = vcombine.high %v2654_v55, %v2658_v56  ;;  %v9377_v60 = vcombine.low %v2654_v55, %v2658_v56 }
  0x74   :  { %5882 = vmatpush1.bf16.msra.mxu0 %v9625_v54  ;;  %v2914_v59 = vld [vmem:[#allocation6 + $0x920] sm:$0xff] }
  0x75   :  { %821 = vperm.xlu1 %10353, %v103_v13   ;;  %1119 = vperm.xlu0 %10352, %v105_v14   ;;  %v9634_v61 = vcombine.high %v2910_v57, %v2914_v59  ;;  %v9633_v62 = vcombine.low %v2910_v57, %v2914_v59  ;;  %v116_v63 = vld [vmem:[%s12488_s1 + $0xc0] sm:$0xff] }
  0x76   :  { %5801 = vmatprep.subr.bf16.mxu1 %v9378_v58  ;;  %v2662_v1 = vld [vmem:[#allocation6 + $0x140] sm:$0xff] }
  0x77   :  { %5883 = vmatprep.subr.bf16.mxu0 %v9634_v61  ;;  %5802 = vmatpush1.bf16.msra.mxu1 %v9377_v60  ;;  %v2666_v2 = vld [vmem:[#allocation6 + $0x160] sm:$0xff] }
  0x78   :  { %v2918_v3 = vld [vmem:[#allocation6 + $0x940] sm:$0xff]  ;;  %5884 = vmatpush1.bf16.msra.mxu0 %v9633_v62  ;;  %v9386_v4 = vcombine.high %v2662_v1, %v2666_v2  ;;  %v9385_v6 = vcombine.low %v2662_v1, %v2666_v2 }
  0x79   :  { %1422 = vperm.xlu1 %10353, %v108_v21   ;;  %1124 = vperm.xlu0 %10352, %v106_v22   ;;  %v2922_v5 = vld [vmem:[#allocation6 + $0x960] sm:$0xff] }
  0x7a   :  { %v9642_v7 = vcombine.high %v2918_v3, %v2922_v5  ;;  %v9641_v8 = vcombine.low %v2918_v3, %v2922_v5  ;;  %5803 = vmatprep.subr.bf16.mxu1 %v9386_v4  ;;  %v2670_v11 = vld [vmem:[#allocation6 + $0x180] sm:$0xff] }
  0x7b   :  { %5804 = vmatpush1.bf16.msra.mxu1 %v9385_v6  ;;  %v2674_v12 = vld [vmem:[#allocation6 + $0x1a0] sm:$0xff] }
  0x7c   :  { %5885 = vmatprep.subr.bf16.mxu0 %v9642_v7  ;;  %v2926_v13 = vld [vmem:[#allocation6 + $0x980] sm:$0xff]  ;;  %v9394_v14 = vcombine.high %v2670_v11, %v2674_v12  ;;  %v9393_v16 = vcombine.low %v2670_v11, %v2674_v12 }
  0x7d   :  { %1129 = vperm.xlu1 %10353, %v107_v33   ;;  %1427 = vperm.xlu0 %10352, %v109_v34   ;;  %v2930_v15 = vld [vmem:[#allocation6 + $0x9a0] sm:$0xff] }
  0x7e   :  { %5886 = vmatpush1.bf16.msra.mxu0 %v9641_v8  ;;  %v9650_v17 = vcombine.high %v2926_v13, %v2930_v15  ;;  %v9649_v18 = vcombine.low %v2926_v13, %v2930_v15  ;;  %v120_v19 = vld [vmem:[%s12488_s1 + $0xe0] sm:$0xff]  ;;  %5805 = vmatprep.subr.bf16.mxu1 %v9394_v14 }
  0x7f   :  { %5806 = vmatpush1.bf16.msra.mxu1 %v9393_v16  ;;  %v2678_v21 = vld [vmem:[#allocation6 + $0x1c0] sm:$0xff] }
  0x80   :  { %5887 = vmatprep.subr.bf16.mxu0 %v9650_v17  ;;  %v2682_v22 = vld [vmem:[#allocation6 + $0x1e0] sm:$0xff] }
  0x81   :  { %1730 = vperm.xlu1 %10353, %v112_v41   ;;  %1432 = vperm.xlu0 %10352, %v110_v44   ;;  %v2934_v23 = vld [vmem:[#allocation6 + $0x9c0] sm:$0xff]  ;;  %v9402_v24 = vcombine.high %v2678_v21, %v2682_v22  ;;  %v9401_v26 = vcombine.low %v2678_v21, %v2682_v22 }
  0x82   :  { %5888 = vmatpush1.bf16.msra.mxu0 %v9649_v18  ;;  %v2938_v25 = vld [vmem:[#allocation6 + $0x9e0] sm:$0xff] }
  0x83   :  { %v9658_v27 = vcombine.high %v2934_v23, %v2938_v25  ;;  %v9657_v28 = vcombine.low %v2934_v23, %v2938_v25  ;;  %5807 = vmatprep.subr.bf16.mxu1 %v9402_v24  ;;  %v2686_v31 = vld [vmem:[#allocation6 + $0x200] sm:$0xff] }
  0x84   :  { %5808 = vmatpush1.bf16.msra.mxu1 %v9401_v26  ;;  %v2690_v32 = vld [vmem:[#allocation6 + $0x220] sm:$0xff] }
  0x85   :  { %1437 = vperm.xlu1 %10353, %v111_v51   ;;  %1735 = vperm.xlu0 %10352, %v113_v52   ;;  %v2942_v33 = vld [vmem:[#allocation6 + $0xa00] sm:$0xff]  ;;  %v9410_v34 = vcombine.high %v2686_v31, %v2690_v32  ;;  %v9409_v36 = vcombine.low %v2686_v31, %v2690_v32 }
  0x86   :  { %5889 = vmatprep.subr.bf16.mxu0 %v9658_v27  ;;  %v2946_v35 = vld [vmem:[#allocation6 + $0xa20] sm:$0xff] }
  0x87   :  { %5890 = vmatpush1.bf16.msra.mxu0 %v9657_v28  ;;  %v9666_v37 = vcombine.high %v2942_v33, %v2946_v35  ;;  %v9665_v38 = vcombine.low %v2942_v33, %v2946_v35  ;;  %5809 = vmatprep.subr.bf16.mxu1 %v9410_v34  ;;  %v2694_v41 = vld [vmem:[#allocation6 + $0x240] sm:$0xff] }
  0x88   :  { %5810 = vmatpush1.bf16.msra.mxu1 %v9409_v36  ;;  %v2698_v42 = vld [vmem:[#allocation6 + $0x260] sm:$0xff] }
  0x89   :  { %2038 = vperm.xlu1 %10353, %v116_v63   ;;  %1740 = vperm.xlu0 %10352, %v114_v0   ;;  %v2950_v43 = vld [vmem:[#allocation6 + $0xa40] sm:$0xff]  ;;  %v9418_v44 = vcombine.high %v2694_v41, %v2698_v42  ;;  %v9417_v46 = vcombine.low %v2694_v41, %v2698_v42  ;;  %v129_v41 = vld [vmem:[#allocation3 + $0x28] sm:$0xff] }
  0x8a   :  { %5891 = vmatprep.subr.bf16.mxu0 %v9666_v37  ;;  %v2954_v45 = vld [vmem:[#allocation6 + $0xa60] sm:$0xff]  ;;  %v125_v37 = vld [vmem:[#allocation3 + $0x8] sm:$0xff] }
  0x8b   :  { %5892 = vmatpush1.bf16.msra.mxu0 %v9665_v38  ;;  %v2702_v47 = vld [vmem:[#allocation6 + $0x280] sm:$0xff]  ;;  %v9674_v49 = vcombine.high %v2950_v43, %v2954_v45  ;;  %v9673_v50 = vcombine.low %v2950_v43, %v2954_v45  ;;  %5811 = vmatprep.subr.bf16.mxu1 %v9418_v44  ;;  %v157_v38 = vld [vmem:[#allocation3 + $0x808] sm:$0xff] }
  0x8c   :  { %v2706_v48 = vld [vmem:[#allocation6 + $0x2a0] sm:$0xff]  ;;  %5812 = vmatpush1.bf16.msra.mxu1 %v9417_v46  ;;  %v161_v42 = vld [vmem:[#allocation3 + $0x828] sm:$0xff] }
  0x8d   :  { %1745 = vperm.xlu1 %10353, %v115_v9   ;;  %2043 = vperm.xlu0 %10352, %v117_v10   ;;  %v9426_v51 = vcombine.high %v2702_v47, %v2706_v48  ;;  %v2958_v52 = vld [vmem:[#allocation6 + $0xa80] sm:$0xff]  ;;  %v9425_v59 = vcombine.low %v2702_v47, %v2706_v48  ;;  %v437_v43 = vld [vmem:[#allocation3 + $0x128] sm:$0xff] }
  0x8e   :  { %v2962_v53 = vld [vmem:[#allocation6 + $0xaa0] sm:$0xff]  ;;  %5893 = vmatprep.subr.bf16.mxu0 %v9674_v49  ;;  %v469_v44 = vld [vmem:[#allocation3 + $0x928] sm:$0xff] }
  0x8f   :  { %v2710_v54 = vld [vmem:[#allocation6 + $0x2c0] sm:$0xff]  ;;  %v9682_v55 = vcombine.high %v2958_v52, %v2962_v53  ;;  %5894 = vmatpush1.bf16.msra.mxu0 %v9673_v50  ;;  %5813 = vmatprep.subr.bf16.mxu1 %v9426_v51  ;;  %v9681_v60 = vcombine.low %v2958_v52, %v2962_v53  ;;  %v133_v49 = vld [vmem:[#allocation3 + $0x48] sm:$0xff]  ;;  %v11296_v53 = vstv %s12489_s2  ;;  %s11084_s2 = smov [#allocation12]  }
  0x90   :  { %v2714_v56 = vld [vmem:[#allocation6 + $0x2e0] sm:$0xff]  ;;  %5814 = vmatpush1.bf16.msra.mxu1 %v9425_v59  ;;  %v165_v50 = vld [vmem:[#allocation3 + $0x848] sm:$0xff]  ;;  %12621 = vst [vmem:[#allocation21_spill] sm:$0xff] %v11296_v53  ;;  %s9334_s23 = sshll.u32 %s11084_s2, 4  ;;  %s9335_s23 = int_to_ptr.vmem [resolvable:$true] %s9334_s23 }
  0x91   :  { %2346 = vperm.xlu1 %10353, %v120_v19   ;;  %2048 = vperm.xlu0 %10352, %v118_v20   ;;  %v2966_v57 = vld [vmem:[#allocation6 + $0xac0] sm:$0xff]  ;;  %v9434_v61 = vcombine.high %v2710_v54, %v2714_v56  ;;  %v9433_v3 = vcombine.low %v2710_v54, %v2714_v56  ;;  %v441_v51 = vld [vmem:[#allocation3 + $0x148] sm:$0xff]  ;;  %s11041_s24 = scalar_lea.vmem %s9335_s23, 192  ;;  %p11046_p13 = scmp.lt.s32.totalorder %s9335_s23, %s9335_s23 }
  0x92   :  { %v2970_v58 = vld [vmem:[#allocation6 + $0xae0] sm:$0xff]  ;;  %5895 = vmatprep.subr.bf16.mxu0 %v9682_v55  ;;  %v473_v52 = vld [vmem:[#allocation3 + $0x948] sm:$0xff]  ;;  %p11042_p12 = scmp.ne.s32.totalorder %s9335_s23, %s11041_s24  ;;  %p11047_p0 = scmp.lt.s32.totalorder %s11041_s24, %s11041_s24 }
  0x93   :  { %v9690_v62 = vcombine.high %v2966_v57, %v2970_v58  ;;  %v2718_v63 = vld [vmem:[#allocation6 + $0x300] sm:$0xff]  ;;  %5896 = vmatpush1.bf16.msra.mxu0 %v9681_v60  ;;  %5815 = vmatprep.subr.bf16.mxu1 %v9434_v61  ;;  %v9689_v4 = vcombine.low %v2966_v57, %v2970_v58  ;;  %v137_v54 = vld [vmem:[#allocation3 + $0x68] sm:$0xff] }
  0x94   :  { %v2722_v0 = vld [vmem:[#allocation6 + $0x320] sm:$0xff]  ;;  %5816 = vmatpush1.bf16.msra.mxu1 %v9433_v3  ;;  %v169_v55 = vld [vmem:[#allocation3 + $0x868] sm:$0xff]  ;;  %p11048_p1 = por %p11047_p0, %p11046_p13 }
  0x95   :  { %2053 = vperm.xlu1 %10353, %v119_v29   ;;  %2351 = vperm.xlu0 %10352, %v121_v30   ;;  %v2974_v1 = vld [vmem:[#allocation6 + $0xb00] sm:$0xff]  ;;  %v9442_v5 = vcombine.high %v2718_v63, %v2722_v0  ;;  %v9441_v11 = vcombine.low %v2718_v63, %v2722_v0  ;;  %v445_v56 = vld [vmem:[#allocation3 + $0x168] sm:$0xff] }
  0x96   :  { %v2978_v2 = vld [vmem:[#allocation6 + $0xb20] sm:$0xff]  ;;  %5897 = vmatprep.subr.bf16.mxu0 %v9690_v62  ;;  %v477_v57 = vld [vmem:[#allocation3 + $0x968] sm:$0xff]  ;;  %p11049_p2 = pnand %p11048_p1, %p11042_p12 }
  0x97   :  { %v9698_v6 = vcombine.high %v2974_v1, %v2978_v2  ;;  %v2726_v7 = vld [vmem:[#allocation6 + $0x340] sm:$0xff]  ;;  %5898 = vmatpush1.bf16.msra.mxu0 %v9689_v4  ;;  %5817 = vmatprep.subr.bf16.mxu1 %v9442_v5  ;;  %v9697_v12 = vcombine.low %v2974_v1, %v2978_v2 }
  0x98   :  { %v2730_v8 = vld [vmem:[#allocation6 + $0x360] sm:$0xff]  ;;  %5818 = vmatpush1.bf16.msra.mxu1 %v9441_v11 }
  0x99   :  { %2361 = vperm.xlu1 %10353, %v123_v39   ;;  %2356 = vperm.xlu0 %10352, %v122_v40   ;;  %v2982_v9 = vld [vmem:[#allocation6 + $0xb40] sm:$0xff]  ;;  %v9450_v13 = vcombine.high %v2726_v7, %v2730_v8  ;;  %v9449_v19 = vcombine.low %v2726_v7, %v2730_v8  ;;  %v433_v39 = vld [vmem:[#allocation3 + $0x108] sm:$0xff] }
  0x9a   :  { %v2986_v10 = vld [vmem:[#allocation6 + $0xb60] sm:$0xff]  ;;  %5899 = vmatprep.subr.bf16.mxu0 %v9698_v6  ;;  %v465_v40 = vld [vmem:[#allocation3 + $0x908] sm:$0xff] }
  0x9b   :  { %v9706_v14 = vcombine.high %v2982_v9, %v2986_v10  ;;  %v2734_v15 = vld [vmem:[#allocation6 + $0x380] sm:$0xff]  ;;  %5900 = vmatpush1.bf16.msra.mxu0 %v9697_v12  ;;  %5819 = vmatprep.subr.bf16.mxu1 %v9450_v13  ;;  %v9705_v20 = vcombine.low %v2982_v9, %v2986_v10  ;;  %v141_v6 = vld [vmem:[#allocation3 + $0x88] sm:$0xff] }
  0x9c   :  { %v2738_v16 = vld [vmem:[#allocation6 + $0x3a0] sm:$0xff]  ;;  %5820 = vmatpush1.bf16.msra.mxu1 %v9449_v19  ;;  %v173_v7 = vld [vmem:[#allocation3 + $0x888] sm:$0xff] }
  0x9d   :  { %v2990_v17 = vld [vmem:[#allocation6 + $0xb80] sm:$0xff]  ;;  %v9458_v21 = vcombine.high %v2734_v15, %v2738_v16  ;;  %5901 = vmatprep.subr.bf16.mxu0 %v9706_v14  ;;  %v9457_v27 = vcombine.low %v2734_v15, %v2738_v16  ;;  %v449_v8 = vld [vmem:[#allocation3 + $0x188] sm:$0xff] }
  0x9e   :  { %v2994_v18 = vld [vmem:[#allocation6 + $0xba0] sm:$0xff]  ;;  %v481_v9 = vld [vmem:[#allocation3 + $0x988] sm:$0xff] }
  0x9f   :  { %v2742_v22 = vld [vmem:[#allocation6 + $0x3c0] sm:$0xff]  ;;  %v9714_v24 = vcombine.high %v2990_v17, %v2994_v18  ;;  %5902 = vmatpush1.bf16.msra.mxu0 %v9705_v20  ;;  %5821 = vmatprep.subr.bf16.mxu1 %v9458_v21  ;;  %v9713_v28 = vcombine.low %v2990_v17, %v2994_v18  ;;  %v145_v18 = vld [vmem:[#allocation3 + $0xa8] sm:$0xff] }
  0xa0   :  { %v2746_v23 = vld [vmem:[#allocation6 + $0x3e0] sm:$0xff]  ;;  %5822 = vmatpush1.bf16.msra.mxu1 %v9457_v27  ;;  %v177_v19 = vld [vmem:[#allocation3 + $0x8a8] sm:$0xff] }
  0xa1   :  { %v2998_v25 = vld [vmem:[#allocation6 + $0xbc0] sm:$0xff]  ;;  %v9466_v29 = vcombine.high %v2742_v22, %v2746_v23  ;;  %5903 = vmatprep.subr.bf16.mxu0 %v9714_v24  ;;  %v9465_v31 = vcombine.low %v2742_v22, %v2746_v23  ;;  %v453_v20 = vld [vmem:[#allocation3 + $0x1a8] sm:$0xff] }
  0xa2   :  { %v3002_v26 = vld [vmem:[#allocation6 + $0xbe0] sm:$0xff]  ;;  %v485_v23 = vld [vmem:[#allocation3 + $0x9a8] sm:$0xff] }
  0xa3   :  { %v9722_v30 = vcombine.high %v2998_v25, %v3002_v26  ;;  %5904 = vmatpush1.bf16.msra.mxu0 %v9713_v28  ;;  %5823 = vmatprep.subr.bf16.mxu1 %v9466_v29  ;;  %v9721_v32 = vcombine.low %v2998_v25, %v3002_v26  ;;  %v11281_v33 = vld [vmem:[#allocation6 + $0x400] sm:$0xff] }
  0xa4   :  { %5824 = vmatpush1.bf16.msra.mxu1 %v9465_v31  ;;  %12617 = vst [vmem:[#allocation17_spill] sm:$0xff] %v11281_v33  ;;  %v11283_v34 = vld [vmem:[#allocation6 + $0x420] sm:$0xff] }
  0xa5   :  { %5905 = vmatprep.subr.bf16.mxu0 %v9722_v30  ;;  %12618 = vst [vmem:[#allocation18_spill] sm:$0xff] %v11283_v34  ;;  %v9474_v36 = vcombine.high %v11281_v33, %v11283_v34  ;;  %v124_v45 = vld [vmem:[#allocation3] sm:$0xff]  ;;  %v1397_v33 = vld [vmem:[#allocation3 + $0xc48] sm:$0xff] }
  0xa6   :  { %v156_v46 = vld [vmem:[#allocation3 + $0x800] sm:$0xff] }
  0xa7   :  { %5906 = vmatpush1.bf16.msra.mxu0 %v9721_v32  ;;  %5834 = vmatprep.subr.bf16.mxu1 %v9474_v36  ;;  %v432_v58 = vld [vmem:[#allocation3 + $0x100] sm:$0xff]  ;;  %v741_v32 = vld [vmem:[#allocation3 + $0x208] sm:$0xff] }
  0xa8   :  { %v464_v59 = vld [vmem:[#allocation3 + $0x900] sm:$0xff]  ;;  %v749_v36 = vld [vmem:[#allocation3 + $0x248] sm:$0xff] }
  0xdc   :  { %v11289_v47 = vpop.permute.xlu1 %498  ;;  %v11291_v48 = vpop.permute.xlu0 %190 }
  0xdd   :  { %12619 = vst [vmem:[#allocation19_spill] sm:$0xff] %v11289_v47  ;;  %12620 = vst [vmem:[#allocation20_spill] sm:$0xff] %v11291_v48  ;;  %v209_v60 = vmul.f32 %v11291_v48, %v125_v37  ;;  %v241_v61 = vmul.f32 %v11291_v48, %v157_v38  ;;  %v517_v62 = vmul.f32 %v11289_v47, %v433_v39  ;;  %v773_v37 = vld [vmem:[#allocation3 + $0xa08] sm:$0xff] }
  0xde   :  { %v549_v63 = vmul.f32 %v11289_v47, %v465_v40  ;;  %v213_v0 = vmul.f32 %v11291_v48, %v129_v41  ;;  %v245_v1 = vmul.f32 %v11291_v48, %v161_v42  ;;  %v521_v2 = vmul.f32 %v11289_v47, %v437_v43  ;;  %v781_v38 = vld [vmem:[#allocation3 + $0xa48] sm:$0xff] }
  0xdf   :  { %v553_v3 = vmul.f32 %v11289_v47, %v469_v44  ;;  %v11311_v10 = vmul.f32 %v11291_v48, %v124_v45  ;;  %v11314_v11 = vmul.f32 %v11291_v48, %v156_v46  ;;  %v11317_v12 = vmul.f32 %v11289_v47, %v432_v58  ;;  %v11342_v58 = vld [vmem:[#allocation6 + $0xc00] sm:$0xff] }
  0xe0   :  { %v11306_v4 = vpop.permute.xlu1 %503  ;;  %v11308_v5 = vpop.permute.xlu0 %195  ;;  %v11320_v13 = vmul.f32 %v11289_v47, %v464_v59  ;;  %12630 = vst [vmem:[#allocation30_spill] sm:$0xff] %v11342_v58  ;;  %v11344_v59 = vld [vmem:[#allocation6 + $0xc20] sm:$0xff] }
  0xe1   :  { %12622 = vst [vmem:[#allocation22_spill] sm:$0xff] %v11306_v4  ;;  %12623 = vst [vmem:[#allocation23_spill] sm:$0xff] %v11308_v5  ;;  %v217_v14 = vmul.f32 %v11308_v5, %v133_v49  ;;  %v249_v15 = vmul.f32 %v11308_v5, %v165_v50  ;;  %v525_v16 = vmul.f32 %v11306_v4, %v441_v51  ;;  %v745_v49 = vld [vmem:[#allocation3 + $0x228] sm:$0xff] }
  0xe2   :  { %12624 = vst [vmem:[#allocation24_spill] sm:$0xff] %v11311_v10  ;;  %12625 = vst [vmem:[#allocation25_spill] sm:$0xff] %v11314_v11  ;;  %v557_v17 = vmul.f32 %v11306_v4, %v473_v52  ;;  %v221_v21 = vmul.f32 %v11308_v5, %v137_v54  ;;  %v253_v22 = vmul.f32 %v11308_v5, %v169_v55  ;;  %v753_v50 = vld [vmem:[#allocation3 + $0x268] sm:$0xff] }
  0xe3   :  { %12626 = vst [vmem:[#allocation26_spill] sm:$0xff] %v11317_v12  ;;  %12627 = vst [vmem:[#allocation27_spill] sm:$0xff] %v11320_v13  ;;  %v529_v24 = vmul.f32 %v11306_v4, %v445_v56  ;;  %v561_v25 = vmul.f32 %v11306_v4, %v477_v57  ;;  %v281_v26 = vadd.f32 %v217_v14, %v209_v60  ;;  %v777_v51 = vld [vmem:[#allocation3 + $0xa28] sm:$0xff] }
  0xe4   :  { %v353_v27 = vadd.f32 %v249_v15, %v241_v61  ;;  %v589_v28 = vadd.f32 %v525_v16, %v517_v62  ;;  %v661_v29 = vadd.f32 %v557_v17, %v549_v63  ;;  %v11330_v30 = vpop.permute.xlu1 %508  ;;  %v11332_v31 = vpop.permute.xlu0 %200  ;;  %v317_v39 = vadd.f32 %v221_v21, %v213_v0  ;;  %v785_v57 = vld [vmem:[#allocation3 + $0xa68] sm:$0xff]  ;;  %12631 = vst [vmem:[#allocation31_spill] sm:$0xff] %v11344_v59 }
  0xe5   :  { %12628 = vst [vmem:[#allocation28_spill] sm:$0xff] %v11330_v30  ;;  %12629 = vst [vmem:[#allocation29_spill] sm:$0xff] %v11332_v31  ;;  %v389_v40 = vadd.f32 %v253_v22, %v245_v1  ;;  %v625_v41 = vadd.f32 %v529_v24, %v521_v2  ;;  %v697_v42 = vadd.f32 %v561_v25, %v553_v3  ;;  %v149_v2 = vld [vmem:[#allocation3 + $0xc8] sm:$0xff]  ;;  %v140_v24 = vld [vmem:[#allocation3 + $0x80] sm:$0xff] }
  0xe6   :  { %v225_v43 = vmul.f32 %v11332_v31, %v141_v6  ;;  %v257_v44 = vmul.f32 %v11332_v31, %v173_v7  ;;  %v533_v45 = vmul.f32 %v11330_v30, %v449_v8  ;;  %v565_v46 = vmul.f32 %v11330_v30, %v481_v9  ;;  %v181_v3 = vld [vmem:[#allocation3 + $0x8c8] sm:$0xff] }
  0xe7   :  { %v229_v52 = vmul.f32 %v11332_v31, %v145_v18  ;;  %v261_v54 = vmul.f32 %v11332_v31, %v177_v19  ;;  %v537_v55 = vmul.f32 %v11330_v30, %v453_v20  ;;  %v569_v56 = vmul.f32 %v11330_v30, %v485_v23  ;;  %v457_v6 = vld [vmem:[#allocation3 + $0x1c8] sm:$0xff]  ;;  %v132_v23 = vld [vmem:[#allocation3 + $0x40] sm:$0xff] }
  0xe8   :  { %v282_v60 = vadd.f32 %v281_v26, %v225_v43  ;;  %v354_v61 = vadd.f32 %v353_v27, %v257_v44  ;;  %v590_v62 = vadd.f32 %v589_v28, %v533_v45  ;;  %v662_v63 = vadd.f32 %v661_v29, %v565_v46  ;;  %v11346_v0 = vpop.permute.xlu1 %811  ;;  %v11348_v1 = vpop.permute.xlu0 %806  ;;  %v489_v7 = vld [vmem:[#allocation3 + $0x9c8] sm:$0xff] }
  0xe9   :  { %12632 = vst [vmem:[#allocation32_spill] sm:$0xff] %v11346_v0  ;;  %12633 = vst [vmem:[#allocation33_spill] sm:$0xff] %v11348_v1  ;;  %v318_v8 = vadd.f32 %v317_v39, %v229_v52  ;;  %v390_v9 = vadd.f32 %v389_v40, %v261_v54  ;;  %v626_v14 = vadd.f32 %v625_v41, %v537_v55  ;;  %v153_v20 = vld [vmem:[#allocation3 + $0xe8] sm:$0xff] }
  0xea   :  { %v698_v15 = vadd.f32 %v697_v42, %v569_v56  ;;  %v825_v16 = vmul.f32 %v11348_v1, %v741_v32  ;;  %v833_v17 = vmul.f32 %v11346_v0, %v749_v36  ;;  %v857_v18 = vmul.f32 %v11348_v1, %v773_v37  ;;  %v185_v21 = vld [vmem:[#allocation3 + $0x8e8] sm:$0xff] }
  0xeb   :  { %v865_v19 = vmul.f32 %v11346_v0, %v781_v38  ;;  %v461_v22 = vld [vmem:[#allocation3 + $0x1e8] sm:$0xff]  ;;  %v829_v26 = vmul.f32 %v11348_v1, %v745_v49  ;;  %v837_v27 = vmul.f32 %v11346_v0, %v753_v50  ;;  %v861_v28 = vmul.f32 %v11348_v1, %v777_v51 }
  0xec   :  { %v493_v25 = vld [vmem:[#allocation3 + $0x9e8] sm:$0xff]  ;;  %v869_v29 = vmul.f32 %v11346_v0, %v785_v57  ;;  %v897_v32 = vadd.f32 %v833_v17, %v825_v16  ;;  %v9730_v38 = vcombine.high %v11342_v58, %v11344_v59  ;;  %v11362_v39 = vpop.permute.xlu1 %513  ;;  %v11364_v40 = vpop.permute.xlu0 %205  ;;  %v11371_v43 = vmul.f32 %v11308_v5, %v132_v23 }
  0xed   :  { %v969_v36 = vadd.f32 %v865_v19, %v857_v18  ;;  %12634 = vst [vmem:[#allocation34_spill] sm:$0xff] %v11362_v39  ;;  %12635 = vst [vmem:[#allocation35_spill] sm:$0xff] %v11364_v40  ;;  %v11366_v41 = vadd.f32 %v837_v27, %v829_v26  ;;  %v11374_v44 = vmul.f32 %v11332_v31, %v140_v24  ;;  %v757_v51 = vld [vmem:[#allocation3 + $0x288] sm:$0xff] }
  0xee   :  { %v11368_v42 = vadd.f32 %v869_v29, %v861_v28  ;;  %12636 = vst [vmem:[#allocation36_spill] sm:$0xff] %v11371_v43  ;;  %v233_v45 = vmul.f32 %v11364_v40, %v149_v2  ;;  %v265_v46 = vmul.f32 %v11364_v40, %v181_v3  ;;  %v541_v49 = vmul.f32 %v11362_v39, %v457_v6  ;;  %v789_v52 = vld [vmem:[#allocation3 + $0xa88] sm:$0xff] }
  0xef   :  { %12637 = vst [vmem:[#allocation37_spill] sm:$0xff] %v11374_v44  ;;  %v573_v50 = vmul.f32 %v11362_v39, %v489_v7  ;;  %v1049_v54 = vld [vmem:[#allocation3 + $0x308] sm:$0xff]  ;;  %5916 = vmatprep.subr.bf16.mxu0 %v9730_v38  ;;  %v237_v56 = vmul.f32 %v11364_v40, %v153_v20  ;;  %v269_v57 = vmul.f32 %v11364_v40, %v185_v21 }
  0xf0   :  { %v1081_v55 = vld [vmem:[#allocation3 + $0xb08] sm:$0xff]  ;;  %v545_v16 = vmul.f32 %v11362_v39, %v461_v22  ;;  %v577_v17 = vmul.f32 %v11362_v39, %v493_v25  ;;  %v283_v2 = vadd.f32 %v282_v60, %v233_v45  ;;  %v355_v18 = vadd.f32 %v354_v61, %v265_v46  ;;  %v11384_v6 = vpop.permute.xlu1 %1114  ;;  %v11386_v7 = vpop.permute.xlu0 %816 }
  0xf1   :  { %v591_v3 = vadd.f32 %v590_v62, %v541_v49  ;;  %v663_v19 = vadd.f32 %v662_v63, %v573_v50  ;;  %12638 = vst [vmem:[#allocation38_spill] sm:$0xff] %v11384_v6  ;;  %v11388_v23 = vadd.f32 %v318_v8, %v237_v56  ;;  %v11390_v24 = vadd.f32 %v390_v9, %v269_v57  ;;  %v765_v60 = vld [vmem:[#allocation3 + $0x2c8] sm:$0xff] }
  0xf2   :  { %v11392_v26 = vadd.f32 %v626_v14, %v545_v16  ;;  %v11394_v20 = vadd.f32 %v698_v15, %v577_v17  ;;  %v284_v21 = vrot.slane %v283_v2, 4  ;;  %v356_v22 = vrot.slane %v355_v18, 4  ;;  %v797_v61 = vld [vmem:[#allocation3 + $0xac8] sm:$0xff] }
  0xf3   :  { %v592_v27 = vrot.slane %v591_v3, 4  ;;  %v664_v25 = vrot.slane %v663_v19, 4  ;;  %v841_v62 = vmul.f32 %v11386_v7, %v757_v51  ;;  %v873_v63 = vmul.f32 %v11386_v7, %v789_v52  ;;  %v1057_v28 = vld [vmem:[#allocation3 + $0x348] sm:$0xff] }
  0xf4   :  { %v1089_v29 = vld [vmem:[#allocation3 + $0xb48] sm:$0xff]  ;;  %v1133_v8 = vmul.f32 %v11384_v6, %v1049_v54  ;;  %v1165_v9 = vmul.f32 %v11384_v6, %v1081_v55  ;;  %v285_v14 = vadd.f32 %v284_v21, %v283_v2  ;;  %v357_v38 = vadd.f32 %v356_v22, %v355_v18  ;;  %v11400_v46 = vpop.permute.xlu1 %821  ;;  %v11402_v49 = vpop.permute.xlu0 %1119 }
  0xf5   :  { %v593_v15 = vadd.f32 %v592_v27, %v591_v3  ;;  %v665_v45 = vadd.f32 %v664_v25, %v663_v19  ;;  %12639 = vst [vmem:[#allocation39_spill] sm:$0xff] %v11400_v46  ;;  %12640 = vst [vmem:[#allocation40_spill] sm:$0xff] %v11402_v49  ;;  %v898_v50 = vadd.f32 %v897_v32, %v841_v62  ;;  %v1065_v18 = vld [vmem:[#allocation3 + $0x388] sm:$0xff] }
  0xf6   :  { %v970_v56 = vadd.f32 %v969_v36, %v873_v63  ;;  %v286_v57 = vrot.slane %v285_v14, 2  ;;  %v358_v16 = vrot.slane %v357_v38, 2  ;;  %v849_v55 = vmul.f32 %v11400_v46, %v765_v60  ;;  %v1097_v3 = vld [vmem:[#allocation3 + $0xb88] sm:$0xff] }
  0xf7   :  { %v594_v17 = vrot.slane %v593_v15, 2  ;;  %v666_v54 = vrot.slane %v665_v45, 2  ;;  %v881_v2 = vmul.f32 %v11400_v46, %v797_v61  ;;  %v1141_v19 = vmul.f32 %v11402_v49, %v1057_v28  ;;  %v1073_v58 = vld [vmem:[#allocation3 + $0x3c8] sm:$0xff] }
  0xf8   :  { %v1173_v21 = vmul.f32 %v11402_v49, %v1089_v29  ;;  %v287_v32 = vadd.f32 %v286_v57, %v285_v14  ;;  %v359_v36 = vadd.f32 %v358_v16, %v357_v38  ;;  %v11410_v25 = vpop.permute.xlu1 %1422  ;;  %v11412_v62 = vpop.permute.xlu0 %1124  ;;  %v899_v63 = vadd.f32 %v898_v50, %v849_v55  ;;  %v1357_v28 = vld [vmem:[#allocation3 + $0x408] sm:$0xff] }
  0xf9   :  { %v595_v22 = vadd.f32 %v594_v17, %v593_v15  ;;  %v667_v27 = vadd.f32 %v666_v54, %v665_v45  ;;  %12641 = vst [vmem:[#allocation41_spill] sm:$0xff] %v11410_v25  ;;  %12642 = vst [vmem:[#allocation42_spill] sm:$0xff] %v11412_v62  ;;  %v971_v37 = vadd.f32 %v970_v56, %v881_v2  ;;  %v1105_v14 = vld [vmem:[#allocation3 + $0xbc8] sm:$0xff] }
  0xfa   :  { %v1205_v35 = vadd.f32 %v1141_v19, %v1133_v8  ;;  %v1277_v60 = vadd.f32 %v1173_v21, %v1165_v9  ;;  %v288_v52 = vrot.slane %v287_v32, 1  ;;  %v360_v61 = vrot.slane %v359_v36, 1  ;;  %v1365_v45 = vld [vmem:[#allocation3 + $0x448] sm:$0xff] }
  0xfb   :  { %v596_v51 = vrot.slane %v595_v22, 1  ;;  %v668_v59 = vrot.slane %v667_v27, 1  ;;  %v900_v34 = vrot.slane %v899_v63, 4  ;;  %v972_v29 = vrot.slane %v971_v37, 4  ;;  %v1389_v57 = vld [vmem:[#allocation3 + $0xc08] sm:$0xff] }
  0xfc   :  { %v1149_v38 = vmul.f32 %v11412_v62, %v1065_v18  ;;  %v1181_v15 = vmul.f32 %v11412_v62, %v1097_v3  ;;  %v289_v16 = vadd.f32 %v288_v52, %v287_v32  ;;  %v361_v50 = vadd.f32 %v360_v61, %v359_v36  ;;  %v11416_v9 = vpop.permute.xlu1 %1129  ;;  %v11418_v17 = vpop.permute.xlu0 %1427  ;;  %v1373_v21 = vld [vmem:[#allocation3 + $0x488] sm:$0xff] }
  0xfd   :  { %v597_v56 = vadd.f32 %v596_v51, %v595_v22  ;;  %v669_v8 = vadd.f32 %v668_v59, %v667_v27  ;;  %12643 = vst [vmem:[#allocation43_spill] sm:$0xff] %v11416_v9  ;;  %12644 = vst [vmem:[#allocation44_spill] sm:$0xff] %v11418_v17  ;;  %v901_v54 = vadd.f32 %v900_v34, %v899_v63  ;;  %v1405_v52 = vld [vmem:[#allocation3 + $0xc88] sm:$0xff] }
  0xfe   :  { %v973_v55 = vadd.f32 %v972_v29, %v971_v37  ;;  %v1206_v2 = vadd.f32 %v1205_v35, %v1149_v38  ;;  %v1278_v19 = vadd.f32 %v1277_v60, %v1181_v15  ;;  %v1157_v3 = vmul.f32 %v11416_v9, %v1073_v58  ;;  %v1665_v32 = vld [vmem:[#allocation3 + $0x508] sm:$0xff] }
  0xff   :  { %v725_v47 = vadd.f32 %v597_v56, %v289_v16  ;;  %v733_v18 = vadd.f32 %v669_v8, %v361_v50  ;;  %v1189_v48 = vmul.f32 %v11416_v9, %v1105_v14  ;;  %v902_v51 = vrot.slane %v901_v54, 2  ;;  %v1697_v34 = vld [vmem:[#allocation3 + $0xd08] sm:$0xff] }
 0x100   :  { %v974_v59 = vrot.slane %v973_v55, 2  ;;  %v1441_v36 = vmul.f32 %v11410_v25, %v1357_v28  ;;  %v1449_v22 = vmul.f32 %v11418_v17, %v1365_v45  ;;  %v1207_v37 = vadd.f32 %v1206_v2, %v1157_v3  ;;  %v11426_v60 = vpop.permute.xlu1 %1730  ;;  %v11428_v58 = vpop.permute.xlu0 %1432  ;;  %v1381_v16 = vld [vmem:[#allocation3 + $0x4c8] sm:$0xff] }
 0x101   :  { %v1279_v35 = vadd.f32 %v1278_v19, %v1189_v48  ;;  %v1473_v27 = vmul.f32 %v11410_v25, %v1389_v57  ;;  %v1481_v63 = vmul.f32 %v11418_v17, %v1397_v33  ;;  %12645 = vst [vmem:[#allocation45_spill] sm:$0xff] %v11426_v60  ;;  %12646 = vst [vmem:[#allocation46_spill] sm:$0xff] %v11428_v58  ;;  %v12647_v38 = vrot.slane %v11388_v23, 4  ;;  %v1413_v56 = vld [vmem:[#allocation3 + $0xcc8] sm:$0xff] }
 0x102   :  { %v903_v61 = vadd.f32 %v902_v51, %v901_v54  ;;  %v975_v29 = vadd.f32 %v974_v59, %v973_v55  ;;  %v1513_v14 = vadd.f32 %v1449_v22, %v1441_v36  ;;  %v1208_v15 = vrot.slane %v1207_v37, 4  ;;  %v1673_v3 = vld [vmem:[#allocation3 + $0x548] sm:$0xff] }
 0x103   :  { %v321_v28 = vadd.f32 %v12647_v38, %v11388_v23  ;;  %v1280_v45 = vrot.slane %v1279_v35, 4  ;;  %v1457_v48 = vmul.f32 %v11428_v58, %v1373_v21  ;;  %v1489_v57 = vmul.f32 %v11428_v58, %v1405_v52  ;;  %v1705_v51 = vld [vmem:[#allocation3 + $0xd48] sm:$0xff] }
 0x104   :  { %v904_v50 = vrot.slane %v903_v61, 1  ;;  %v976_v33 = vrot.slane %v975_v29, 1  ;;  %v1585_v8 = vadd.f32 %v1481_v63, %v1473_v27  ;;  %v1749_v2 = vmul.f32 %v11426_v60, %v1665_v32  ;;  %v11437_v59 = vpop.permute.xlu1 %1437  ;;  %v11439_v36 = vpop.permute.xlu0 %1735  ;;  %v1973_v63 = vld [vmem:[#allocation3 + $0x608] sm:$0xff] }
 0x105   :  { %v1209_v54 = vadd.f32 %v1208_v15, %v1207_v37  ;;  %v1281_v55 = vadd.f32 %v1280_v45, %v1279_v35  ;;  %v1514_v19 = vadd.f32 %v1513_v14, %v1457_v48  ;;  %v1781_v23 = vmul.f32 %v11426_v60, %v1697_v34  ;;  %12648 = vst [vmem:[#allocation47_spill] sm:$0xff] %v11437_v59  ;;  %v1681_v37 = vld [vmem:[#allocation3 + $0x588] sm:$0xff] }
 0x106   :  { %12649 = vst [vmem:[#allocation48_spill] sm:$0xff] %v11439_v36  ;;  %v905_v21 = vadd.f32 %v904_v50, %v903_v61  ;;  %v977_v22 = vadd.f32 %v976_v33, %v975_v29  ;;  %v1586_v52 = vadd.f32 %v1585_v8, %v1489_v57  ;;  %v322_v38 = vrot.slane %v321_v28, 2  ;;  %v1713_v35 = vld [vmem:[#allocation3 + $0xd88] sm:$0xff] }
 0x107   :  { %v1210_v0 = vrot.slane %v1209_v54, 2  ;;  %v1282_v1 = vrot.slane %v1281_v55, 2  ;;  %v1465_v27 = vmul.f32 %v11437_v59, %v1381_v16  ;;  %v1497_v32 = vmul.f32 %v11437_v59, %v1413_v56  ;;  %v2005_v48 = vld [vmem:[#allocation3 + $0xe08] sm:$0xff] }
 0x108   :  { %v1033_v14 = vadd.f32 %v905_v21, %v725_v47  ;;  %v1041_v15 = vadd.f32 %v977_v22, %v733_v18  ;;  %v1757_v34 = vmul.f32 %v11439_v36, %v1673_v3  ;;  %v1789_v45 = vmul.f32 %v11439_v36, %v1705_v51  ;;  %v11445_v33 = vpop.permute.xlu1 %2038  ;;  %v11447_v8 = vpop.permute.xlu0 %1740  ;;  %v1689_v12 = vld [vmem:[#allocation3 + $0x5c8] sm:$0xff] }
 0x109   :  { %v1211_v61 = vadd.f32 %v1210_v0, %v1209_v54  ;;  %v1283_v29 = vadd.f32 %v1282_v1, %v1281_v55  ;;  %v1515_v57 = vadd.f32 %v1514_v19, %v1465_v27  ;;  %v1587_v50 = vadd.f32 %v1586_v52, %v1497_v32  ;;  %12650 = vst [vmem:[#allocation49_spill] sm:$0xff] %v11445_v33  ;;  %v1721_v0 = vld [vmem:[#allocation3 + $0xdc8] sm:$0xff] }
 0x10a   :  { %12651 = vst [vmem:[#allocation50_spill] sm:$0xff] %v11447_v8  ;;  %v1821_v16 = vadd.f32 %v1757_v34, %v1749_v2  ;;  %v1893_v56 = vadd.f32 %v1789_v45, %v1781_v23  ;;  %v323_v13 = vadd.f32 %v322_v38, %v321_v28  ;;  %v12652_v47 = vrot.slane %v11390_v24, 4  ;;  %v1981_v55 = vld [vmem:[#allocation3 + $0x648] sm:$0xff] }
 0x10b   :  { %v1212_v21 = vrot.slane %v1211_v61, 1  ;;  %v1284_v3 = vrot.slane %v1283_v29, 1  ;;  %v1516_v22 = vrot.slane %v1515_v57, 4  ;;  %v1588_v51 = vrot.slane %v1587_v50, 4  ;;  %v2029_v11 = vld [vmem:[#allocation3 + $0xec8] sm:$0xff] }
 0x10c   :  { %v393_v18 = vadd.f32 %v12652_v47, %v11390_v24  ;;  %v1765_v1 = vmul.f32 %v11447_v8, %v1681_v37  ;;  %v1797_v54 = vmul.f32 %v11447_v8, %v1713_v35  ;;  %v2057_v19 = vmul.f32 %v11445_v33, %v1973_v63  ;;  %v2013_v24 = vld [vmem:[#allocation3 + $0xe48] sm:$0xff]  ;;  %v11456_v27 = vpop.permute.xlu1 %1745  ;;  %v11458_v32 = vpop.permute.xlu0 %2043 }
 0x10d   :  { %v2089_v2 = vmul.f32 %v11445_v33, %v2005_v48  ;;  %v1213_v28 = vadd.f32 %v1212_v21, %v1211_v61  ;;  %v1285_v23 = vadd.f32 %v1284_v3, %v1283_v29  ;;  %v1517_v52 = vadd.f32 %v1516_v22, %v1515_v57  ;;  %12653 = vst [vmem:[#allocation51_spill] sm:$0xff] %v11456_v27  ;;  %v1989_v47 = vld [vmem:[#allocation3 + $0x688] sm:$0xff] }
 0x10e   :  { %v1589_v38 = vadd.f32 %v1588_v51, %v1587_v50  ;;  %12654 = vst [vmem:[#allocation52_spill] sm:$0xff] %v11458_v32  ;;  %v1822_v34 = vadd.f32 %v1821_v16, %v1765_v1  ;;  %v1894_v45 = vadd.f32 %v1893_v56, %v1797_v54  ;;  %v2021_v37 = vld [vmem:[#allocation3 + $0xe88] sm:$0xff]  ;;  %v324_v39 = vrot.slane %v323_v13, 1 }
 0x10f   :  { %v394_v35 = vrot.slane %v393_v18, 2  ;;  %v1341_v44 = vadd.f32 %v1213_v28, %v1033_v14  ;;  %v1349_v30 = vadd.f32 %v1285_v23, %v1041_v15  ;;  %v1518_v63 = vrot.slane %v1517_v52, 2  ;;  %v2281_v48 = vld [vmem:[#allocation3 + $0x708] sm:$0xff] }
 0x110   :  { %v1590_v4 = vrot.slane %v1589_v38, 2  ;;  %v2313_v61 = vld [vmem:[#allocation3 + $0xf08] sm:$0xff]  ;;  %v1773_v29 = vmul.f32 %v11456_v27, %v1689_v12  ;;  %v1805_v57 = vmul.f32 %v11456_v27, %v1721_v0  ;;  %v2065_v50 = vmul.f32 %v11458_v32, %v1981_v55  ;;  %v11466_v51 = vpop.permute.xlu1 %2346  ;;  %v11468_v14 = vpop.permute.xlu0 %2048 }
 0x111   :  { %v2097_v21 = vmul.f32 %v11458_v32, %v2013_v24  ;;  %v1519_v16 = vadd.f32 %v1518_v63, %v1517_v52  ;;  %v11464_v3 = vadd.f32 %v324_v39, %v323_v13  ;;  %v395_v22 = vadd.f32 %v394_v35, %v393_v18  ;;  %12655 = vst [vmem:[#allocation53_spill] sm:$0xff] %v11466_v51  ;;  %v1997_v0 = vld [vmem:[#allocation3 + $0x6c8] sm:$0xff] }
 0x112   :  { %v1591_v56 = vadd.f32 %v1590_v4, %v1589_v38  ;;  %12656 = vst [vmem:[#allocation54_spill] sm:$0xff] %v11468_v14  ;;  %v1823_v15 = vadd.f32 %v1822_v34, %v1773_v29  ;;  %v1895_v1 = vadd.f32 %v1894_v45, %v1805_v57  ;;  %v2129_v54 = vadd.f32 %v2065_v50, %v2057_v19  ;;  %v2289_v19 = vld [vmem:[#allocation3 + $0x748] sm:$0xff] }
 0x113   :  { %v2201_v28 = vadd.f32 %v2097_v21, %v2089_v2  ;;  %v1520_v12 = vrot.slane %v1519_v16, 1  ;;  %v2073_v55 = vmul.f32 %v11468_v14, %v1989_v47  ;;  %v2105_v52 = vmul.f32 %v11468_v14, %v2021_v37  ;;  %v2321_v2 = vld [vmem:[#allocation3 + $0xf48] sm:$0xff] }
 0x114   :  { %v1592_v23 = vrot.slane %v1591_v56, 1  ;;  %v1824_v4 = vrot.slane %v1823_v15, 4  ;;  %v1896_v13 = vrot.slane %v1895_v1, 4  ;;  %v2365_v39 = vmul.f32 %v11466_v51, %v2281_v48  ;;  %v11474_v35 = vpop.permute.xlu1 %2053  ;;  %v11476_v63 = vpop.permute.xlu0 %2351  ;;  %v2297_v57 = vld [vmem:[#allocation3 + $0x788] sm:$0xff] }
 0x115   :  { %v2397_v18 = vmul.f32 %v11466_v51, %v2313_v61  ;;  %v1521_v38 = vadd.f32 %v1520_v12, %v1519_v16  ;;  %v2130_v34 = vadd.f32 %v2129_v54, %v2073_v55  ;;  %v2202_v45 = vadd.f32 %v2201_v28, %v2105_v52  ;;  %12657 = vst [vmem:[#allocation55_spill] sm:$0xff] %v11474_v35  ;;  %v2305_v37 = vld [vmem:[#allocation3 + $0x7c8] sm:$0xff] }
 0x116   :  { %v1593_v24 = vadd.f32 %v1592_v23, %v1591_v56  ;;  %12658 = vst [vmem:[#allocation56_spill] sm:$0xff] %v11476_v63  ;;  %v1825_v29 = vadd.f32 %v1824_v4, %v1823_v15  ;;  %v1897_v47 = vadd.f32 %v1896_v13, %v1895_v1  ;;  %v396_v50 = vrot.slane %v395_v22, 1  ;;  %v2329_v56 = vld [vmem:[#allocation3 + $0xf88] sm:$0xff] }
 0x117   :  { %v628_v21 = vrot.slane %v11392_v26, 4  ;;  %v1649_v48 = vadd.f32 %v1521_v38, %v1341_v44  ;;  %v2081_v61 = vmul.f32 %v11474_v35, %v1997_v0  ;;  %v2113_v16 = vmul.f32 %v11474_v35, %v2029_v11  ;;  %v2337_v54 = vld [vmem:[#allocation3 + $0xfc8] sm:$0xff] }
 0x118   :  { %v1657_v43 = vadd.f32 %v1593_v24, %v1349_v30  ;;  %v1826_v28 = vrot.slane %v1825_v29, 2  ;;  %v1898_v12 = vrot.slane %v1897_v47, 2  ;;  %v2373_v23 = vmul.f32 %v11476_v63, %v2289_v19  ;;  %v11486_v44 = vpop.permute.xlu1 %2361  ;;  %v11488_v30 = vpop.permute.xlu0 %2356 }
 0x119   :  { %v2405_v15 = vmul.f32 %v11476_v63, %v2321_v2  ;;  %v2131_v1 = vadd.f32 %v2130_v34, %v2081_v61  ;;  %v2203_v55 = vadd.f32 %v2202_v45, %v2113_v16  ;;  %v11483_v52 = vadd.f32 %v396_v50, %v395_v22  ;;  %12659 = vst [vmem:[#allocation57_spill] sm:$0xff] %v11486_v44 }
 0x11a   :  { %v629_v4 = vadd.f32 %v628_v21, %v11392_v26  ;;  %12660 = vst [vmem:[#allocation58_spill] sm:$0xff] %v11488_v30  ;;  %v1827_v0 = vadd.f32 %v1826_v28, %v1825_v29  ;;  %v1899_v11 = vadd.f32 %v1898_v12, %v1897_v47  ;;  %v2437_v13 = vadd.f32 %v2373_v23, %v2365_v39  ;;  %v761_v28 = vld [vmem:[#allocation3 + $0x2a8] sm:$0xff] }
 0x11b   :  { %v2509_v38 = vadd.f32 %v2405_v15, %v2397_v18  ;;  %v2132_v24 = vrot.slane %v2131_v1, 4  ;;  %v2204_v10 = vrot.slane %v2203_v55, 4  ;;  %v2381_v19 = vmul.f32 %v11488_v30, %v2297_v57  ;;  %v769_v12 = vld [vmem:[#allocation3 + $0x2e8] sm:$0xff] }
 0x11c   :  { %v2389_v2 = vmul.f32 %v11486_v44, %v2305_v37  ;;  %v1828_v34 = vrot.slane %v1827_v0, 1  ;;  %v1900_v45 = vrot.slane %v1899_v11, 1  ;;  %v2413_v22 = vmul.f32 %v11488_v30, %v2329_v56 }
 0x11d   :  { %v2421_v26 = vmul.f32 %v11486_v44, %v2337_v54  ;;  %v2133_v50 = vadd.f32 %v2132_v24, %v2131_v1  ;;  %v2205_v21 = vadd.f32 %v2204_v10, %v2203_v55  ;;  %v2438_v61 = vadd.f32 %v2437_v13, %v2381_v19 }
 0x11e   :  { %v630_v16 = vrot.slane %v629_v4, 2  ;;  %v1829_v29 = vadd.f32 %v1828_v34, %v1827_v0  ;;  %v1901_v47 = vadd.f32 %v1900_v45, %v1899_v11  ;;  %v2510_v39 = vadd.f32 %v2509_v38, %v2413_v22  ;;  %v793_v0 = vld [vmem:[#allocation3 + $0xaa8] sm:$0xff] }
 0x11f   :  { %v700_v18 = vrot.slane %v11394_v20, 4  ;;  %v2134_v57 = vrot.slane %v2133_v50, 2  ;;  %v2206_v23 = vrot.slane %v2205_v21, 2  ;;  %v2439_v37 = vadd.f32 %v2438_v61, %v2389_v2  ;;  %v801_v11 = vld [vmem:[#allocation3 + $0xae8] sm:$0xff] }
 0x120   :  { %v631_v15 = vadd.f32 %v630_v16, %v629_v4  ;;  %v1957_v31 = vadd.f32 %v1829_v29, %v1649_v48  ;;  %v1965_v5 = vadd.f32 %v1901_v47, %v1657_v43  ;;  %v2511_v56 = vadd.f32 %v2510_v39, %v2421_v26  ;;  %v1053_v45 = vld [vmem:[#allocation3 + $0x328] sm:$0xff] }
 0x121   :  { %v701_v54 = vadd.f32 %v700_v18, %v11394_v20  ;;  %v2135_v1 = vadd.f32 %v2134_v57, %v2133_v50  ;;  %v2207_v10 = vadd.f32 %v2206_v23, %v2205_v21  ;;  %v2440_v55 = vrot.slane %v2439_v37, 4  ;;  %v1061_v21 = vld [vmem:[#allocation3 + $0x368] sm:$0xff] }
 0x122   :  { %v632_v13 = vrot.slane %v631_v15, 1  ;;  %v2512_v38 = vrot.slane %v2511_v56, 4  ;;  %v845_v19 = vmul.f32 %v11386_v7, %v761_v28  ;;  %v853_v34 = vmul.f32 %v11400_v46, %v769_v12  ;;  %v1069_v57 = vld [vmem:[#allocation3 + $0x3a8] sm:$0xff] }
 0x123   :  { %v702_v24 = vrot.slane %v701_v54, 2  ;;  %v2136_v2 = vrot.slane %v2135_v1, 1  ;;  %v2208_v4 = vrot.slane %v2207_v10, 1  ;;  %v2441_v48 = vadd.f32 %v2440_v55, %v2439_v37  ;;  %v1077_v23 = vld [vmem:[#allocation3 + $0x3e8] sm:$0xff] }
 0x124   :  { %v633_v43 = vadd.f32 %v632_v13, %v631_v15  ;;  %v2513_v22 = vadd.f32 %v2512_v38, %v2511_v56  ;;  %v877_v20 = vmul.f32 %v11386_v7, %v793_v0  ;;  %v885_v50 = vmul.f32 %v11400_v46, %v801_v11  ;;  %v1085_v37 = vld [vmem:[#allocation3 + $0xb28] sm:$0xff] }
 0x125   :  { %v703_v26 = vadd.f32 %v702_v24, %v701_v54  ;;  %v2137_v61 = vadd.f32 %v2136_v2, %v2135_v1  ;;  %v2209_v16 = vadd.f32 %v2208_v4, %v2207_v10  ;;  %v2442_v29 = vrot.slane %v2441_v48, 2  ;;  %v1093_v15 = vld [vmem:[#allocation3 + $0xb68] sm:$0xff] }
 0x126   :  { %v11501_v47 = vadd.f32 %v633_v43, %v11464_v3  ;;  %v2514_v39 = vrot.slane %v2513_v22, 2  ;;  %v934_v28 = vadd.f32 %v11366_v41, %v845_v19  ;;  %v1006_v12 = vadd.f32 %v11368_v42, %v877_v20  ;;  %v1101_v56 = vld [vmem:[#allocation3 + $0xba8] sm:$0xff] }
 0x127   :  { %v704_v18 = vrot.slane %v703_v26, 1  ;;  %v2265_v54 = vadd.f32 %v2137_v61, %v1957_v31  ;;  %v2273_v55 = vadd.f32 %v2209_v16, %v1965_v5  ;;  %v2443_v13 = vadd.f32 %v2442_v29, %v2441_v48  ;;  %v1109_v1 = vld [vmem:[#allocation3 + $0xbe8] sm:$0xff] }
 0x128   :  { %v1137_v10 = vmul.f32 %v11384_v6, %v1053_v45  ;;  %v2515_v0 = vadd.f32 %v2514_v39, %v2513_v22  ;;  %v935_v11 = vadd.f32 %v934_v28, %v853_v34  ;;  %v1007_v38 = vadd.f32 %v1006_v12, %v885_v50  ;;  %v1361_v48 = vld [vmem:[#allocation3 + $0x428] sm:$0xff] }
 0x129   :  { %v705_v3 = vadd.f32 %v704_v18, %v703_v26  ;;  %v2444_v24 = vrot.slane %v2443_v13, 1  ;;  %v1145_v41 = vmul.f32 %v11402_v49, %v1061_v21  ;;  %v1153_v42 = vmul.f32 %v11412_v62, %v1069_v57  ;;  %v1369_v43 = vld [vmem:[#allocation3 + $0x468] sm:$0xff] }
 0x12a   :  { %v1161_v19 = vmul.f32 %v11416_v9, %v1077_v23  ;;  %v2516_v2 = vrot.slane %v2515_v0, 1  ;;  %v936_v31 = vrot.slane %v935_v11, 4  ;;  %v1008_v5 = vrot.slane %v1007_v38, 4  ;;  %v1377_v20 = vld [vmem:[#allocation3 + $0x4a8] sm:$0xff] }
 0x12b   :  { %v737_v4 = vadd.f32 %v705_v3, %v11483_v52  ;;  %v2445_v45 = vadd.f32 %v2444_v24, %v2443_v13  ;;  %v1169_v34 = vmul.f32 %v11384_v6, %v1085_v37  ;;  %v1177_v22 = vmul.f32 %v11402_v49, %v1093_v15  ;;  %v1385_v50 = vld [vmem:[#allocation3 + $0x4e8] sm:$0xff] }
 0x12c   :  { %v1185_v26 = vmul.f32 %v11412_v62, %v1101_v56  ;;  %v2517_v21 = vadd.f32 %v2516_v2, %v2515_v0  ;;  %v937_v61 = vadd.f32 %v936_v31, %v935_v11  ;;  %v1009_v16 = vadd.f32 %v1008_v5, %v1007_v38  ;;  %v1393_v13 = vld [vmem:[#allocation3 + $0xc28] sm:$0xff] }
 0x12d   :  { %v1193_v29 = vmul.f32 %v11416_v9, %v1109_v1  ;;  %v2573_v52 = vadd.f32 %v2445_v45, %v2265_v54  ;;  %v1241_v39 = vadd.f32 %v1145_v41, %v1137_v10  ;;  %v1313_v18 = vadd.f32 %v1177_v22, %v1169_v34  ;;  %v1401_v37 = vld [vmem:[#allocation3 + $0xc68] sm:$0xff] }
 0x12e   :  { %v1445_v28 = vmul.f32 %v11410_v25, %v1361_v48  ;;  %v2581_v12 = vadd.f32 %v2517_v21, %v2273_v55  ;;  %v938_v57 = vrot.slane %v937_v61, 2  ;;  %v1010_v23 = vrot.slane %v1009_v16, 2  ;;  %v1409_v3 = vld [vmem:[#allocation3 + $0xca8] sm:$0xff] }
 0x12f   :  { %v1453_v15 = vmul.f32 %v11418_v17, %v1369_v43  ;;  %v2591_v56 = vadd.f32 %v11296_v53, %v2573_v52  ;;  %v1242_v0 = vadd.f32 %v1241_v39, %v1153_v42  ;;  %v1314_v11 = vadd.f32 %v1313_v18, %v1185_v26  ;;  %v1417_v38 = vld [vmem:[#allocation3 + $0xce8] sm:$0xff] }
 0x130   :  { %v1461_v1 = vmul.f32 %v11428_v58, %v1377_v20  ;;  %v2599_v54 = vadd.f32 %v11296_v53, %v2581_v12  ;;  %v939_v10 = vadd.f32 %v938_v57, %v937_v61  ;;  %v1011_v24 = vadd.f32 %v1010_v23, %v1009_v16  ;;  %v1669_v34 = vld [vmem:[#allocation3 + $0x528] sm:$0xff] }
 0x131   :  { %v1469_v55 = vmul.f32 %v11437_v59, %v1385_v50  ;;  %v2607_v41 = vpack.c.bf16 %v2591_v56, %v2591_v56  ;;  %v1243_v2 = vadd.f32 %v1242_v0, %v1161_v19  ;;  %v1315_v31 = vadd.f32 %v1314_v11, %v1193_v29  ;;  %v1677_v61 = vld [vmem:[#allocation3 + $0x568] sm:$0xff] }
 0x132   :  { %v1477_v5 = vmul.f32 %v11410_v25, %v1393_v13  ;;  %v2615_v48 = vpack.c.bf16 %v2599_v54, %v2599_v54  ;;  %v940_v43 = vrot.slane %v939_v10, 1  ;;  %v1012_v45 = vrot.slane %v1011_v24, 1  ;;  %v1685_v16 = vld [vmem:[#allocation3 + $0x5a8] sm:$0xff] }
 0x133   :  { %v1485_v42 = vmul.f32 %v11418_v17, %v1401_v37  ;;  %v3193_v22 = vunpack.c.l.b16 %v2607_v41  ;;  %v1244_v26 = vrot.slane %v1243_v2, 4  ;;  %v1316_v20 = vrot.slane %v1315_v31, 4  ;;  %v1693_v52 = vld [vmem:[#allocation3 + $0x5e8] sm:$0xff] }
 0x134   :  { %v1493_v21 = vmul.f32 %v11428_v58, %v1409_v3  ;;  %v3201_v50 = vunpack.c.l.b16 %v2615_v48  ;;  %v941_v39 = vadd.f32 %v940_v43, %v939_v10  ;;  %v1013_v19 = vadd.f32 %v1012_v45, %v1011_v24  ;;  %v1701_v0 = vld [vmem:[#allocation3 + $0xd28] sm:$0xff] }
 0x135   :  { %v1501_v29 = vmul.f32 %v11437_v59, %v1417_v38  ;;  %v1245_v18 = vadd.f32 %v1244_v26, %v1243_v2  ;;  %v1317_v12 = vadd.f32 %v1316_v20, %v1315_v31  ;;  %v1549_v57 = vadd.f32 %v1453_v15, %v1445_v28  ;;  %v1709_v11 = vld [vmem:[#allocation3 + $0xd68] sm:$0xff] }
 0x136   :  { %v1621_v23 = vadd.f32 %v1485_v42, %v1477_v5  ;;  %v3210_v13 = vsel %vm3208_vm0, %v3201_v50, %v3193_v22  ;;  %v1037_v37 = vadd.f32 %v941_v39, %v11501_v47  ;;  %v1045_v56 = vadd.f32 %v1013_v19, %v737_v4  ;;  %v1717_v3 = vld [vmem:[#allocation3 + $0xda8] sm:$0xff] }
 0x137   :  { %v1753_v54 = vmul.f32 %v11426_v60, %v1669_v34  ;;  %v11527_v41 = vpack.c.b16 %v3210_v13, %v3210_v13  ;;  %v1246_v10 = vrot.slane %v1245_v18, 2  ;;  %v1318_v24 = vrot.slane %v1317_v12, 2  ;;  %v1725_v38 = vld [vmem:[#allocation3 + $0xde8] sm:$0xff] }
 0x138   :  { %v1550_v48 = vadd.f32 %v1549_v57, %v1461_v1  ;;  %v1977_v2 = vld [vmem:[#allocation3 + $0x628] sm:$0xff]  ;;  %v1622_v28 = vadd.f32 %v1621_v23, %v1493_v21  ;;  %v1761_v15 = vmul.f32 %v11439_v36, %v1677_v61  ;;  %v1769_v5 = vmul.f32 %v11447_v8, %v1685_v16 }
 0x139   :  { %12661 = vst [vmem:[#allocation59_spill] sm:$0xff] %v11527_v41  ;;  %v1985_v31 = vld [vmem:[#allocation3 + $0x668] sm:$0xff]  ;;  %v1777_v47 = vmul.f32 %v11456_v27, %v1693_v52  ;;  %5825 = vmatprep.mubr.bf16.mxu1 %v11527_v41  ;;  %v1247_v4 = vadd.f32 %v1246_v10, %v1245_v18  ;;  %v1319_v43 = vadd.f32 %v1318_v24, %v1317_v12 }
 0x13a   :  { %v1551_v45 = vadd.f32 %v1550_v48, %v1469_v55  ;;  %v1785_v42 = vmul.f32 %v11426_v60, %v1701_v0  ;;  %v1623_v34 = vadd.f32 %v1622_v28, %v1501_v29  ;;  %v1793_v1 = vmul.f32 %v11439_v36, %v1709_v11  ;;  %v1993_v20 = vld [vmem:[#allocation3 + $0x6a8] sm:$0xff] }
 0x13b   :  { %v1801_v22 = vmul.f32 %v11447_v8, %v1717_v3  ;;  %v1809_v26 = vmul.f32 %v11456_v27, %v1725_v38  ;;  %v2001_v21 = vld [vmem:[#allocation3 + $0x6e8] sm:$0xff]  ;;  %v1248_v61 = vrot.slane %v1247_v4, 1  ;;  %v1320_v16 = vrot.slane %v1319_v43, 1 }
 0x13c   :  { %v1552_v50 = vrot.slane %v1551_v45, 4  ;;  %v1857_v52 = vadd.f32 %v1761_v15, %v1753_v54  ;;  %v2009_v39 = vld [vmem:[#allocation3 + $0xe28] sm:$0xff]  ;;  %v1624_v18 = vrot.slane %v1623_v34, 4  ;;  %v1929_v12 = vadd.f32 %v1793_v1, %v1785_v42 }
 0x13d   :  { %v2017_v19 = vld [vmem:[#allocation3 + $0xe68] sm:$0xff]  ;;  %v2061_v55 = vmul.f32 %v11445_v33, %v1977_v2  ;;  %v2069_v29 = vmul.f32 %v11458_v32, %v1985_v31  ;;  %v1249_v57 = vadd.f32 %v1248_v61, %v1247_v4  ;;  %v1321_v23 = vadd.f32 %v1320_v16, %v1319_v43 }
 0x13e   :  { %v1553_v13 = vadd.f32 %v1552_v50, %v1551_v45  ;;  %v1858_v0 = vadd.f32 %v1857_v52, %v1769_v5  ;;  %v1625_v11 = vadd.f32 %v1624_v18, %v1623_v34  ;;  %v1930_v3 = vadd.f32 %v1929_v12, %v1801_v22  ;;  %v2025_v10 = vld [vmem:[#allocation3 + $0xea8] sm:$0xff] }
 0x13f   :  { %v2033_v24 = vld [vmem:[#allocation3 + $0xee8] sm:$0xff]  ;;  %v2077_v48 = vmul.f32 %v11468_v14, %v1993_v20  ;;  %v2085_v54 = vmul.f32 %v11474_v35, %v2001_v21  ;;  %v1345_v38 = vadd.f32 %v1249_v57, %v1037_v37  ;;  %v1353_v28 = vadd.f32 %v1321_v23, %v1045_v56 }
 0x140   :  { %v1554_v15 = vrot.slane %v1553_v13, 2  ;;  %v1859_v42 = vadd.f32 %v1858_v0, %v1777_v47  ;;  %v1626_v1 = vrot.slane %v1625_v11, 2  ;;  %v1931_v2 = vadd.f32 %v1930_v3, %v1809_v26  ;;  %v2285_v43 = vld [vmem:[#allocation3 + $0x728] sm:$0xff] }
 0x141   :  { %v2093_v31 = vmul.f32 %v11445_v33, %v2009_v39  ;;  %v2101_v4 = vmul.f32 %v11458_v32, %v2017_v19  ;;  %v2293_v5 = vld [vmem:[#allocation3 + $0x768] sm:$0xff]  ;;  %v2109_v22 = vmul.f32 %v11468_v14, %v2025_v10  ;;  %v2117_v20 = vmul.f32 %v11474_v35, %v2033_v24 }
 0x142   :  { %v1555_v45 = vadd.f32 %v1554_v15, %v1553_v13  ;;  %v1860_v34 = vrot.slane %v1859_v42, 4  ;;  %v1627_v61 = vadd.f32 %v1626_v1, %v1625_v11  ;;  %v1932_v21 = vrot.slane %v1931_v2, 4  ;;  %v2301_v16 = vld [vmem:[#allocation3 + $0x7a8] sm:$0xff] }
 0x143   :  { %v2165_v37 = vadd.f32 %v2069_v29, %v2061_v55  ;;  %v2237_v56 = vadd.f32 %v2101_v4, %v2093_v31  ;;  %v2309_v47 = vld [vmem:[#allocation3 + $0x7e8] sm:$0xff]  ;;  %v2369_v19 = vmul.f32 %v11466_v51, %v2285_v43  ;;  %v2377_v18 = vmul.f32 %v11476_v63, %v2293_v5  ;;  %v164_v5 = vld [vmem:[#allocation3 + $0x840] sm:$0xff] }
 0x144   :  { %v1556_v50 = vrot.slane %v1555_v45, 1  ;;  %v1861_v26 = vadd.f32 %v1860_v34, %v1859_v42  ;;  %v2317_v52 = vld [vmem:[#allocation3 + $0xf28] sm:$0xff]  ;;  %v1628_v12 = vrot.slane %v1627_v61, 1  ;;  %v1933_v57 = vadd.f32 %v1932_v21, %v1931_v2 }
 0x145   :  { %v2325_v39 = vld [vmem:[#allocation3 + $0xf68] sm:$0xff]  ;;  %v2166_v23 = vadd.f32 %v2165_v37, %v2077_v48  ;;  %v2238_v13 = vadd.f32 %v2237_v56, %v2109_v22  ;;  %v2385_v11 = vmul.f32 %v11488_v30, %v2301_v16  ;;  %v2393_v55 = vmul.f32 %v11486_v44, %v2309_v47  ;;  %v148_v48 = vld [vmem:[#allocation3 + $0xc0] sm:$0xff] }
 0x146   :  { %v1557_v0 = vadd.f32 %v1556_v50, %v1555_v45  ;;  %v1862_v3 = vrot.slane %v1861_v26, 2  ;;  %v1629_v29 = vadd.f32 %v1628_v12, %v1627_v61  ;;  %v1934_v10 = vrot.slane %v1933_v57, 2  ;;  %v2333_v42 = vld [vmem:[#allocation3 + $0xfa8] sm:$0xff]  ;;  %v172_v37 = vld [vmem:[#allocation3 + $0x880] sm:$0xff] }
 0x147   :  { %v2167_v24 = vadd.f32 %v2166_v23, %v2085_v54  ;;  %v2239_v15 = vadd.f32 %v2238_v13, %v2117_v20  ;;  %v2341_v1 = vld [vmem:[#allocation3 + $0xfe8] sm:$0xff]  ;;  %v2401_v43 = vmul.f32 %v11466_v51, %v2317_v52  ;;  %v2409_v2 = vmul.f32 %v11476_v63, %v2325_v39  ;;  %v180_v56 = vld [vmem:[#allocation3 + $0x8c0] sm:$0xff] }
 0x148   :  { %v1653_v31 = vadd.f32 %v1557_v0, %v1345_v38  ;;  %v1863_v4 = vadd.f32 %v1862_v3, %v1861_v26  ;;  %v1661_v45 = vadd.f32 %v1629_v29, %v1353_v28  ;;  %v1935_v34 = vadd.f32 %v1934_v10, %v1933_v57  ;;  %v12662_v28 = vld [vmem:[#allocation23_spill] sm:$0xff]  ;;  %v440_v23 = vld [vmem:[#allocation3 + $0x140] sm:$0xff] }
 0x149   :  { %v2168_v22 = vrot.slane %v2167_v24, 4  ;;  %v2240_v21 = vrot.slane %v2239_v15, 4  ;;  %v2417_v54 = vmul.f32 %v11488_v30, %v2333_v42  ;;  %v2425_v20 = vmul.f32 %v11486_v44, %v2341_v1  ;;  %v448_v13 = vld [vmem:[#allocation3 + $0x180] sm:$0xff] }
 0x14a   :  { %v1864_v61 = vrot.slane %v1863_v4, 1  ;;  %v2473_v16 = vadd.f32 %v2377_v18, %v2369_v19  ;;  %v1936_v38 = vrot.slane %v1935_v34, 1  ;;  %v2545_v26 = vadd.f32 %v2409_v2, %v2401_v43  ;;  %v12663_v1 = vld [vmem:[#allocation29_spill] sm:$0xff] }
 0x14b   :  { %v2169_v47 = vadd.f32 %v2168_v22, %v2167_v24  ;;  %v2241_v50 = vadd.f32 %v2240_v21, %v2239_v15  ;;  %v232_v12 = vmul.f32 %v11364_v40, %v148_v48  ;;  %v248_v57 = vmul.f32 %v12662_v28, %v164_v5  ;;  %v456_v43 = vld [vmem:[#allocation3 + $0x1c0] sm:$0xff]  ;;  %v12664_v48 = vld [vmem:[#allocation24_spill] sm:$0xff] }
 0x14c   :  { %v1865_v52 = vadd.f32 %v1864_v61, %v1863_v4  ;;  %v2474_v39 = vadd.f32 %v2473_v16, %v2385_v11  ;;  %v1937_v0 = vadd.f32 %v1936_v38, %v1935_v34  ;;  %v2546_v10 = vadd.f32 %v2545_v26, %v2417_v54  ;;  %v12665_v5 = vld [vmem:[#allocation36_spill] sm:$0xff]  ;;  %v12666_v21 = vld [vmem:[#allocation25_spill] sm:$0xff]  ;;  %v12667_v54 = vld [vmem:[#allocation22_spill] sm:$0xff] }
 0x14d   :  { %v2170_v3 = vrot.slane %v2169_v47, 2  ;;  %v2242_v29 = vrot.slane %v2241_v50, 2  ;;  %v256_v19 = vmul.f32 %v12663_v1, %v172_v37  ;;  %v264_v18 = vmul.f32 %v11364_v40, %v180_v56  ;;  %v472_v61 = vld [vmem:[#allocation3 + $0x940] sm:$0xff]  ;;  %v12668_v56 = vld [vmem:[#allocation28_spill] sm:$0xff] }
 0x14e   :  { %v1961_v42 = vadd.f32 %v1865_v52, %v1653_v31  ;;  %v2475_v41 = vadd.f32 %v2474_v39, %v2393_v55  ;;  %v1969_v24 = vadd.f32 %v1937_v0, %v1661_v45  ;;  %v2547_v11 = vadd.f32 %v2546_v10, %v2425_v20  ;;  %v480_v16 = vld [vmem:[#allocation3 + $0x980] sm:$0xff] }
 0x14f   :  { %v2171_v15 = vadd.f32 %v2170_v3, %v2169_v47  ;;  %v2243_v4 = vadd.f32 %v2242_v29, %v2241_v50  ;;  %v272_v22 = vadd.f32 %v12665_v5, %v12664_v48  ;;  %v344_v34 = vadd.f32 %v248_v57, %v12666_v21  ;;  %v488_v26 = vld [vmem:[#allocation3 + $0x9c0] sm:$0xff] }
 0x150   :  { %v2476_v2 = vrot.slane %v2475_v41, 4  ;;  %v524_v31 = vmul.f32 %v12667_v54, %v440_v23  ;;  %v2548_v37 = vrot.slane %v2547_v11, 4  ;;  %v532_v45 = vmul.f32 %v12668_v56, %v448_v13  ;;  %v12669_v50 = vld [vmem:[#allocation37_spill] sm:$0xff]  ;;  %v12670_v39 = vld [vmem:[#allocation34_spill] sm:$0xff] }
 0x151   :  { %v2172_v55 = vrot.slane %v2171_v15, 1  ;;  %v2244_v38 = vrot.slane %v2243_v4, 1  ;;  %v273_v20 = vadd.f32 %v272_v22, %v12669_v50  ;;  %v345_v52 = vadd.f32 %v344_v34, %v256_v19  ;;  %v740_v3 = vld [vmem:[#allocation3 + $0x200] sm:$0xff] }
 0x152   :  { %v2477_v47 = vadd.f32 %v2476_v2, %v2475_v41  ;;  %v540_v0 = vmul.f32 %v12670_v39, %v456_v43  ;;  %v748_v29 = vld [vmem:[#allocation3 + $0x240] sm:$0xff]  ;;  %v2549_v48 = vadd.f32 %v2548_v37, %v2547_v11  ;;  %v556_v5 = vmul.f32 %v12667_v54, %v472_v61 }
 0x153   :  { %v2173_v10 = vadd.f32 %v2172_v55, %v2171_v15  ;;  %v2245_v57 = vadd.f32 %v2244_v38, %v2243_v4  ;;  %v274_v21 = vadd.f32 %v273_v20, %v232_v12  ;;  %v346_v40 = vadd.f32 %v345_v52, %v264_v18  ;;  %v756_v28 = vld [vmem:[#allocation3 + $0x280] sm:$0xff]  ;;  %v12672_v55 = vld [vmem:[#allocation27_spill] sm:$0xff]  ;;  %v12674_v18 = vld [vmem:[#allocation32_spill] sm:$0xff] }
 0x154   :  { %v2478_v23 = vrot.slane %v2477_v47, 2  ;;  %v564_v1 = vmul.f32 %v12668_v56, %v480_v16  ;;  %v764_v13 = vld [vmem:[#allocation3 + $0x2c0] sm:$0xff]  ;;  %v2550_v22 = vrot.slane %v2549_v48, 2  ;;  %v572_v19 = vmul.f32 %v12670_v39, %v488_v26 }
 0x155   :  { %v2269_v41 = vadd.f32 %v2173_v10, %v1961_v42  ;;  %v2277_v2 = vadd.f32 %v2245_v57, %v1969_v24  ;;  %v275_v34 = vrot.slane %v274_v21, 4  ;;  %v347_v50 = vrot.slane %v346_v40, 4  ;;  %v12671_v15 = vld [vmem:[#allocation26_spill] sm:$0xff]  ;;  %v12673_v38 = vld [vmem:[#allocation33_spill] sm:$0xff] }
 0x156   :  { %v2479_v43 = vadd.f32 %v2478_v23, %v2477_v47  ;;  %v580_v4 = vadd.f32 %v524_v31, %v12671_v15  ;;  %v2551_v11 = vadd.f32 %v2550_v22, %v2549_v48  ;;  %v652_v61 = vadd.f32 %v556_v5, %v12672_v55  ;;  %v772_v24 = vld [vmem:[#allocation3 + $0xa00] sm:$0xff] }
 0x157   :  { %v824_v12 = vmul.f32 %v12673_v38, %v740_v3  ;;  %v832_v37 = vmul.f32 %v12674_v18, %v748_v29  ;;  %v276_v20 = vadd.f32 %v275_v34, %v274_v21  ;;  %v348_v52 = vadd.f32 %v347_v50, %v346_v40  ;;  %v780_v10 = vld [vmem:[#allocation3 + $0xa40] sm:$0xff] }
 0x158   :  { %v2480_v16 = vrot.slane %v2479_v43, 1  ;;  %v581_v42 = vadd.f32 %v580_v4, %v532_v45  ;;  %v788_v57 = vld [vmem:[#allocation3 + $0xa80] sm:$0xff]  ;;  %v2552_v26 = vrot.slane %v2551_v11, 1  ;;  %v653_v47 = vadd.f32 %v652_v61, %v564_v1 }
 0x159   :  { %v796_v23 = vld [vmem:[#allocation3 + $0xac0] sm:$0xff]  ;;  %v840_v39 = vmul.f32 %v11386_v7, %v756_v28  ;;  %v848_v31 = vmul.f32 %v11400_v46, %v764_v13  ;;  %v277_v5 = vrot.slane %v276_v20, 2  ;;  %v349_v22 = vrot.slane %v348_v52, 2 }
 0x15a   :  { %v2481_v48 = vadd.f32 %v2480_v16, %v2479_v43  ;;  %v582_v3 = vadd.f32 %v581_v42, %v540_v0  ;;  %v2553_v15 = vadd.f32 %v2552_v26, %v2551_v11  ;;  %v654_v29 = vadd.f32 %v653_v47, %v572_v19  ;;  %v128_v43 = vld [vmem:[#allocation3 + $0x20] sm:$0xff]  ;;  %v12675_v47 = vld [vmem:[#allocation20_spill] sm:$0xff] }
 0x15b   :  { %v856_v21 = vmul.f32 %v12673_v38, %v772_v24  ;;  %v864_v40 = vmul.f32 %v12674_v18, %v780_v10  ;;  %v278_v34 = vadd.f32 %v277_v5, %v276_v20  ;;  %v350_v50 = vadd.f32 %v349_v22, %v348_v52  ;;  %v1048_v10 = vld [vmem:[#allocation3 + $0x300] sm:$0xff] }
 0x15c   :  { %v2577_v45 = vadd.f32 %v2481_v48, %v2269_v41  ;;  %v583_v4 = vrot.slane %v582_v3, 4  ;;  %v2585_v1 = vadd.f32 %v2553_v15, %v2277_v2  ;;  %v655_v55 = vrot.slane %v654_v29, 4  ;;  %v1056_v2 = vld [vmem:[#allocation3 + $0x340] sm:$0xff] }
 0x15d   :  { %v872_v28 = vmul.f32 %v11386_v7, %v788_v57  ;;  %v880_v13 = vmul.f32 %v11400_v46, %v796_v23  ;;  %v279_v0 = vrot.slane %v278_v34, 1  ;;  %v351_v11 = vrot.slane %v350_v50, 1  ;;  %v1064_v26 = vld [vmem:[#allocation3 + $0x380] sm:$0xff] }
 0x15e   :  { %v2595_v61 = vadd.f32 %v11296_v53, %v2577_v45  ;;  %v584_v19 = vadd.f32 %v583_v4, %v582_v3  ;;  %v2603_v16 = vadd.f32 %v11296_v53, %v2585_v1  ;;  %v656_v42 = vadd.f32 %v655_v55, %v654_v29  ;;  %v1080_v15 = vld [vmem:[#allocation3 + $0xb00] sm:$0xff] }
 0x15f   :  { %v888_v24 = vadd.f32 %v832_v37, %v824_v12  ;;  %v960_v41 = vadd.f32 %v864_v40, %v856_v21  ;;  %v11580_v57 = vmul.f32 %v12675_v47, %v128_v43  ;;  %v1088_v45 = vld [vmem:[#allocation3 + $0xb40] sm:$0xff]  ;;  %v280_v1 = vadd.f32 %v279_v0, %v278_v34 }
 0x160   :  { %v2611_v20 = vpack.c.bf16 %v2595_v61, %v2595_v61  ;;  %v585_v52 = vrot.slane %v584_v19, 2  ;;  %v2619_v23 = vpack.c.bf16 %v2603_v16, %v2603_v16  ;;  %v657_v48 = vrot.slane %v656_v42, 2  ;;  %v1096_v3 = vld [vmem:[#allocation3 + $0xb80] sm:$0xff] }
 0x161   :  { %v889_v5 = vadd.f32 %v888_v24, %v840_v39  ;;  %v961_v22 = vadd.f32 %v960_v41, %v872_v28  ;;  %v352_v29 = vadd.f32 %v351_v11, %v350_v50  ;;  %v1072_v46 = vld [vmem:[#allocation3 + $0x3c0] sm:$0xff]  ;;  %v1132_v43 = vmul.f32 %v11384_v6, %v1048_v10 }
 0x162   :  { %v3197_v4 = vunpack.c.l.b16 %v2611_v20  ;;  %v586_v12 = vadd.f32 %v585_v52, %v584_v19  ;;  %v3205_v37 = vunpack.c.l.b16 %v2619_v23  ;;  %v658_v21 = vadd.f32 %v657_v48, %v656_v42  ;;  %v1104_v34 = vld [vmem:[#allocation3 + $0xbc0] sm:$0xff] }
 0x163   :  { %v890_v40 = vadd.f32 %v889_v5, %v848_v31  ;;  %v962_v55 = vadd.f32 %v961_v22, %v880_v13  ;;  %v1140_v16 = vmul.f32 %v11402_v49, %v1056_v2  ;;  %v1148_v39 = vmul.f32 %v11412_v62, %v1064_v26  ;;  %v1356_v11 = vld [vmem:[#allocation3 + $0x400] sm:$0xff] }
 0x164   :  { %v587_v61 = vrot.slane %v586_v12, 1  ;;  %v3214_v28 = vsel %vm3208_vm0, %v3205_v37, %v3197_v4  ;;  %v659_v24 = vrot.slane %v658_v21, 1  ;;  %v1164_v0 = vmul.f32 %v11384_v6, %v1080_v15  ;;  %v1364_v19 = vld [vmem:[#allocation3 + $0x440] sm:$0xff] }
 0x165   :  { %v891_v41 = vrot.slane %v890_v40, 4  ;;  %v963_v20 = vrot.slane %v962_v55, 4  ;;  %v11586_v50 = vpack.c.b16 %v3214_v28, %v3214_v28  ;;  %v1172_v31 = vmul.f32 %v11402_v49, %v1088_v45  ;;  %v1372_v26 = vld [vmem:[#allocation3 + $0x480] sm:$0xff] }
 0x166   :  { %v1180_v13 = vmul.f32 %v11412_v62, %v1096_v3  ;;  %v588_v42 = vadd.f32 %v587_v61, %v586_v12  ;;  %v1156_v2 = vmul.f32 %v11416_v9, %v1072_v46  ;;  %v1380_v23 = vld [vmem:[#allocation3 + $0x4c0] sm:$0xff]  ;;  %v660_v48 = vadd.f32 %v659_v24, %v658_v21 }
 0x167   :  { %12676 = vst [vmem:[#allocation24_spill] sm:$0xff] %v11586_v50  ;;  %v892_v52 = vadd.f32 %v891_v41, %v890_v40  ;;  %v964_v10 = vadd.f32 %v963_v20, %v962_v55  ;;  %5907 = vmatprep.mubr.bf16.mxu0 %v11586_v50  ;;  %v1188_v5 = vmul.f32 %v11416_v9, %v1104_v34  ;;  %v1388_v4 = vld [vmem:[#allocation3 + $0xc00] sm:$0xff] }
 0x168   :  { %v1196_v22 = vadd.f32 %v1140_v16, %v1132_v43  ;;  %v1268_v15 = vadd.f32 %v1172_v31, %v1164_v0  ;;  %v1396_v45 = vld [vmem:[#allocation3 + $0xc40] sm:$0xff]  ;;  %v1440_v12 = vmul.f32 %v11410_v25, %v1356_v11  ;;  %v1448_v40 = vmul.f32 %v11418_v17, %v1364_v19 }
 0x169   :  { %v893_v37 = vrot.slane %v892_v52, 2  ;;  %v965_v3 = vrot.slane %v964_v10, 2  ;;  %v1404_v28 = vld [vmem:[#allocation3 + $0xc80] sm:$0xff]  ;;  %v1456_v61 = vmul.f32 %v11428_v58, %v1372_v26  ;;  %v1464_v21 = vmul.f32 %v11437_v59, %v1380_v23 }
 0x16a   :  { %v1412_v62 = vld [vmem:[#allocation3 + $0xcc0] sm:$0xff]  ;;  %v1197_v46 = vadd.f32 %v1196_v22, %v1148_v39  ;;  %v1269_v55 = vadd.f32 %v1268_v15, %v1180_v13  ;;  %v1472_v43 = vmul.f32 %v11410_v25, %v1388_v4  ;;  %v1480_v16 = vmul.f32 %v11418_v17, %v1396_v45 }
 0x16b   :  { %v894_v24 = vadd.f32 %v893_v37, %v892_v52  ;;  %v966_v41 = vadd.f32 %v965_v3, %v964_v10  ;;  %v1488_v0 = vmul.f32 %v11428_v58, %v1404_v28  ;;  %v1496_v31 = vmul.f32 %v11437_v59, %v1412_v62  ;;  %v1664_v11 = vld [vmem:[#allocation3 + $0x500] sm:$0xff] }
 0x16c   :  { %v1198_v20 = vadd.f32 %v1197_v46, %v1156_v2  ;;  %v1270_v34 = vadd.f32 %v1269_v55, %v1188_v5  ;;  %v1672_v19 = vld [vmem:[#allocation3 + $0x540] sm:$0xff]  ;;  %v1504_v22 = vadd.f32 %v1448_v40, %v1440_v12  ;;  %v1576_v26 = vadd.f32 %v1480_v16, %v1472_v43 }
 0x16d   :  { %v895_v39 = vrot.slane %v894_v24, 1  ;;  %v967_v13 = vrot.slane %v966_v41, 1  ;;  %v724_v15 = vadd.f32 %v588_v42, %v280_v1  ;;  %v732_v23 = vadd.f32 %v660_v48, %v352_v29  ;;  %v1680_v37 = vld [vmem:[#allocation3 + $0x580] sm:$0xff] }
 0x16e   :  { %v1199_v52 = vrot.slane %v1198_v20, 4  ;;  %v1271_v10 = vrot.slane %v1270_v34, 4  ;;  %v1688_v4 = vld [vmem:[#allocation3 + $0x5c0] sm:$0xff]  ;;  %v1505_v3 = vadd.f32 %v1504_v22, %v1456_v61  ;;  %v1577_v45 = vadd.f32 %v1576_v26, %v1488_v0 }
 0x16f   :  { %v1696_v2 = vld [vmem:[#allocation3 + $0xd00] sm:$0xff]  ;;  %v1748_v28 = vmul.f32 %v11426_v60, %v1664_v11  ;;  %v1756_v62 = vmul.f32 %v11439_v36, %v1672_v19  ;;  %v896_v46 = vadd.f32 %v895_v39, %v894_v24  ;;  %v968_v55 = vadd.f32 %v967_v13, %v966_v41 }
 0x170   :  { %v1704_v5 = vld [vmem:[#allocation3 + $0xd40] sm:$0xff]  ;;  %v1200_v50 = vadd.f32 %v1199_v52, %v1198_v20  ;;  %v1272_v59 = vadd.f32 %v1271_v10, %v1270_v34  ;;  %v1506_v1 = vadd.f32 %v1505_v3, %v1464_v21  ;;  %v1578_v29 = vadd.f32 %v1577_v45, %v1496_v31 }
 0x171   :  { %v1712_v12 = vld [vmem:[#allocation3 + $0xd80] sm:$0xff]  ;;  %v1764_v42 = vmul.f32 %v11447_v8, %v1680_v37  ;;  %v1772_v48 = vmul.f32 %v11456_v27, %v1688_v4  ;;  %v1780_v16 = vmul.f32 %v11426_v60, %v1696_v2  ;;  %v1788_v0 = vmul.f32 %v11439_v36, %v1704_v5 }
 0x172   :  { %v1720_v40 = vld [vmem:[#allocation3 + $0xdc0] sm:$0xff]  ;;  %v1201_v61 = vrot.slane %v1200_v50, 2  ;;  %v1273_v43 = vrot.slane %v1272_v59, 2  ;;  %v1507_v11 = vrot.slane %v1506_v1, 4  ;;  %v1579_v19 = vrot.slane %v1578_v29, 4 }
 0x173   :  { %v1796_v24 = vmul.f32 %v11447_v8, %v1712_v12  ;;  %v1804_v41 = vmul.f32 %v11456_v27, %v1720_v40  ;;  %v1812_v21 = vadd.f32 %v1756_v62, %v1748_v28  ;;  %v1884_v31 = vadd.f32 %v1788_v0, %v1780_v16  ;;  %v1972_v39 = vld [vmem:[#allocation3 + $0x600] sm:$0xff] }
 0x174   :  { %v1202_v20 = vadd.f32 %v1201_v61, %v1200_v50  ;;  %v1274_v34 = vadd.f32 %v1273_v43, %v1272_v59  ;;  %v1980_v13 = vld [vmem:[#allocation3 + $0x640] sm:$0xff]  ;;  %v1032_v22 = vadd.f32 %v896_v46, %v724_v15  ;;  %v1040_v26 = vadd.f32 %v968_v55, %v732_v23 }
 0x175   :  { %v1508_v52 = vadd.f32 %v1507_v11, %v1506_v1  ;;  %v1580_v10 = vadd.f32 %v1579_v19, %v1578_v29  ;;  %v1988_v37 = vld [vmem:[#allocation3 + $0x680] sm:$0xff]  ;;  %v1813_v45 = vadd.f32 %v1812_v21, %v1764_v42  ;;  %v1885_v2 = vadd.f32 %v1884_v31, %v1796_v24 }
 0x176   :  { %v1203_v4 = vrot.slane %v1202_v20, 1  ;;  %v1275_v3 = vrot.slane %v1274_v34, 1  ;;  %v2012_v5 = vld [vmem:[#allocation3 + $0xe40] sm:$0xff]  ;;  %v2056_v59 = vmul.f32 %v11445_v33, %v1972_v39  ;;  %v2064_v50 = vmul.f32 %v11458_v32, %v1980_v13 }
 0x177   :  { %v1509_v36 = vrot.slane %v1508_v52, 2  ;;  %v1581_v12 = vrot.slane %v1580_v10, 2  ;;  %v1996_v8 = vld [vmem:[#allocation3 + $0x6c0] sm:$0xff]  ;;  %v1814_v62 = vadd.f32 %v1813_v45, %v1772_v48  ;;  %v1886_v15 = vadd.f32 %v1885_v2, %v1804_v41 }
 0x178   :  { %v2004_v40 = vld [vmem:[#allocation3 + $0xe00] sm:$0xff]  ;;  %v1204_v28 = vadd.f32 %v1203_v4, %v1202_v20  ;;  %v2072_v55 = vmul.f32 %v11468_v14, %v1988_v37  ;;  %v1276_v1 = vadd.f32 %v1275_v3, %v1274_v34  ;;  %v2096_v61 = vmul.f32 %v11458_v32, %v2012_v5 }
 0x179   :  { %v2020_v23 = vld [vmem:[#allocation3 + $0xe80] sm:$0xff]  ;;  %v1510_v29 = vadd.f32 %v1509_v36, %v1508_v52  ;;  %v1582_v42 = vadd.f32 %v1581_v12, %v1580_v10  ;;  %v1815_v43 = vrot.slane %v1814_v62, 4  ;;  %v1887_v16 = vrot.slane %v1886_v15, 4 }
 0x17a   :  { %v2028_v46 = vld [vmem:[#allocation3 + $0xec0] sm:$0xff]  ;;  %v2080_v0 = vmul.f32 %v11474_v35, %v1996_v8  ;;  %v2088_v11 = vmul.f32 %v11445_v33, %v2004_v40  ;;  %v2104_v48 = vmul.f32 %v11468_v14, %v2020_v23  ;;  %v2120_v31 = vadd.f32 %v2064_v50, %v2056_v59 }
 0x17b   :  { %v1511_v19 = vrot.slane %v1510_v29, 1  ;;  %v1583_v24 = vrot.slane %v1582_v42, 1  ;;  %v2112_v41 = vmul.f32 %v11474_v35, %v2028_v46  ;;  %v1816_v20 = vadd.f32 %v1815_v43, %v1814_v62  ;;  %v2280_v36 = vld [vmem:[#allocation3 + $0x700] sm:$0xff] }
 0x17c   :  { %v1888_v21 = vadd.f32 %v1887_v16, %v1886_v15  ;;  %v2192_v34 = vadd.f32 %v2096_v61, %v2088_v11  ;;  %v2288_v39 = vld [vmem:[#allocation3 + $0x740] sm:$0xff]  ;;  %v1340_v13 = vadd.f32 %v1204_v28, %v1032_v22  ;;  %v1348_v52 = vadd.f32 %v1276_v1, %v1040_v26 }
 0x17d   :  { %v1512_v10 = vadd.f32 %v1511_v19, %v1510_v29  ;;  %v1584_v37 = vadd.f32 %v1583_v24, %v1582_v42  ;;  %v2312_v4 = vld [vmem:[#allocation3 + $0xf00] sm:$0xff]  ;;  %v1817_v8 = vrot.slane %v1816_v20, 2  ;;  %v2121_v45 = vadd.f32 %v2120_v31, %v2072_v55 }
 0x17e   :  { %v1889_v3 = vrot.slane %v1888_v21, 2  ;;  %v2193_v2 = vadd.f32 %v2192_v34, %v2104_v48  ;;  %v2296_v5 = vld [vmem:[#allocation3 + $0x780] sm:$0xff]  ;;  %v2364_v62 = vmul.f32 %v11466_v51, %v2280_v36  ;;  %v2372_v59 = vmul.f32 %v11476_v63, %v2288_v39 }
 0x17f   :  { %v2320_v12 = vld [vmem:[#allocation3 + $0xf40] sm:$0xff]  ;;  %v1648_v23 = vadd.f32 %v1512_v10, %v1340_v13  ;;  %v1656_v46 = vadd.f32 %v1584_v37, %v1348_v52  ;;  %v1818_v50 = vadd.f32 %v1817_v8, %v1816_v20  ;;  %v2122_v22 = vadd.f32 %v2121_v45, %v2080_v0  ;;  %v12677_v37 = vld [vmem:[#allocation23_spill] sm:$0xff] }
 0x180   :  { %v2328_v40 = vld [vmem:[#allocation3 + $0xf80] sm:$0xff]  ;;  %v1890_v15 = vadd.f32 %v1889_v3, %v1888_v21  ;;  %v2194_v26 = vadd.f32 %v2193_v2, %v2112_v41  ;;  %v2380_v29 = vmul.f32 %v11488_v30, %v2296_v5  ;;  %v2396_v55 = vmul.f32 %v11466_v51, %v2312_v4 }
 0x181   :  { %v2304_v28 = vld [vmem:[#allocation3 + $0x7c0] sm:$0xff]  ;;  %v2404_v42 = vmul.f32 %v11476_v63, %v2320_v12  ;;  %v2412_v61 = vmul.f32 %v11488_v30, %v2328_v40  ;;  %v1819_v16 = vrot.slane %v1818_v50, 1  ;;  %v2123_v19 = vrot.slane %v2122_v22, 4 }
 0x182   :  { %v2336_v1 = vld [vmem:[#allocation3 + $0xfc0] sm:$0xff]  ;;  %v1891_v11 = vrot.slane %v1890_v15, 1  ;;  %v2195_v24 = vrot.slane %v2194_v26, 4  ;;  %v2388_v20 = vmul.f32 %v11486_v44, %v2304_v28  ;;  %v2428_v41 = vadd.f32 %v2372_v59, %v2364_v62 }
 0x183   :  { %v136_v43 = vld [vmem:[#allocation3 + $0x60] sm:$0xff]  ;;  %v2420_v0 = vmul.f32 %v11486_v44, %v2336_v1  ;;  %v2500_v21 = vadd.f32 %v2404_v42, %v2396_v55  ;;  %v1820_v36 = vadd.f32 %v1819_v16, %v1818_v50  ;;  %v2124_v39 = vadd.f32 %v2123_v19, %v2122_v22  ;;  %v12679_v1 = vld [vmem:[#allocation35_spill] sm:$0xff] }
 0x184   :  { %v144_v48 = vld [vmem:[#allocation3 + $0xa0] sm:$0xff]  ;;  %v2196_v13 = vadd.f32 %v2195_v24, %v2194_v26  ;;  %v220_v4 = vmul.f32 %v12677_v37, %v136_v43  ;;  %v1892_v8 = vadd.f32 %v1891_v11, %v1890_v15  ;;  %v2429_v3 = vadd.f32 %v2428_v41, %v2380_v29 }
 0x185   :  { %v152_v31 = vld [vmem:[#allocation3 + $0xe0] sm:$0xff]  ;;  %v2501_v45 = vadd.f32 %v2500_v21, %v2412_v61  ;;  %v2125_v12 = vrot.slane %v2124_v39, 2  ;;  %v1956_v42 = vadd.f32 %v1820_v36, %v1648_v23 }
 0x186   :  { %v160_v34 = vld [vmem:[#allocation3 + $0x820] sm:$0xff]  ;;  %v2197_v40 = vrot.slane %v2196_v13, 2  ;;  %v236_v62 = vmul.f32 %v12679_v1, %v152_v31  ;;  %v2430_v55 = vadd.f32 %v2429_v3, %v2388_v20  ;;  %v308_v29 = vadd.f32 %v220_v4, %v11580_v57 }
 0x187   :  { %v168_v52 = vld [vmem:[#allocation3 + $0x860] sm:$0xff]  ;;  %v244_v59 = vmul.f32 %v12675_v47, %v160_v34  ;;  %v2502_v50 = vadd.f32 %v2501_v45, %v2420_v0  ;;  %v2126_v43 = vadd.f32 %v2125_v12, %v2124_v39  ;;  %v1964_v21 = vadd.f32 %v1892_v8, %v1656_v46 }
 0x188   :  { %v176_v10 = vld [vmem:[#allocation3 + $0x8a0] sm:$0xff]  ;;  %v252_v22 = vmul.f32 %v12677_v37, %v168_v52  ;;  %v2198_v15 = vadd.f32 %v2197_v40, %v2196_v13  ;;  %v2431_v16 = vrot.slane %v2430_v55, 4  ;;  %v12680_v13 = vld [vmem:[#allocation19_spill] sm:$0xff] }
 0x189   :  { %v12678_v2 = vld [vmem:[#allocation29_spill] sm:$0xff]  ;;  %v2503_v11 = vrot.slane %v2502_v50, 4  ;;  %v2127_v20 = vrot.slane %v2126_v43, 1 }
 0x18a   :  { %v228_v5 = vmul.f32 %v12678_v2, %v144_v48  ;;  %v184_v28 = vld [vmem:[#allocation3 + $0x8e0] sm:$0xff]  ;;  %v260_v26 = vmul.f32 %v12678_v2, %v176_v10  ;;  %v380_v24 = vadd.f32 %v252_v22, %v244_v59  ;;  %v2199_v0 = vrot.slane %v2198_v15, 1 }
 0x18b   :  { %v436_v61 = vld [vmem:[#allocation3 + $0x120] sm:$0xff]  ;;  %v268_v19 = vmul.f32 %v12679_v1, %v184_v28  ;;  %v2432_v34 = vadd.f32 %v2431_v16, %v2430_v55  ;;  %v2504_v52 = vadd.f32 %v2503_v11, %v2502_v50  ;;  %v2128_v4 = vadd.f32 %v2127_v20, %v2126_v43 }
 0x18c   :  { %v444_v48 = vld [vmem:[#allocation3 + $0x160] sm:$0xff]  ;;  %v309_v31 = vadd.f32 %v308_v29, %v228_v5  ;;  %v381_v10 = vadd.f32 %v380_v24, %v260_v26  ;;  %v520_v57 = vmul.f32 %v12680_v13, %v436_v61  ;;  %v2200_v28 = vadd.f32 %v2199_v0, %v2198_v15 }
 0x18d   :  { %v452_v41 = vld [vmem:[#allocation3 + $0x1a0] sm:$0xff]  ;;  %v528_v12 = vmul.f32 %v12667_v54, %v444_v48  ;;  %v2433_v46 = vrot.slane %v2432_v34, 2  ;;  %v2505_v8 = vrot.slane %v2504_v52, 2 }
 0x18e   :  { %v460_v23 = vld [vmem:[#allocation3 + $0x1e0] sm:$0xff]  ;;  %v310_v3 = vadd.f32 %v309_v31, %v236_v62  ;;  %v536_v40 = vmul.f32 %v12668_v56, %v452_v41  ;;  %v382_v59 = vadd.f32 %v381_v10, %v268_v19  ;;  %v2264_v19 = vadd.f32 %v2128_v4, %v1956_v42 }
 0x18f   :  { %v468_v36 = vld [vmem:[#allocation3 + $0x920] sm:$0xff]  ;;  %v2434_v61 = vadd.f32 %v2433_v46, %v2432_v34  ;;  %v2506_v43 = vadd.f32 %v2505_v8, %v2504_v52  ;;  %v616_v15 = vadd.f32 %v528_v12, %v520_v57 }
 0x190   :  { %v476_v39 = vld [vmem:[#allocation3 + $0x960] sm:$0xff]  ;;  %v311_v55 = vrot.slane %v310_v3, 4  ;;  %v552_v26 = vmul.f32 %v12680_v13, %v468_v36  ;;  %v383_v62 = vrot.slane %v382_v59, 4 }
 0x191   :  { %v484_v45 = vld [vmem:[#allocation3 + $0x9a0] sm:$0xff]  ;;  %v560_v29 = vmul.f32 %v12667_v54, %v476_v39  ;;  %v2435_v20 = vrot.slane %v2434_v61, 1  ;;  %v2507_v0 = vrot.slane %v2506_v43, 1  ;;  %v617_v13 = vadd.f32 %v616_v15, %v536_v40 }
 0x192   :  { %v492_v5 = vld [vmem:[#allocation3 + $0x9e0] sm:$0xff]  ;;  %v568_v16 = vmul.f32 %v12668_v56, %v484_v45  ;;  %v312_v11 = vadd.f32 %v311_v55, %v310_v3  ;;  %v384_v31 = vadd.f32 %v383_v62, %v382_v59 }
 0x193   :  { %v12681_v50 = vld [vmem:[#allocation34_spill] sm:$0xff]  ;;  %v688_v48 = vadd.f32 %v560_v29, %v552_v26  ;;  %v2436_v52 = vadd.f32 %v2435_v20, %v2434_v61  ;;  %v2508_v46 = vadd.f32 %v2507_v0, %v2506_v43 }
 0x194   :  { %v544_v22 = vmul.f32 %v12681_v50, %v460_v23  ;;  %v576_v24 = vmul.f32 %v12681_v50, %v492_v5  ;;  %v744_v41 = vld [vmem:[#allocation3 + $0x220] sm:$0xff]  ;;  %v2272_v23 = vadd.f32 %v2200_v28, %v1964_v21  ;;  %v313_v36 = vrot.slane %v312_v11, 2 }
 0x195   :  { %v752_v10 = vld [vmem:[#allocation3 + $0x260] sm:$0xff]  ;;  %v689_v39 = vadd.f32 %v688_v48, %v568_v16  ;;  %v385_v8 = vrot.slane %v384_v31, 2  ;;  %v828_v3 = vmul.f32 %v12673_v38, %v744_v41  ;;  %v2572_v4 = vadd.f32 %v2436_v52, %v2264_v19  ;;  %v12682_v41 = vld [vmem:[#allocation39_spill] sm:$0xff] }
 0x196   :  { %v776_v34 = vld [vmem:[#allocation3 + $0xa20] sm:$0xff]  ;;  %v314_v5 = vadd.f32 %v313_v36, %v312_v11  ;;  %v618_v57 = vadd.f32 %v617_v13, %v544_v22  ;;  %v836_v42 = vmul.f32 %v12674_v18, %v752_v10  ;;  %v2580_v59 = vadd.f32 %v2508_v46, %v2272_v23 }
 0x197   :  { %v784_v45 = vld [vmem:[#allocation3 + $0xa60] sm:$0xff]  ;;  %v690_v12 = vadd.f32 %v689_v39, %v576_v24  ;;  %v386_v26 = vadd.f32 %v385_v8, %v384_v31  ;;  %v860_v40 = vmul.f32 %v12673_v38, %v776_v34  ;;  %v2590_v16 = vadd.f32 %v11296_v53, %v2572_v4 }
 0x198   :  { %v760_v55 = vld [vmem:[#allocation3 + $0x2a0] sm:$0xff]  ;;  %v315_v29 = vrot.slane %v314_v5, 1  ;;  %v619_v61 = vrot.slane %v618_v57, 4  ;;  %v868_v62 = vmul.f32 %v12674_v18, %v784_v45  ;;  %v2598_v13 = vadd.f32 %v11296_v53, %v2580_v59 }
 0x199   :  { %v768_v21 = vld [vmem:[#allocation3 + $0x2e0] sm:$0xff]  ;;  %v691_v43 = vrot.slane %v690_v12, 4  ;;  %v387_v22 = vrot.slane %v386_v26, 1  ;;  %v844_v24 = vmul.f32 %v11386_v7, %v760_v55  ;;  %v2606_v0 = vpack.c.bf16 %v2590_v16, %v2590_v16 }
 0x19a   :  { %v792_v28 = vld [vmem:[#allocation3 + $0xaa0] sm:$0xff]  ;;  %v620_v15 = vadd.f32 %v619_v61, %v618_v57  ;;  %v852_v19 = vmul.f32 %v12682_v41, %v768_v21  ;;  %v2614_v31 = vpack.c.bf16 %v2598_v13, %v2598_v13  ;;  %v11651_v10 = vadd.f32 %v315_v29, %v314_v5 }
 0x19b   :  { %v800_v11 = vld [vmem:[#allocation3 + $0xae0] sm:$0xff]  ;;  %v692_v48 = vadd.f32 %v691_v43, %v690_v12  ;;  %v876_v20 = vmul.f32 %v11386_v7, %v792_v28  ;;  %v924_v23 = vadd.f32 %v836_v42, %v828_v3  ;;  %v996_v46 = vadd.f32 %v868_v62, %v860_v40 }
 0x19c   :  { %v1060_v36 = vld [vmem:[#allocation3 + $0x360] sm:$0xff]  ;;  %v621_v39 = vrot.slane %v620_v15, 2  ;;  %v884_v52 = vmul.f32 %v12682_v41, %v800_v11  ;;  %v3192_v55 = vunpack.c.l.b16 %v2606_v0  ;;  %v3200_v57 = vunpack.c.l.b16 %v2614_v31 }
 0x19d   :  { %v693_v34 = vrot.slane %v692_v48, 2  ;;  %v1052_v8 = vld [vmem:[#allocation3 + $0x320] sm:$0xff]  ;;  %v11654_v12 = vadd.f32 %v387_v22, %v386_v26  ;;  %v925_v4 = vadd.f32 %v924_v23, %v844_v24  ;;  %v997_v28 = vadd.f32 %v996_v46, %v876_v20 }
 0x19e   :  { %v1068_v45 = vld [vmem:[#allocation3 + $0x3a0] sm:$0xff]  ;;  %v622_v59 = vadd.f32 %v621_v39, %v620_v15  ;;  %v1144_v3 = vmul.f32 %v11402_v49, %v1060_v36  ;;  %v3209_v42 = vsel %vm3208_vm0, %v3200_v57, %v3192_v55  ;;  %v1136_v62 = vmul.f32 %v11384_v6, %v1052_v8 }
 0x19f   :  { %v694_v21 = vadd.f32 %v693_v34, %v692_v48  ;;  %v1084_v61 = vld [vmem:[#allocation3 + $0xb20] sm:$0xff]  ;;  %v926_v43 = vadd.f32 %v925_v4, %v852_v19  ;;  %v11660_v26 = vpack.c.b16 %v3209_v42, %v3209_v42  ;;  %v998_v15 = vadd.f32 %v997_v28, %v884_v52 }
 0x1a0   :  { %v1092_v5 = vld [vmem:[#allocation3 + $0xb60] sm:$0xff]  ;;  %v623_v22 = vrot.slane %v622_v59, 1  ;;  %v1168_v20 = vmul.f32 %v11384_v6, %v1084_v61  ;;  %v1232_v46 = vadd.f32 %v1144_v3, %v1136_v62 }
 0x1a1   :  { %v1100_v29 = vld [vmem:[#allocation3 + $0xba0] sm:$0xff]  ;;  %12684 = vst [vmem:[#allocation36_spill] sm:$0xff] %v11660_v26  ;;  %v695_v24 = vrot.slane %v694_v21, 1  ;;  %v927_v48 = vrot.slane %v926_v43, 4  ;;  %v1176_v0 = vmul.f32 %v11402_v49, %v1092_v5  ;;  %5826 = vmatmul.mubr.bf16.vlgmr.msra.gmra.mrb[0].mxu1 %v11660_v26  ;;  %v999_v36 = vrot.slane %v998_v15, 4 }
 0x1a2   :  { %v1076_v16 = vld [vmem:[#allocation3 + $0x3e0] sm:$0xff]  ;;  %v624_v4 = vadd.f32 %v623_v22, %v622_v59 }
 0x1a3   :  { %v1108_v40 = vld [vmem:[#allocation3 + $0xbe0] sm:$0xff]  ;;  %v1160_v39 = vmul.f32 %v11416_v9, %v1076_v16  ;;  %v696_v28 = vadd.f32 %v695_v24, %v694_v21  ;;  %v928_v61 = vadd.f32 %v927_v48, %v926_v43  ;;  %v1304_v5 = vadd.f32 %v1176_v0, %v1168_v20 }
 0x1a4   :  { %v12683_v13 = vld [vmem:[#allocation42_spill] sm:$0xff]  ;;  %v1192_v34 = vmul.f32 %v11416_v9, %v1108_v40  ;;  %v12685_v52 = vld [vmem:[#allocation17_spill] sm:$0xff] }
 0x1a5   :  { %v1152_v11 = vmul.f32 %v12683_v13, %v1068_v45  ;;  %v1184_v31 = vmul.f32 %v12683_v13, %v1100_v29  ;;  %v1360_v23 = vld [vmem:[#allocation3 + $0x420] sm:$0xff]  ;;  %v1000_v13 = vadd.f32 %v999_v36, %v998_v15  ;;  %v929_v40 = vrot.slane %v928_v61, 2 }
 0x1a6   :  { %v1368_v19 = vld [vmem:[#allocation3 + $0x460] sm:$0xff]  ;;  %v1444_v16 = vmul.f32 %v11410_v25, %v1360_v23 }
 0x1a7   :  { %v1376_v8 = vld [vmem:[#allocation3 + $0x4a0] sm:$0xff]  ;;  %v1233_v26 = vadd.f32 %v1232_v46, %v1152_v11  ;;  %v1452_v3 = vmul.f32 %v11418_v17, %v1368_v19  ;;  %v1305_v62 = vadd.f32 %v1304_v5, %v1184_v31  ;;  %v1001_v59 = vrot.slane %v1000_v13, 2 }
 0x1a8   :  { %v1384_v45 = vld [vmem:[#allocation3 + $0x4e0] sm:$0xff]  ;;  %v1460_v9 = vmul.f32 %v11428_v58, %v1376_v8  ;;  %v930_v24 = vadd.f32 %v929_v40, %v928_v61  ;;  %v728_v46 = vadd.f32 %v624_v4, %v11651_v10 }
 0x1a9   :  { %v12686_v55 = vld [vmem:[#allocation18_spill] sm:$0xff]  ;;  %v1234_v21 = vadd.f32 %v1233_v26, %v1160_v39  ;;  %v1306_v11 = vadd.f32 %v1305_v62, %v1192_v34  ;;  %v1002_v20 = vadd.f32 %v1001_v59, %v1000_v13  ;;  %v1540_v23 = vadd.f32 %v1452_v3, %v1444_v16  ;;  %v12689_v3 = vld [vmem:[#allocation48_spill] sm:$0xff] }
 0x1aa   :  { %v12687_v57 = vcombine.low %v12685_v52, %v12686_v55  ;;  %v1392_v29 = vld [vmem:[#allocation3 + $0xc20] sm:$0xff]  ;;  %v12688_v52 = vld [vmem:[#allocation47_spill] sm:$0xff]  ;;  %v736_v26 = vadd.f32 %v696_v28, %v11654_v12  ;;  %v931_v39 = vrot.slane %v930_v24, 1 }
 0x1ab   :  { %v1400_v42 = vld [vmem:[#allocation3 + $0xc60] sm:$0xff]  ;;  %v1468_v55 = vmul.f32 %v12688_v52, %v1384_v45  ;;  %v1476_v43 = vmul.f32 %v11410_v25, %v1392_v29  ;;  %v1235_v0 = vrot.slane %v1234_v21, 4  ;;  %v1307_v8 = vrot.slane %v1306_v11, 4 }
 0x1ac   :  { %5835 = vmatpush1.bf16.msra.mxu1 %v12687_v57  ;;  %v1408_v49 = vld [vmem:[#allocation3 + $0xca0] sm:$0xff]  ;;  %v1484_v22 = vmul.f32 %v11418_v17, %v1400_v42  ;;  %v1003_v57 = vrot.slane %v1002_v20, 1  ;;  %v1541_v34 = vadd.f32 %v1540_v23, %v1460_v9 }
 0x1ad   :  { %v1416_v6 = vld [vmem:[#allocation3 + $0xce0] sm:$0xff]  ;;  %v1492_v15 = vmul.f32 %v11428_v58, %v1408_v49  ;;  %v1236_v61 = vadd.f32 %v1235_v0, %v1234_v21  ;;  %v1308_v13 = vadd.f32 %v1307_v8, %v1306_v11 }
 0x1ae   :  { %v1500_v48 = vmul.f32 %v12688_v52, %v1416_v6  ;;  %v1612_v31 = vadd.f32 %v1484_v22, %v1476_v43  ;;  %v1668_v19 = vld [vmem:[#allocation3 + $0x520] sm:$0xff]  ;;  %v932_v6 = vadd.f32 %v931_v39, %v930_v24  ;;  %v1542_v10 = vadd.f32 %v1541_v34, %v1468_v55 }
 0x1af   :  { %v1676_v36 = vld [vmem:[#allocation3 + $0x560] sm:$0xff]  ;;  %v1752_v16 = vmul.f32 %v11426_v60, %v1668_v19  ;;  %v1237_v62 = vrot.slane %v1236_v61, 2  ;;  %v1004_v22 = vadd.f32 %v1003_v57, %v1002_v20  ;;  %v1309_v21 = vrot.slane %v1308_v13, 2 }
 0x1b0   :  { %v1684_v45 = vld [vmem:[#allocation3 + $0x5a0] sm:$0xff]  ;;  %v1613_v5 = vadd.f32 %v1612_v31, %v1492_v15  ;;  %v1760_v40 = vmul.f32 %v12689_v3, %v1676_v36  ;;  %v1543_v11 = vrot.slane %v1542_v10, 4  ;;  %v1036_v34 = vadd.f32 %v932_v6, %v728_v46 }
 0x1b1   :  { %v1692_v49 = vld [vmem:[#allocation3 + $0x5e0] sm:$0xff]  ;;  %v1238_v24 = vadd.f32 %v1237_v62, %v1236_v61  ;;  %v1310_v31 = vadd.f32 %v1309_v21, %v1308_v13 }
 0x1b2   :  { %v1708_v29 = vld [vmem:[#allocation3 + $0xd60] sm:$0xff]  ;;  %v1614_v4 = vadd.f32 %v1613_v5, %v1500_v48  ;;  %v1776_v9 = vmul.f32 %v11456_v27, %v1692_v49  ;;  %v1848_v48 = vadd.f32 %v1760_v40, %v1752_v16  ;;  %v1544_v8 = vadd.f32 %v1543_v11, %v1542_v10 }
 0x1b3   :  { %v1700_v42 = vld [vmem:[#allocation3 + $0xd20] sm:$0xff]  ;;  %v1792_v15 = vmul.f32 %v12689_v3, %v1708_v29  ;;  %v1239_v39 = vrot.slane %v1238_v24, 1  ;;  %v1044_v5 = vadd.f32 %v1004_v22, %v736_v26  ;;  %v1311_v49 = vrot.slane %v1310_v31, 1 }
 0x1b4   :  { %v1716_v12 = vld [vmem:[#allocation3 + $0xda0] sm:$0xff]  ;;  %v1615_v0 = vrot.slane %v1614_v4, 4  ;;  %v1784_v23 = vmul.f32 %v11426_v60, %v1700_v42  ;;  %v1545_v62 = vrot.slane %v1544_v8, 2 }
 0x1b5   :  { %v1724_v28 = vld [vmem:[#allocation3 + $0xde0] sm:$0xff]  ;;  %v1240_v16 = vadd.f32 %v1239_v39, %v1238_v24  ;;  %v1312_v40 = vadd.f32 %v1311_v49, %v1310_v31 }
 0x1b6   :  { %v12690_v59 = vld [vmem:[#allocation50_spill] sm:$0xff]  ;;  %v1808_v55 = vmul.f32 %v11456_v27, %v1724_v28  ;;  %v1616_v20 = vadd.f32 %v1615_v0, %v1614_v4 }
 0x1b7   :  { %v1768_v43 = vmul.f32 %v12690_v59, %v1684_v45  ;;  %v1800_v19 = vmul.f32 %v12690_v59, %v1716_v12  ;;  %v1976_v36 = vld [vmem:[#allocation3 + $0x620] sm:$0xff]  ;;  %v1920_v45 = vadd.f32 %v1792_v15, %v1784_v23  ;;  %v1546_v15 = vadd.f32 %v1545_v62, %v1544_v8 }
 0x1b8   :  { %v1984_v57 = vld [vmem:[#allocation3 + $0x660] sm:$0xff]  ;;  %v1617_v3 = vrot.slane %v1616_v20, 2  ;;  %v2060_v28 = vmul.f32 %v11445_v33, %v1976_v36 }
 0x1b9   :  { %v1849_v61 = vadd.f32 %v1848_v48, %v1768_v43  ;;  %v1992_v29 = vld [vmem:[#allocation3 + $0x6a0] sm:$0xff]  ;;  %v1921_v42 = vadd.f32 %v1920_v45, %v1800_v19  ;;  %v2068_v4 = vmul.f32 %v11458_v32, %v1984_v57  ;;  %v1547_v19 = vrot.slane %v1546_v15, 1 }
 0x1ba   :  { %v2000_v13 = vld [vmem:[#allocation3 + $0x6e0] sm:$0xff]  ;;  %v1618_v46 = vadd.f32 %v1617_v3, %v1616_v20  ;;  %v2076_v43 = vmul.f32 %v11468_v14, %v1992_v29  ;;  %v1344_v20 = vadd.f32 %v1240_v16, %v1036_v34  ;;  %v1352_v45 = vadd.f32 %v1312_v40, %v1044_v5 }
 0x1bb   :  { %v2008_v21 = vld [vmem:[#allocation3 + $0xe20] sm:$0xff]  ;;  %v1850_v27 = vadd.f32 %v1849_v61, %v1776_v9  ;;  %v1922_v26 = vadd.f32 %v1921_v42, %v1808_v55  ;;  %v2084_v11 = vmul.f32 %v11474_v35, %v2000_v13  ;;  %v2156_v3 = vadd.f32 %v2068_v4, %v2060_v28 }
 0x1bc   :  { %v2016_v12 = vld [vmem:[#allocation3 + $0xe60] sm:$0xff]  ;;  %v2092_v0 = vmul.f32 %v11445_v33, %v2008_v21  ;;  %v1619_v24 = vrot.slane %v1618_v46, 1  ;;  %v1548_v57 = vadd.f32 %v1547_v19, %v1546_v15 }
 0x1bd   :  { %v2024_v10 = vld [vmem:[#allocation3 + $0xea0] sm:$0xff]  ;;  %v1851_v22 = vrot.slane %v1850_v27, 4  ;;  %v2100_v23 = vmul.f32 %v11458_v32, %v2016_v12  ;;  %v1923_v31 = vrot.slane %v1922_v26, 4  ;;  %v2157_v42 = vadd.f32 %v2156_v3, %v2076_v43 }
 0x1be   :  { %v2032_v6 = vld [vmem:[#allocation3 + $0xee0] sm:$0xff]  ;;  %v2108_v9 = vmul.f32 %v11468_v14, %v2024_v10  ;;  %v1620_v29 = vadd.f32 %v1619_v24, %v1618_v46  ;;  %v1652_v10 = vadd.f32 %v1548_v57, %v1344_v20 }
 0x1bf   :  { %v1852_v48 = vadd.f32 %v1851_v22, %v1850_v27  ;;  %v2116_v36 = vmul.f32 %v11474_v35, %v2032_v6  ;;  %v2228_v55 = vadd.f32 %v2100_v23, %v2092_v0  ;;  %v2284_v39 = vld [vmem:[#allocation3 + $0x720] sm:$0xff]  ;;  %v1924_v49 = vadd.f32 %v1923_v31, %v1922_v26  ;;  %v127_v31 = vld [vmem:[#allocation3 + $0x18] sm:$0xff] }
 0x1c0   :  { %v2292_v8 = vld [vmem:[#allocation3 + $0x760] sm:$0xff]  ;;  %v2368_v6 = vmul.f32 %v11466_v51, %v2284_v39  ;;  %v2158_v22 = vadd.f32 %v2157_v42, %v2084_v11  ;;  %v1660_v0 = vadd.f32 %v1620_v29, %v1352_v45  ;;  %v167_v45 = vld [vmem:[#allocation3 + $0x858] sm:$0xff] }
 0x1c1   :  { %v2300_v61 = vld [vmem:[#allocation3 + $0x7a0] sm:$0xff]  ;;  %v1853_v62 = vrot.slane %v1852_v48, 2  ;;  %v2229_v13 = vadd.f32 %v2228_v55, %v2108_v9  ;;  %v1925_v27 = vrot.slane %v1924_v49, 2  ;;  %v2376_v28 = vmul.f32 %v11476_v63, %v2292_v8  ;;  %v135_v9 = vld [vmem:[#allocation3 + $0x58] sm:$0xff] }
 0x1c2   :  { %v2316_v21 = vld [vmem:[#allocation3 + $0xf20] sm:$0xff]  ;;  %v2384_v16 = vmul.f32 %v11488_v30, %v2300_v61  ;;  %v2159_v19 = vrot.slane %v2158_v22, 4  ;;  %v143_v55 = vld [vmem:[#allocation3 + $0x98] sm:$0xff]  ;;  %v219_v42 = vmul.f32 %v12677_v37, %v135_v9 }
 0x1c3   :  { %v2324_v12 = vld [vmem:[#allocation3 + $0xf60] sm:$0xff]  ;;  %v1854_v4 = vadd.f32 %v1853_v62, %v1852_v48  ;;  %v2230_v34 = vadd.f32 %v2229_v13, %v2116_v36  ;;  %v1926_v40 = vadd.f32 %v1925_v27, %v1924_v49  ;;  %v2400_v46 = vmul.f32 %v11466_v51, %v2316_v21  ;;  %v159_v49 = vld [vmem:[#allocation3 + $0x818] sm:$0xff] }
 0x1c4   :  { %v2332_v32 = vld [vmem:[#allocation3 + $0xfa0] sm:$0xff]  ;;  %v2408_v26 = vmul.f32 %v11476_v63, %v2324_v12  ;;  %v2464_v36 = vadd.f32 %v2376_v28, %v2368_v6  ;;  %v2160_v8 = vadd.f32 %v2159_v19, %v2158_v22  ;;  %v175_v29 = vld [vmem:[#allocation3 + $0x898] sm:$0xff]  ;;  %v211_v62 = vmul.f32 %v12675_v47, %v127_v31 }
 0x1c5   :  { %v2308_v5 = vld [vmem:[#allocation3 + $0x7e0] sm:$0xff]  ;;  %v2416_v43 = vmul.f32 %v11488_v30, %v2332_v32  ;;  %v1855_v23 = vrot.slane %v1854_v4, 1  ;;  %v2231_v24 = vrot.slane %v2230_v34, 4  ;;  %v1927_v48 = vrot.slane %v1926_v40, 1  ;;  %v151_v27 = vld [vmem:[#allocation3 + $0xd8] sm:$0xff] }
 0x1c6   :  { %v2340_v15 = vld [vmem:[#allocation3 + $0xfe0] sm:$0xff]  ;;  %v2392_v11 = vmul.f32 %v11486_v44, %v2308_v5  ;;  %v2536_v3 = vadd.f32 %v2408_v26, %v2400_v46  ;;  %v2465_v61 = vadd.f32 %v2464_v36, %v2384_v16  ;;  %v2161_v21 = vrot.slane %v2160_v8, 2  ;;  %v443_v31 = vld [vmem:[#allocation3 + $0x158] sm:$0xff] }
 0x1c7   :  { %v1856_v39 = vadd.f32 %v1855_v23, %v1854_v4  ;;  %v2232_v20 = vadd.f32 %v2231_v24, %v2230_v34  ;;  %v2424_v57 = vmul.f32 %v11486_v44, %v2340_v15  ;;  %v1928_v13 = vadd.f32 %v1927_v48, %v1926_v40  ;;  %v183_v34 = vld [vmem:[#allocation3 + $0x8d8] sm:$0xff] }
 0x1c8   :  { %v2537_v32 = vadd.f32 %v2536_v3, %v2416_v43  ;;  %v227_v6 = vmul.f32 %v12678_v2, %v143_v55  ;;  %v2466_v4 = vadd.f32 %v2465_v61, %v2392_v11  ;;  %v243_v5 = vmul.f32 %v12675_v47, %v159_v49  ;;  %v435_v24 = vld [vmem:[#allocation3 + $0x118] sm:$0xff] }
 0x1c9   :  { %v2233_v12 = vrot.slane %v2232_v20, 2  ;;  %v1960_v28 = vadd.f32 %v1856_v39, %v1652_v10  ;;  %v2162_v16 = vadd.f32 %v2161_v21, %v2160_v8  ;;  %v251_v46 = vmul.f32 %v12677_v37, %v167_v45  ;;  %v451_v8 = vld [vmem:[#allocation3 + $0x198] sm:$0xff]  ;;  %v12691_v45 = vld [vmem:[#allocation19_spill] sm:$0xff] }
 0x1ca   :  { %v2538_v22 = vadd.f32 %v2537_v32, %v2424_v57  ;;  %v259_v26 = vmul.f32 %v12678_v2, %v175_v29  ;;  %v2467_v43 = vrot.slane %v2466_v4, 4  ;;  %v235_v40 = vmul.f32 %v12679_v1, %v151_v27  ;;  %v467_v57 = vld [vmem:[#allocation3 + $0x918] sm:$0xff] }
 0x1cb   :  { %v2234_v15 = vadd.f32 %v2233_v12, %v2232_v20  ;;  %v299_v19 = vadd.f32 %v219_v42, %v211_v62  ;;  %v2163_v9 = vrot.slane %v2162_v16, 1  ;;  %v267_v48 = vmul.f32 %v12679_v1, %v183_v34  ;;  %v459_v20 = vld [vmem:[#allocation3 + $0x1d8] sm:$0xff] }
 0x1cc   :  { %v2539_v23 = vrot.slane %v2538_v22, 4  ;;  %v371_v11 = vadd.f32 %v251_v46, %v243_v5  ;;  %v1968_v36 = vadd.f32 %v1928_v13, %v1660_v0  ;;  %v2468_v3 = vadd.f32 %v2467_v43, %v2466_v4  ;;  %v475_v32 = vld [vmem:[#allocation3 + $0x958] sm:$0xff] }
 0x1cd   :  { %v2235_v10 = vrot.slane %v2234_v15, 1  ;;  %v300_v39 = vadd.f32 %v299_v19, %v227_v6  ;;  %v2164_v49 = vadd.f32 %v2163_v9, %v2162_v16  ;;  %v519_v29 = vmul.f32 %v12691_v45, %v435_v24  ;;  %v483_v34 = vld [vmem:[#allocation3 + $0x998] sm:$0xff] }
 0x1ce   :  { %v2540_v55 = vadd.f32 %v2539_v23, %v2538_v22  ;;  %v372_v61 = vadd.f32 %v371_v11, %v259_v26  ;;  %v527_v62 = vmul.f32 %v12667_v54, %v443_v31  ;;  %v2469_v21 = vrot.slane %v2468_v3, 2  ;;  %v491_v5 = vld [vmem:[#allocation3 + $0x9d8] sm:$0xff] }
 0x1cf   :  { %v2236_v42 = vadd.f32 %v2235_v10, %v2234_v15  ;;  %v301_v27 = vadd.f32 %v300_v39, %v235_v40  ;;  %v535_v13 = vmul.f32 %v12668_v56, %v451_v8  ;;  %v543_v6 = vmul.f32 %v12681_v50, %v459_v20  ;;  %v743_v10 = vld [vmem:[#allocation3 + $0x218] sm:$0xff] }
 0x1d0   :  { %v2541_v12 = vrot.slane %v2540_v55, 2  ;;  %v373_v0 = vadd.f32 %v372_v61, %v267_v48  ;;  %v551_v4 = vmul.f32 %v12691_v45, %v467_v57  ;;  %v2470_v22 = vadd.f32 %v2469_v21, %v2468_v3  ;;  %v751_v48 = vld [vmem:[#allocation3 + $0x258] sm:$0xff] }
 0x1d1   :  { %v302_v46 = vrot.slane %v301_v27, 4  ;;  %v559_v26 = vmul.f32 %v12667_v54, %v475_v32  ;;  %v567_v15 = vmul.f32 %v12668_v56, %v483_v34  ;;  %v575_v23 = vmul.f32 %v12681_v50, %v491_v5  ;;  %v775_v32 = vld [vmem:[#allocation3 + $0xa18] sm:$0xff] }
 0x1d2   :  { %v2542_v16 = vadd.f32 %v2541_v12, %v2540_v55  ;;  %v374_v43 = vrot.slane %v373_v0, 4  ;;  %v607_v40 = vadd.f32 %v527_v62, %v519_v29  ;;  %v2471_v19 = vrot.slane %v2470_v22, 1  ;;  %v783_v21 = vld [vmem:[#allocation3 + $0xa58] sm:$0xff] }
 0x1d3   :  { %v303_v31 = vadd.f32 %v302_v46, %v301_v27  ;;  %v679_v9 = vadd.f32 %v559_v26, %v551_v4  ;;  %v2268_v11 = vadd.f32 %v2164_v49, %v1960_v28  ;;  %v2276_v39 = vadd.f32 %v2236_v42, %v1968_v36  ;;  %v759_v28 = vld [vmem:[#allocation3 + $0x298] sm:$0xff] }
 0x1d4   :  { %v2543_v24 = vrot.slane %v2542_v16, 1  ;;  %v375_v8 = vadd.f32 %v374_v43, %v373_v0  ;;  %v608_v3 = vadd.f32 %v607_v40, %v535_v13  ;;  %v2472_v55 = vadd.f32 %v2471_v19, %v2470_v22  ;;  %v767_v36 = vld [vmem:[#allocation3 + $0x2d8] sm:$0xff] }
 0x1d5   :  { %v304_v57 = vrot.slane %v303_v31, 2  ;;  %v680_v61 = vadd.f32 %v679_v9, %v567_v15  ;;  %v827_v29 = vmul.f32 %v12673_v38, %v743_v10  ;;  %v835_v62 = vmul.f32 %v12674_v18, %v751_v48  ;;  %v791_v49 = vld [vmem:[#allocation3 + $0xa98] sm:$0xff] }
 0x1d6   :  { %v2544_v20 = vadd.f32 %v2543_v24, %v2542_v16  ;;  %v376_v12 = vrot.slane %v375_v8, 2  ;;  %v609_v34 = vadd.f32 %v608_v3, %v543_v6  ;;  %v2576_v27 = vadd.f32 %v2472_v55, %v2268_v11  ;;  %v799_v15 = vld [vmem:[#allocation3 + $0xad8] sm:$0xff] }
 0x1d7   :  { %v305_v4 = vadd.f32 %v304_v57, %v303_v31  ;;  %v681_v46 = vadd.f32 %v680_v61, %v575_v23  ;;  %v859_v13 = vmul.f32 %v12673_v38, %v775_v32  ;;  %v867_v22 = vmul.f32 %v12674_v18, %v783_v21  ;;  %v1051_v11 = vld [vmem:[#allocation3 + $0x318] sm:$0xff] }
 0x1d8   :  { %v2584_v5 = vadd.f32 %v2544_v20, %v2276_v39  ;;  %v377_v42 = vadd.f32 %v376_v12, %v375_v8  ;;  %v610_v0 = vrot.slane %v609_v34, 4  ;;  %v2594_v16 = vadd.f32 %v11296_v53, %v2576_v27  ;;  %v1059_v20 = vld [vmem:[#allocation3 + $0x358] sm:$0xff] }
 0x1d9   :  { %v306_v26 = vrot.slane %v305_v4, 1  ;;  %v682_v43 = vrot.slane %v681_v46, 4  ;;  %v843_v19 = vmul.f32 %v11386_v7, %v759_v28  ;;  %v851_v23 = vmul.f32 %v12682_v41, %v767_v36  ;;  %v1067_v57 = vld [vmem:[#allocation3 + $0x398] sm:$0xff] }
 0x1da   :  { %v2602_v6 = vadd.f32 %v11296_v53, %v2584_v5  ;;  %v611_v40 = vadd.f32 %v610_v0, %v609_v34  ;;  %v875_v24 = vmul.f32 %v11386_v7, %v791_v49  ;;  %v2610_v31 = vpack.c.bf16 %v2594_v16, %v2594_v16  ;;  %v1083_v28 = vld [vmem:[#allocation3 + $0xb18] sm:$0xff]  ;;  %v12692_v0 = vld [vmem:[#allocation38_spill] sm:$0xff] }
 0x1db   :  { %v378_v10 = vrot.slane %v377_v42, 1  ;;  %v683_v48 = vadd.f32 %v682_v43, %v681_v46  ;;  %v883_v8 = vmul.f32 %v12682_v41, %v799_v15  ;;  %v915_v3 = vadd.f32 %v835_v62, %v827_v29  ;;  %v1091_v36 = vld [vmem:[#allocation3 + $0xb58] sm:$0xff]  ;;  %v12694_v62 = vld [vmem:[#allocation42_spill] sm:$0xff] }
 0x1dc   :  { %v2618_v9 = vpack.c.bf16 %v2602_v6, %v2602_v6  ;;  %v612_v39 = vrot.slane %v611_v40, 2  ;;  %v987_v55 = vadd.f32 %v867_v22, %v859_v13  ;;  %v3196_v61 = vunpack.c.l.b16 %v2610_v31  ;;  %v1099_v49 = vld [vmem:[#allocation3 + $0xb98] sm:$0xff] }
 0x1dd   :  { %v307_v21 = vadd.f32 %v306_v26, %v305_v4  ;;  %v684_v12 = vrot.slane %v683_v48, 2  ;;  %v916_v27 = vadd.f32 %v915_v3, %v843_v19  ;;  %v1135_v46 = vmul.f32 %v12692_v0, %v1051_v11  ;;  %v12693_v43 = vld [vmem:[#allocation40_spill] sm:$0xff] }
 0x1de   :  { %v3204_v32 = vunpack.c.l.b16 %v2618_v9  ;;  %v613_v34 = vadd.f32 %v612_v39, %v611_v40  ;;  %v988_v5 = vadd.f32 %v987_v55, %v875_v24  ;;  %v1143_v29 = vmul.f32 %v12693_v43, %v1059_v20  ;;  %v1075_v40 = vld [vmem:[#allocation3 + $0x3d8] sm:$0xff] }
 0x1df   :  { %v685_v6 = vadd.f32 %v684_v12, %v683_v48  ;;  %v1151_v13 = vmul.f32 %v12694_v62, %v1067_v57  ;;  %v917_v4 = vadd.f32 %v916_v27, %v851_v23  ;;  %v1107_v19 = vld [vmem:[#allocation3 + $0xbd8] sm:$0xff]  ;;  %v1167_v31 = vmul.f32 %v12692_v0, %v1083_v28  ;;  %v12697_v23 = vld [vmem:[#allocation31_spill] sm:$0xff] }
 0x1e0   :  { %v3213_v16 = vsel %vm3208_vm0, %v3204_v32, %v3196_v61  ;;  %v614_v15 = vrot.slane %v613_v34, 1  ;;  %v989_v26 = vadd.f32 %v988_v5, %v883_v8  ;;  %v1175_v9 = vmul.f32 %v12693_v43, %v1091_v36  ;;  %v1367_v39 = vld [vmem:[#allocation3 + $0x458] sm:$0xff]  ;;  %v12696_v61 = vld [vmem:[#allocation30_spill] sm:$0xff]  ;;  %v12699_v32 = vld [vmem:[#allocation43_spill] sm:$0xff] }
 0x1e1   :  { %v11735_v22 = vpack.c.b16 %v3213_v16, %v3213_v16  ;;  %v686_v24 = vrot.slane %v685_v6, 1  ;;  %v1183_v11 = vmul.f32 %v12694_v62, %v1099_v49  ;;  %v379_v48 = vadd.f32 %v378_v10, %v377_v42  ;;  %v1359_v57 = vld [vmem:[#allocation3 + $0x418] sm:$0xff] }
 0x1e2   :  { %v615_v3 = vadd.f32 %v614_v15, %v613_v34  ;;  %v918_v55 = vrot.slane %v917_v4, 4  ;;  %v990_v20 = vrot.slane %v989_v26, 4  ;;  %v12698_v8 = vcombine.low %v12696_v61, %v12697_v23  ;;  %v1375_v36 = vld [vmem:[#allocation3 + $0x498] sm:$0xff] }
 0x1e3   :  { %12695 = vst [vmem:[#allocation25_spill] sm:$0xff] %v11735_v22  ;;  %5908 = vmatmul.mubr.bf16.vlgmr.msra.gmra.mrb[0].mxu0 %v11735_v22  ;;  %v1159_v12 = vmul.f32 %v12699_v32, %v1075_v40  ;;  %v1191_v27 = vmul.f32 %v12699_v32, %v1107_v19  ;;  %v1223_v5 = vadd.f32 %v1143_v29, %v1135_v46  ;;  %v1391_v49 = vld [vmem:[#allocation3 + $0xc18] sm:$0xff] }
 0x1e4   :  { %5917 = vmatpush1.bf16.msra.mxu0 %v12698_v8  ;;  %v1295_v28 = vadd.f32 %v1175_v9, %v1167_v31  ;;  %v687_v16 = vadd.f32 %v686_v24, %v685_v6  ;;  %v919_v62 = vadd.f32 %v918_v55, %v917_v4  ;;  %v991_v22 = vadd.f32 %v990_v20, %v989_v26  ;;  %v1399_v42 = vld [vmem:[#allocation3 + $0xc58] sm:$0xff] }
 0x1e5   :  { %v1407_v10 = vld [vmem:[#allocation3 + $0xc98] sm:$0xff]  ;;  %v1451_v34 = vmul.f32 %v11418_v17, %v1367_v39  ;;  %v727_v15 = vadd.f32 %v615_v3, %v307_v21  ;;  %v1224_v0 = vadd.f32 %v1223_v5, %v1151_v13  ;;  %v1443_v23 = vmul.f32 %v11410_v25, %v1359_v57 }
 0x1e6   :  { %v1296_v43 = vadd.f32 %v1295_v28, %v1183_v11  ;;  %v1383_v61 = vld [vmem:[#allocation3 + $0x4d8] sm:$0xff]  ;;  %v920_v40 = vrot.slane %v919_v62, 2  ;;  %v992_v8 = vrot.slane %v991_v22, 2  ;;  %v1459_v46 = vmul.f32 %v11428_v58, %v1375_v36 }
 0x1e7   :  { %v1415_v19 = vld [vmem:[#allocation3 + $0xcd8] sm:$0xff]  ;;  %v1475_v29 = vmul.f32 %v11410_v25, %v1391_v49  ;;  %v1225_v6 = vadd.f32 %v1224_v0, %v1159_v12  ;;  %v1483_v26 = vmul.f32 %v11418_v17, %v1399_v42  ;;  %v1491_v24 = vmul.f32 %v11428_v58, %v1407_v10 }
 0x1e8   :  { %v1297_v4 = vadd.f32 %v1296_v43, %v1191_v27  ;;  %v921_v31 = vadd.f32 %v920_v40, %v919_v62  ;;  %v993_v21 = vadd.f32 %v992_v8, %v991_v22  ;;  %v1467_v13 = vmul.f32 %v12688_v52, %v1383_v61  ;;  %v1667_v11 = vld [vmem:[#allocation3 + $0x518] sm:$0xff] }
 0x1e9   :  { %v1531_v9 = vadd.f32 %v1451_v34, %v1443_v23  ;;  %v1226_v39 = vrot.slane %v1225_v6, 4  ;;  %v1499_v55 = vmul.f32 %v12688_v52, %v1415_v19  ;;  %v1603_v20 = vadd.f32 %v1483_v26, %v1475_v29  ;;  %v1675_v57 = vld [vmem:[#allocation3 + $0x558] sm:$0xff] }
 0x1ea   :  { %v1298_v3 = vrot.slane %v1297_v4, 4  ;;  %v1683_v5 = vld [vmem:[#allocation3 + $0x598] sm:$0xff]  ;;  %v735_v28 = vadd.f32 %v687_v16, %v379_v48  ;;  %v922_v0 = vrot.slane %v921_v31, 1  ;;  %v994_v43 = vrot.slane %v993_v21, 1 }
 0x1eb   :  { %v1532_v12 = vadd.f32 %v1531_v9, %v1459_v46  ;;  %v1227_v27 = vadd.f32 %v1226_v39, %v1225_v6  ;;  %v1604_v49 = vadd.f32 %v1603_v20, %v1491_v24  ;;  %v1691_v62 = vld [vmem:[#allocation3 + $0x5d8] sm:$0xff]  ;;  %v1751_v10 = vmul.f32 %v11426_v60, %v1667_v11 }
 0x1ec   :  { %v1299_v36 = vadd.f32 %v1298_v3, %v1297_v4  ;;  %v1699_v22 = vld [vmem:[#allocation3 + $0xd18] sm:$0xff]  ;;  %v923_v34 = vadd.f32 %v922_v0, %v921_v31  ;;  %v1767_v19 = vmul.f32 %v12690_v59, %v1683_v5  ;;  %v995_v29 = vadd.f32 %v994_v43, %v993_v21  ;;  %v12701_v4 = vld [vmem:[#allocation51_spill] sm:$0xff] }
 0x1ed   :  { %v1707_v42 = vld [vmem:[#allocation3 + $0xd58] sm:$0xff]  ;;  %v1533_v61 = vadd.f32 %v1532_v12, %v1467_v13  ;;  %v1228_v48 = vrot.slane %v1227_v27, 2  ;;  %v1605_v26 = vadd.f32 %v1604_v49, %v1499_v55  ;;  %v1775_v24 = vmul.f32 %v12701_v4, %v1691_v62 }
 0x1ee   :  { %v1715_v23 = vld [vmem:[#allocation3 + $0xd98] sm:$0xff]  ;;  %v1300_v16 = vrot.slane %v1299_v36, 2  ;;  %v1783_v9 = vmul.f32 %v11426_v60, %v1699_v22  ;;  %v1035_v43 = vadd.f32 %v923_v34, %v727_v15  ;;  %v1043_v52 = vadd.f32 %v995_v29, %v735_v28 }
 0x1ef   :  { %v12700_v40 = vld [vmem:[#allocation48_spill] sm:$0xff]  ;;  %v1534_v6 = vrot.slane %v1533_v61, 4  ;;  %v1229_v11 = vadd.f32 %v1228_v48, %v1227_v27  ;;  %v1606_v13 = vrot.slane %v1605_v26, 4  ;;  %v1799_v3 = vmul.f32 %v12690_v59, %v1715_v23 }
 0x1f0   :  { %v1759_v8 = vmul.f32 %v12700_v40, %v1675_v57  ;;  %v1723_v46 = vld [vmem:[#allocation3 + $0xdd8] sm:$0xff]  ;;  %v1791_v39 = vmul.f32 %v12700_v40, %v1707_v42  ;;  %v1301_v31 = vadd.f32 %v1300_v16, %v1299_v36 }
 0x1f1   :  { %v1535_v20 = vadd.f32 %v1534_v6, %v1533_v61  ;;  %v1807_v57 = vmul.f32 %v12701_v4, %v1723_v46  ;;  %v1975_v0 = vld [vmem:[#allocation3 + $0x618] sm:$0xff]  ;;  %v1230_v12 = vrot.slane %v1229_v11, 1  ;;  %v1607_v62 = vadd.f32 %v1606_v13, %v1605_v26 }
 0x1f2   :  { %v1839_v21 = vadd.f32 %v1759_v8, %v1751_v10  ;;  %v1911_v5 = vadd.f32 %v1791_v39, %v1783_v9  ;;  %v1983_v55 = vld [vmem:[#allocation3 + $0x658] sm:$0xff]  ;;  %v1302_v49 = vrot.slane %v1301_v31, 1  ;;  %v2059_v46 = vmul.f32 %v11445_v33, %v1975_v0 }
 0x1f3   :  { %v1536_v22 = vrot.slane %v1535_v20, 2  ;;  %v1991_v27 = vld [vmem:[#allocation3 + $0x698] sm:$0xff]  ;;  %v1231_v16 = vadd.f32 %v1230_v12, %v1229_v11  ;;  %v1608_v23 = vrot.slane %v1607_v62, 2 }
 0x1f4   :  { %v1840_v60 = vadd.f32 %v1839_v21, %v1767_v19  ;;  %v1912_v42 = vadd.f32 %v1911_v5, %v1799_v3  ;;  %v1999_v36 = vld [vmem:[#allocation3 + $0x6d8] sm:$0xff]  ;;  %v1303_v6 = vadd.f32 %v1302_v49, %v1301_v31  ;;  %v2075_v19 = vmul.f32 %v11468_v14, %v1991_v27 }
 0x1f5   :  { %v2007_v48 = vld [vmem:[#allocation3 + $0xe18] sm:$0xff]  ;;  %v1537_v9 = vadd.f32 %v1536_v22, %v1535_v20  ;;  %v1609_v28 = vadd.f32 %v1608_v23, %v1607_v62  ;;  %v2083_v29 = vmul.f32 %v11474_v35, %v1999_v36  ;;  %v1343_v22 = vadd.f32 %v1231_v16, %v1035_v43 }
 0x1f6   :  { %v2015_v61 = vld [vmem:[#allocation3 + $0xe58] sm:$0xff]  ;;  %v1841_v15 = vadd.f32 %v1840_v60, %v1775_v24  ;;  %v1913_v34 = vadd.f32 %v1912_v42, %v1807_v57  ;;  %v2091_v13 = vmul.f32 %v11445_v33, %v2007_v48  ;;  %v1351_v42 = vadd.f32 %v1303_v6, %v1043_v52 }
 0x1f7   :  { %v12702_v10 = vld [vmem:[#allocation52_spill] sm:$0xff]  ;;  %v1538_v11 = vrot.slane %v1537_v9, 1  ;;  %v1610_v0 = vrot.slane %v1609_v28, 1 }
 0x1f8   :  { %v2067_v8 = vmul.f32 %v12702_v10, %v1983_v55  ;;  %v2023_v39 = vld [vmem:[#allocation3 + $0xe98] sm:$0xff]  ;;  %v1842_v3 = vrot.slane %v1841_v15, 4  ;;  %v1914_v21 = vrot.slane %v1913_v34, 4  ;;  %v2099_v5 = vmul.f32 %v12702_v10, %v2015_v61 }
 0x1f9   :  { %v2031_v26 = vld [vmem:[#allocation3 + $0xed8] sm:$0xff]  ;;  %v2107_v31 = vmul.f32 %v11468_v14, %v2023_v39  ;;  %v1539_v57 = vadd.f32 %v1538_v11, %v1537_v9  ;;  %v1611_v27 = vadd.f32 %v1610_v0, %v1609_v28 }
 0x1fa   :  { %v2115_v60 = vmul.f32 %v11474_v35, %v2031_v26  ;;  %v2147_v24 = vadd.f32 %v2067_v8, %v2059_v46  ;;  %v2291_v20 = vld [vmem:[#allocation3 + $0x758] sm:$0xff]  ;;  %v1843_v55 = vadd.f32 %v1842_v3, %v1841_v15  ;;  %v1915_v12 = vadd.f32 %v1914_v21, %v1913_v34 }
 0x1fb   :  { %v2219_v49 = vadd.f32 %v2099_v5, %v2091_v13  ;;  %v2283_v62 = vld [vmem:[#allocation3 + $0x718] sm:$0xff]  ;;  %v2375_v26 = vmul.f32 %v11476_v63, %v2291_v20  ;;  %v1651_v46 = vadd.f32 %v1539_v57, %v1343_v22  ;;  %v1659_v8 = vadd.f32 %v1611_v27, %v1351_v42 }
 0x1fc   :  { %v2148_v36 = vadd.f32 %v2147_v24, %v2075_v19  ;;  %v2299_v48 = vld [vmem:[#allocation3 + $0x798] sm:$0xff]  ;;  %v1844_v23 = vrot.slane %v1843_v55, 2  ;;  %v1916_v33 = vrot.slane %v1915_v12, 2  ;;  %v2367_v15 = vmul.f32 %v11466_v51, %v2283_v62 }
 0x1fd   :  { %v2220_v61 = vadd.f32 %v2219_v49, %v2107_v31  ;;  %v2315_v10 = vld [vmem:[#allocation3 + $0xf18] sm:$0xff]  ;;  %v2383_v6 = vmul.f32 %v11488_v30, %v2299_v48 }
 0x1fe   :  { %v2323_v4 = vld [vmem:[#allocation3 + $0xf58] sm:$0xff]  ;;  %v2149_v9 = vadd.f32 %v2148_v36, %v2083_v29  ;;  %v1845_v34 = vadd.f32 %v1844_v23, %v1843_v55  ;;  %v1917_v13 = vadd.f32 %v1916_v33, %v1915_v12  ;;  %v2399_v19 = vmul.f32 %v11466_v51, %v2315_v10 }
 0x1ff   :  { %v2331_v39 = vld [vmem:[#allocation3 + $0xf98] sm:$0xff]  ;;  %v2221_v43 = vadd.f32 %v2220_v61, %v2115_v60  ;;  %v2407_v11 = vmul.f32 %v11476_v63, %v2323_v4  ;;  %v2455_v24 = vadd.f32 %v2375_v26, %v2367_v15 }
 0x200   :  { %v2307_v52 = vld [vmem:[#allocation3 + $0x7d8] sm:$0xff]  ;;  %v2150_v28 = vrot.slane %v2149_v9, 4  ;;  %v2415_v3 = vmul.f32 %v11488_v30, %v2331_v39  ;;  %v1846_v0 = vrot.slane %v1845_v34, 1  ;;  %v1918_v29 = vrot.slane %v1917_v13, 1 }
 0x201   :  { %v2339_v16 = vld [vmem:[#allocation3 + $0xfd8] sm:$0xff]  ;;  %v2222_v31 = vrot.slane %v2221_v43, 4  ;;  %v2391_v33 = vmul.f32 %v11486_v44, %v2307_v52  ;;  %v2527_v57 = vadd.f32 %v2407_v11, %v2399_v19  ;;  %v2456_v10 = vadd.f32 %v2455_v24, %v2383_v6 }
 0x202   :  { %v131_v21 = vld [vmem:[#allocation3 + $0x38] sm:$0xff]  ;;  %v2151_v20 = vadd.f32 %v2150_v28, %v2149_v9  ;;  %v2423_v60 = vmul.f32 %v11486_v44, %v2339_v16  ;;  %v1847_v27 = vadd.f32 %v1846_v0, %v1845_v34  ;;  %v1919_v36 = vadd.f32 %v1918_v29, %v1917_v13 }
 0x203   :  { %v139_v5 = vld [vmem:[#allocation3 + $0x78] sm:$0xff]  ;;  %v2223_v49 = vadd.f32 %v2222_v31, %v2221_v43  ;;  %v215_v22 = vmul.f32 %v12675_v47, %v131_v21  ;;  %v2528_v23 = vadd.f32 %v2527_v57, %v2415_v3  ;;  %v2457_v9 = vadd.f32 %v2456_v10, %v2391_v33 }
 0x204   :  { %v147_v55 = vld [vmem:[#allocation3 + $0xb8] sm:$0xff]  ;;  %v223_v42 = vmul.f32 %v12677_v37, %v139_v5  ;;  %v2152_v48 = vrot.slane %v2151_v20, 2  ;;  %v1959_v24 = vadd.f32 %v1847_v27, %v1651_v46  ;;  %v1967_v33 = vadd.f32 %v1919_v36, %v1659_v8 }
 0x205   :  { %v155_v12 = vld [vmem:[#allocation3 + $0xf8] sm:$0xff]  ;;  %v2224_v26 = vrot.slane %v2223_v49, 2  ;;  %v231_v15 = vmul.f32 %v12678_v2, %v147_v55  ;;  %v2529_v16 = vadd.f32 %v2528_v23, %v2423_v60  ;;  %v2458_v11 = vrot.slane %v2457_v9, 4 }
 0x206   :  { %v163_v62 = vld [vmem:[#allocation3 + $0x838] sm:$0xff]  ;;  %v239_v52 = vmul.f32 %v12679_v1, %v155_v12  ;;  %v2153_v43 = vadd.f32 %v2152_v48, %v2151_v20  ;;  %v335_v0 = vadd.f32 %v223_v42, %v215_v22 }
 0x207   :  { %v171_v4 = vld [vmem:[#allocation3 + $0x878] sm:$0xff]  ;;  %v247_v6 = vmul.f32 %v12675_v47, %v163_v62  ;;  %v2225_v19 = vadd.f32 %v2224_v26, %v2223_v49  ;;  %v2530_v5 = vrot.slane %v2529_v16, 4  ;;  %v2459_v60 = vadd.f32 %v2458_v11, %v2457_v9 }
 0x208   :  { %v179_v61 = vld [vmem:[#allocation3 + $0x8b8] sm:$0xff]  ;;  %v255_v28 = vmul.f32 %v12677_v37, %v171_v4  ;;  %v2154_v21 = vrot.slane %v2153_v43, 1  ;;  %v336_v12 = vadd.f32 %v335_v0, %v231_v15 }
 0x209   :  { %v187_v39 = vld [vmem:[#allocation3 + $0x8f8] sm:$0xff]  ;;  %v263_v34 = vmul.f32 %v12678_v2, %v179_v61  ;;  %v2226_v20 = vrot.slane %v2225_v19, 1  ;;  %v2531_v55 = vadd.f32 %v2530_v5, %v2529_v16 }
 0x20a   :  { %v271_v13 = vmul.f32 %v12679_v1, %v187_v39  ;;  %v439_v3 = vld [vmem:[#allocation3 + $0x138] sm:$0xff]  ;;  %v407_v29 = vadd.f32 %v255_v28, %v247_v6  ;;  %v2155_v23 = vadd.f32 %v2154_v21, %v2153_v43  ;;  %v2460_v39 = vrot.slane %v2459_v60, 2 }
 0x20b   :  { %v447_v31 = vld [vmem:[#allocation3 + $0x178] sm:$0xff]  ;;  %v523_v48 = vmul.f32 %v12691_v45, %v439_v3  ;;  %v2227_v61 = vadd.f32 %v2226_v20, %v2225_v19  ;;  %v2532_v42 = vrot.slane %v2531_v55, 2  ;;  %v337_v46 = vadd.f32 %v336_v12, %v239_v52 }
 0x20c   :  { %v455_v57 = vld [vmem:[#allocation3 + $0x1b8] sm:$0xff]  ;;  %v408_v10 = vadd.f32 %v407_v29, %v263_v34  ;;  %v531_v22 = vmul.f32 %v12667_v54, %v447_v31  ;;  %v2461_v9 = vadd.f32 %v2460_v39, %v2459_v60  ;;  %v2267_v5 = vadd.f32 %v2155_v23, %v1959_v24 }
 0x20d   :  { %v463_v49 = vld [vmem:[#allocation3 + $0x1f8] sm:$0xff]  ;;  %v539_v36 = vmul.f32 %v12668_v56, %v455_v57  ;;  %v2533_v28 = vadd.f32 %v2532_v42, %v2531_v55  ;;  %v338_v43 = vrot.slane %v337_v46, 4  ;;  %v2275_v60 = vadd.f32 %v2227_v61, %v1967_v33 }
 0x20e   :  { %v471_v62 = vld [vmem:[#allocation3 + $0x938] sm:$0xff]  ;;  %v409_v8 = vadd.f32 %v408_v10, %v271_v13  ;;  %v547_v15 = vmul.f32 %v12681_v50, %v463_v49  ;;  %v2462_v34 = vrot.slane %v2461_v9, 1  ;;  %v643_v52 = vadd.f32 %v531_v22, %v523_v48 }
 0x20f   :  { %v479_v4 = vld [vmem:[#allocation3 + $0x978] sm:$0xff]  ;;  %v555_v16 = vmul.f32 %v12691_v45, %v471_v62  ;;  %v2534_v0 = vrot.slane %v2533_v28, 1  ;;  %v339_v29 = vadd.f32 %v338_v43, %v337_v46 }
 0x210   :  { %v487_v26 = vld [vmem:[#allocation3 + $0x9b8] sm:$0xff]  ;;  %v563_v6 = vmul.f32 %v12667_v54, %v479_v4  ;;  %v410_v19 = vrot.slane %v409_v8, 4  ;;  %v2463_v57 = vadd.f32 %v2462_v34, %v2461_v9  ;;  %v644_v12 = vadd.f32 %v643_v52, %v539_v36 }
 0x211   :  { %v495_v27 = vld [vmem:[#allocation3 + $0x9f8] sm:$0xff]  ;;  %v571_v11 = vmul.f32 %v12668_v56, %v487_v26  ;;  %v2535_v49 = vadd.f32 %v2534_v0, %v2533_v28  ;;  %v340_v62 = vrot.slane %v339_v29, 2 }
 0x212   :  { %v579_v3 = vmul.f32 %v12681_v50, %v495_v27  ;;  %v715_v13 = vadd.f32 %v563_v6, %v555_v16  ;;  %v747_v21 = vld [vmem:[#allocation3 + $0x238] sm:$0xff]  ;;  %v411_v31 = vadd.f32 %v410_v19, %v409_v8  ;;  %v2575_v42 = vadd.f32 %v2463_v57, %v2267_v5 }
 0x213   :  { %v755_v20 = vld [vmem:[#allocation3 + $0x278] sm:$0xff]  ;;  %v831_v26 = vmul.f32 %v12673_v38, %v747_v21  ;;  %v645_v48 = vadd.f32 %v644_v12, %v547_v15  ;;  %v2583_v23 = vadd.f32 %v2535_v49, %v2275_v60  ;;  %v341_v46 = vadd.f32 %v340_v62, %v339_v29 }
 0x214   :  { %v716_v10 = vadd.f32 %v715_v13, %v571_v11  ;;  %v779_v55 = vld [vmem:[#allocation3 + $0xa38] sm:$0xff]  ;;  %v412_v4 = vrot.slane %v411_v31, 2  ;;  %v839_v24 = vmul.f32 %v12674_v18, %v755_v20  ;;  %v2593_v36 = vadd.f32 %v11296_v53, %v2575_v42 }
 0x215   :  { %v787_v39 = vld [vmem:[#allocation3 + $0xa78] sm:$0xff]  ;;  %v863_v61 = vmul.f32 %v12673_v38, %v779_v55  ;;  %v646_v9 = vrot.slane %v645_v48, 4  ;;  %v2601_v15 = vadd.f32 %v11296_v53, %v2583_v23  ;;  %v342_v19 = vrot.slane %v341_v46, 1 }
 0x216   :  { %v717_v22 = vadd.f32 %v716_v10, %v579_v3  ;;  %v763_v27 = vld [vmem:[#allocation3 + $0x2b8] sm:$0xff]  ;;  %v413_v8 = vadd.f32 %v412_v4, %v411_v31  ;;  %v871_v43 = vmul.f32 %v12674_v18, %v787_v39  ;;  %v2609_v3 = vpack.c.bf16 %v2593_v36, %v2593_v36 }
 0x217   :  { %v795_v33 = vld [vmem:[#allocation3 + $0xab8] sm:$0xff]  ;;  %v847_v34 = vmul.f32 %v11386_v7, %v763_v27  ;;  %v647_v52 = vadd.f32 %v646_v9, %v645_v48  ;;  %v2617_v5 = vpack.c.bf16 %v2601_v15, %v2601_v15  ;;  %v951_v31 = vadd.f32 %v839_v24, %v831_v26 }
 0x218   :  { %v718_v16 = vrot.slane %v717_v22, 4  ;;  %v771_v6 = vld [vmem:[#allocation3 + $0x2f8] sm:$0xff]  ;;  %v414_v11 = vrot.slane %v413_v8, 1  ;;  %v879_v21 = vmul.f32 %v11386_v7, %v795_v33  ;;  %v3195_v60 = vunpack.c.l.b16 %v2609_v3 }
 0x219   :  { %v803_v28 = vld [vmem:[#allocation3 + $0xaf8] sm:$0xff]  ;;  %v855_v0 = vmul.f32 %v12682_v41, %v771_v6  ;;  %v648_v57 = vrot.slane %v647_v52, 2  ;;  %v1023_v10 = vadd.f32 %v871_v43, %v863_v61  ;;  %v3203_v62 = vunpack.c.l.b16 %v2617_v5 }
 0x21a   :  { %v719_v13 = vadd.f32 %v718_v16, %v717_v22  ;;  %v887_v29 = vmul.f32 %v12682_v41, %v803_v28  ;;  %v1063_v20 = vld [vmem:[#allocation3 + $0x378] sm:$0xff]  ;;  %v11804_v4 = vadd.f32 %v342_v19, %v341_v46  ;;  %v11806_v39 = vadd.f32 %v414_v11, %v413_v8  ;;  %v12704_v28 = vld [vmem:[#allocation38_spill] sm:$0xff] }
 0x21b   :  { %v1055_v55 = vld [vmem:[#allocation3 + $0x338] sm:$0xff]  ;;  %v952_v42 = vadd.f32 %v951_v31, %v847_v34  ;;  %v649_v48 = vadd.f32 %v648_v57, %v647_v52  ;;  %v1024_v27 = vadd.f32 %v1023_v10, %v879_v21  ;;  %v3212_v9 = vsel %vm3208_vm0, %v3203_v62, %v3195_v60  ;;  %v12705_v46 = vld [vmem:[#allocation42_spill] sm:$0xff] }
 0x21c   :  { %v720_v12 = vrot.slane %v719_v13, 2  ;;  %v1071_v49 = vld [vmem:[#allocation3 + $0x3b8] sm:$0xff]  ;;  %v1139_v43 = vmul.f32 %v12704_v28, %v1055_v55  ;;  %v11812_v8 = vpack.c.b16 %v3212_v9, %v3212_v9 }
 0x21d   :  { %v1087_v23 = vld [vmem:[#allocation3 + $0xb38] sm:$0xff]  ;;  %v953_v16 = vadd.f32 %v952_v42, %v855_v0  ;;  %v1155_v15 = vmul.f32 %v12705_v46, %v1071_v49  ;;  %v650_v19 = vrot.slane %v649_v48, 1  ;;  %v1025_v34 = vadd.f32 %v1024_v27, %v887_v29 }
 0x21e   :  { %v721_v22 = vadd.f32 %v720_v12, %v719_v13  ;;  %v1095_v33 = vld [vmem:[#allocation3 + $0xb78] sm:$0xff]  ;;  %12706 = vst [vmem:[#allocation28_spill] sm:$0xff] %v11812_v8  ;;  %v1171_v52 = vmul.f32 %v12704_v28, %v1087_v23  ;;  %5866 = vmatprep.mubr.bf16.mxu1 %v11812_v8 }
 0x21f   :  { %v1103_v36 = vld [vmem:[#allocation3 + $0xbb8] sm:$0xff]  ;;  %v954_v3 = vrot.slane %v953_v16, 4  ;;  %v1026_v31 = vrot.slane %v1025_v34, 4  ;;  %v651_v29 = vadd.f32 %v650_v19, %v649_v48 }
 0x220   :  { %v12703_v26 = vld [vmem:[#allocation40_spill] sm:$0xff]  ;;  %v722_v11 = vrot.slane %v721_v22, 1  ;;  %v1187_v21 = vmul.f32 %v12705_v46, %v1103_v36 }
 0x221   :  { %v1147_v24 = vmul.f32 %v12703_v26, %v1063_v20  ;;  %v1079_v61 = vld [vmem:[#allocation3 + $0x3f8] sm:$0xff]  ;;  %v1179_v13 = vmul.f32 %v12703_v26, %v1095_v33  ;;  %v955_v49 = vadd.f32 %v954_v3, %v953_v16  ;;  %v1027_v23 = vadd.f32 %v1026_v31, %v1025_v34 }
 0x222   :  { %v1111_v6 = vld [vmem:[#allocation3 + $0xbf8] sm:$0xff]  ;;  %v1163_v20 = vmul.f32 %v12699_v32, %v1079_v61  ;;  %v723_v55 = vadd.f32 %v722_v11, %v721_v22 }
 0x223   :  { %v1363_v5 = vld [vmem:[#allocation3 + $0x438] sm:$0xff]  ;;  %v1195_v60 = vmul.f32 %v12699_v32, %v1111_v6  ;;  %v1259_v57 = vadd.f32 %v1147_v24, %v1139_v43  ;;  %v1331_v62 = vadd.f32 %v1179_v13, %v1171_v52  ;;  %v956_v61 = vrot.slane %v955_v49, 2  ;;  %v12707_v6 = vld [vmem:[#allocation47_spill] sm:$0xff] }
 0x224   :  { %v1371_v0 = vld [vmem:[#allocation3 + $0x478] sm:$0xff]  ;;  %v1447_v8 = vmul.f32 %v11410_v25, %v1363_v5  ;;  %v1028_v48 = vrot.slane %v1027_v23, 2 }
 0x225   :  { %v1379_v12 = vld [vmem:[#allocation3 + $0x4b8] sm:$0xff]  ;;  %v1260_v33 = vadd.f32 %v1259_v57, %v1155_v15  ;;  %v1455_v46 = vmul.f32 %v11418_v17, %v1371_v0  ;;  %v1332_v26 = vadd.f32 %v1331_v62, %v1187_v21  ;;  %v957_v11 = vadd.f32 %v956_v61, %v955_v49 }
 0x226   :  { %v1387_v10 = vld [vmem:[#allocation3 + $0x4f8] sm:$0xff]  ;;  %v1463_v24 = vmul.f32 %v11428_v58, %v1379_v12  ;;  %v1029_v52 = vadd.f32 %v1028_v48, %v1027_v23  ;;  %v731_v57 = vadd.f32 %v651_v29, %v11804_v4 }
 0x227   :  { %v1395_v42 = vld [vmem:[#allocation3 + $0xc38] sm:$0xff]  ;;  %v1471_v43 = vmul.f32 %v12707_v6, %v1387_v10  ;;  %v1261_v22 = vadd.f32 %v1260_v33, %v1163_v20  ;;  %v1333_v15 = vadd.f32 %v1332_v26, %v1195_v60  ;;  %v1567_v5 = vadd.f32 %v1455_v46, %v1447_v8 }
 0x228   :  { %v1403_v27 = vld [vmem:[#allocation3 + $0xc78] sm:$0xff]  ;;  %v1479_v16 = vmul.f32 %v11410_v25, %v1395_v42  ;;  %v739_v20 = vadd.f32 %v723_v55, %v11806_v39  ;;  %v958_v12 = vrot.slane %v957_v11, 1  ;;  %v1030_v42 = vrot.slane %v1029_v52, 1 }
 0x229   :  { %v1411_v36 = vld [vmem:[#allocation3 + $0xcb8] sm:$0xff]  ;;  %v1487_v19 = vmul.f32 %v11418_v17, %v1403_v27  ;;  %v1262_v13 = vrot.slane %v1261_v22, 4  ;;  %v1334_v10 = vrot.slane %v1333_v15, 4  ;;  %v1568_v26 = vadd.f32 %v1567_v5, %v1463_v24  ;;  %v12709_v24 = vld [vmem:[#allocation51_spill] sm:$0xff] }
 0x22a   :  { %v1419_v9 = vld [vmem:[#allocation3 + $0xcf8] sm:$0xff]  ;;  %v1495_v34 = vmul.f32 %v11428_v58, %v1411_v36  ;;  %v959_v36 = vadd.f32 %v958_v12, %v957_v11  ;;  %v142_v58 = vld [vmem:[#allocation3 + $0x90] sm:$0xff] }
 0x22b   :  { %v1503_v3 = vmul.f32 %v12707_v6, %v1419_v9  ;;  %v1639_v21 = vadd.f32 %v1487_v19, %v1479_v16  ;;  %v1671_v0 = vld [vmem:[#allocation3 + $0x538] sm:$0xff]  ;;  %v1263_v49 = vadd.f32 %v1262_v13, %v1261_v22  ;;  %v1335_v23 = vadd.f32 %v1334_v10, %v1333_v15 }
 0x22c   :  { %v1679_v31 = vld [vmem:[#allocation3 + $0x578] sm:$0xff]  ;;  %v1569_v4 = vadd.f32 %v1568_v26, %v1471_v43  ;;  %v1031_v19 = vadd.f32 %v1030_v42, %v1029_v52 }
 0x22d   :  { %v1687_v62 = vld [vmem:[#allocation3 + $0x5b8] sm:$0xff]  ;;  %v1640_v60 = vadd.f32 %v1639_v21, %v1495_v34  ;;  %v1763_v61 = vmul.f32 %v12700_v40, %v1679_v31  ;;  %v1264_v48 = vrot.slane %v1263_v49, 2  ;;  %v1336_v22 = vrot.slane %v1335_v23, 2 }
 0x22e   :  { %v1695_v27 = vld [vmem:[#allocation3 + $0x5f8] sm:$0xff]  ;;  %v1771_v16 = vmul.f32 %v12690_v59, %v1687_v62  ;;  %v1570_v15 = vrot.slane %v1569_v4, 4 }
 0x22f   :  { %v1711_v33 = vld [vmem:[#allocation3 + $0xd78] sm:$0xff]  ;;  %v1641_v29 = vadd.f32 %v1640_v60, %v1503_v3  ;;  %v1779_v34 = vmul.f32 %v12709_v24, %v1695_v27  ;;  %v1265_v11 = vadd.f32 %v1264_v48, %v1263_v49  ;;  %v1039_v60 = vadd.f32 %v959_v36, %v731_v57 }
 0x230   :  { %v1703_v9 = vld [vmem:[#allocation3 + $0xd38] sm:$0xff]  ;;  %v1795_v13 = vmul.f32 %v12700_v40, %v1711_v33  ;;  %v1571_v62 = vadd.f32 %v1570_v15, %v1569_v4  ;;  %v1047_v27 = vadd.f32 %v1031_v19, %v739_v20 }
 0x231   :  { %v12708_v46 = vld [vmem:[#allocation45_spill] sm:$0xff]  ;;  %v1642_v5 = vrot.slane %v1641_v29, 4  ;;  %v1266_v10 = vrot.slane %v1265_v11, 1 }
 0x232   :  { %v1755_v8 = vmul.f32 %v12708_v46, %v1671_v0  ;;  %v1719_v39 = vld [vmem:[#allocation3 + $0xdb8] sm:$0xff]  ;;  %v1787_v21 = vmul.f32 %v12708_v46, %v1703_v9  ;;  %v1337_v0 = vadd.f32 %v1336_v22, %v1335_v23  ;;  %v1572_v40 = vrot.slane %v1571_v62, 2  ;;  %v12028_v46 = vld [vmem:[#allocation6 + $0x7e0] sm:$0xff] }
 0x233   :  { %v1727_v55 = vld [vmem:[#allocation3 + $0xdf8] sm:$0xff]  ;;  %v1803_v31 = vmul.f32 %v12690_v59, %v1719_v39  ;;  %v1643_v52 = vadd.f32 %v1642_v5, %v1641_v29  ;;  %12721 = vst [vmem:[#allocation35_spill] sm:$0xff] %v12028_v46 }
 0x234   :  { %v1811_v43 = vmul.f32 %v12709_v24, %v1727_v55  ;;  %v1875_v3 = vadd.f32 %v1763_v61, %v1755_v8  ;;  %v1979_v12 = vld [vmem:[#allocation3 + $0x638] sm:$0xff]  ;;  %v1947_v42 = vadd.f32 %v1795_v13, %v1787_v21  ;;  %v1338_v33 = vrot.slane %v1337_v0, 1 }
 0x235   :  { %v1987_v26 = vld [vmem:[#allocation3 + $0x678] sm:$0xff]  ;;  %v1644_v6 = vrot.slane %v1643_v52, 2  ;;  %v1267_v8 = vadd.f32 %v1266_v10, %v1265_v11  ;;  %v1573_v15 = vadd.f32 %v1572_v40, %v1571_v62 }
 0x236   :  { %v1876_v49 = vadd.f32 %v1875_v3, %v1771_v16  ;;  %v1995_v48 = vld [vmem:[#allocation3 + $0x6b8] sm:$0xff]  ;;  %v1948_v9 = vadd.f32 %v1947_v42, %v1803_v31  ;;  %v1339_v61 = vadd.f32 %v1338_v33, %v1337_v0 }
 0x237   :  { %v2003_v23 = vld [vmem:[#allocation3 + $0x6f8] sm:$0xff]  ;;  %v1645_v57 = vadd.f32 %v1644_v6, %v1643_v52  ;;  %v2079_v16 = vmul.f32 %v11468_v14, %v1995_v48  ;;  %v1574_v3 = vrot.slane %v1573_v15, 1  ;;  %v1347_v52 = vadd.f32 %v1267_v8, %v1039_v60 }
 0x238   :  { %v2011_v22 = vld [vmem:[#allocation3 + $0xe38] sm:$0xff]  ;;  %v1877_v24 = vadd.f32 %v1876_v49, %v1779_v34  ;;  %v1949_v20 = vadd.f32 %v1948_v9, %v1811_v43  ;;  %v2087_v5 = vmul.f32 %v11474_v35, %v2003_v23  ;;  %v1355_v42 = vadd.f32 %v1339_v61, %v1047_v27  ;;  %v2758_v61 = vld [vmem:[#allocation6 + $0x440] sm:$0xff] }
 0x239   :  { %v2019_v39 = vld [vmem:[#allocation3 + $0xe78] sm:$0xff]  ;;  %v1646_v11 = vrot.slane %v1645_v57, 1 }
 0x23a   :  { %v12710_v59 = vld [vmem:[#allocation49_spill] sm:$0xff]  ;;  %v12711_v29 = vld [vmem:[#allocation52_spill] sm:$0xff]  ;;  %v1878_v19 = vrot.slane %v1877_v24, 4  ;;  %v1950_v0 = vrot.slane %v1949_v20, 4 }
 0x23b   :  { %v2063_v55 = vmul.f32 %v12710_v59, %v1979_v12  ;;  %v2027_v4 = vld [vmem:[#allocation3 + $0xeb8] sm:$0xff]  ;;  %v2071_v13 = vmul.f32 %v12711_v29, %v1987_v26  ;;  %v2095_v21 = vmul.f32 %v12710_v59, %v2011_v22  ;;  %v2103_v31 = vmul.f32 %v12711_v29, %v2019_v39 }
 0x23c   :  { %v2035_v36 = vld [vmem:[#allocation3 + $0xef8] sm:$0xff]  ;;  %v2111_v34 = vmul.f32 %v11468_v14, %v2027_v4  ;;  %v1879_v12 = vadd.f32 %v1878_v19, %v1877_v24  ;;  %v1575_v26 = vadd.f32 %v1574_v3, %v1573_v15  ;;  %v1951_v33 = vadd.f32 %v1950_v0, %v1949_v20  ;;  %v2762_v15 = vld [vmem:[#allocation6 + $0x460] sm:$0xff] }
 0x23d   :  { %v2119_v40 = vmul.f32 %v11474_v35, %v2035_v36  ;;  %v2183_v6 = vadd.f32 %v2071_v13, %v2063_v55  ;;  %v2255_v43 = vadd.f32 %v2103_v31, %v2095_v21  ;;  %v2287_v10 = vld [vmem:[#allocation3 + $0x738] sm:$0xff]  ;;  %v1647_v48 = vadd.f32 %v1646_v11, %v1645_v57  ;;  %v12001_v35 = vld [vmem:[#allocation6 + $0xf60] sm:$0xff] }
 0x23e   :  { %v2295_v62 = vld [vmem:[#allocation3 + $0x778] sm:$0xff]  ;;  %v1880_v9 = vrot.slane %v1879_v12, 2  ;;  %v1655_v4 = vadd.f32 %v1575_v26, %v1347_v52  ;;  %v1952_v24 = vrot.slane %v1951_v33, 2  ;;  %v2371_v55 = vmul.f32 %v11466_v51, %v2287_v10  ;;  %v12024_v14 = vld [vmem:[#allocation6 + $0xfa0] sm:$0xff] }
 0x23f   :  { %v2303_v49 = vld [vmem:[#allocation3 + $0x7b8] sm:$0xff]  ;;  %v2184_v23 = vadd.f32 %v2183_v6, %v2079_v16  ;;  %v2256_v22 = vadd.f32 %v2255_v43, %v2111_v34  ;;  %v2379_v13 = vmul.f32 %v11476_v63, %v2295_v62  ;;  %v9481_v10 = vcombine.low %v2758_v61, %v2762_v15  ;;  %12719 = vst [vmem:[#allocation20_spill] sm:$0xff] %v12024_v14  ;;  %v442_v14 = vld [vmem:[#allocation3 + $0x150] sm:$0xff] }
 0x240   :  { %v2319_v39 = vld [vmem:[#allocation3 + $0xf38] sm:$0xff]  ;;  %v1881_v36 = vadd.f32 %v1880_v9, %v1879_v12  ;;  %v2387_v8 = vmul.f32 %v11488_v30, %v2303_v49  ;;  %v1953_v57 = vadd.f32 %v1952_v24, %v1951_v33  ;;  %v3014_v12 = vld [vmem:[#allocation6 + $0xc40] sm:$0xff]  ;;  %v9482_v33 = vcombine.high %v2758_v61, %v2762_v15 }
 0x241   :  { %v2327_v29 = vld [vmem:[#allocation3 + $0xf78] sm:$0xff]  ;;  %v2185_v60 = vadd.f32 %v2184_v23, %v2087_v5  ;;  %v2257_v27 = vadd.f32 %v2256_v22, %v2119_v40  ;;  %v2403_v20 = vmul.f32 %v11466_v51, %v2319_v39  ;;  %v3018_v5 = vld [vmem:[#allocation6 + $0xc60] sm:$0xff]  ;;  %v2491_v6 = vadd.f32 %v2379_v13, %v2371_v55 }
 0x242   :  { %v2335_v59 = vld [vmem:[#allocation3 + $0xfb8] sm:$0xff]  ;;  %v2411_v16 = vmul.f32 %v11476_v63, %v2327_v29  ;;  %v1882_v31 = vrot.slane %v1881_v36, 1  ;;  %v1954_v40 = vrot.slane %v1953_v57, 1  ;;  %v2766_v49 = vld [vmem:[#allocation6 + $0x480] sm:$0xff]  ;;  %v9737_v22 = vcombine.low %v3014_v12, %v3018_v5  ;;  %5836 = vmatprep.subr.bf16.mxu1 %v9482_v33 }
 0x243   :  { %v2311_v19 = vld [vmem:[#allocation3 + $0x7f8] sm:$0xff]  ;;  %v2419_v21 = vmul.f32 %v11488_v30, %v2335_v59  ;;  %v2186_v3 = vrot.slane %v2185_v60, 4  ;;  %v2258_v11 = vrot.slane %v2257_v27, 4  ;;  %v2770_v29 = vld [vmem:[#allocation6 + $0x4a0] sm:$0xff]  ;;  %v2492_v9 = vadd.f32 %v2491_v6, %v2387_v8  ;;  %5837 = vmatpush1.bf16.msra.mxu1 %v9481_v10 }
 0x244   :  { %v2343_v0 = vld [vmem:[#allocation3 + $0xff8] sm:$0xff]  ;;  %v2395_v34 = vmul.f32 %v11486_v44, %v2311_v19  ;;  %v2563_v43 = vadd.f32 %v2411_v16, %v2403_v20  ;;  %v1883_v62 = vadd.f32 %v1882_v31, %v1881_v36  ;;  %v1663_v39 = vadd.f32 %v1647_v48, %v1355_v42  ;;  %v3022_v63 = vld [vmem:[#allocation6 + $0xc80] sm:$0xff] }
 0x245   :  { %v2187_v52 = vadd.f32 %v2186_v3, %v2185_v60  ;;  %v2259_v26 = vadd.f32 %v2258_v11, %v2257_v27  ;;  %v2427_v59 = vmul.f32 %v11486_v44, %v2343_v0  ;;  %v9738_v30 = vcombine.high %v3014_v12, %v3018_v5  ;;  %v3026_v55 = vld [vmem:[#allocation6 + $0xca0] sm:$0xff] }
 0x246   :  { %v2564_v23 = vadd.f32 %v2563_v43, %v2419_v21  ;;  %v1955_v13 = vadd.f32 %v1954_v40, %v1953_v57  ;;  %v2493_v20 = vadd.f32 %v2492_v9, %v2395_v34  ;;  %v9489_v60 = vcombine.low %v2766_v49, %v2770_v29  ;;  %v2774_v27 = vld [vmem:[#allocation6 + $0x4c0] sm:$0xff] }
 0x247   :  { %v2188_v24 = vrot.slane %v2187_v52, 2  ;;  %v2260_v19 = vrot.slane %v2259_v26, 2  ;;  %v2778_v61 = vld [vmem:[#allocation6 + $0x4e0] sm:$0xff]  ;;  %v1963_v15 = vadd.f32 %v1883_v62, %v1655_v4  ;;  %5918 = vmatprep.subr.bf16.mxu0 %v9738_v30  ;;  %v9490_v8 = vcombine.high %v2766_v49, %v2770_v29 }
 0x248   :  { %v2565_v36 = vadd.f32 %v2564_v23, %v2427_v59  ;;  %v11854_v21 = vld [vmem:[#allocation6 + $0xcc0] sm:$0xff]  ;;  %v2494_v48 = vrot.slane %v2493_v20, 4  ;;  %5919 = vmatpush1.bf16.msra.mxu0 %v9737_v22  ;;  %v9745_v11 = vcombine.low %v3022_v63, %v3026_v55  ;;  %v9746_v0 = vcombine.high %v3022_v63, %v3026_v55 }
 0x249   :  { %v2189_v16 = vadd.f32 %v2188_v24, %v2187_v52  ;;  %v2261_v31 = vadd.f32 %v2260_v19, %v2259_v26  ;;  %v3034_v42 = vld [vmem:[#allocation6 + $0xce0] sm:$0xff]  ;;  %5838 = vmatprep.subr.bf16.mxu1 %v9490_v8  ;;  %v9497_v4 = vcombine.low %v2774_v27, %v2778_v61  ;;  %v9498_v40 = vcombine.high %v2774_v27, %v2778_v61 }
 0x24a   :  { %v2566_v3 = vrot.slane %v2565_v36, 4  ;;  %v11856_v57 = vld [vmem:[#allocation6 + $0x500] sm:$0xff]  ;;  %v2495_v6 = vadd.f32 %v2494_v48, %v2493_v20  ;;  %5920 = vmatprep.subr.bf16.mxu0 %v9746_v0  ;;  %5839 = vmatpush1.bf16.msra.mxu1 %v9489_v60  ;;  %v9754_v43 = vcombine.high %v11854_v21, %v3034_v42  ;;  %v1971_v63 = vadd.f32 %v1955_v13, %v1663_v39 }
 0x24b   :  { %v11858_v34 = vld [vmem:[#allocation6 + $0x520] sm:$0xff]  ;;  %v2190_v12 = vrot.slane %v2189_v16, 1  ;;  %v2262_v5 = vrot.slane %v2261_v31, 1  ;;  %5840 = vmatprep.subr.bf16.mxu1 %v9498_v40  ;;  %v9753_v22 = vcombine.low %v11854_v21, %v3034_v42 }
 0x24c   :  { %v2567_v30 = vadd.f32 %v2566_v3, %v2565_v36  ;;  %v11861_v10 = vld [vmem:[#allocation6 + $0xd00] sm:$0xff]  ;;  %v9506_v33 = vcombine.high %v11856_v57, %v11858_v34  ;;  %v2496_v9 = vrot.slane %v2495_v6, 2  ;;  %5921 = vmatpush1.bf16.msra.mxu0 %v9745_v11  ;;  %v9505_v39 = vcombine.low %v11856_v57, %v11858_v34 }
 0x24d   :  { %v11863_v62 = vld [vmem:[#allocation6 + $0xd20] sm:$0xff]  ;;  %v2191_v52 = vadd.f32 %v2190_v12, %v2189_v16  ;;  %v2263_v26 = vadd.f32 %v2262_v5, %v2261_v31  ;;  %5922 = vmatprep.subr.bf16.mxu0 %v9754_v43 }
 0x24e   :  { %v11867_v49 = vld [vmem:[#allocation6 + $0x540] sm:$0xff]  ;;  %v2568_v23 = vrot.slane %v2567_v30, 2  ;;  %v9761_v36 = vcombine.low %v11861_v10, %v11863_v62  ;;  %v9762_v60 = vcombine.high %v11861_v10, %v11863_v62  ;;  %v2497_v31 = vadd.f32 %v2496_v9, %v2495_v6  ;;  %5841 = vmatpush1.bf16.msra.mxu1 %v9497_v4 }
 0x24f   :  { %v11869_v29 = vld [vmem:[#allocation6 + $0x560] sm:$0xff]  ;;  %v2271_v13 = vadd.f32 %v2191_v52, %v1963_v15  ;;  %v2279_v20 = vadd.f32 %v2263_v26, %v1971_v63  ;;  %5842 = vmatprep.subr.bf16.mxu1 %v9506_v33 }
 0x250   :  { %v11871_v59 = vld [vmem:[#allocation6 + $0xd40] sm:$0xff]  ;;  %v2569_v8 = vadd.f32 %v2568_v23, %v2567_v30  ;;  %v9514_v21 = vcombine.high %v11867_v49, %v11869_v29  ;;  %v2498_v40 = vrot.slane %v2497_v31, 1  ;;  %5923 = vmatpush1.bf16.msra.mxu0 %v9753_v22  ;;  %v12713_v44 = vcombine.low %v11867_v49, %v11869_v29  ;;  %v126_v49 = vld [vmem:[#allocation3 + $0x10] sm:$0xff] }
 0x251   :  { %v11876_v24 = vld [vmem:[#allocation6 + $0xd60] sm:$0xff]  ;;  %5924 = vmatprep.subr.bf16.mxu0 %v9762_v60 }
 0x252   :  { %v11878_v19 = vld [vmem:[#allocation6 + $0x580] sm:$0xff]  ;;  %v9770_v0 = vcombine.high %v11871_v59, %v11876_v24  ;;  %v2570_v6 = vrot.slane %v2569_v8, 1  ;;  %v2499_v57 = vadd.f32 %v2498_v40, %v2497_v31  ;;  %5843 = vmatpush1.bf16.msra.mxu1 %v9505_v39 }
 0x253   :  { %v11880_v55 = vld [vmem:[#allocation6 + $0x5a0] sm:$0xff]  ;;  %5844 = vmatprep.subr.bf16.mxu1 %v9514_v21 }
 0x254   :  { %v11886_v27 = vld [vmem:[#allocation6 + $0xd80] sm:$0xff]  ;;  %v9522_v34 = vcombine.high %v11878_v19, %v11880_v55  ;;  %v2571_v60 = vadd.f32 %v2570_v6, %v2569_v8  ;;  %v2579_v26 = vadd.f32 %v2499_v57, %v2271_v13  ;;  %5925 = vmatpush1.bf16.msra.mxu0 %v9761_v36 }
 0x255   :  { %v11888_v61 = vld [vmem:[#allocation6 + $0xda0] sm:$0xff]  ;;  %5926 = vmatprep.subr.bf16.mxu0 %v9770_v0 }
 0x256   :  { %v11890_v16 = vld [vmem:[#allocation6 + $0x5c0] sm:$0xff]  ;;  %v2587_v21 = vadd.f32 %v2571_v60, %v2279_v20  ;;  %v2597_v0 = vadd.f32 %v11296_v53, %v2579_v26  ;;  %5845 = vmatpush1.bf16.msra.mxu1 %v12713_v44  ;;  %v12718_v26 = vcombine.low %v11871_v59, %v11876_v24  ;;  %v134_v44 = vld [vmem:[#allocation3 + $0x50] sm:$0xff] }
 0x257   :  { %v11896_v42 = vld [vmem:[#allocation6 + $0x5e0] sm:$0xff]  ;;  %5846 = vmatprep.subr.bf16.mxu1 %v9522_v34  ;;  %v182_v59 = vld [vmem:[#allocation3 + $0x8d0] sm:$0xff] }
 0x258   :  { %v11898_v48 = vld [vmem:[#allocation6 + $0xdc0] sm:$0xff]  ;;  %v2605_v31 = vadd.f32 %v11296_v53, %v2587_v21  ;;  %v2613_v53 = vpack.c.bf16 %v2597_v0, %v2597_v0  ;;  %5927 = vmatpush1.bf16.msra.mxu0 %v12718_v26  ;;  %v12722_v0 = vcombine.high %v11886_v27, %v11888_v61  ;;  %v12724_v26 = vcombine.high %v11890_v16, %v11896_v42  ;;  %v434_v24 = vld [vmem:[#allocation3 + $0x110] sm:$0xff] }
 0x259   :  { %v11900_v3 = vld [vmem:[#allocation6 + $0xde0] sm:$0xff] }
 0x25a   :  { %v11910_v12 = vld [vmem:[#allocation6 + $0x600] sm:$0xff]  ;;  %v2621_v34 = vpack.c.bf16 %v2605_v31, %v2605_v31  ;;  %5928 = vmatprep.subr.bf16.mxu0 %v12722_v0  ;;  %v3199_v25 = vunpack.c.l.b16 %v2613_v53  ;;  %v12723_v0 = vcombine.low %v11878_v19, %v11880_v55  ;;  %v158_v31 = vld [vmem:[#allocation3 + $0x810] sm:$0xff]  ;;  %v210_v53 = vmul.f32 %v12675_v47, %v126_v49 }
 0x25b   :  { %v11912_v5 = vld [vmem:[#allocation6 + $0x620] sm:$0xff]  ;;  %v226_v19 = vmul.f32 %v12678_v2, %v142_v58  ;;  %v450_v55 = vld [vmem:[#allocation3 + $0x190] sm:$0xff]  ;;  %v12728_v58 = vcombine.low %v11890_v16, %v11896_v42 }
 0x25c   :  { %v11914_v4 = vld [vmem:[#allocation6 + $0xe00] sm:$0xff]  ;;  %v3207_v17 = vunpack.c.l.b16 %v2621_v34  ;;  %5847 = vmatpush1.bf16.msra.mxu1 %v12723_v0  ;;  %v174_v0 = vld [vmem:[#allocation3 + $0x890] sm:$0xff]  ;;  %v12727_v34 = vcombine.high %v11898_v48, %v11900_v3  ;;  %v534_v16 = vmul.f32 %v12668_v56, %v450_v55 }
 0x25d   :  { %v11920_v10 = vld [vmem:[#allocation6 + $0xe20] sm:$0xff]  ;;  %5848 = vmatprep.subr.bf16.mxu1 %v12724_v26  ;;  %v12725_v26 = vcombine.low %v11886_v27, %v11888_v61  ;;  %v458_v61 = vld [vmem:[#allocation3 + $0x1d0] sm:$0xff] }
 0x25e   :  { %v11922_v62 = vld [vmem:[#allocation6 + $0x640] sm:$0xff]  ;;  %v466_v49 = vld [vmem:[#allocation3 + $0x910] sm:$0xff] }
 0x25f   :  { %v11924_v63 = vld [vmem:[#allocation6 + $0x660] sm:$0xff]  ;;  %5929 = vmatpush1.bf16.msra.mxu0 %v12725_v26  ;;  %v474_v26 = vld [vmem:[#allocation3 + $0x950] sm:$0xff] }
 0x260   :  { %v11934_v23 = vld [vmem:[#allocation6 + $0xe40] sm:$0xff]  ;;  %5930 = vmatprep.subr.bf16.mxu0 %v12727_v34  ;;  %5849 = vmatpush1.bf16.msra.mxu1 %v12728_v58  ;;  %v490_v34 = vld [vmem:[#allocation3 + $0x9d0] sm:$0xff]  ;;  %v558_v58 = vmul.f32 %v12667_v54, %v474_v26 }
 0x261   :  { %v11936_v22 = vld [vmem:[#allocation6 + $0xe60] sm:$0xff]  ;;  %v742_v42 = vld [vmem:[#allocation3 + $0x210] sm:$0xff] }
 0x262   :  { %v11938_v30 = vld [vmem:[#allocation6 + $0x680] sm:$0xff]  ;;  %v790_v26 = vld [vmem:[#allocation3 + $0xa90] sm:$0xff] }
 0x263   :  { %v11944_v43 = vld [vmem:[#allocation6 + $0x6a0] sm:$0xff] }
 0x264   :  { %v11946_v33 = vld [vmem:[#allocation6 + $0xe80] sm:$0xff] }
 0x265   :  { %v11948_v9 = vld [vmem:[#allocation6 + $0xea0] sm:$0xff] }
 0x266   :  { %v11958_v40 = vld [vmem:[#allocation6 + $0x6c0] sm:$0xff] }
 0x267   :  { %v11960_v6 = vld [vmem:[#allocation6 + $0x6e0] sm:$0xff] }
 0x268   :  { %v11962_v52 = vld [vmem:[#allocation6 + $0xec0] sm:$0xff] }
 0x269   :  { %v11968_v15 = vld [vmem:[#allocation6 + $0xee0] sm:$0xff] }
 0x26a   :  { %v11970_v39 = vld [vmem:[#allocation6 + $0x700] sm:$0xff] }
 0x26b   :  { %v11972_v8 = vld [vmem:[#allocation6 + $0x720] sm:$0xff] }
 0x26c   :  { %v11982_v57 = vld [vmem:[#allocation6 + $0xf00] sm:$0xff] }
 0x26d   :  { %v11984_v60 = vld [vmem:[#allocation6 + $0xf20] sm:$0xff] }
 0x26e   :  { %v11986_v11 = vld [vmem:[#allocation6 + $0x740] sm:$0xff] }
 0x26f   :  { %12712 = vst [vmem:[#allocation37_spill] sm:$0xff] %v11986_v11  ;;  %v11997_v13 = vld [vmem:[#allocation6 + $0x760] sm:$0xff]  ;;  %v166_v11 = vld [vmem:[#allocation3 + $0x850] sm:$0xff] }
 0x270   :  { %12714 = vst [vmem:[#allocation26_spill] sm:$0xff] %v11997_v13  ;;  %v11999_v51 = vld [vmem:[#allocation6 + $0xf40] sm:$0xff]  ;;  %v150_v13 = vld [vmem:[#allocation3 + $0xd0] sm:$0xff]  ;;  %v250_v27 = vmul.f32 %v12677_v37, %v166_v11  ;;  %v12729_v11 = vcombine.high %v11910_v12, %v11912_v5 }
 0x271   :  { %v12011_v21 = vld [vmem:[#allocation6 + $0x780] sm:$0xff] }
 0x272   :  { %12715 = vst [vmem:[#allocation27_spill] sm:$0xff] %v12011_v21  ;;  %v12013_v20 = vld [vmem:[#allocation6 + $0x7a0] sm:$0xff]  ;;  %v218_v21 = vmul.f32 %v12677_v37, %v134_v44  ;;  %v266_v44 = vmul.f32 %v12679_v1, %v182_v59  ;;  %5850 = vmatprep.subr.bf16.mxu1 %v12729_v11  ;;  %v526_v37 = vmul.f32 %v12667_v54, %v442_v14  ;;  %v766_v11 = vld [vmem:[#allocation3 + $0x2d0] sm:$0xff] }
 0x273   :  { %12716 = vst [vmem:[#allocation33_spill] sm:$0xff] %v12013_v20  ;;  %v12015_v36 = vld [vmem:[#allocation6 + $0xf80] sm:$0xff]  ;;  %v3216_v20 = vsel %vm3208_vm0, %v3207_v17, %v3199_v25  ;;  %v234_v25 = vmul.f32 %v12679_v1, %v150_v13  ;;  %v242_v17 = vmul.f32 %v12675_v47, %v158_v31  ;;  %v518_v13 = vmul.f32 %v12691_v45, %v434_v24 }
 0x274   :  { %12717 = vst [vmem:[#allocation32_spill] sm:$0xff] %v12015_v36  ;;  %v12026_v29 = vld [vmem:[#allocation6 + $0x7c0] sm:$0xff]  ;;  %v12066_v36 = vpack.c.b16 %v3216_v20, %v3216_v20  ;;  %v258_v20 = vmul.f32 %v12678_v2, %v174_v0  ;;  %v290_v46 = vadd.f32 %v218_v21, %v210_v53  ;;  %v750_v0 = vld [vmem:[#allocation3 + $0x250] sm:$0xff]  ;;  %v12730_v21 = vcombine.low %v11898_v48, %v11900_v3 }
 0x275   :  { %12720 = vst [vmem:[#allocation29_spill] sm:$0xff] %v12026_v29  ;;  %v482_v29 = vld [vmem:[#allocation3 + $0x990] sm:$0xff]  ;;  %v362_v31 = vadd.f32 %v250_v27, %v242_v17  ;;  %v542_v24 = vmul.f32 %v12681_v50, %v458_v61  ;;  %v550_v53 = vmul.f32 %v12691_v45, %v466_v49  ;;  %v12731_v14 = vcombine.high %v11914_v4, %v11920_v10 }
 0x276   :  { %12726 = vst [vmem:[#allocation34_spill] sm:$0xff] %v12066_v36  ;;  %5948 = vmatprep.mubr.bf16.mxu0 %v12066_v36  ;;  %5931 = vmatpush1.bf16.msra.mxu0 %v12730_v21  ;;  %v291_v59 = vadd.f32 %v290_v46, %v226_v19  ;;  %v758_v36 = vld [vmem:[#allocation3 + $0x290] sm:$0xff]  ;;  %v566_v17 = vmul.f32 %v12668_v56, %v482_v29 }
 0x277   :  { %5932 = vmatprep.subr.bf16.mxu0 %v12731_v14  ;;  %v363_v55 = vadd.f32 %v362_v31, %v258_v20  ;;  %v574_v27 = vmul.f32 %v12681_v50, %v490_v34  ;;  %v598_v48 = vadd.f32 %v526_v37, %v518_v13  ;;  %v774_v3 = vld [vmem:[#allocation3 + $0xa10] sm:$0xff]  ;;  %v12732_v19 = vcombine.low %v11910_v12, %v11912_v5  ;;  %v12110_v5 = vld [vmem:[#allocation6 + $0xfc0] sm:$0xff] }
 0x278   :  { %v782_v46 = vld [vmem:[#allocation3 + $0xa50] sm:$0xff]  ;;  %v292_v61 = vadd.f32 %v291_v59, %v234_v25  ;;  %v670_v49 = vadd.f32 %v558_v58, %v550_v53  ;;  %v826_v54 = vmul.f32 %v12673_v38, %v742_v42  ;;  %v834_v14 = vmul.f32 %v12674_v18, %v750_v0  ;;  %v12112_v25 = vld [vmem:[#allocation6 + $0xfe0] sm:$0xff] }
 0x279   :  { %5851 = vmatpush1.bf16.msra.mxu1 %v12732_v19  ;;  %v798_v21 = vld [vmem:[#allocation3 + $0xad0] sm:$0xff]  ;;  %v12733_v29 = vcombine.high %v11922_v62, %v11924_v63  ;;  %v364_v20 = vadd.f32 %v363_v55, %v266_v44  ;;  %v599_v37 = vadd.f32 %v598_v48, %v534_v16  ;;  %v842_v34 = vmul.f32 %v11386_v7, %v758_v36 }
 0x27a   :  { %v850_v13 = vmul.f32 %v12682_v41, %v766_v11  ;;  %v12734_v12 = vcombine.low %v11914_v4, %v11920_v10  ;;  %v293_v31 = vrot.slane %v292_v61, 4  ;;  %v671_v42 = vadd.f32 %v670_v49, %v566_v17  ;;  %v1050_v48 = vld [vmem:[#allocation3 + $0x310] sm:$0xff] }
 0x27b   :  { %5852 = vmatprep.subr.bf16.mxu1 %v12733_v29  ;;  %v858_v0 = vmul.f32 %v12673_v38, %v774_v3  ;;  %v866_v59 = vmul.f32 %v12674_v18, %v782_v46  ;;  %v12735_v44 = vcombine.high %v11934_v23, %v11936_v22  ;;  %v365_v36 = vrot.slane %v364_v20, 4  ;;  %v1058_v3 = vld [vmem:[#allocation3 + $0x350] sm:$0xff] }
 0x27c   :  { %5933 = vmatpush1.bf16.msra.mxu0 %v12734_v12  ;;  %v600_v16 = vadd.f32 %v599_v37, %v542_v24  ;;  %v874_v53 = vmul.f32 %v11386_v7, %v790_v26  ;;  %v882_v4 = vmul.f32 %v12682_v41, %v798_v21  ;;  %v12736_v10 = vcombine.low %v11922_v62, %v11924_v63  ;;  %v1066_v21 = vld [vmem:[#allocation3 + $0x390] sm:$0xff] }
 0x27d   :  { %5934 = vmatprep.subr.bf16.mxu0 %v12735_v44  ;;  %v294_v58 = vadd.f32 %v293_v31, %v292_v61  ;;  %v672_v11 = vadd.f32 %v671_v42, %v574_v27  ;;  %v906_v55 = vadd.f32 %v834_v14, %v826_v54  ;;  %v978_v17 = vadd.f32 %v866_v59, %v858_v0  ;;  %v1090_v14 = vld [vmem:[#allocation3 + $0xb50] sm:$0xff] }
 0x27e   :  { %5853 = vmatpush1.bf16.msra.mxu1 %v12736_v10  ;;  %v12737_v46 = vcombine.high %v11938_v30, %v11944_v43  ;;  %v9849_v24 = vcombine.low %v12110_v5, %v12112_v25  ;;  %v9850_v19 = vcombine.high %v12110_v5, %v12112_v25  ;;  %v366_v49 = vadd.f32 %v365_v36, %v364_v20  ;;  %v12740_v20 = vld [vmem:[#allocation40_spill] sm:$0xff] }
 0x27f   :  { %v601_v26 = vrot.slane %v600_v16, 4  ;;  %v12738_v62 = vcombine.low %v11934_v23, %v11936_v22  ;;  %v295_v54 = vrot.slane %v294_v58, 2  ;;  %v673_v63 = vrot.slane %v672_v11, 4  ;;  %v1082_v44 = vld [vmem:[#allocation3 + $0xb10] sm:$0xff] }
 0x280   :  { %5854 = vmatprep.subr.bf16.mxu1 %v12737_v46  ;;  %v907_v27 = vadd.f32 %v906_v55, %v842_v34  ;;  %v979_v61 = vadd.f32 %v978_v17, %v874_v53  ;;  %v12739_v29 = vcombine.high %v11946_v33, %v11948_v9  ;;  %v367_v37 = vrot.slane %v366_v49, 2  ;;  %v1098_v36 = vld [vmem:[#allocation3 + $0xb90] sm:$0xff]  ;;  %v12743_v17 = vld [vmem:[#allocation42_spill] sm:$0xff] }
 0x281   :  { %5935 = vmatpush1.bf16.msra.mxu0 %v12738_v62  ;;  %v602_v12 = vadd.f32 %v601_v26, %v600_v16  ;;  %v1134_v31 = vmul.f32 %v12704_v28, %v1050_v48  ;;  %v1142_v42 = vmul.f32 %v12740_v20, %v1058_v3  ;;  %v12741_v23 = vcombine.low %v11938_v30, %v11944_v43  ;;  %v1074_v55 = vld [vmem:[#allocation3 + $0x3d0] sm:$0xff] }
 0x282   :  { %5936 = vmatprep.subr.bf16.mxu0 %v12739_v29  ;;  %v296_v22 = vadd.f32 %v295_v54, %v294_v58  ;;  %v674_v0 = vadd.f32 %v673_v63, %v672_v11  ;;  %v908_v34 = vadd.f32 %v907_v27, %v850_v13  ;;  %v980_v59 = vadd.f32 %v979_v61, %v882_v4  ;;  %v1106_v11 = vld [vmem:[#allocation3 + $0xbd0] sm:$0xff] }
 0x283   :  { %5855 = vmatpush1.bf16.msra.mxu1 %v12741_v23  ;;  %v12742_v53 = vcombine.high %v11958_v40, %v11960_v6  ;;  %v368_v10 = vadd.f32 %v367_v37, %v366_v49  ;;  %v603_v16 = vrot.slane %v602_v12, 2  ;;  %v1150_v48 = vmul.f32 %v12743_v17, %v1066_v21  ;;  %v1366_v23 = vld [vmem:[#allocation3 + $0x450] sm:$0xff] }
 0x284   :  { %v1174_v3 = vmul.f32 %v12740_v20, %v1090_v14  ;;  %v12744_v30 = vcombine.low %v11946_v33, %v11948_v9  ;;  %v297_v43 = vrot.slane %v296_v22, 1  ;;  %v675_v13 = vrot.slane %v674_v0, 2 }
 0x285   :  { %5856 = vmatprep.subr.bf16.mxu1 %v12742_v53  ;;  %v909_v4 = vrot.slane %v908_v34, 4  ;;  %v981_v58 = vrot.slane %v980_v59, 4  ;;  %v12745_v46 = vcombine.high %v11962_v52, %v11968_v15  ;;  %v369_v49 = vrot.slane %v368_v10, 1 }
 0x286   :  { %5937 = vmatpush1.bf16.msra.mxu0 %v12744_v30  ;;  %v604_v26 = vadd.f32 %v603_v16, %v602_v12  ;;  %v1166_v62 = vmul.f32 %v12704_v28, %v1082_v44  ;;  %v1182_v54 = vmul.f32 %v12743_v17, %v1098_v36  ;;  %v12746_v63 = vcombine.low %v11958_v40, %v11960_v6  ;;  %v1374_v36 = vld [vmem:[#allocation3 + $0x490] sm:$0xff] }
 0x287   :  { %5938 = vmatprep.subr.bf16.mxu0 %v12745_v46  ;;  %v676_v33 = vadd.f32 %v675_v13, %v674_v0  ;;  %v910_v9 = vadd.f32 %v909_v4, %v908_v34  ;;  %v982_v27 = vadd.f32 %v981_v58, %v980_v59  ;;  %v1158_v61 = vmul.f32 %v12699_v32, %v1074_v55  ;;  %v1358_v59 = vld [vmem:[#allocation3 + $0x410] sm:$0xff]  ;;  %v12753_v46 = vld [vmem:[#allocation26_spill] sm:$0xff] }
 0x288   :  { %5857 = vmatpush1.bf16.msra.mxu1 %v12746_v63  ;;  %v12747_v21 = vcombine.high %v11970_v39, %v11972_v8  ;;  %v605_v14 = vrot.slane %v604_v26, 1  ;;  %v1190_v29 = vmul.f32 %v12699_v32, %v1106_v11  ;;  %v1214_v37 = vadd.f32 %v1142_v42, %v1134_v31  ;;  %v1390_v42 = vld [vmem:[#allocation3 + $0xc10] sm:$0xff]  ;;  %v12752_v11 = vld [vmem:[#allocation37_spill] sm:$0xff]  ;;  %v12756_v63 = vld [vmem:[#allocation46_spill] sm:$0xff] }
 0x289   :  { %v1286_v12 = vadd.f32 %v1174_v3, %v1166_v62  ;;  %v12748_v44 = vcombine.low %v11962_v52, %v11968_v15  ;;  %v298_v40 = vadd.f32 %v297_v43, %v296_v22  ;;  %v677_v6 = vrot.slane %v676_v33, 1  ;;  %v1398_v43 = vld [vmem:[#allocation3 + $0xc50] sm:$0xff] }
 0x28a   :  { %5858 = vmatprep.subr.bf16.mxu1 %v12747_v21  ;;  %v911_v0 = vrot.slane %v910_v9, 2  ;;  %v983_v34 = vrot.slane %v982_v27, 2  ;;  %v12749_v53 = vcombine.high %v11982_v57, %v11984_v60  ;;  %v370_v16 = vadd.f32 %v369_v49, %v368_v10  ;;  %v1406_v13 = vld [vmem:[#allocation3 + $0xc90] sm:$0xff] }
 0x28b   :  { %5939 = vmatpush1.bf16.msra.mxu0 %v12748_v44  ;;  %v606_v55 = vadd.f32 %v605_v14, %v604_v26  ;;  %v1215_v30 = vadd.f32 %v1214_v37, %v1150_v48  ;;  %v1287_v31 = vadd.f32 %v1286_v12, %v1182_v54  ;;  %v12750_v3 = vcombine.low %v11970_v39, %v11972_v8  ;;  %v12751_v4 = vld [vmem:[#allocation44_spill] sm:$0xff]  ;;  %v12755_v26 = vld [vmem:[#allocation41_spill] sm:$0xff] }
 0x28c   :  { %5940 = vmatprep.subr.bf16.mxu0 %v12749_v53  ;;  %v678_v15 = vadd.f32 %v677_v6, %v676_v33  ;;  %v912_v52 = vadd.f32 %v911_v0, %v910_v9  ;;  %v984_v22 = vadd.f32 %v983_v34, %v982_v27  ;;  %v1450_v58 = vmul.f32 %v12751_v4, %v1366_v23  ;;  %v1382_v48 = vld [vmem:[#allocation3 + $0x4d0] sm:$0xff] }
 0x28d   :  { %5859 = vmatpush1.bf16.msra.mxu1 %v12750_v3  ;;  %v12754_v62 = vcombine.high %v12752_v11, %v12753_v46  ;;  %v1216_v10 = vadd.f32 %v1215_v30, %v1158_v61  ;;  %v1288_v49 = vadd.f32 %v1287_v31, %v1190_v29  ;;  %v1442_v54 = vmul.f32 %v12755_v26, %v1358_v59  ;;  %v1414_v27 = vld [vmem:[#allocation3 + $0xcd0] sm:$0xff] }
 0x28e   :  { %v1458_v21 = vmul.f32 %v12756_v63, %v1374_v36  ;;  %v12757_v39 = vcombine.low %v11982_v57, %v11984_v60  ;;  %v726_v8 = vadd.f32 %v606_v55, %v298_v40  ;;  %v913_v33 = vrot.slane %v912_v52, 1  ;;  %v1666_v44 = vld [vmem:[#allocation3 + $0x510] sm:$0xff]  ;;  %v12762_v55 = vld [vmem:[#allocation33_spill] sm:$0xff] }
 0x28f   :  { %5860 = vmatprep.subr.bf16.mxu1 %v12754_v62  ;;  %v985_v9 = vrot.slane %v984_v22, 1  ;;  %v1474_v14 = vmul.f32 %v12755_v26, %v1390_v42  ;;  %v12758_v37 = vcombine.high %v11999_v51, %v12001_v35  ;;  %v1217_v61 = vrot.slane %v1216_v10, 4  ;;  %v1674_v6 = vld [vmem:[#allocation3 + $0x550] sm:$0xff] }
 0x290   :  { %5941 = vmatpush1.bf16.msra.mxu0 %v12757_v39  ;;  %v1289_v29 = vrot.slane %v1288_v49, 4  ;;  %v1482_v12 = vmul.f32 %v12751_v4, %v1398_v43  ;;  %v1490_v23 = vmul.f32 %v12756_v63, %v1406_v13  ;;  %v12759_v57 = vcombine.low %v12752_v11, %v12753_v46  ;;  %v12760_v0 = vld [vmem:[#allocation47_spill] sm:$0xff]  ;;  %v12765_v11 = vld [vmem:[#allocation45_spill] sm:$0xff] }
 0x291   :  { %5942 = vmatprep.subr.bf16.mxu0 %v12758_v37  ;;  %v734_v60 = vadd.f32 %v678_v15, %v370_v16  ;;  %v914_v40 = vadd.f32 %v913_v33, %v912_v52  ;;  %v1466_v34 = vmul.f32 %v12760_v0, %v1382_v48  ;;  %v1522_v59 = vadd.f32 %v1450_v58, %v1442_v54  ;;  %v1682_v36 = vld [vmem:[#allocation3 + $0x590] sm:$0xff] }
 0x292   :  { %5861 = vmatpush1.bf16.msra.mxu1 %v12759_v57  ;;  %v12761_v53 = vld [vmem:[#allocation27_spill] sm:$0xff]  ;;  %v1218_v31 = vadd.f32 %v1217_v61, %v1216_v10  ;;  %v1290_v42 = vadd.f32 %v1289_v29, %v1288_v49  ;;  %v1498_v3 = vmul.f32 %v12760_v0, %v1414_v27  ;;  %v1594_v43 = vadd.f32 %v1482_v12, %v1474_v14  ;;  %v12766_v48 = vld [vmem:[#allocation48_spill] sm:$0xff]  ;;  %v12770_v29 = vld [vmem:[#allocation50_spill] sm:$0xff] }
 0x293   :  { %v12763_v30 = vcombine.high %v12761_v53, %v12762_v55  ;;  %v1690_v13 = vld [vmem:[#allocation3 + $0x5d0] sm:$0xff]  ;;  %v12764_v16 = vcombine.low %v11999_v51, %v12001_v35  ;;  %v986_v15 = vadd.f32 %v985_v9, %v984_v22  ;;  %v1523_v52 = vadd.f32 %v1522_v59, %v1458_v21 }
 0x294   :  { %v1698_v62 = vld [vmem:[#allocation3 + $0xd10] sm:$0xff]  ;;  %v1750_v46 = vmul.f32 %v12765_v11, %v1666_v44  ;;  %v1758_v54 = vmul.f32 %v12766_v48, %v1674_v6  ;;  %v1219_v27 = vrot.slane %v1218_v31, 2  ;;  %v1291_v14 = vrot.slane %v1290_v42, 2  ;;  %v12773_v6 = vld [vmem:[#allocation29_spill] sm:$0xff] }
 0x295   :  { %5862 = vmatprep.subr.bf16.mxu1 %v12763_v30  ;;  %v1706_v39 = vld [vmem:[#allocation3 + $0xd50] sm:$0xff]  ;;  %5943 = vmatpush1.bf16.msra.mxu0 %v12764_v16  ;;  %v1595_v37 = vadd.f32 %v1594_v43, %v1490_v23  ;;  %v1766_v12 = vmul.f32 %v12770_v29, %v1682_v36  ;;  %v12771_v51 = vcombine.low %v12761_v53, %v12762_v55 }
 0x296   :  { %v1714_v58 = vld [vmem:[#allocation3 + $0xd90] sm:$0xff]  ;;  %v1524_v35 = vadd.f32 %v1523_v52, %v1466_v34  ;;  %v1782_v9 = vmul.f32 %v12765_v11, %v1698_v62  ;;  %v1790_v44 = vmul.f32 %v12766_v48, %v1706_v39  ;;  %v1220_v30 = vadd.f32 %v1219_v27, %v1218_v31 }
 0x297   :  { %v12767_v33 = vld [vmem:[#allocation32_spill] sm:$0xff]  ;;  %5863 = vmatpush1.bf16.msra.mxu1 %v12771_v51  ;;  %v12772_v22 = vld [vmem:[#allocation51_spill] sm:$0xff]  ;;  %v1292_v23 = vadd.f32 %v1291_v14, %v1290_v42  ;;  %v1596_v43 = vadd.f32 %v1595_v37, %v1498_v3  ;;  %v1798_v36 = vmul.f32 %v12770_v29, %v1714_v58  ;;  %v1034_v31 = vadd.f32 %v914_v40, %v726_v8 }
 0x298   :  { %v12768_v10 = vld [vmem:[#allocation20_spill] sm:$0xff]  ;;  %v1774_v21 = vmul.f32 %v12772_v22, %v1690_v13  ;;  %v12774_v57 = vld [vmem:[#allocation35_spill] sm:$0xff]  ;;  %v1525_v34 = vrot.slane %v1524_v35, 4  ;;  %v1830_v13 = vadd.f32 %v1758_v54, %v1750_v46  ;;  %v1902_v62 = vadd.f32 %v1790_v44, %v1782_v9  ;;  %v12778_v9 = vld [vmem:[#allocation49_spill] sm:$0xff] }
 0x299   :  { %v12769_v49 = vcombine.high %v12767_v33, %v12768_v10  ;;  %v1722_v61 = vld [vmem:[#allocation3 + $0xdd0] sm:$0xff]  ;;  %v12775_v59 = vcombine.high %v12773_v6, %v12774_v57  ;;  %v12776_v53 = vcombine.low %v12767_v33, %v12768_v10  ;;  %v1221_v42 = vrot.slane %v1220_v30, 1 }
 0x29a   :  { %v1806_v55 = vmul.f32 %v12772_v22, %v1722_v61  ;;  %v1974_v16 = vld [vmem:[#allocation3 + $0x610] sm:$0xff]  ;;  %v1293_v3 = vrot.slane %v1292_v23, 1  ;;  %v1597_v52 = vrot.slane %v1596_v43, 4  ;;  %v12777_v58 = vcombine.low %v12773_v6, %v12774_v57 }
 0x29b   :  { %5944 = vmatprep.subr.bf16.mxu0 %v12769_v49  ;;  %5864 = vmatprep.subr.bf16.mxu1 %v12775_v59  ;;  %v1982_v39 = vld [vmem:[#allocation3 + $0x650] sm:$0xff]  ;;  %v1042_v33 = vadd.f32 %v986_v15, %v734_v60  ;;  %v1526_v10 = vadd.f32 %v1525_v34, %v1524_v35  ;;  %v1831_v49 = vadd.f32 %v1830_v13, %v1766_v12  ;;  %v12780_v59 = vld [vmem:[#allocation54_spill] sm:$0xff] }
 0x29c   :  { %5945 = vmatpush1.bf16.msra.mxu0 %v12776_v53  ;;  %5865 = vmatpush1.bf16.msra.mxu1 %v12777_v58  ;;  %v1903_v27 = vadd.f32 %v1902_v62, %v1798_v36  ;;  %v1990_v46 = vld [vmem:[#allocation3 + $0x690] sm:$0xff]  ;;  %v1222_v37 = vadd.f32 %v1221_v42, %v1220_v30  ;;  %v1598_v61 = vadd.f32 %v1597_v52, %v1596_v43 }
 0x29d   :  { %5946 = vmatprep.subr.bf16.mxu0 %v9850_v19  ;;  %v1998_v54 = vld [vmem:[#allocation3 + $0x6d0] sm:$0xff]  ;;  %v2058_v19 = vmul.f32 %v12778_v9, %v1974_v16  ;;  %v1294_v44 = vadd.f32 %v1293_v3, %v1292_v23  ;;  %v1527_v6 = vrot.slane %v1526_v10, 2  ;;  %v1832_v60 = vadd.f32 %v1831_v49, %v1774_v21 }
 0x29e   :  { %v2006_v14 = vld [vmem:[#allocation3 + $0xe10] sm:$0xff]  ;;  %v1904_v15 = vadd.f32 %v1903_v27, %v1806_v55  ;;  %v1599_v57 = vrot.slane %v1598_v61, 2  ;;  %v2074_v36 = vmul.f32 %v12780_v59, %v1990_v46  ;;  %v1342_v58 = vadd.f32 %v1222_v37, %v1034_v31 }
 0x29f   :  { %v2014_v51 = vld [vmem:[#allocation3 + $0xe50] sm:$0xff]  ;;  %v2090_v53 = vmul.f32 %v12778_v9, %v2006_v14  ;;  %v1528_v34 = vadd.f32 %v1527_v6, %v1526_v10  ;;  %v1833_v13 = vrot.slane %v1832_v60, 4  ;;  %v1350_v10 = vadd.f32 %v1294_v44, %v1042_v33  ;;  %v12784_v44 = vld [vmem:[#allocation58_spill] sm:$0xff] }
 0x2a0   :  { %v12779_v8 = vld [vmem:[#allocation52_spill] sm:$0xff]  ;;  %5947 = vmatpush1.bf16.msra.mxu0 %v9849_v24  ;;  %v12781_v30 = vld [vmem:[#allocation55_spill] sm:$0xff]  ;;  %v1905_v62 = vrot.slane %v1904_v15, 4  ;;  %v1600_v5 = vadd.f32 %v1599_v57, %v1598_v61 }
 0x2a1   :  { %v2066_v40 = vmul.f32 %v12779_v8, %v1982_v39  ;;  %v2022_v12 = vld [vmem:[#allocation3 + $0xe90] sm:$0xff]  ;;  %v2082_v43 = vmul.f32 %v12781_v30, %v1998_v54  ;;  %v2098_v16 = vmul.f32 %v12779_v8, %v2014_v51  ;;  %v1529_v23 = vrot.slane %v1528_v34, 1 }
 0x2a2   :  { %v2030_v35 = vld [vmem:[#allocation3 + $0xed0] sm:$0xff]  ;;  %v2106_v25 = vmul.f32 %v12780_v59, %v2022_v12  ;;  %v1834_v55 = vadd.f32 %v1833_v13, %v1832_v60  ;;  %v1906_v39 = vadd.f32 %v1905_v62, %v1904_v15  ;;  %v1601_v49 = vrot.slane %v1600_v5, 1 }
 0x2a3   :  { %v2114_v24 = vmul.f32 %v12781_v30, %v2030_v35  ;;  %v2138_v21 = vadd.f32 %v2066_v40, %v2058_v19  ;;  %v2210_v42 = vadd.f32 %v2098_v16, %v2090_v53  ;;  %v2282_v3 = vld [vmem:[#allocation3 + $0x710] sm:$0xff]  ;;  %v1530_v12 = vadd.f32 %v1529_v23, %v1528_v34  ;;  %v12782_v19 = vld [vmem:[#allocation53_spill] sm:$0xff] }
 0x2a4   :  { %v2290_v52 = vld [vmem:[#allocation3 + $0x750] sm:$0xff]  ;;  %v1835_v46 = vrot.slane %v1834_v55, 2  ;;  %v1907_v54 = vrot.slane %v1906_v39, 2  ;;  %v2366_v40 = vmul.f32 %v12782_v19, %v2282_v3  ;;  %v1602_v53 = vadd.f32 %v1601_v49, %v1600_v5 }
 0x2a5   :  { %v2139_v27 = vadd.f32 %v2138_v21, %v2074_v36  ;;  %v2211_v14 = vadd.f32 %v2210_v42, %v2106_v25  ;;  %v2298_v51 = vld [vmem:[#allocation3 + $0x790] sm:$0xff] }
 0x2a6   :  { %v2314_v61 = vld [vmem:[#allocation3 + $0xf10] sm:$0xff]  ;;  %v1836_v13 = vadd.f32 %v1835_v46, %v1834_v55  ;;  %v1908_v62 = vadd.f32 %v1907_v54, %v1906_v39  ;;  %v2382_v16 = vmul.f32 %v12784_v44, %v2298_v51  ;;  %v1658_v46 = vadd.f32 %v1602_v53, %v1350_v10 }
 0x2a7   :  { %v2322_v6 = vld [vmem:[#allocation3 + $0xf50] sm:$0xff]  ;;  %v2140_v57 = vadd.f32 %v2139_v27, %v2082_v43  ;;  %v2212_v31 = vadd.f32 %v2211_v14, %v2114_v24  ;;  %v2398_v25 = vmul.f32 %v12782_v19, %v2314_v61  ;;  %v1650_v27 = vadd.f32 %v1530_v12, %v1342_v58 }
 0x2a8   :  { %v2330_v35 = vld [vmem:[#allocation3 + $0xf90] sm:$0xff]  ;;  %v1837_v34 = vrot.slane %v1836_v13, 1  ;;  %v1909_v43 = vrot.slane %v1908_v62, 1 }
 0x2a9   :  { %v12783_v60 = vld [vmem:[#allocation56_spill] sm:$0xff]  ;;  %v2141_v36 = vrot.slane %v2140_v57, 4  ;;  %v2213_v23 = vrot.slane %v2212_v31, 4  ;;  %v2414_v42 = vmul.f32 %v12784_v44, %v2330_v35 }
 0x2aa   :  { %v2374_v15 = vmul.f32 %v12783_v60, %v2290_v52  ;;  %v2306_v37 = vld [vmem:[#allocation3 + $0x7d0] sm:$0xff]  ;;  %v2406_v21 = vmul.f32 %v12783_v60, %v2322_v6  ;;  %v12785_v52 = vld [vmem:[#allocation57_spill] sm:$0xff]  ;;  %v1838_v61 = vadd.f32 %v1837_v34, %v1836_v13 }
 0x2ab   :  { %v2338_v33 = vld [vmem:[#allocation3 + $0xfd0] sm:$0xff]  ;;  %v2142_v3 = vadd.f32 %v2141_v36, %v2140_v57  ;;  %v2390_v5 = vmul.f32 %v12785_v52, %v2306_v37  ;;  %v2214_v54 = vadd.f32 %v2213_v23, %v2212_v31  ;;  %v1910_v57 = vadd.f32 %v1909_v43, %v1908_v62 }
 0x2ac   :  { %v2446_v55 = vadd.f32 %v2374_v15, %v2366_v40  ;;  %v2518_v39 = vadd.f32 %v2406_v21, %v2398_v25  ;;  %v130_v24 = vld [vmem:[#allocation3 + $0x30] sm:$0xff]  ;;  %v2422_v14 = vmul.f32 %v12785_v52, %v2338_v33 }
 0x2ad   :  { %v138_v49 = vld [vmem:[#allocation3 + $0x70] sm:$0xff]  ;;  %v2143_v6 = vrot.slane %v2142_v3, 2  ;;  %v2215_v36 = vrot.slane %v2214_v54, 2  ;;  %v214_v40 = vmul.f32 %v12675_v47, %v130_v24  ;;  %v1966_v24 = vadd.f32 %v1910_v57, %v1658_v46 }
 0x2ae   :  { %v146_v51 = vld [vmem:[#allocation3 + $0xb0] sm:$0xff]  ;;  %v2447_v19 = vadd.f32 %v2446_v55, %v2382_v16  ;;  %v2519_v60 = vadd.f32 %v2518_v39, %v2414_v42  ;;  %v1958_v39 = vadd.f32 %v1838_v61, %v1650_v27 }
 0x2af   :  { %v162_v30 = vld [vmem:[#allocation3 + $0x830] sm:$0xff]  ;;  %v2144_v58 = vadd.f32 %v2143_v6, %v2142_v3  ;;  %v230_v31 = vmul.f32 %v12678_v2, %v146_v51  ;;  %v2216_v13 = vadd.f32 %v2215_v36, %v2214_v54 }
 0x2b0   :  { %v170_v59 = vld [vmem:[#allocation3 + $0x870] sm:$0xff]  ;;  %v2448_v10 = vadd.f32 %v2447_v19, %v2390_v5  ;;  %v2520_v12 = vadd.f32 %v2519_v60, %v2422_v14  ;;  %v246_v33 = vmul.f32 %v12675_v47, %v162_v30 }
 0x2b1   :  { %v178_v35 = vld [vmem:[#allocation3 + $0x8b0] sm:$0xff]  ;;  %v2145_v62 = vrot.slane %v2144_v58, 1  ;;  %v2217_v3 = vrot.slane %v2216_v13, 1 }
 0x2b2   :  { %v154_v37 = vld [vmem:[#allocation3 + $0xf0] sm:$0xff]  ;;  %v262_v21 = vmul.f32 %v12678_v2, %v178_v35  ;;  %v2449_v34 = vrot.slane %v2448_v10, 4  ;;  %v2521_v43 = vrot.slane %v2520_v12, 4  ;;  %v12787_v35 = vld [vmem:[#allocation22_spill] sm:$0xff] }
 0x2b3   :  { %v12786_v15 = vld [vmem:[#allocation23_spill] sm:$0xff]  ;;  %v238_v23 = vmul.f32 %v12679_v1, %v154_v37  ;;  %v2146_v37 = vadd.f32 %v2145_v62, %v2144_v58 }
 0x2b4   :  { %v222_v25 = vmul.f32 %v12786_v15, %v138_v49  ;;  %v186_v53 = vld [vmem:[#allocation3 + $0x8f0] sm:$0xff]  ;;  %v254_v16 = vmul.f32 %v12786_v15, %v170_v59  ;;  %v2450_v49 = vadd.f32 %v2449_v34, %v2448_v10  ;;  %v2522_v47 = vadd.f32 %v2521_v43, %v2520_v12 }
 0x2b5   :  { %v438_v42 = vld [vmem:[#allocation3 + $0x130] sm:$0xff]  ;;  %v270_v19 = vmul.f32 %v12679_v1, %v186_v53  ;;  %v2218_v15 = vadd.f32 %v2217_v3, %v2216_v13 }
 0x2b6   :  { %v446_v55 = vld [vmem:[#allocation3 + $0x170] sm:$0xff]  ;;  %v326_v60 = vadd.f32 %v222_v25, %v214_v40  ;;  %v398_v5 = vadd.f32 %v254_v16, %v246_v33  ;;  %v522_v6 = vmul.f32 %v12691_v45, %v438_v42  ;;  %v2451_v52 = vrot.slane %v2450_v49, 2 }
 0x2b7   :  { %v454_v30 = vld [vmem:[#allocation3 + $0x1b0] sm:$0xff]  ;;  %v530_v36 = vmul.f32 %v12787_v35, %v446_v55  ;;  %v2523_v1 = vrot.slane %v2522_v47, 2  ;;  %v2266_v42 = vadd.f32 %v2146_v37, %v1958_v39  ;;  %v2274_v55 = vadd.f32 %v2218_v15, %v1966_v24  ;;  %v12788_v15 = vld [vmem:[#allocation21_spill] sm:$0xff] }
 0x2b8   :  { %v470_v59 = vld [vmem:[#allocation3 + $0x930] sm:$0xff]  ;;  %v327_v54 = vadd.f32 %v326_v60, %v230_v31  ;;  %v399_v2 = vadd.f32 %v398_v5, %v262_v21  ;;  %v538_v61 = vmul.f32 %v12668_v56, %v454_v30  ;;  %v2452_v10 = vadd.f32 %v2451_v52, %v2450_v49 }
 0x2b9   :  { %v478_v14 = vld [vmem:[#allocation3 + $0x970] sm:$0xff]  ;;  %v554_v57 = vmul.f32 %v12691_v45, %v470_v59  ;;  %v2524_v12 = vadd.f32 %v2523_v1, %v2522_v47  ;;  %v634_v13 = vadd.f32 %v530_v36, %v522_v6 }
 0x2ba   :  { %v486_v51 = vld [vmem:[#allocation3 + $0x9b0] sm:$0xff]  ;;  %v328_v25 = vadd.f32 %v327_v54, %v238_v23  ;;  %v400_v27 = vadd.f32 %v399_v2, %v270_v19  ;;  %v562_v53 = vmul.f32 %v12787_v35, %v478_v14  ;;  %v2453_v21 = vrot.slane %v2452_v10, 1 }
 0x2bb   :  { %v462_v40 = vld [vmem:[#allocation3 + $0x1f0] sm:$0xff]  ;;  %v570_v31 = vmul.f32 %v12668_v56, %v486_v51  ;;  %v2525_v62 = vrot.slane %v2524_v12, 1  ;;  %v635_v45 = vadd.f32 %v634_v13, %v538_v61 }
 0x2bc   :  { %v494_v46 = vld [vmem:[#allocation3 + $0x9f0] sm:$0xff]  ;;  %v329_v33 = vrot.slane %v328_v25, 4  ;;  %v401_v16 = vrot.slane %v400_v27, 4  ;;  %v546_v58 = vmul.f32 %v12681_v50, %v462_v40  ;;  %v706_v43 = vadd.f32 %v562_v53, %v554_v57 }
 0x2bd   :  { %v578_v34 = vmul.f32 %v12681_v50, %v494_v46  ;;  %v746_v23 = vld [vmem:[#allocation3 + $0x230] sm:$0xff]  ;;  %v2454_v3 = vadd.f32 %v2453_v21, %v2452_v10  ;;  %v2526_v19 = vadd.f32 %v2525_v62, %v2524_v12 }
 0x2be   :  { %v754_v52 = vld [vmem:[#allocation3 + $0x270] sm:$0xff]  ;;  %v330_v60 = vadd.f32 %v329_v33, %v328_v25  ;;  %v707_v5 = vadd.f32 %v706_v43, %v570_v31  ;;  %v402_v30 = vadd.f32 %v401_v16, %v400_v27  ;;  %v636_v59 = vadd.f32 %v635_v45, %v546_v58 }
 0x2bf   :  { %v762_v56 = vld [vmem:[#allocation3 + $0x2b0] sm:$0xff]  ;;  %v830_v54 = vmul.f32 %v12673_v38, %v746_v23  ;;  %v2574_v2 = vadd.f32 %v2454_v3, %v2266_v42  ;;  %v2582_v14 = vadd.f32 %v2526_v19, %v2274_v55  ;;  %v838_v39 = vmul.f32 %v12674_v18, %v754_v52 }
 0x2c0   :  { %v778_v49 = vld [vmem:[#allocation3 + $0xa30] sm:$0xff]  ;;  %v708_v50 = vadd.f32 %v707_v5, %v578_v34  ;;  %v637_v24 = vrot.slane %v636_v59, 4  ;;  %v846_v35 = vmul.f32 %v11386_v7, %v762_v56  ;;  %v331_v25 = vrot.slane %v330_v60, 2 }
 0x2c1   :  { %v786_v47 = vld [vmem:[#allocation3 + $0xa70] sm:$0xff]  ;;  %v862_v36 = vmul.f32 %v12673_v38, %v778_v49  ;;  %v2592_v1 = vadd.f32 %v12788_v15, %v2574_v2  ;;  %v2600_v40 = vadd.f32 %v12788_v15, %v2582_v14  ;;  %v403_v61 = vrot.slane %v402_v30, 2 }
 0x2c2   :  { %v770_v51 = vld [vmem:[#allocation3 + $0x2f0] sm:$0xff]  ;;  %v870_v37 = vmul.f32 %v12674_v18, %v786_v47  ;;  %v709_v27 = vrot.slane %v708_v50, 4  ;;  %v638_v57 = vadd.f32 %v637_v24, %v636_v59  ;;  %v942_v16 = vadd.f32 %v838_v39, %v830_v54 }
 0x2c3   :  { %v794_v6 = vld [vmem:[#allocation3 + $0xab0] sm:$0xff]  ;;  %v854_v10 = vmul.f32 %v12682_v41, %v770_v51  ;;  %v2608_v53 = vpack.c.bf16 %v2592_v1, %v2592_v1  ;;  %v2616_v31 = vpack.c.bf16 %v2600_v40, %v2600_v40  ;;  %v12269_v23 = vadd.f32 %v331_v25, %v330_v60 }
 0x2c4   :  { %v802_v46 = vld [vmem:[#allocation3 + $0xaf0] sm:$0xff]  ;;  %v878_v12 = vmul.f32 %v11386_v7, %v794_v6  ;;  %v710_v33 = vadd.f32 %v709_v27, %v708_v50  ;;  %v639_v38 = vrot.slane %v638_v57, 2  ;;  %v1014_v58 = vadd.f32 %v870_v37, %v862_v36 }
 0x2c5   :  { %v886_v18 = vmul.f32 %v12682_v41, %v802_v46  ;;  %v1062_v13 = vld [vmem:[#allocation3 + $0x370] sm:$0xff]  ;;  %v3194_v21 = vunpack.c.l.b16 %v2608_v53  ;;  %v3202_v62 = vunpack.c.l.b16 %v2616_v31  ;;  %v943_v34 = vadd.f32 %v942_v16, %v846_v35 }
 0x2c6   :  { %v1054_v43 = vld [vmem:[#allocation3 + $0x330] sm:$0xff]  ;;  %v711_v42 = vrot.slane %v710_v33, 2  ;;  %v1015_v55 = vadd.f32 %v1014_v58, %v878_v12  ;;  %v404_v19 = vadd.f32 %v403_v61, %v402_v30  ;;  %v1146_v41 = vmul.f32 %v12740_v20, %v1062_v13 }
 0x2c7   :  { %v1070_v45 = vld [vmem:[#allocation3 + $0x3b0] sm:$0xff]  ;;  %v3211_v3 = vsel %vm3208_vm0, %v3202_v62, %v3194_v21  ;;  %v944_v5 = vadd.f32 %v943_v34, %v854_v10  ;;  %v640_v59 = vadd.f32 %v639_v38, %v638_v57  ;;  %v1138_v60 = vmul.f32 %v12704_v28, %v1054_v43 }
 0x2c8   :  { %v1086_v52 = vld [vmem:[#allocation3 + $0xb30] sm:$0xff]  ;;  %v12273_v47 = vpack.c.b16 %v3211_v3, %v3211_v3  ;;  %v1016_v54 = vadd.f32 %v1015_v55, %v886_v18  ;;  %v1154_v50 = vmul.f32 %v12743_v17, %v1070_v45  ;;  %v712_v39 = vadd.f32 %v711_v42, %v710_v33 }
 0x2c9   :  { %v1094_v7 = vld [vmem:[#allocation3 + $0xb70] sm:$0xff]  ;;  %v945_v14 = vrot.slane %v944_v5, 4  ;;  %v1170_v51 = vmul.f32 %v12704_v28, %v1086_v52  ;;  %v1250_v40 = vadd.f32 %v1146_v41, %v1138_v60  ;;  %v333_v28 = vrot.slane %v12269_v23, 1 }
 0x2ca   :  { %v1078_v56 = vld [vmem:[#allocation3 + $0x3f0] sm:$0xff]  ;;  %v1178_v6 = vmul.f32 %v12740_v20, %v1094_v7  ;;  %5867 = vmatmul.mubr.bf16.vlgmr.msra.gmra.mrb[0].mxu1 %v12273_v47  ;;  %v1017_v24 = vrot.slane %v1016_v54, 4  ;;  %v405_v20 = vrot.slane %v404_v19, 1  ;;  %v641_v31 = vrot.slane %v640_v59, 1 }
 0x2cb   :  { %v1102_v49 = vld [vmem:[#allocation3 + $0xbb0] sm:$0xff]  ;;  %v1162_v35 = vmul.f32 %v12699_v32, %v1078_v56  ;;  %v946_v37 = vadd.f32 %v945_v14, %v944_v5  ;;  %v713_v18 = vrot.slane %v712_v39, 1  ;;  %v334_v14 = vadd.f32 %v333_v28, %v12269_v23 }
 0x2cc   :  { %v1110_v2 = vld [vmem:[#allocation3 + $0xbf0] sm:$0xff]  ;;  %v1186_v36 = vmul.f32 %v12743_v17, %v1102_v49  ;;  %v1322_v25 = vadd.f32 %v1178_v6, %v1170_v51  ;;  %v1018_v57 = vadd.f32 %v1017_v24, %v1016_v54  ;;  %v1251_v17 = vadd.f32 %v1250_v40, %v1154_v50 }
 0x2cd   :  { %v1370_v30 = vld [vmem:[#allocation3 + $0x470] sm:$0xff]  ;;  %v1194_v1 = vmul.f32 %v12699_v32, %v1110_v2  ;;  %v947_v33 = vrot.slane %v946_v37, 2  ;;  %v406_v50 = vadd.f32 %v405_v20, %v404_v19  ;;  %v642_v24 = vadd.f32 %v641_v31, %v640_v59 }
 0x2ce   :  { %v1362_v27 = vld [vmem:[#allocation3 + $0x430] sm:$0xff]  ;;  %v1454_v53 = vmul.f32 %v12751_v4, %v1370_v30  ;;  %v1323_v16 = vadd.f32 %v1322_v25, %v1186_v36  ;;  %v1019_v58 = vrot.slane %v1018_v57, 2  ;;  %v1252_v34 = vadd.f32 %v1251_v17, %v1162_v35 }
 0x2cf   :  { %v1378_v46 = vld [vmem:[#allocation3 + $0x4b0] sm:$0xff]  ;;  %v1446_v21 = vmul.f32 %v12755_v26, %v1362_v27  ;;  %v948_v45 = vadd.f32 %v947_v33, %v946_v37 }
 0x2d0   :  { %v12789_v61 = vld [vmem:[#allocation59_spill] sm:$0xff]  ;;  %v1462_v62 = vmul.f32 %v12756_v63, %v1378_v46  ;;  %v1324_v43 = vadd.f32 %v1323_v16, %v1194_v1  ;;  %v1253_v5 = vrot.slane %v1252_v34, 4 }
 0x2d1   :  { %5989 = vmatprep.mubr.bf16.mxu1 %v12789_v61  ;;  %v1394_v10 = vld [vmem:[#allocation3 + $0xc30] sm:$0xff]  ;;  %v1558_v3 = vadd.f32 %v1454_v53, %v1446_v21  ;;  %v949_v40 = vrot.slane %v948_v45, 1 }
 0x2d2   :  { %v1402_v12 = vld [vmem:[#allocation3 + $0xc70] sm:$0xff]  ;;  %v1478_v42 = vmul.f32 %v12755_v26, %v1394_v10  ;;  %v1325_v56 = vrot.slane %v1324_v43, 4  ;;  %v1020_v26 = vadd.f32 %v1019_v58, %v1018_v57  ;;  %v1254_v35 = vadd.f32 %v1253_v5, %v1252_v34 }
 0x2d3   :  { %v1386_v38 = vld [vmem:[#allocation3 + $0x4f0] sm:$0xff]  ;;  %v1486_v55 = vmul.f32 %v12751_v4, %v1402_v12  ;;  %v1559_v2 = vadd.f32 %v1558_v3, %v1462_v62  ;;  %v950_v21 = vadd.f32 %v949_v40, %v948_v45 }
 0x2d4   :  { %v1410_v32 = vld [vmem:[#allocation3 + $0xcb0] sm:$0xff]  ;;  %v1470_v52 = vmul.f32 %v12760_v0, %v1386_v38  ;;  %v1326_v25 = vadd.f32 %v1325_v56, %v1324_v43  ;;  %v1021_v59 = vrot.slane %v1020_v26, 1  ;;  %v1255_v53 = vrot.slane %v1254_v35, 2 }
 0x2d5   :  { %v1418_v13 = vld [vmem:[#allocation3 + $0xcf0] sm:$0xff]  ;;  %v1494_v7 = vmul.f32 %v12756_v63, %v1410_v32  ;;  %v1630_v41 = vadd.f32 %v1486_v55, %v1478_v42  ;;  %v730_v32 = vadd.f32 %v642_v24, %v334_v14 }
 0x2d6   :  { %v1502_v49 = vmul.f32 %v12760_v0, %v1418_v13  ;;  %v1678_v54 = vld [vmem:[#allocation3 + $0x570] sm:$0xff]  ;;  %v1560_v63 = vadd.f32 %v1559_v2, %v1470_v52  ;;  %v714_v0 = vadd.f32 %v713_v18, %v712_v39  ;;  %v1327_v16 = vrot.slane %v1326_v25, 2 }
 0x2d7   :  { %v1670_v60 = vld [vmem:[#allocation3 + $0x530] sm:$0xff]  ;;  %v1631_v51 = vadd.f32 %v1630_v41, %v1494_v7  ;;  %v1762_v1 = vmul.f32 %v12766_v48, %v1678_v54  ;;  %v1022_v42 = vadd.f32 %v1021_v59, %v1020_v26  ;;  %v12303_v55 = vadd.f32 %v1255_v53, %v1254_v35  ;;  %v12790_v54 = vld [vmem:[#allocation54_spill] sm:$0xff] }
 0x2d8   :  { %v1686_v4 = vld [vmem:[#allocation3 + $0x5b0] sm:$0xff]  ;;  %v1754_v23 = vmul.f32 %v12765_v11, %v1670_v60  ;;  %v1561_v57 = vrot.slane %v1560_v63, 4  ;;  %v12305_v5 = vadd.f32 %v1327_v16, %v1326_v25 }
 0x2d9   :  { %v1702_v6 = vld [vmem:[#allocation3 + $0xd30] sm:$0xff]  ;;  %v1632_v27 = vadd.f32 %v1631_v51, %v1502_v49  ;;  %v1770_v19 = vmul.f32 %v12770_v29, %v1686_v4 }
 0x2da   :  { %v1710_v30 = vld [vmem:[#allocation3 + $0xd70] sm:$0xff]  ;;  %v1786_v28 = vmul.f32 %v12765_v11, %v1702_v6  ;;  %v1866_v31 = vadd.f32 %v1762_v1, %v1754_v23  ;;  %v1562_v62 = vadd.f32 %v1561_v57, %v1560_v63  ;;  %v1329_v57 = vrot.slane %v12305_v5, 1 }
 0x2db   :  { %v1694_v36 = vld [vmem:[#allocation3 + $0x5f0] sm:$0xff]  ;;  %v1794_v20 = vmul.f32 %v12766_v48, %v1710_v30  ;;  %v1633_v38 = vrot.slane %v1632_v27, 4  ;;  %v738_v48 = vadd.f32 %v714_v0, %v406_v50  ;;  %v12314_v0 = vadd.f32 %v950_v21, %v730_v32  ;;  %v2623_v32 = vld [vmem:[#allocation6 + $0x8] sm:$0xff] }
 0x2dc   :  { %v1718_v37 = vld [vmem:[#allocation3 + $0xdb0] sm:$0xff]  ;;  %v1778_v10 = vmul.f32 %v12772_v22, %v1694_v36  ;;  %v1867_v18 = vadd.f32 %v1866_v31, %v1770_v19  ;;  %v1563_v26 = vrot.slane %v1562_v62, 2 }
 0x2dd   :  { %v1726_v46 = vld [vmem:[#allocation3 + $0xdf0] sm:$0xff]  ;;  %v1802_v12 = vmul.f32 %v12770_v29, %v1718_v37  ;;  %v1938_v33 = vadd.f32 %v1794_v20, %v1786_v28  ;;  %v1634_v56 = vadd.f32 %v1633_v38, %v1632_v27  ;;  %v12316_v40 = vadd.f32 %v1022_v42, %v738_v48 }
 0x2de   :  { %v1810_v39 = vmul.f32 %v12772_v22, %v1726_v46  ;;  %v1986_v17 = vld [vmem:[#allocation3 + $0x670] sm:$0xff]  ;;  %v1868_v22 = vadd.f32 %v1867_v18, %v1778_v10  ;;  %v1564_v10 = vadd.f32 %v1563_v26, %v1562_v62  ;;  %v2627_v18 = vld [vmem:[#allocation6 + $0x28] sm:$0xff] }
 0x2df   :  { %v1939_v58 = vadd.f32 %v1938_v33, %v1802_v12  ;;  %v1978_v11 = vld [vmem:[#allocation3 + $0x630] sm:$0xff]  ;;  %v2070_v29 = vmul.f32 %v12779_v8, %v1986_v17  ;;  %v1635_v27 = vrot.slane %v1634_v56, 2 }
 0x2e0   :  { %v1994_v13 = vld [vmem:[#allocation3 + $0x6b0] sm:$0xff]  ;;  %v2062_v41 = vmul.f32 %v12778_v9, %v1978_v11  ;;  %v1869_v2 = vrot.slane %v1868_v22, 4 }
 0x2e1   :  { %v2010_v34 = vld [vmem:[#allocation3 + $0xe30] sm:$0xff]  ;;  %v1940_v52 = vadd.f32 %v1939_v58, %v1810_v39  ;;  %v2078_v45 = vmul.f32 %v12790_v54, %v1994_v13  ;;  %v12793_v39 = vld [vmem:[#allocation53_spill] sm:$0xff]  ;;  %v1636_v21 = vadd.f32 %v1635_v27, %v1634_v56 }
 0x2e2   :  { %v2018_v43 = vld [vmem:[#allocation3 + $0xe70] sm:$0xff]  ;;  %v2094_v14 = vmul.f32 %v12778_v9, %v2010_v34  ;;  %v2174_v30 = vadd.f32 %v2070_v29, %v2062_v41  ;;  %v1870_v35 = vadd.f32 %v1869_v2, %v1868_v22  ;;  %v9348_v41 = vcombine.high %v2623_v32, %v2627_v18 }
 0x2e3   :  { %v2002_v7 = vld [vmem:[#allocation3 + $0x6f0] sm:$0xff]  ;;  %v1941_v60 = vrot.slane %v1940_v52, 4  ;;  %v2102_v50 = vmul.f32 %v12779_v8, %v2018_v43  ;;  %v1257_v8 = vrot.slane %v12303_v55, 1  ;;  %v12794_v43 = vld [vmem:[#allocation57_spill] sm:$0xff] }
 0x2e4   :  { %v2026_v3 = vld [vmem:[#allocation3 + $0xeb0] sm:$0xff]  ;;  %v2175_v9 = vadd.f32 %v2174_v30, %v2078_v45  ;;  %v1871_v33 = vrot.slane %v1870_v35, 2  ;;  %5957 = vmatprep.subr.bf16.mxu1 %v9348_v41  ;;  %v2667_v41 = vld [vmem:[#allocation6 + $0x168] sm:$0xff] }
 0x2e5   :  { %v2034_v49 = vld [vmem:[#allocation3 + $0xef0] sm:$0xff]  ;;  %v2110_v6 = vmul.f32 %v12790_v54, %v2026_v3  ;;  %v1942_v63 = vadd.f32 %v1941_v60, %v1940_v52  ;;  %v2246_v37 = vadd.f32 %v2102_v50, %v2094_v14  ;;  %v2631_v14 = vld [vmem:[#allocation6 + $0x48] sm:$0xff] }
 0x2e6   :  { %v12791_v51 = vld [vmem:[#allocation55_spill] sm:$0xff]  ;;  %v12792_v20 = vld [vmem:[#allocation56_spill] sm:$0xff]  ;;  %v1872_v54 = vadd.f32 %v1871_v33, %v1870_v35 }
 0x2e7   :  { %v2086_v4 = vmul.f32 %v12791_v51, %v2002_v7  ;;  %v2294_v24 = vld [vmem:[#allocation3 + $0x770] sm:$0xff]  ;;  %v2118_v36 = vmul.f32 %v12791_v51, %v2034_v49  ;;  %v2247_v46 = vadd.f32 %v2246_v37, %v2110_v6  ;;  %v1943_v17 = vrot.slane %v1942_v63, 2  ;;  %v2643_v35 = vld [vmem:[#allocation6 + $0xa8] sm:$0xff] }
 0x2e8   :  { %v2286_v1 = vld [vmem:[#allocation3 + $0x730] sm:$0xff]  ;;  %v2378_v59 = vmul.f32 %v12792_v20, %v2294_v24  ;;  %v9347_v49 = vcombine.low %v2623_v32, %v2627_v18  ;;  %v1637_v6 = vrot.slane %v1636_v21, 1  ;;  %v1873_v27 = vrot.slane %v1872_v54, 1 }
 0x2e9   :  { %v2302_v25 = vld [vmem:[#allocation3 + $0x7b0] sm:$0xff]  ;;  %v2176_v12 = vadd.f32 %v2175_v9, %v2086_v4  ;;  %v2370_v31 = vmul.f32 %v12793_v39, %v2286_v1  ;;  %v2248_v16 = vadd.f32 %v2247_v46, %v2118_v36  ;;  %v1944_v45 = vadd.f32 %v1943_v17, %v1942_v63  ;;  %v2639_v36 = vld [vmem:[#allocation6 + $0x88] sm:$0xff] }
 0x2ea   :  { %v2318_v23 = vld [vmem:[#allocation3 + $0xf30] sm:$0xff]  ;;  %v2386_v38 = vmul.f32 %v12784_v44, %v2302_v25  ;;  %v1565_v4 = vrot.slane %v1564_v10, 1  ;;  %5958 = vmatpush1.bf16.msra.mxu1 %v9347_v49  ;;  %v1258_v25 = vadd.f32 %v1257_v8, %v12303_v55  ;;  %v9363_v17 = vcombine.low %v2639_v36, %v2643_v35  ;;  %v2663_v49 = vld [vmem:[#allocation6 + $0x148] sm:$0xff] }
 0x2eb   :  { %v2326_v19 = vld [vmem:[#allocation3 + $0xf70] sm:$0xff]  ;;  %v2177_v58 = vrot.slane %v2176_v12, 4  ;;  %v2402_v11 = vmul.f32 %v12793_v39, %v2318_v23  ;;  %v2249_v62 = vrot.slane %v2248_v16, 4  ;;  %v2482_v42 = vadd.f32 %v2378_v59, %v2370_v31 }
 0x2ec   :  { %v2334_v28 = vld [vmem:[#allocation3 + $0xfb0] sm:$0xff]  ;;  %v2410_v13 = vmul.f32 %v12792_v20, %v2326_v19  ;;  %v2647_v19 = vld [vmem:[#allocation6 + $0xc8] sm:$0xff]  ;;  %v1330_v20 = vadd.f32 %v1329_v57, %v12305_v5  ;;  %v1945_v59 = vrot.slane %v1944_v45, 1  ;;  %v1566_v39 = vadd.f32 %v1565_v4, %v1564_v10 }
 0x2ed   :  { %v2310_v53 = vld [vmem:[#allocation3 + $0x7f0] sm:$0xff]  ;;  %v2418_v48 = vmul.f32 %v12784_v44, %v2334_v28  ;;  %v2178_v7 = vadd.f32 %v2177_v58, %v2176_v12  ;;  %v2250_v2 = vadd.f32 %v2249_v62, %v2248_v16  ;;  %v2483_v60 = vadd.f32 %v2482_v42, %v2386_v38  ;;  %v2635_v44 = vld [vmem:[#allocation6 + $0x68] sm:$0xff] }
 0x2ee   :  { %v2342_v34 = vld [vmem:[#allocation3 + $0xff0] sm:$0xff]  ;;  %v2394_v29 = vmul.f32 %v12794_v43, %v2310_v53  ;;  %v2554_v3 = vadd.f32 %v2410_v13, %v2402_v11  ;;  %v9355_v1 = vcombine.low %v2631_v14, %v2635_v44  ;;  %v9356_v9 = vcombine.high %v2631_v14, %v2635_v44  ;;  %v2651_v28 = vld [vmem:[#allocation6 + $0xe8] sm:$0xff] }
 0x2ef   :  { %v12327_v22 = vld [vmem:[#allocation6 + $0x10] sm:$0xff]  ;;  %v2179_v56 = vrot.slane %v2178_v7, 2  ;;  %v2426_v50 = vmul.f32 %v12794_v43, %v2342_v34  ;;  %v2251_v30 = vrot.slane %v2250_v2, 2  ;;  %v9364_v53 = vcombine.high %v2639_v36, %v2643_v35  ;;  %v2655_v11 = vld [vmem:[#allocation6 + $0x108] sm:$0xff] }
 0x2f0   :  { %v12329_v52 = vld [vmem:[#allocation6 + $0x30] sm:$0xff]  ;;  %v2555_v26 = vadd.f32 %v2554_v3, %v2418_v48  ;;  %v2484_v24 = vadd.f32 %v2483_v60, %v2394_v29  ;;  %5959 = vmatprep.subr.bf16.mxu1 %v9356_v9  ;;  %v1638_v16 = vadd.f32 %v1637_v6, %v1636_v21  ;;  %v9372_v55 = vcombine.high %v2647_v19, %v2651_v28  ;;  %v2659_v5 = vld [vmem:[#allocation6 + $0x128] sm:$0xff] }
 0x2f1   :  { %v9350_v51 = vcombine.high %v12327_v22, %v12329_v52  ;;  %v2180_v63 = vadd.f32 %v2179_v56, %v2178_v7  ;;  %v2252_v46 = vadd.f32 %v2251_v30, %v2250_v2  ;;  %5960 = vmatpush1.bf16.msra.mxu1 %v9355_v1  ;;  %v1346_v8 = vadd.f32 %v1258_v25, %v12314_v0 }
 0x2f2   :  { %v2556_v37 = vadd.f32 %v2555_v26, %v2426_v50  ;;  %v2485_v23 = vrot.slane %v2484_v24, 4  ;;  %5961 = vmatprep.subr.bf16.mxu1 %v9364_v53  ;;  %v1874_v18 = vadd.f32 %v1873_v27, %v1872_v54  ;;  %v1354_v57 = vadd.f32 %v1330_v20, %v12316_v40  ;;  %v2671_v26 = vld [vmem:[#allocation6 + $0x188] sm:$0xff] }
 0x2f3   :  { %6121 = vmatprep.subr.bf16.mxu0 %v9350_v51  ;;  %v2181_v31 = vrot.slane %v2180_v63, 1  ;;  %v2253_v38 = vrot.slane %v2252_v46, 1  ;;  %v1946_v13 = vadd.f32 %v1945_v59, %v1944_v45  ;;  %v1654_v10 = vadd.f32 %v1566_v39, %v1346_v8  ;;  %v2675_v51 = vld [vmem:[#allocation6 + $0x1a8] sm:$0xff]  ;;  %v2652_v8 = vld [vmem:[#allocation6 + $0xf0] sm:$0xff] }
 0x2f4   :  { %v2557_v12 = vrot.slane %v2556_v37, 4  ;;  %v2486_v33 = vadd.f32 %v2485_v23, %v2484_v24  ;;  %v9371_v43 = vcombine.low %v2647_v19, %v2651_v28  ;;  %v1662_v21 = vadd.f32 %v1638_v16, %v1354_v57  ;;  %v2636_v23 = vld [vmem:[#allocation6 + $0x70] sm:$0xff]  ;;  %v2687_v28 = vld [vmem:[#allocation6 + $0x208] sm:$0xff] }
 0x2f5   :  { %v2182_v62 = vadd.f32 %v2181_v31, %v2180_v63  ;;  %5962 = vmatpush1.bf16.msra.mxu1 %v9363_v17  ;;  %v2254_v29 = vadd.f32 %v2253_v38, %v2252_v46  ;;  %v9380_v7 = vcombine.high %v2655_v11, %v2659_v5  ;;  %v1962_v3 = vadd.f32 %v1874_v18, %v1654_v10  ;;  %v2679_v63 = vld [vmem:[#allocation6 + $0x1c8] sm:$0xff]  ;;  %v2632_v46 = vld [vmem:[#allocation6 + $0x50] sm:$0xff] }
 0x2f6   :  { %v2558_v32 = vadd.f32 %v2557_v12, %v2556_v37  ;;  %v2487_v58 = vrot.slane %v2486_v33, 2  ;;  %5963 = vmatprep.subr.bf16.mxu1 %v9372_v55  ;;  %v1970_v54 = vadd.f32 %v1946_v13, %v1662_v21  ;;  %v9379_v45 = vcombine.low %v2655_v11, %v2659_v5  ;;  %v2683_v37 = vld [vmem:[#allocation6 + $0x1e8] sm:$0xff]  ;;  %v2640_v31 = vld [vmem:[#allocation6 + $0x90] sm:$0xff] }
 0x2f7   :  { %v2270_v60 = vadd.f32 %v2182_v62, %v1962_v3  ;;  %v9388_v56 = vcombine.high %v2663_v49, %v2667_v41  ;;  %v9387_v30 = vcombine.low %v2663_v49, %v2667_v41  ;;  %v9396_v36 = vcombine.high %v2671_v26, %v2675_v51  ;;  %v2691_v20 = vld [vmem:[#allocation6 + $0x228] sm:$0xff]  ;;  %v2660_v10 = vld [vmem:[#allocation6 + $0x130] sm:$0xff] }
 0x2f8   :  { %v2559_v48 = vrot.slane %v2558_v32, 2  ;;  %v2488_v34 = vadd.f32 %v2487_v58, %v2486_v33  ;;  %v2278_v14 = vadd.f32 %v2254_v29, %v1970_v54  ;;  %v9395_v25 = vcombine.low %v2671_v26, %v2675_v51  ;;  %v2644_v33 = vld [vmem:[#allocation6 + $0xb0] sm:$0xff]  ;;  %v2695_v16 = vld [vmem:[#allocation6 + $0x248] sm:$0xff] }
 0x2f9   :  { %5964 = vmatpush1.bf16.msra.mxu1 %v9371_v43  ;;  %v9404_v19 = vcombine.high %v2679_v63, %v2683_v37  ;;  %v9358_v53 = vcombine.high %v2632_v46, %v2636_v23  ;;  %v9403_v39 = vcombine.low %v2679_v63, %v2683_v37  ;;  %v9412_v17 = vcombine.high %v2687_v28, %v2691_v20  ;;  %v2699_v38 = vld [vmem:[#allocation6 + $0x268] sm:$0xff]  ;;  %v2668_v3 = vld [vmem:[#allocation6 + $0x170] sm:$0xff] }
 0x2fa   :  { %v2560_v42 = vadd.f32 %v2559_v48, %v2558_v32  ;;  %v2489_v0 = vrot.slane %v2488_v34, 1  ;;  %5965 = vmatprep.subr.bf16.mxu1 %v9380_v7  ;;  %v9357_v32 = vcombine.low %v2632_v46, %v2636_v23  ;;  %v9366_v55 = vcombine.high %v2640_v31, %v2644_v33  ;;  %v2703_v58 = vld [vmem:[#allocation6 + $0x288] sm:$0xff]  ;;  %v2656_v48 = vld [vmem:[#allocation6 + $0x110] sm:$0xff] }
 0x2fb   :  { %v9420_v18 = vcombine.high %v2695_v16, %v2699_v38  ;;  %v2707_v11 = vld [vmem:[#allocation6 + $0x2a8] sm:$0xff]  ;;  %v9365_v5 = vcombine.low %v2640_v31, %v2644_v33  ;;  %v9419_v13 = vcombine.low %v2695_v16, %v2699_v38  ;;  %v9382_v29 = vcombine.high %v2656_v48, %v2660_v10  ;;  %v2664_v7 = vld [vmem:[#allocation6 + $0x150] sm:$0xff] }
 0x2fc   :  { %v2561_v2 = vrot.slane %v2560_v42, 1  ;;  %v2490_v40 = vadd.f32 %v2489_v0, %v2488_v34  ;;  %v9428_v62 = vcombine.high %v2703_v58, %v2707_v11  ;;  %v2711_v34 = vld [vmem:[#allocation6 + $0x2c8] sm:$0xff]  ;;  %v9381_v54 = vcombine.low %v2656_v48, %v2660_v10  ;;  %v2704_v16 = vld [vmem:[#allocation6 + $0x290] sm:$0xff] }
 0x2fd   :  { %5966 = vmatpush1.bf16.msra.mxu1 %v9379_v45  ;;  %v2715_v43 = vld [vmem:[#allocation6 + $0x2e8] sm:$0xff]  ;;  %v2676_v45 = vld [vmem:[#allocation6 + $0x1b0] sm:$0xff] }
 0x2fe   :  { %v2562_v44 = vadd.f32 %v2561_v2, %v2560_v42  ;;  %v2578_v50 = vadd.f32 %v2490_v40, %v2270_v60  ;;  %5967 = vmatprep.subr.bf16.mxu1 %v9388_v56  ;;  %v9427_v42 = vcombine.low %v2703_v58, %v2707_v11  ;;  %v9436_v0 = vcombine.high %v2711_v34, %v2715_v43  ;;  %v2719_v49 = vld [vmem:[#allocation6 + $0x308] sm:$0xff]  ;;  %v2672_v40 = vld [vmem:[#allocation6 + $0x190] sm:$0xff] }
 0x2ff   :  { %v2723_v41 = vld [vmem:[#allocation6 + $0x328] sm:$0xff]  ;;  %v9390_v2 = vcombine.high %v2664_v7, %v2668_v3  ;;  %v9435_v60 = vcombine.low %v2711_v34, %v2715_v43  ;;  %v9398_v26 = vcombine.high %v2672_v40, %v2676_v45  ;;  %v2708_v38 = vld [vmem:[#allocation6 + $0x2b0] sm:$0xff] }
 0x300   :  { %v2586_v4 = vadd.f32 %v2562_v44, %v2278_v14  ;;  %v2596_v6 = vadd.f32 %v12788_v15, %v2578_v50  ;;  %v9444_v14 = vcombine.high %v2719_v49, %v2723_v41  ;;  %v2727_v44 = vld [vmem:[#allocation6 + $0x348] sm:$0xff]  ;;  %v9389_v50 = vcombine.low %v2664_v7, %v2668_v3  ;;  %v2712_v58 = vld [vmem:[#allocation6 + $0x2d0] sm:$0xff] }
 0x301   :  { %5968 = vmatpush1.bf16.msra.mxu1 %v9387_v30  ;;  %v2731_v56 = vld [vmem:[#allocation6 + $0x368] sm:$0xff]  ;;  %v9443_v51 = vcombine.low %v2719_v49, %v2723_v41  ;;  %v2716_v11 = vld [vmem:[#allocation6 + $0x2f0] sm:$0xff]  ;;  %v9429_v48 = vcombine.low %v2704_v16, %v2708_v38 }
 0x302   :  { %v2604_v24 = vadd.f32 %v12788_v15, %v2586_v4  ;;  %v2612_v35 = vpack.c.bf16 %v2596_v6, %v2596_v6  ;;  %5969 = vmatprep.subr.bf16.mxu1 %v9396_v36  ;;  %v9349_v15 = vcombine.low %v12327_v22, %v12329_v52  ;;  %v9411_v22 = vcombine.low %v2687_v28, %v2691_v20  ;;  %v2648_v52 = vld [vmem:[#allocation6 + $0xd0] sm:$0xff]  ;;  %v2739_v36 = vld [vmem:[#allocation6 + $0x3a8] sm:$0xff] }
 0x303   :  { %v9374_v57 = vcombine.high %v2648_v52, %v2652_v8  ;;  %v9373_v21 = vcombine.low %v2648_v52, %v2652_v8  ;;  %v2680_v4 = vld [vmem:[#allocation6 + $0x1d0] sm:$0xff]  ;;  %v9452_v30 = vcombine.high %v2727_v44, %v2731_v56  ;;  %v9451_v37 = vcombine.low %v2727_v44, %v2731_v56  ;;  %v2747_v46 = vld [vmem:[#allocation6 + $0x3e8] sm:$0xff] }
 0x304   :  { %v2620_v1 = vpack.c.bf16 %v2604_v24, %v2604_v24  ;;  %v3198_v9 = vunpack.c.l.b16 %v2612_v35  ;;  %v2684_v6 = vld [vmem:[#allocation6 + $0x1f0] sm:$0xff]  ;;  %v2735_v24 = vld [vmem:[#allocation6 + $0x388] sm:$0xff]  ;;  %v9397_v35 = vcombine.low %v2672_v40, %v2676_v45  ;;  %v9430_v8 = vcombine.high %v2704_v16, %v2708_v38 }
 0x305   :  { %5970 = vmatpush1.bf16.msra.mxu1 %v9395_v25  ;;  %v9406_v63 = vcombine.high %v2680_v4, %v2684_v6  ;;  %v9460_v25 = vcombine.high %v2735_v24, %v2739_v36  ;;  %v9405_v23 = vcombine.low %v2680_v4, %v2684_v6  ;;  %v9459_v28 = vcombine.low %v2735_v24, %v2739_v36  ;;  %v2696_v20 = vld [vmem:[#allocation6 + $0x250] sm:$0xff]  ;;  %v2775_v7 = vld [vmem:[#allocation6 + $0x4c8] sm:$0xff] }
 0x306   :  { %v3206_v27 = vunpack.c.l.b16 %v2620_v1  ;;  %5971 = vmatprep.subr.bf16.mxu1 %v9404_v19  ;;  %v2688_v1 = vld [vmem:[#allocation6 + $0x210] sm:$0xff]  ;;  %v2779_v3 = vld [vmem:[#allocation6 + $0x4e8] sm:$0xff] }
 0x307   :  { %v12795_v10 = vld [vmem:[#allocation36_spill] sm:$0xff]  ;;  %v2783_v40 = vld [vmem:[#allocation6 + $0x508] sm:$0xff]  ;;  %v9499_v56 = vcombine.low %v2775_v7, %v2779_v3 }
 0x308   :  { %v3215_v59 = vsel %vm3208_vm0, %v3206_v27, %v3198_v9  ;;  %v2692_v9 = vld [vmem:[#allocation6 + $0x230] sm:$0xff]  ;;  %v2743_v27 = vld [vmem:[#allocation6 + $0x3c8] sm:$0xff] }
 0x309   :  { %v12343_v12 = vpack.c.b16 %v3215_v59, %v3215_v59  ;;  %5972 = vmatpush1.bf16.msra.mxu1 %v9403_v39  ;;  %v9414_v19 = vcombine.high %v2688_v1, %v2692_v9  ;;  %v2700_v59 = vld [vmem:[#allocation6 + $0x270] sm:$0xff]  ;;  %v2755_v39 = vld [vmem:[#allocation6 + $0x428] sm:$0xff]  ;;  %v9413_v31 = vcombine.low %v2688_v1, %v2692_v9 }
 0x30a   :  { %5973 = vmatprep.subr.bf16.mxu1 %v9412_v17  ;;  %v9422_v33 = vcombine.high %v2696_v20, %v2700_v59  ;;  %v9467_v17 = vcombine.low %v2743_v27, %v2747_v46  ;;  %v9421_v52 = vcombine.low %v2696_v20, %v2700_v59  ;;  %v2720_v43 = vld [vmem:[#allocation6 + $0x310] sm:$0xff]  ;;  %v2787_v45 = vld [vmem:[#allocation6 + $0x528] sm:$0xff] }
 0x30b   :  { %5949 = vmatmul.mubr.bf16.vlgmr.msra.gmra.mrb[0].mxu0 %v12343_v12  ;;  %v2791_v4 = vld [vmem:[#allocation6 + $0x548] sm:$0xff]  ;;  %v9507_v36 = vcombine.low %v2783_v40, %v2787_v45 }
 0x30c   :  { %6122 = vmatpush1.bf16.msra.mxu0 %v9349_v15  ;;  %6153 = vmatprep.mubr.bf16.mxu0 %v12789_v61  ;;  %v9468_v15 = vcombine.high %v2743_v27, %v2747_v46  ;;  %v2795_v6 = vld [vmem:[#allocation6 + $0x568] sm:$0xff] }
 0x30d   :  { %6123 = vmatprep.subr.bf16.mxu0 %v9358_v53  ;;  %5974 = vmatpush1.bf16.msra.mxu1 %v9411_v22  ;;  %v2751_v53 = vld [vmem:[#allocation6 + $0x408] sm:$0xff]  ;;  %v9515_v46 = vcombine.low %v2791_v4, %v2795_v6 }
 0x30e   :  { %5975 = vmatprep.subr.bf16.mxu1 %v9420_v18  ;;  %v2763_v22 = vld [vmem:[#allocation6 + $0x468] sm:$0xff]  ;;  %v9475_v18 = vcombine.low %v2751_v53, %v2755_v39 }
 0x30f   :  { %v2799_v1 = vld [vmem:[#allocation6 + $0x588] sm:$0xff] }
 0x310   :  { %6124 = vmatpush1.bf16.msra.mxu0 %v9357_v32  ;;  %v9476_v32 = vcombine.high %v2751_v53, %v2755_v39  ;;  %v2803_v9 = vld [vmem:[#allocation6 + $0x5a8] sm:$0xff] }
 0x311   :  { %6125 = vmatprep.subr.bf16.mxu0 %v9366_v55  ;;  %5976 = vmatpush1.bf16.msra.mxu1 %v9419_v13  ;;  %v2759_v55 = vld [vmem:[#allocation6 + $0x448] sm:$0xff]  ;;  %v9523_v39 = vcombine.low %v2799_v1, %v2803_v9 }
 0x312   :  { %5977 = vmatprep.subr.bf16.mxu1 %v9428_v62  ;;  %v2771_v13 = vld [vmem:[#allocation6 + $0x4a8] sm:$0xff]  ;;  %v9438_v62 = vcombine.high %v2712_v58, %v2716_v11  ;;  %v9483_v34 = vcombine.low %v2759_v55, %v2763_v22 }
 0x313   :  { %v2807_v20 = vld [vmem:[#allocation6 + $0x5c8] sm:$0xff] }
 0x314   :  { %6126 = vmatpush1.bf16.msra.mxu0 %v9365_v5  ;;  %v9484_v5 = vcombine.high %v2759_v55, %v2763_v22  ;;  %v2811_v59 = vld [vmem:[#allocation6 + $0x5e8] sm:$0xff] }
 0x315   :  { %6127 = vmatprep.subr.bf16.mxu0 %v9374_v57  ;;  %5978 = vmatpush1.bf16.msra.mxu1 %v9427_v42  ;;  %v2767_v57 = vld [vmem:[#allocation6 + $0x488] sm:$0xff]  ;;  %v9531_v22 = vcombine.low %v2807_v20, %v2811_v59 }
 0x316   :  { %5979 = vmatprep.subr.bf16.mxu1 %v9436_v0  ;;  %v9492_v42 = vcombine.high %v2767_v57, %v2771_v13  ;;  %v9437_v0 = vcombine.low %v2712_v58, %v2716_v11  ;;  %v9491_v41 = vcombine.low %v2767_v57, %v2771_v13  ;;  %v2815_v16 = vld [vmem:[#allocation6 + $0x608] sm:$0xff] }
 0x317   :  { %v2819_v38 = vld [vmem:[#allocation6 + $0x628] sm:$0xff] }
 0x318   :  { %6128 = vmatpush1.bf16.msra.mxu0 %v9373_v21  ;;  %v2724_v21 = vld [vmem:[#allocation6 + $0x330] sm:$0xff]  ;;  %v2823_v58 = vld [vmem:[#allocation6 + $0x648] sm:$0xff]  ;;  %v9539_v13 = vcombine.low %v2815_v16, %v2819_v38 }
 0x319   :  { %6129 = vmatprep.subr.bf16.mxu0 %v9382_v29  ;;  %5980 = vmatpush1.bf16.msra.mxu1 %v9435_v60  ;;  %v12796_v29 = vld [vmem:[#allocation28_spill] sm:$0xff]  ;;  %v9446_v49 = vcombine.high %v2720_v43, %v2724_v21  ;;  %v9500_v60 = vcombine.high %v2775_v7, %v2779_v3  ;;  %v2827_v11 = vld [vmem:[#allocation6 + $0x668] sm:$0xff] }
 0x31a   :  { %5981 = vmatprep.subr.bf16.mxu1 %v9444_v14  ;;  %v9445_v14 = vcombine.low %v2720_v43, %v2724_v21  ;;  %v2831_v43 = vld [vmem:[#allocation6 + $0x688] sm:$0xff]  ;;  %v9547_v3 = vcombine.low %v2823_v58, %v2827_v11 }
 0x31b   :  { %v2835_v21 = vld [vmem:[#allocation6 + $0x6a8] sm:$0xff] }
 0x31c   :  { %6130 = vmatpush1.bf16.msra.mxu0 %v9381_v54  ;;  %v2728_v54 = vld [vmem:[#allocation6 + $0x350] sm:$0xff] }
 0x31d   :  { %6131 = vmatprep.subr.bf16.mxu0 %v9390_v2  ;;  %5982 = vmatpush1.bf16.msra.mxu1 %v9443_v51  ;;  %v2732_v2 = vld [vmem:[#allocation6 + $0x370] sm:$0xff]  ;;  %v9508_v51 = vcombine.high %v2783_v40, %v2787_v45  ;;  %v9555_v45 = vcombine.low %v2831_v43, %v2835_v21 }
 0x31e   :  { %5983 = vmatprep.subr.bf16.mxu1 %v9452_v30  ;;  %v9454_v44 = vcombine.high %v2728_v54, %v2732_v2  ;;  %v9453_v30 = vcombine.low %v2728_v54, %v2732_v2  ;;  %v2839_v54 = vld [vmem:[#allocation6 + $0x6c8] sm:$0xff] }
 0x31f   :  { %v2843_v2 = vld [vmem:[#allocation6 + $0x6e8] sm:$0xff] }
 0x320   :  { %6132 = vmatpush1.bf16.msra.mxu0 %v9389_v50  ;;  %v2736_v50 = vld [vmem:[#allocation6 + $0x390] sm:$0xff] }
 0x321   :  { %6133 = vmatprep.subr.bf16.mxu0 %v9398_v26  ;;  %5984 = vmatpush1.bf16.msra.mxu1 %v9451_v37  ;;  %v2740_v26 = vld [vmem:[#allocation6 + $0x3b0] sm:$0xff]  ;;  %v9516_v37 = vcombine.high %v2791_v4, %v2795_v6  ;;  %v9563_v6 = vcombine.low %v2839_v54, %v2843_v2 }
 0x322   :  { %5985 = vmatprep.subr.bf16.mxu1 %v9460_v25  ;;  %v9462_v24 = vcombine.high %v2736_v50, %v2740_v26  ;;  %v9461_v25 = vcombine.low %v2736_v50, %v2740_v26  ;;  %v2847_v50 = vld [vmem:[#allocation6 + $0x708] sm:$0xff] }
 0x323   :  { %v2851_v26 = vld [vmem:[#allocation6 + $0x728] sm:$0xff] }
 0x324   :  { %6134 = vmatpush1.bf16.msra.mxu0 %v9397_v35  ;;  %v2744_v35 = vld [vmem:[#allocation6 + $0x3d0] sm:$0xff] }
 0x325   :  { %6135 = vmatprep.subr.bf16.mxu0 %v9406_v63  ;;  %5986 = vmatpush1.bf16.msra.mxu1 %v9459_v28  ;;  %v2748_v63 = vld [vmem:[#allocation6 + $0x3f0] sm:$0xff]  ;;  %v9524_v28 = vcombine.high %v2799_v1, %v2803_v9  ;;  %v9571_v9 = vcombine.low %v2847_v50, %v2851_v26 }
 0x326   :  { %5987 = vmatprep.subr.bf16.mxu1 %v9468_v15  ;;  %v9470_v27 = vcombine.high %v2744_v35, %v2748_v63  ;;  %v9469_v15 = vcombine.low %v2744_v35, %v2748_v63  ;;  %v2855_v35 = vld [vmem:[#allocation6 + $0x748] sm:$0xff] }
 0x327   :  { %v2859_v63 = vld [vmem:[#allocation6 + $0x768] sm:$0xff] }
 0x328   :  { %6136 = vmatpush1.bf16.msra.mxu0 %v9405_v23  ;;  %v2752_v23 = vld [vmem:[#allocation6 + $0x410] sm:$0xff] }
 0x329   :  { %6137 = vmatprep.subr.bf16.mxu0 %v9414_v19  ;;  %5988 = vmatpush1.bf16.msra.mxu1 %v9467_v17  ;;  %v2756_v19 = vld [vmem:[#allocation6 + $0x430] sm:$0xff]  ;;  %v9532_v17 = vcombine.high %v2807_v20, %v2811_v59  ;;  %v9579_v59 = vcombine.low %v2855_v35, %v2859_v63 }
 0x32a   :  { %5998 = vmatprep.subr.bf16.mxu1 %v9476_v32  ;;  %v9478_v53 = vcombine.high %v2752_v23, %v2756_v19  ;;  %v9477_v32 = vcombine.low %v2752_v23, %v2756_v19  ;;  %v2863_v23 = vld [vmem:[#allocation6 + $0x788] sm:$0xff] }
 0x32b   :  { %v2867_v19 = vld [vmem:[#allocation6 + $0x7a8] sm:$0xff] }
 0x32c   :  { %6138 = vmatpush1.bf16.msra.mxu0 %v9413_v31  ;;  %5990 = vmatmul.mubr.bf16.vlgmr.msra.gmra.mrb[4].mxu1 %v12795_v10  ;;  %v2760_v31 = vld [vmem:[#allocation6 + $0x450] sm:$0xff] }
 0x32d   :  { %6139 = vmatprep.subr.bf16.mxu0 %v9422_v33  ;;  %5999 = vmatpush1.bf16.msra.mxu1 %v9475_v18  ;;  %v2764_v33 = vld [vmem:[#allocation6 + $0x470] sm:$0xff]  ;;  %v9540_v18 = vcombine.high %v2815_v16, %v2819_v38  ;;  %v9587_v38 = vcombine.low %v2863_v23, %v2867_v19 }
 0x32e   :  { %6030 = vmatprep.mubr.bf16.mxu1 %v12796_v29  ;;  %6000 = vmatprep.subr.bf16.mxu1 %v9484_v5  ;;  %v9486_v55 = vcombine.high %v2760_v31, %v2764_v33  ;;  %v9485_v5 = vcombine.low %v2760_v31, %v2764_v33  ;;  %v2871_v31 = vld [vmem:[#allocation6 + $0x7c8] sm:$0xff] }
 0x32f   :  { %v2875_v33 = vld [vmem:[#allocation6 + $0x7e8] sm:$0xff] }
 0x330   :  { %6140 = vmatpush1.bf16.msra.mxu0 %v9421_v52  ;;  %v2768_v52 = vld [vmem:[#allocation6 + $0x490] sm:$0xff] }
 0x331   :  { %6141 = vmatprep.subr.bf16.mxu0 %v9430_v8  ;;  %6001 = vmatpush1.bf16.msra.mxu1 %v9483_v34  ;;  %v2772_v8 = vld [vmem:[#allocation6 + $0x4b0] sm:$0xff]  ;;  %v9548_v34 = vcombine.high %v2823_v58, %v2827_v11  ;;  %v9595_v11 = vcombine.low %v2871_v31, %v2875_v33 }
 0x332   :  { %6002 = vmatprep.subr.bf16.mxu1 %v9492_v42  ;;  %v9494_v57 = vcombine.high %v2768_v52, %v2772_v8  ;;  %v9493_v42 = vcombine.low %v2768_v52, %v2772_v8  ;;  %v2879_v52 = vld [vmem:[#allocation6 + $0x808] sm:$0xff] }
 0x333   :  { %v2883_v8 = vld [vmem:[#allocation6 + $0x828] sm:$0xff] }
 0x334   :  { %6142 = vmatpush1.bf16.msra.mxu0 %v9429_v48  ;;  %v2776_v48 = vld [vmem:[#allocation6 + $0x4d0] sm:$0xff] }
 0x335   :  { %6143 = vmatprep.subr.bf16.mxu0 %v9438_v62  ;;  %6003 = vmatpush1.bf16.msra.mxu1 %v9491_v41  ;;  %v2780_v62 = vld [vmem:[#allocation6 + $0x4f0] sm:$0xff]  ;;  %v9556_v41 = vcombine.high %v2831_v43, %v2835_v21  ;;  %v9603_v21 = vcombine.low %v2879_v52, %v2883_v8 }
 0x336   :  { %6004 = vmatprep.subr.bf16.mxu1 %v9500_v60  ;;  %v9502_v7 = vcombine.high %v2776_v48, %v2780_v62  ;;  %v9501_v60 = vcombine.low %v2776_v48, %v2780_v62  ;;  %v2887_v48 = vld [vmem:[#allocation6 + $0x848] sm:$0xff] }
 0x337   :  { %v2891_v62 = vld [vmem:[#allocation6 + $0x868] sm:$0xff] }
 0x338   :  { %6144 = vmatpush1.bf16.msra.mxu0 %v9437_v0  ;;  %v2784_v0 = vld [vmem:[#allocation6 + $0x510] sm:$0xff] }
 0x339   :  { %6145 = vmatprep.subr.bf16.mxu0 %v9446_v49  ;;  %6005 = vmatpush1.bf16.msra.mxu1 %v9499_v56  ;;  %v2788_v49 = vld [vmem:[#allocation6 + $0x530] sm:$0xff]  ;;  %v9564_v56 = vcombine.high %v2839_v54, %v2843_v2  ;;  %v9611_v2 = vcombine.low %v2887_v48, %v2891_v62 }
 0x33a   :  { %6006 = vmatprep.subr.bf16.mxu1 %v9508_v51  ;;  %v9510_v40 = vcombine.high %v2784_v0, %v2788_v49  ;;  %v9509_v51 = vcombine.low %v2784_v0, %v2788_v49  ;;  %v2895_v0 = vld [vmem:[#allocation6 + $0x888] sm:$0xff] }
 0x33b   :  { %v2899_v49 = vld [vmem:[#allocation6 + $0x8a8] sm:$0xff] }
 0x33c   :  { %6146 = vmatpush1.bf16.msra.mxu0 %v9445_v14  ;;  %v2792_v14 = vld [vmem:[#allocation6 + $0x550] sm:$0xff] }
 0x33d   :  { %6147 = vmatprep.subr.bf16.mxu0 %v9454_v44  ;;  %6007 = vmatpush1.bf16.msra.mxu1 %v9507_v36  ;;  %v2796_v44 = vld [vmem:[#allocation6 + $0x570] sm:$0xff]  ;;  %v9572_v36 = vcombine.high %v2847_v50, %v2851_v26 }
 0x33e   :  { %6008 = vmatprep.subr.bf16.mxu1 %v9516_v37  ;;  %v9518_v4 = vcombine.high %v2792_v14, %v2796_v44  ;;  %v9517_v37 = vcombine.low %v2792_v14, %v2796_v44  ;;  %v9620_v14 = vcombine.high %v2895_v0, %v2899_v49  ;;  %v2903_v44 = vld [vmem:[#allocation6 + $0x8c8] sm:$0xff] }
 0x340   :  { %6148 = vmatpush1.bf16.msra.mxu0 %v9453_v30  ;;  %v2800_v30 = vld [vmem:[#allocation6 + $0x590] sm:$0xff] }
 0x341   :  { %6149 = vmatprep.subr.bf16.mxu0 %v9462_v24  ;;  %6009 = vmatpush1.bf16.msra.mxu1 %v9515_v46  ;;  %v2804_v24 = vld [vmem:[#allocation6 + $0x5b0] sm:$0xff]  ;;  %v9580_v46 = vcombine.high %v2855_v35, %v2859_v63 }
 0x342   :  { %6010 = vmatprep.subr.bf16.mxu1 %v9524_v28  ;;  %v9526_v1 = vcombine.high %v2800_v30, %v2804_v24  ;;  %v9525_v28 = vcombine.low %v2800_v30, %v2804_v24  ;;  %v2911_v24 = vld [vmem:[#allocation6 + $0x908] sm:$0xff] }
 0x344   :  { %6150 = vmatpush1.bf16.msra.mxu0 %v9461_v25  ;;  %v2808_v25 = vld [vmem:[#allocation6 + $0x5d0] sm:$0xff] }
 0x345   :  { %6151 = vmatprep.subr.bf16.mxu0 %v9470_v27  ;;  %6011 = vmatpush1.bf16.msra.mxu1 %v9523_v39  ;;  %v2812_v27 = vld [vmem:[#allocation6 + $0x5f0] sm:$0xff]  ;;  %v9588_v39 = vcombine.high %v2863_v23, %v2867_v19 }
 0x346   :  { %6012 = vmatprep.subr.bf16.mxu1 %v9532_v17  ;;  %v9534_v20 = vcombine.high %v2808_v25, %v2812_v27  ;;  %v9533_v17 = vcombine.low %v2808_v25, %v2812_v27  ;;  %v2919_v27 = vld [vmem:[#allocation6 + $0x948] sm:$0xff] }
 0x348   :  { %6152 = vmatpush1.bf16.msra.mxu0 %v9469_v15  ;;  %v2816_v15 = vld [vmem:[#allocation6 + $0x610] sm:$0xff] }
 0x349   :  { %6162 = vmatprep.subr.bf16.mxu0 %v9478_v53  ;;  %6013 = vmatpush1.bf16.msra.mxu1 %v9531_v22  ;;  %v2820_v53 = vld [vmem:[#allocation6 + $0x630] sm:$0xff]  ;;  %v9596_v22 = vcombine.high %v2871_v31, %v2875_v33 }
 0x34a   :  { %6014 = vmatprep.subr.bf16.mxu1 %v9540_v18  ;;  %v9542_v16 = vcombine.high %v2816_v15, %v2820_v53  ;;  %v9541_v18 = vcombine.low %v2816_v15, %v2820_v53  ;;  %v2927_v53 = vld [vmem:[#allocation6 + $0x988] sm:$0xff] }
 0x34b   :  { %6154 = vmatmul.mubr.bf16.vlgmr.msra.gmra.mrb[4].mxu0 %v12795_v10 }
 0x34c   :  { %6163 = vmatpush1.bf16.msra.mxu0 %v9477_v32  ;;  %6194 = vmatprep.mubr.bf16.mxu0 %v12796_v29  ;;  %v2824_v32 = vld [vmem:[#allocation6 + $0x650] sm:$0xff] }
 0x34d   :  { %6164 = vmatprep.subr.bf16.mxu0 %v9486_v55  ;;  %6015 = vmatpush1.bf16.msra.mxu1 %v9539_v13  ;;  %v2828_v55 = vld [vmem:[#allocation6 + $0x670] sm:$0xff]  ;;  %v9604_v13 = vcombine.high %v2879_v52, %v2883_v8 }
 0x34e   :  { %6016 = vmatprep.subr.bf16.mxu1 %v9548_v34  ;;  %v9550_v58 = vcombine.high %v2824_v32, %v2828_v55  ;;  %v9549_v34 = vcombine.low %v2824_v32, %v2828_v55  ;;  %v2935_v55 = vld [vmem:[#allocation6 + $0x9c8] sm:$0xff] }
 0x350   :  { %6165 = vmatpush1.bf16.msra.mxu0 %v9485_v5  ;;  %v2832_v5 = vld [vmem:[#allocation6 + $0x690] sm:$0xff] }
 0x351   :  { %6166 = vmatprep.subr.bf16.mxu0 %v9494_v57  ;;  %6017 = vmatpush1.bf16.msra.mxu1 %v9547_v3  ;;  %v2836_v57 = vld [vmem:[#allocation6 + $0x6b0] sm:$0xff]  ;;  %v9612_v3 = vcombine.high %v2887_v48, %v2891_v62 }
 0x352   :  { %6018 = vmatprep.subr.bf16.mxu1 %v9556_v41  ;;  %v9558_v43 = vcombine.high %v2832_v5, %v2836_v57  ;;  %v9557_v41 = vcombine.low %v2832_v5, %v2836_v57  ;;  %v2943_v57 = vld [vmem:[#allocation6 + $0xa08] sm:$0xff] }
 0x354   :  { %6167 = vmatpush1.bf16.msra.mxu0 %v9493_v42  ;;  %v2840_v42 = vld [vmem:[#allocation6 + $0x6d0] sm:$0xff] }
 0x355   :  { %6168 = vmatprep.subr.bf16.mxu0 %v9502_v7  ;;  %6019 = vmatpush1.bf16.msra.mxu1 %v9555_v45  ;;  %v2844_v7 = vld [vmem:[#allocation6 + $0x6f0] sm:$0xff] }
 0x356   :  { %6020 = vmatprep.subr.bf16.mxu1 %v9564_v56  ;;  %v9566_v54 = vcombine.high %v2840_v42, %v2844_v7  ;;  %v12797_v45 = vld [vmem:[#allocation24_spill] sm:$0xff]  ;;  %v2907_v56 = vld [vmem:[#allocation6 + $0x8e8] sm:$0xff]  ;;  %v9565_v50 = vcombine.low %v2840_v42, %v2844_v7 }
 0x357   :  { %v9628_v30 = vcombine.high %v2903_v44, %v2907_v56  ;;  %v2951_v7 = vld [vmem:[#allocation6 + $0xa48] sm:$0xff] }
 0x358   :  { %6169 = vmatpush1.bf16.msra.mxu0 %v9501_v60  ;;  %v2848_v60 = vld [vmem:[#allocation6 + $0x710] sm:$0xff] }
 0x359   :  { %6170 = vmatprep.subr.bf16.mxu0 %v9510_v40  ;;  %6021 = vmatpush1.bf16.msra.mxu1 %v9563_v6  ;;  %v2852_v40 = vld [vmem:[#allocation6 + $0x730] sm:$0xff] }
 0x35a   :  { %6022 = vmatprep.subr.bf16.mxu1 %v9572_v36  ;;  %v9574_v26 = vcombine.high %v2848_v60, %v2852_v40  ;;  %v2860_v6 = vld [vmem:[#allocation6 + $0x770] sm:$0xff]  ;;  %v2915_v36 = vld [vmem:[#allocation6 + $0x928] sm:$0xff]  ;;  %v9573_v35 = vcombine.low %v2848_v60, %v2852_v40 }
 0x35b   :  { %v9636_v25 = vcombine.high %v2911_v24, %v2915_v36  ;;  %v2959_v40 = vld [vmem:[#allocation6 + $0xa88] sm:$0xff] }
 0x35c   :  { %6171 = vmatpush1.bf16.msra.mxu0 %v9509_v51  ;;  %v9619_v51 = vcombine.low %v2895_v0, %v2899_v49 }
 0x35d   :  { %6172 = vmatprep.subr.bf16.mxu0 %v9518_v4  ;;  %6023 = vmatpush1.bf16.msra.mxu1 %v9571_v9  ;;  %v2856_v4 = vld [vmem:[#allocation6 + $0x750] sm:$0xff] }
 0x35e   :  { %6024 = vmatprep.subr.bf16.mxu1 %v9580_v46  ;;  %v9582_v63 = vcombine.high %v2856_v4, %v2860_v6  ;;  %v2868_v9 = vld [vmem:[#allocation6 + $0x7b0] sm:$0xff]  ;;  %v2923_v46 = vld [vmem:[#allocation6 + $0x968] sm:$0xff]  ;;  %v9581_v23 = vcombine.low %v2856_v4, %v2860_v6 }
 0x35f   :  { %v9644_v15 = vcombine.high %v2919_v27, %v2923_v46  ;;  %v2967_v6 = vld [vmem:[#allocation6 + $0xac8] sm:$0xff] }
 0x360   :  { %6173 = vmatpush1.bf16.msra.mxu0 %v9517_v37  ;;  %v9627_v37 = vcombine.low %v2903_v44, %v2907_v56 }
 0x361   :  { %6174 = vmatprep.subr.bf16.mxu0 %v9526_v1  ;;  %6025 = vmatpush1.bf16.msra.mxu1 %v9579_v59  ;;  %v2864_v1 = vld [vmem:[#allocation6 + $0x790] sm:$0xff] }
 0x362   :  { %6026 = vmatprep.subr.bf16.mxu1 %v9588_v39  ;;  %v9590_v19 = vcombine.high %v2864_v1, %v2868_v9  ;;  %v2876_v59 = vld [vmem:[#allocation6 + $0x7f0] sm:$0xff]  ;;  %v2931_v39 = vld [vmem:[#allocation6 + $0x9a8] sm:$0xff]  ;;  %v9589_v31 = vcombine.low %v2864_v1, %v2868_v9 }
 0x363   :  { %v9652_v32 = vcombine.high %v2927_v53, %v2931_v39  ;;  %v2975_v9 = vld [vmem:[#allocation6 + $0xb08] sm:$0xff] }
 0x364   :  { %6175 = vmatpush1.bf16.msra.mxu0 %v9525_v28  ;;  %v9635_v28 = vcombine.low %v2911_v24, %v2915_v36 }
 0x365   :  { %6176 = vmatprep.subr.bf16.mxu0 %v9534_v20  ;;  %6027 = vmatpush1.bf16.msra.mxu1 %v9587_v38  ;;  %v2872_v20 = vld [vmem:[#allocation6 + $0x7d0] sm:$0xff] }
 0x366   :  { %6028 = vmatprep.subr.bf16.mxu1 %v9596_v22  ;;  %v9598_v33 = vcombine.high %v2872_v20, %v2876_v59  ;;  %v2884_v38 = vld [vmem:[#allocation6 + $0x830] sm:$0xff]  ;;  %v2939_v22 = vld [vmem:[#allocation6 + $0x9e8] sm:$0xff]  ;;  %v9597_v52 = vcombine.low %v2872_v20, %v2876_v59 }
 0x367   :  { %v9660_v5 = vcombine.high %v2935_v55, %v2939_v22  ;;  %v2983_v59 = vld [vmem:[#allocation6 + $0xb48] sm:$0xff] }
 0x368   :  { %6177 = vmatpush1.bf16.msra.mxu0 %v9533_v17  ;;  %v9643_v17 = vcombine.low %v2919_v27, %v2923_v46 }
 0x369   :  { %6178 = vmatprep.subr.bf16.mxu0 %v9542_v16  ;;  %6029 = vmatpush1.bf16.msra.mxu1 %v9595_v11  ;;  %v2880_v16 = vld [vmem:[#allocation6 + $0x810] sm:$0xff] }
 0x36a   :  { %6039 = vmatprep.subr.bf16.mxu1 %v9604_v13  ;;  %v9606_v8 = vcombine.high %v2880_v16, %v2884_v38  ;;  %v2892_v11 = vld [vmem:[#allocation6 + $0x870] sm:$0xff]  ;;  %v2947_v13 = vld [vmem:[#allocation6 + $0xa28] sm:$0xff]  ;;  %v9605_v48 = vcombine.low %v2880_v16, %v2884_v38 }
 0x36b   :  { %v9668_v42 = vcombine.high %v2943_v57, %v2947_v13  ;;  %v2991_v38 = vld [vmem:[#allocation6 + $0xb88] sm:$0xff] }
 0x36c   :  { %6179 = vmatpush1.bf16.msra.mxu0 %v9541_v18  ;;  %6031 = vmatmul.mubr.bf16.vlgmr.msra.gmra.mrb[4].mxu1 %v12273_v47  ;;  %v9651_v18 = vcombine.low %v2927_v53, %v2931_v39 }
 0x36d   :  { %6180 = vmatprep.subr.bf16.mxu0 %v9550_v58  ;;  %6040 = vmatpush1.bf16.msra.mxu1 %v9603_v21  ;;  %v2888_v58 = vld [vmem:[#allocation6 + $0x850] sm:$0xff] }
 0x36e   :  { %6071 = vmatprep.mubr.bf16.mxu1 %v12797_v45  ;;  %6041 = vmatprep.subr.bf16.mxu1 %v9612_v3  ;;  %v9614_v62 = vcombine.high %v2888_v58, %v2892_v11  ;;  %v2900_v21 = vld [vmem:[#allocation6 + $0x8b0] sm:$0xff]  ;;  %v2955_v3 = vld [vmem:[#allocation6 + $0xa68] sm:$0xff]  ;;  %v9613_v0 = vcombine.low %v2888_v58, %v2892_v11 }
 0x36f   :  { %v9676_v60 = vcombine.high %v2951_v7, %v2955_v3  ;;  %v2999_v11 = vld [vmem:[#allocation6 + $0xbc8] sm:$0xff] }
 0x370   :  { %6181 = vmatpush1.bf16.msra.mxu0 %v9549_v34  ;;  %v9659_v34 = vcombine.low %v2935_v55, %v2939_v22 }
 0x371   :  { %6182 = vmatprep.subr.bf16.mxu0 %v9558_v43  ;;  %6042 = vmatpush1.bf16.msra.mxu1 %v9611_v2  ;;  %v2896_v43 = vld [vmem:[#allocation6 + $0x890] sm:$0xff] }
 0x372   :  { %6043 = vmatprep.subr.bf16.mxu1 %v9620_v14  ;;  %v9622_v49 = vcombine.high %v2896_v43, %v2900_v21  ;;  %v2908_v2 = vld [vmem:[#allocation6 + $0x8f0] sm:$0xff]  ;;  %v2963_v14 = vld [vmem:[#allocation6 + $0xaa8] sm:$0xff]  ;;  %v9621_v44 = vcombine.low %v2896_v43, %v2900_v21 }
 0x373   :  { %v9684_v4 = vcombine.high %v2959_v40, %v2963_v14  ;;  %v2952_v43 = vld [vmem:[#allocation6 + $0xa50] sm:$0xff] }
 0x374   :  { %6183 = vmatpush1.bf16.msra.mxu0 %v9557_v41  ;;  %v9667_v41 = vcombine.low %v2943_v57, %v2947_v13  ;;  %v2956_v21 = vld [vmem:[#allocation6 + $0xa70] sm:$0xff] }
 0x375   :  { %6184 = vmatprep.subr.bf16.mxu0 %v9566_v54  ;;  %6044 = vmatpush1.bf16.msra.mxu1 %v9619_v51  ;;  %v2904_v54 = vld [vmem:[#allocation6 + $0x8d0] sm:$0xff] }
 0x376   :  { %6045 = vmatprep.subr.bf16.mxu1 %v9628_v30  ;;  %v9630_v56 = vcombine.high %v2904_v54, %v2908_v2  ;;  %v2916_v51 = vld [vmem:[#allocation6 + $0x930] sm:$0xff]  ;;  %v2971_v30 = vld [vmem:[#allocation6 + $0xae8] sm:$0xff]  ;;  %v9629_v24 = vcombine.low %v2904_v54, %v2908_v2  ;;  %v9678_v54 = vcombine.high %v2952_v43, %v2956_v21 }
 0x377   :  { %v9692_v1 = vcombine.high %v2967_v6, %v2971_v30 }
 0x378   :  { %6185 = vmatpush1.bf16.msra.mxu0 %v9565_v50  ;;  %v9675_v50 = vcombine.low %v2951_v7, %v2955_v3  ;;  %v3007_v3 = vld [vmem:[#allocation6 + $0xc08] sm:$0xff] }
 0x379   :  { %6186 = vmatprep.subr.bf16.mxu0 %v9574_v26  ;;  %6046 = vmatpush1.bf16.msra.mxu1 %v9627_v37  ;;  %v2912_v26 = vld [vmem:[#allocation6 + $0x910] sm:$0xff] }
 0x37a   :  { %6047 = vmatprep.subr.bf16.mxu1 %v9636_v25  ;;  %v9638_v36 = vcombine.high %v2912_v26, %v2916_v51  ;;  %v2924_v37 = vld [vmem:[#allocation6 + $0x970] sm:$0xff]  ;;  %v2979_v25 = vld [vmem:[#allocation6 + $0xb28] sm:$0xff]  ;;  %v9637_v27 = vcombine.low %v2912_v26, %v2916_v51 }
 0x37b   :  { %v9700_v20 = vcombine.high %v2975_v9, %v2979_v25 }
 0x37c   :  { %6187 = vmatpush1.bf16.msra.mxu0 %v9573_v35  ;;  %v9683_v35 = vcombine.low %v2959_v40, %v2963_v14  ;;  %v2964_v40 = vld [vmem:[#allocation6 + $0xab0] sm:$0xff] }
 0x37d   :  { %6188 = vmatprep.subr.bf16.mxu0 %v9582_v63  ;;  %6048 = vmatpush1.bf16.msra.mxu1 %v9635_v28  ;;  %v2920_v63 = vld [vmem:[#allocation6 + $0x950] sm:$0xff] }
 0x37e   :  { %6049 = vmatprep.subr.bf16.mxu1 %v9644_v15  ;;  %v9646_v46 = vcombine.high %v2920_v63, %v2924_v37  ;;  %v2932_v28 = vld [vmem:[#allocation6 + $0x9b0] sm:$0xff]  ;;  %v2987_v15 = vld [vmem:[#allocation6 + $0xb68] sm:$0xff]  ;;  %v9645_v53 = vcombine.low %v2920_v63, %v2924_v37  ;;  %v12798_v63 = vld [vmem:[#allocation25_spill] sm:$0xff] }
 0x37f   :  { %v9708_v16 = vcombine.high %v2983_v59, %v2987_v15 }
 0x380   :  { %6189 = vmatpush1.bf16.msra.mxu0 %v9581_v23  ;;  %v9691_v23 = vcombine.low %v2967_v6, %v2971_v30  ;;  %v2972_v6 = vld [vmem:[#allocation6 + $0xaf0] sm:$0xff] }
 0x381   :  { %6190 = vmatprep.subr.bf16.mxu0 %v9590_v19  ;;  %6050 = vmatpush1.bf16.msra.mxu1 %v9643_v17  ;;  %v2928_v19 = vld [vmem:[#allocation6 + $0x990] sm:$0xff] }
 0x382   :  { %6051 = vmatprep.subr.bf16.mxu1 %v9652_v32  ;;  %v9654_v39 = vcombine.high %v2928_v19, %v2932_v28  ;;  %v2940_v17 = vld [vmem:[#allocation6 + $0x9f0] sm:$0xff]  ;;  %v2995_v32 = vld [vmem:[#allocation6 + $0xba8] sm:$0xff]  ;;  %v9653_v55 = vcombine.low %v2928_v19, %v2932_v28 }
 0x383   :  { %v9716_v58 = vcombine.high %v2991_v38, %v2995_v32  ;;  %v3035_v19 = vld [vmem:[#allocation6 + $0xce8] sm:$0xff] }
 0x384   :  { %6191 = vmatpush1.bf16.msra.mxu0 %v9589_v31  ;;  %v9699_v31 = vcombine.low %v2975_v9, %v2979_v25  ;;  %v2976_v9 = vld [vmem:[#allocation6 + $0xb10] sm:$0xff] }
 0x385   :  { %6192 = vmatprep.subr.bf16.mxu0 %v9598_v33  ;;  %6052 = vmatpush1.bf16.msra.mxu1 %v9651_v18  ;;  %v2936_v33 = vld [vmem:[#allocation6 + $0x9d0] sm:$0xff] }
 0x386   :  { %6053 = vmatprep.subr.bf16.mxu1 %v9660_v5  ;;  %v9662_v22 = vcombine.high %v2936_v33, %v2940_v17  ;;  %v2948_v18 = vld [vmem:[#allocation6 + $0xa30] sm:$0xff]  ;;  %v3003_v5 = vld [vmem:[#allocation6 + $0xbe8] sm:$0xff]  ;;  %v9661_v57 = vcombine.low %v2936_v33, %v2940_v17 }
 0x387   :  { %v9723_v2 = vcombine.low %v2999_v11, %v3003_v5  ;;  %v2980_v25 = vld [vmem:[#allocation6 + $0xb30] sm:$0xff]  ;;  %v3043_v33 = vld [vmem:[#allocation6 + $0xd28] sm:$0xff] }
 0x388   :  { %6193 = vmatpush1.bf16.msra.mxu0 %v9597_v52  ;;  %v9707_v52 = vcombine.low %v2983_v59, %v2987_v15  ;;  %v2984_v15 = vld [vmem:[#allocation6 + $0xb50] sm:$0xff]  ;;  %v9701_v17 = vcombine.low %v2976_v9, %v2980_v25 }
 0x389   :  { %6203 = vmatprep.subr.bf16.mxu0 %v9606_v8  ;;  %6054 = vmatpush1.bf16.msra.mxu1 %v9659_v34  ;;  %v2944_v8 = vld [vmem:[#allocation6 + $0xa10] sm:$0xff] }
 0x38a   :  { %6055 = vmatprep.subr.bf16.mxu1 %v9668_v42  ;;  %v9724_v42 = vcombine.high %v2999_v11, %v3003_v5  ;;  %v3000_v5 = vld [vmem:[#allocation6 + $0xbd0] sm:$0xff] }
 0x38b   :  { %6195 = vmatmul.mubr.bf16.vlgmr.msra.gmra.mrb[4].mxu0 %v12273_v47 }
 0x38c   :  { %6204 = vmatpush1.bf16.msra.mxu0 %v9605_v48  ;;  %6235 = vmatprep.mubr.bf16.mxu0 %v12797_v45  ;;  %v9670_v48 = vcombine.high %v2944_v8, %v2948_v18 }
 0x38d   :  { %6205 = vmatprep.subr.bf16.mxu0 %v9614_v62  ;;  %6056 = vmatpush1.bf16.msra.mxu1 %v9667_v41  ;;  %v9715_v62 = vcombine.low %v2991_v38, %v2995_v32  ;;  %v9669_v41 = vcombine.low %v2944_v8, %v2948_v18  ;;  %v2992_v32 = vld [vmem:[#allocation6 + $0xb90] sm:$0xff]  ;;  %v3051_v8 = vld [vmem:[#allocation6 + $0xd68] sm:$0xff] }
 0x38e   :  { %6057 = vmatprep.subr.bf16.mxu1 %v9676_v60  ;;  %v2960_v60 = vld [vmem:[#allocation6 + $0xa90] sm:$0xff] }
 0x38f   :  { %v9686_v26 = vcombine.high %v2960_v60, %v2964_v40 }
 0x390   :  { %6206 = vmatpush1.bf16.msra.mxu0 %v9613_v0  ;;  %v3011_v0 = vld [vmem:[#allocation6 + $0xc28] sm:$0xff] }
 0x391   :  { %6207 = vmatprep.subr.bf16.mxu0 %v9622_v49  ;;  %6058 = vmatpush1.bf16.msra.mxu1 %v9675_v50  ;;  %v9732_v14 = vcombine.high %v3007_v3, %v3011_v0  ;;  %v9677_v50 = vcombine.low %v2952_v43, %v2956_v21  ;;  %v9731_v51 = vcombine.low %v3007_v3, %v3011_v0  ;;  %v3059_v43 = vld [vmem:[#allocation6 + $0xda8] sm:$0xff]  ;;  %v3008_v3 = vld [vmem:[#allocation6 + $0xc10] sm:$0xff] }
 0x392   :  { %6059 = vmatprep.subr.bf16.mxu1 %v9684_v4  ;;  %v2968_v4 = vld [vmem:[#allocation6 + $0xad0] sm:$0xff] }
 0x393   :  { %v9694_v37 = vcombine.high %v2968_v4, %v2972_v6  ;;  %v9693_v28 = vcombine.low %v2968_v4, %v2972_v6  ;;  %v3012_v0 = vld [vmem:[#allocation6 + $0xc30] sm:$0xff] }
 0x394   :  { %6208 = vmatpush1.bf16.msra.mxu0 %v9621_v44  ;;  %v3015_v44 = vld [vmem:[#allocation6 + $0xc48] sm:$0xff] }
 0x395   :  { %6209 = vmatprep.subr.bf16.mxu0 %v9630_v56  ;;  %6060 = vmatpush1.bf16.msra.mxu1 %v9683_v35  ;;  %v3019_v56 = vld [vmem:[#allocation6 + $0xc68] sm:$0xff]  ;;  %v9685_v35 = vcombine.low %v2960_v60, %v2964_v40  ;;  %v9734_v60 = vcombine.high %v3008_v3, %v3012_v0 }
 0x396   :  { %6061 = vmatprep.subr.bf16.mxu1 %v9692_v1  ;;  %v9740_v30 = vcombine.high %v3015_v44, %v3019_v56  ;;  %v9739_v1 = vcombine.low %v3015_v44, %v3019_v56  ;;  %v3020_v44 = vld [vmem:[#allocation6 + $0xc70] sm:$0xff] }
 0x398   :  { %6210 = vmatpush1.bf16.msra.mxu0 %v9629_v24  ;;  %v3023_v24 = vld [vmem:[#allocation6 + $0xc88] sm:$0xff] }
 0x399   :  { %6211 = vmatprep.subr.bf16.mxu0 %v9638_v36  ;;  %6062 = vmatpush1.bf16.msra.mxu1 %v9691_v23  ;;  %v3027_v36 = vld [vmem:[#allocation6 + $0xca8] sm:$0xff] }
 0x39a   :  { %6063 = vmatprep.subr.bf16.mxu1 %v9700_v20  ;;  %v3031_v23 = vld [vmem:[#allocation6 + $0xcc8] sm:$0xff]  ;;  %v9702_v20 = vcombine.high %v2976_v9, %v2980_v25  ;;  %v9747_v59 = vcombine.low %v3023_v24, %v3027_v36 }
 0x39b   :  { %v9755_v38 = vcombine.low %v3031_v23, %v3035_v19 }
 0x39c   :  { %6212 = vmatpush1.bf16.msra.mxu0 %v9637_v27  ;;  %v12799_v27 = vld [vmem:[#allocation34_spill] sm:$0xff] }
 0x39d   :  { %6213 = vmatprep.subr.bf16.mxu0 %v9646_v46  ;;  %6064 = vmatpush1.bf16.msra.mxu1 %v9699_v31  ;;  %v12355_v13 = vpop.f32.mrb[0].mxu1  ;;  %v9748_v46 = vcombine.high %v3023_v24, %v3027_v36  ;;  %v3039_v31 = vld [vmem:[#allocation6 + $0xd08] sm:$0xff]  ;;  %v3028_v24 = vld [vmem:[#allocation6 + $0xcb0] sm:$0xff] }
 0x39e   :  { %6065 = vmatprep.subr.bf16.mxu1 %v9708_v16  ;;  %v12357_v34 = vpop.f32.mrb[1].mxu1  ;;  %v9763_v11 = vcombine.low %v3039_v31, %v3043_v33 }
 0x39f   :  { %v5872_v7 = vpop.f32.mrb[2].mxu1 }
 0x3a0   :  { %6214 = vmatpush1.bf16.msra.mxu0 %v9645_v53  ;;  %v5873_v49 = vpop.f32.mrb[3].mxu1  ;;  %v2988_v53 = vld [vmem:[#allocation6 + $0xb70] sm:$0xff] }
 0x3a1   :  { %6215 = vmatprep.subr.bf16.mxu0 %v9654_v39  ;;  %6066 = vmatpush1.bf16.msra.mxu1 %v9707_v52  ;;  %v9756_v39 = vcombine.high %v3031_v23, %v3035_v19  ;;  %v9710_v16 = vcombine.high %v2984_v15, %v2988_v53  ;;  %v3047_v52 = vld [vmem:[#allocation6 + $0xd48] sm:$0xff]  ;;  %v9709_v18 = vcombine.low %v2984_v15, %v2988_v53  ;;  %v3032_v23 = vld [vmem:[#allocation6 + $0xcd0] sm:$0xff] }
 0x3a2   :  { %6067 = vmatprep.subr.bf16.mxu1 %v9716_v58  ;;  %v9771_v7 = vcombine.low %v3047_v52, %v3051_v8  ;;  %v3036_v19 = vld [vmem:[#allocation6 + $0xcf0] sm:$0xff]  ;;  %v3091_v15 = vld [vmem:[#allocation6 + $0xea8] sm:$0xff] }
 0x3a4   :  { %6216 = vmatpush1.bf16.msra.mxu0 %v9653_v55  ;;  %v2996_v55 = vld [vmem:[#allocation6 + $0xbb0] sm:$0xff] }
 0x3a5   :  { %6217 = vmatprep.subr.bf16.mxu0 %v9662_v22  ;;  %6068 = vmatpush1.bf16.msra.mxu1 %v9715_v62  ;;  %v9764_v22 = vcombine.high %v3039_v31, %v3043_v33  ;;  %v9718_v58 = vcombine.high %v2992_v32, %v2996_v55  ;;  %v3055_v62 = vld [vmem:[#allocation6 + $0xd88] sm:$0xff]  ;;  %v9717_v21 = vcombine.low %v2992_v32, %v2996_v55  ;;  %v3040_v33 = vld [vmem:[#allocation6 + $0xd10] sm:$0xff] }
 0x3a6   :  { %6069 = vmatprep.subr.bf16.mxu1 %v9724_v42  ;;  %v9780_v49 = vcombine.high %v3055_v62, %v3059_v43  ;;  %v9779_v40 = vcombine.low %v3055_v62, %v3059_v43  ;;  %v3095_v32 = vld [vmem:[#allocation6 + $0xec8] sm:$0xff] }
 0x3a7   :  { %v3099_v55 = vld [vmem:[#allocation6 + $0xee8] sm:$0xff] }
 0x3a8   :  { %6218 = vmatpush1.bf16.msra.mxu0 %v9661_v57  ;;  %v3004_v57 = vld [vmem:[#allocation6 + $0xbf0] sm:$0xff]  ;;  %v3103_v62 = vld [vmem:[#allocation6 + $0xf08] sm:$0xff] }
 0x3a9   :  { %6219 = vmatprep.subr.bf16.mxu0 %v9670_v48  ;;  %6070 = vmatpush1.bf16.msra.mxu1 %v9723_v2  ;;  %v9772_v48 = vcombine.high %v3047_v52, %v3051_v8  ;;  %v9726_v42 = vcombine.high %v3000_v5, %v3004_v57  ;;  %v9725_v2 = vcombine.low %v3000_v5, %v3004_v57  ;;  %v3134_v52 = vld [vmem:[#allocation8] sm:$0xff]  ;;  %v3052_v5 = vld [vmem:[#allocation6 + $0xd70] sm:$0xff]  ;;  %v3107_v43 = vld [vmem:[#allocation6 + $0xf28] sm:$0xff] }
 0x3aa   :  { %6080 = vmatprep.subr.bf16.mxu1 %v9732_v14  ;;  %v3016_v14 = vld [vmem:[#allocation6 + $0xc50] sm:$0xff]  ;;  %v9820_v57 = vcombine.high %v3095_v32, %v3099_v55 }
 0x3ab   :  { %v9742_v4 = vcombine.high %v3016_v14, %v3020_v44  ;;  %v9741_v9 = vcombine.low %v3016_v14, %v3020_v44 }
 0x3ac   :  { %6220 = vmatpush1.bf16.msra.mxu0 %v9669_v41  ;;  %6072 = vmatmul.mubr.bf16.vlgmr.msra.gmra.mrb[4].mxu1 %v12798_v63  ;;  %v3063_v41 = vld [vmem:[#allocation6 + $0xdc8] sm:$0xff] }
 0x3ad   :  { %6221 = vmatprep.subr.bf16.mxu0 %v9678_v54  ;;  %6081 = vmatpush1.bf16.msra.mxu1 %v9731_v51  ;;  %v3067_v54 = vld [vmem:[#allocation6 + $0xde8] sm:$0xff]  ;;  %v9733_v51 = vcombine.low %v3008_v3, %v3012_v0  ;;  %v9819_v3 = vcombine.low %v3095_v32, %v3099_v55  ;;  %v3056_v0 = vld [vmem:[#allocation6 + $0xd90] sm:$0xff] }
 0x3ae   :  { %6112 = vmatprep.mubr.bf16.mxu1 %v12799_v27  ;;  %6082 = vmatprep.subr.bf16.mxu1 %v9740_v30  ;;  %v9788_v56 = vcombine.high %v3063_v41, %v3067_v54  ;;  %v9787_v6 = vcombine.low %v3063_v41, %v3067_v54  ;;  %v3024_v30 = vld [vmem:[#allocation6 + $0xc90] sm:$0xff]  ;;  %v9828_v41 = vcombine.high %v3103_v62, %v3107_v43 }
 0x3af   :  { %v9750_v25 = vcombine.high %v3024_v30, %v3028_v24  ;;  %v9749_v53 = vcombine.low %v3024_v30, %v3028_v24  ;;  %v3119_v24 = vld [vmem:[#allocation6 + $0xf88] sm:$0xff] }
 0x3b0   :  { %6222 = vmatpush1.bf16.msra.mxu0 %v9677_v50  ;;  %v3071_v50 = vld [vmem:[#allocation6 + $0xe08] sm:$0xff] }
 0x3b1   :  { %6223 = vmatprep.subr.bf16.mxu0 %v9686_v26  ;;  %6083 = vmatpush1.bf16.msra.mxu1 %v9739_v1  ;;  %v3075_v26 = vld [vmem:[#allocation6 + $0xe28] sm:$0xff] }
 0x3b2   :  { %6084 = vmatprep.subr.bf16.mxu1 %v9748_v46  ;;  %v9796_v36 = vcombine.high %v3071_v50, %v3075_v26  ;;  %v3083_v1 = vld [vmem:[#allocation6 + $0xe68] sm:$0xff]  ;;  %v9795_v46 = vcombine.low %v3071_v50, %v3075_v26  ;;  %v3064_v26 = vld [vmem:[#allocation6 + $0xdd0] sm:$0xff] }
 0x3b4   :  { %6224 = vmatpush1.bf16.msra.mxu0 %v9685_v35  ;;  %v3136_v35 = vlaneseq }
 0x3b5   :  { %6225 = vmatprep.subr.bf16.mxu0 %v9694_v37  ;;  %6085 = vmatpush1.bf16.msra.mxu1 %v9747_v59  ;;  %v3079_v37 = vld [vmem:[#allocation6 + $0xe48] sm:$0xff] }
 0x3b6   :  { %6086 = vmatprep.subr.bf16.mxu1 %v9756_v39  ;;  %v3087_v59 = vld [vmem:[#allocation6 + $0xe88] sm:$0xff]  ;;  %v9758_v39 = vcombine.high %v3032_v23, %v3036_v19  ;;  %v9803_v31 = vcombine.low %v3079_v37, %v3083_v1 }
 0x3b8   :  { %6226 = vmatpush1.bf16.msra.mxu0 %v9693_v28  ;;  %v9804_v28 = vcombine.high %v3079_v37, %v3083_v1 }
 0x3b9   :  { %6227 = vmatprep.subr.bf16.mxu0 %v9702_v20  ;;  %6087 = vmatpush1.bf16.msra.mxu1 %v9755_v38  ;;  %v12363_v20 = vshrl.u32 %v3136_v35, 7 }
 0x3ba   :  { %6088 = vmatprep.subr.bf16.mxu1 %v9764_v22  ;;  %v9757_v22 = vcombine.low %v3032_v23, %v3036_v19  ;;  %v3127_v19 = vld [vmem:[#allocation6 + $0xfc8] sm:$0xff] }
 0x3bb   :  { %v3138_v38 = vsub.s32 0, %v12363_v20  ;;  %v3142_v8 = vsub.s32 1, %v12363_v20 }
 0x3bc   :  { %6228 = vmatpush1.bf16.msra.mxu0 %v9701_v17  ;;  %v3044_v17 = vld [vmem:[#allocation6 + $0xd30] sm:$0xff] }
 0x3bd   :  { %6229 = vmatprep.subr.bf16.mxu0 %v9710_v16  ;;  %6089 = vmatpush1.bf16.msra.mxu1 %v9763_v11  ;;  %v9812_v16 = vcombine.high %v3087_v59, %v3091_v15  ;;  %v3048_v11 = vld [vmem:[#allocation6 + $0xd50] sm:$0xff] }
 0x3be   :  { %6090 = vmatprep.subr.bf16.mxu1 %v9772_v48  ;;  %v3139_v48 = vrot.slane %v3134_v52, %v3138_v38  ;;  %v9773_v14 = vcombine.low %v3048_v11, %v3052_v5 }
 0x3c0   :  { %6230 = vmatpush1.bf16.msra.mxu0 %v9709_v18  ;;  %v9766_v18 = vcombine.high %v3040_v33, %v3044_v17  ;;  %v10242_v54 = vadd.f32 %v12355_v13, %v3139_v48  ;;  %v3123_v13 = vld [vmem:[#allocation6 + $0xfa8] sm:$0xff] }
 0x3c1   :  { %6231 = vmatprep.subr.bf16.mxu0 %v9718_v58  ;;  %6091 = vmatpush1.bf16.msra.mxu1 %v9771_v7  ;;  %v9811_v58 = vcombine.low %v3087_v59, %v3091_v15  ;;  %v9774_v7 = vcombine.high %v3048_v11, %v3052_v5  ;;  %v9844_v23 = vcombine.high %v3119_v24, %v3123_v13  ;;  %v2633_v11 = vld [vmem:[#allocation6 + $0x58] sm:$0xff] }
 0x3c2   :  { %6092 = vmatprep.subr.bf16.mxu1 %v9780_v49  ;;  %v3060_v49 = vld [vmem:[#allocation6 + $0xdb0] sm:$0xff]  ;;  %v2637_v5 = vld [vmem:[#allocation6 + $0x78] sm:$0xff] }
 0x3c3   :  { %v9782_v44 = vcombine.high %v3056_v0, %v3060_v49 }
 0x3c4   :  { %6232 = vmatpush1.bf16.msra.mxu0 %v9717_v21  ;;  %v9765_v21 = vcombine.low %v3040_v33, %v3044_v17  ;;  %v2625_v17 = vld [vmem:[#allocation6 + $0x18] sm:$0xff] }
 0x3c5   :  { %6233 = vmatprep.subr.bf16.mxu0 %v9726_v42  ;;  %6093 = vmatpush1.bf16.msra.mxu1 %v9779_v40  ;;  %v3143_v42 = vrot.slane %v3134_v52, %v3142_v8  ;;  %v3088_v52 = vld [vmem:[#allocation6 + $0xe90] sm:$0xff] }
 0x3c6   :  { %6094 = vmatprep.subr.bf16.mxu1 %v9788_v56  ;;  %v9827_v56 = vcombine.low %v3103_v62, %v3107_v43  ;;  %v3096_v43 = vld [vmem:[#allocation6 + $0xed0] sm:$0xff] }
 0x3c7   :  { %v10244_v40 = vadd.f32 %v12357_v34, %v3143_v42  ;;  %v9781_v34 = vcombine.low %v3056_v0, %v3060_v49  ;;  %v9360_v42 = vcombine.high %v2633_v11, %v2637_v5 }
 0x3c8   :  { %6234 = vmatpush1.bf16.msra.mxu0 %v9725_v2  ;;  %v3111_v2 = vld [vmem:[#allocation6 + $0xf48] sm:$0xff] }
 0x3c9   :  { %6244 = vmatprep.subr.bf16.mxu0 %v9734_v60  ;;  %6095 = vmatpush1.bf16.msra.mxu1 %v9787_v6  ;;  %v3115_v60 = vld [vmem:[#allocation6 + $0xf68] sm:$0xff] }
 0x3ca   :  { %6096 = vmatprep.subr.bf16.mxu1 %v9796_v36 }
 0x3cb   :  { %6236 = vmatmul.mubr.bf16.vlgmr.msra.gmra.mrb[4].mxu0 %v12798_v63 }
 0x3cc   :  { %6245 = vmatpush1.bf16.msra.mxu0 %v9733_v51  ;;  %6276 = vmatprep.mubr.bf16.mxu0 %v12799_v27  ;;  %v3068_v51 = vld [vmem:[#allocation6 + $0xdf0] sm:$0xff] }
 0x3cd   :  { %6246 = vmatprep.subr.bf16.mxu0 %v9742_v4  ;;  %6097 = vmatpush1.bf16.msra.mxu1 %v9795_v46  ;;  %v9836_v4 = vcombine.high %v3111_v2, %v3115_v60  ;;  %v9790_v1 = vcombine.high %v3064_v26, %v3068_v51  ;;  %v3076_v46 = vld [vmem:[#allocation6 + $0xe30] sm:$0xff]  ;;  %v9789_v59 = vcombine.low %v3064_v26, %v3068_v51 }
 0x3ce   :  { %6098 = vmatprep.subr.bf16.mxu1 %v9804_v28  ;;  %v3131_v28 = vld [vmem:[#allocation6 + $0xfe8] sm:$0xff]  ;;  %v3112_v26 = vld [vmem:[#allocation6 + $0xf50] sm:$0xff] }
 0x3cf   :  { %v9852_v33 = vcombine.high %v3127_v19, %v3131_v28  ;;  %v3116_v51 = vld [vmem:[#allocation6 + $0xf70] sm:$0xff] }
 0x3d0   :  { %6247 = vmatpush1.bf16.msra.mxu0 %v9741_v9  ;;  %v9835_v9 = vcombine.low %v3111_v2, %v3115_v60  ;;  %v3108_v2 = vld [vmem:[#allocation6 + $0xf30] sm:$0xff] }
 0x3d1   :  { %6248 = vmatprep.subr.bf16.mxu0 %v9750_v25  ;;  %6099 = vmatpush1.bf16.msra.mxu1 %v9803_v31  ;;  %v3072_v25 = vld [vmem:[#allocation6 + $0xe10] sm:$0xff] }
 0x3d2   :  { %6100 = vmatprep.subr.bf16.mxu1 %v9812_v16  ;;  %v9798_v15 = vcombine.high %v3072_v25, %v3076_v46  ;;  %v3084_v31 = vld [vmem:[#allocation6 + $0xe70] sm:$0xff]  ;;  %v2629_v16 = vld [vmem:[#allocation6 + $0x38] sm:$0xff]  ;;  %v9797_v32 = vcombine.low %v3072_v25, %v3076_v46  ;;  %v9837_v46 = vcombine.low %v3112_v26, %v3116_v51 }
 0x3d3   :  { %v9351_v62 = vcombine.low %v2625_v17, %v2629_v16  ;;  %v2669_v25 = vld [vmem:[#allocation6 + $0x178] sm:$0xff] }
 0x3d4   :  { %6249 = vmatpush1.bf16.msra.mxu0 %v9749_v53  ;;  %v9843_v53 = vcombine.low %v3119_v24, %v3123_v13  ;;  %v2661_v24 = vld [vmem:[#allocation6 + $0x138] sm:$0xff] }
 0x3d5   :  { %6250 = vmatprep.subr.bf16.mxu0 %v9758_v39  ;;  %6101 = vmatpush1.bf16.msra.mxu1 %v9811_v58  ;;  %v3080_v39 = vld [vmem:[#allocation6 + $0xe50] sm:$0xff]  ;;  %v9352_v58 = vcombine.high %v2625_v17, %v2629_v16 }
 0x3d6   :  { %6102 = vmatprep.subr.bf16.mxu1 %v9820_v57  ;;  %v9806_v55 = vcombine.high %v3080_v39, %v3084_v31  ;;  %v9805_v57 = vcombine.low %v3080_v39, %v3084_v31  ;;  %v2677_v39 = vld [vmem:[#allocation6 + $0x1b8] sm:$0xff] }
 0x3d8   :  { %6251 = vmatpush1.bf16.msra.mxu0 %v9757_v22  ;;  %v9851_v22 = vcombine.low %v3127_v19, %v3131_v28  ;;  %v3128_v28 = vld [vmem:[#allocation6 + $0xfd0] sm:$0xff] }
 0x3d9   :  { %6252 = vmatprep.subr.bf16.mxu0 %v9766_v18  ;;  %6103 = vmatpush1.bf16.msra.mxu1 %v9819_v3  ;;  %v3092_v18 = vld [vmem:[#allocation6 + $0xeb0] sm:$0xff]  ;;  %v2645_v3 = vld [vmem:[#allocation6 + $0xb8] sm:$0xff] }
 0x3da   :  { %6104 = vmatprep.subr.bf16.mxu1 %v9828_v41  ;;  %v9814_v48 = vcombine.high %v3088_v52, %v3092_v18  ;;  %v9813_v0 = vcombine.low %v3088_v52, %v3092_v18  ;;  %v9359_v41 = vcombine.low %v2633_v11, %v2637_v5  ;;  %v10356_v52 = vld [vmem:[#allocation9 + $0x4] ss:$24 sps:$4 sm:$0xff]   ;;  %v2689_v5 = vld [vmem:[#allocation6 + $0x218] sm:$0xff] }
 0x3dc   :  { %6253 = vmatpush1.bf16.msra.mxu0 %v9765_v21  ;;  %v3100_v21 = vld [vmem:[#allocation6 + $0xef0] sm:$0xff] }
 0x3dd   :  { %6254 = vmatprep.subr.bf16.mxu0 %v9774_v7  ;;  %6105 = vmatpush1.bf16.msra.mxu1 %v9827_v56  ;;  %v2641_v7 = vld [vmem:[#allocation6 + $0x98] sm:$0xff]  ;;  %v9822_v49 = vcombine.high %v3096_v43, %v3100_v21 }
 0x3de   :  { %v5950_v50 = vpop.f32.mrb[0].mxu0  ;;  %6106 = vmatprep.subr.bf16.mxu1 %v9836_v4  ;;  %v9368_v60 = vcombine.high %v2641_v7, %v2645_v3 }
 0x3df   :  { %v12373_v6 = vadd.f32 %v10242_v54, %v5950_v50  ;;  %v5952_v30 = vpop.f32.mrb[1].mxu0  ;;  %v3104_v54 = vld [vmem:[#allocation6 + $0xf10] sm:$0xff]  ;;  %v9367_v50 = vcombine.low %v2641_v7, %v2645_v3  ;;  %v2697_v7 = vld [vmem:[#allocation6 + $0x258] sm:$0xff] }
 0x3e0   :  { %v12375_v36 = vadd.f32 %v10244_v40, %v5952_v30  ;;  %v5954_v35 = vpop.f32.mrb[2].mxu0  ;;  %6255 = vmatpush1.bf16.msra.mxu0 %v9773_v14  ;;  %v2649_v40 = vld [vmem:[#allocation6 + $0xd8] sm:$0xff]  ;;  %v9830_v56 = vcombine.high %v3104_v54, %v3108_v2  ;;  %v9829_v13 = vcombine.low %v3104_v54, %v3108_v2 }
 0x3e1   :  { %v5955_v37 = vpop.f32.mrb[3].mxu0  ;;  %6256 = vmatprep.subr.bf16.mxu0 %v9782_v44  ;;  %6107 = vmatpush1.bf16.msra.mxu1 %v9835_v9  ;;  %v2653_v14 = vld [vmem:[#allocation6 + $0xf8] sm:$0xff]  ;;  %v9821_v44 = vcombine.low %v3096_v43, %v3100_v21 }
 0x3e2   :  { %6108 = vmatprep.subr.bf16.mxu1 %v9844_v23  ;;  %v9376_v4 = vcombine.high %v2649_v40, %v2653_v14  ;;  %v2657_v30 = vld [vmem:[#allocation6 + $0x118] sm:$0xff]  ;;  %v9375_v35 = vcombine.low %v2649_v40, %v2653_v14  ;;  %v3124_v37 = vld [vmem:[#allocation6 + $0xfb0] sm:$0xff] }
 0x3e3   :  { %v2665_v9 = vld [vmem:[#allocation6 + $0x158] sm:$0xff]  ;;  %v9383_v19 = vcombine.low %v2657_v30, %v2661_v24 }
 0x3e4   :  { %6257 = vmatpush1.bf16.msra.mxu0 %v9781_v34  ;;  %v3120_v34 = vld [vmem:[#allocation6 + $0xf90] sm:$0xff]  ;;  %v9391_v17 = vcombine.low %v2665_v9, %v2669_v25  ;;  %v2701_v3 = vld [vmem:[#allocation6 + $0x278] sm:$0xff] }
 0x3e5   :  { %6258 = vmatprep.subr.bf16.mxu0 %v9790_v1  ;;  %6109 = vmatpush1.bf16.msra.mxu1 %v9843_v53  ;;  %v9384_v1 = vcombine.high %v2657_v30, %v2661_v24  ;;  %v9846_v23 = vcombine.high %v3120_v34, %v3124_v37  ;;  %v2673_v53 = vld [vmem:[#allocation6 + $0x198] sm:$0xff]  ;;  %v9845_v31 = vcombine.low %v3120_v34, %v3124_v37 }
 0x3e6   :  { %6110 = vmatprep.subr.bf16.mxu1 %v9852_v33  ;;  %v9400_v16 = vcombine.high %v2673_v53, %v2677_v39  ;;  %v9399_v18 = vcombine.low %v2673_v53, %v2677_v39  ;;  %v2705_v54 = vld [vmem:[#allocation6 + $0x298] sm:$0xff]  ;;  %v9423_v14 = vcombine.low %v2697_v7, %v2701_v3 }
 0x3e7   :  { %v2709_v2 = vld [vmem:[#allocation6 + $0x2b8] sm:$0xff] }
 0x3e8   :  { %6259 = vmatpush1.bf16.msra.mxu0 %v9789_v59  ;;  %v3132_v59 = vld [vmem:[#allocation6 + $0xff0] sm:$0xff]  ;;  %v2721_v24 = vld [vmem:[#allocation6 + $0x318] sm:$0xff] }
 0x3e9   :  { %6260 = vmatprep.subr.bf16.mxu0 %v9798_v15  ;;  %6111 = vmatpush1.bf16.msra.mxu1 %v9851_v22  ;;  %v9392_v15 = vcombine.high %v2665_v9, %v2669_v25  ;;  %v9854_v33 = vcombine.high %v3128_v28, %v3132_v59  ;;  %v9853_v22 = vcombine.low %v3128_v28, %v3132_v59  ;;  %v10365_v40 = vld [vmem:[#allocation9 + $0x94] ss:$24 sps:$4 sm:$0xff]   ;;  %v10369_v25 = vld [vmem:[#allocation9 + $0xf0] ss:$24 sps:$4 sm:$0xff]  }
 0x3ea   :  { %6285 = vmatprep.subr.bf16.mxu1 %v9352_v58  ;;  %v6450_v58 = vmax.f32 %v12375_v36, 0.0  ;;  %v10357_v36 = vld [vmem:[#allocation9 + $0x30] ss:$24 sps:$4 sm:$0xff]   ;;  %v10377_v53 = vld [vmem:[#allocation9 + $0x154] ss:$24 sps:$4 sm:$0xff]  }
 0x3eb   :  { %v2733_v9 = vld [vmem:[#allocation6 + $0x378] sm:$0xff] }
 0x3ec   :  { %6261 = vmatpush1.bf16.msra.mxu0 %v9797_v32  ;;  %6113 = vmatmul.mubr.bf16.vlgmr.msra.gmra.mrb[4].mxu1 %v12343_v12  ;;  %v2681_v32 = vld [vmem:[#allocation6 + $0x1d8] sm:$0xff]  ;;  %v12380_v21 = vpack.c.bf16 %v6450_v58, %v6450_v58  ;;  %v10378_v58 = vld [vmem:[#allocation9 + $0x180] ss:$24 sps:$4 sm:$0xff]  }
 0x3ed   :  { %6262 = vmatprep.subr.bf16.mxu0 %v9806_v55  ;;  %6286 = vmatpush1.bf16.msra.mxu1 %v9351_v62  ;;  %v2685_v55 = vld [vmem:[#allocation6 + $0x1f8] sm:$0xff] }
 0x3ee   :  { %6317 = vmatprep.mubr.bf16.mxu1 %v12789_v61  ;;  %6287 = vmatprep.subr.bf16.mxu1 %v9360_v42  ;;  %v9838_v61 = vcombine.high %v3112_v26, %v3116_v51  ;;  %v9408_v11 = vcombine.high %v2681_v32, %v2685_v55  ;;  %v10359_v62 = vld [vmem:[#allocation9 + $0x34] ss:$24 sps:$4 sm:$0xff]   ;;  %v9407_v43 = vcombine.low %v2681_v32, %v2685_v55  ;;  %v10363_v26 = vld [vmem:[#allocation9 + $0x90] ss:$24 sps:$4 sm:$0xff]   ;;  %v10368_v51 = vld [vmem:[#allocation9 + $0xc4] ss:$24 sps:$4 sm:$0xff]  }
 0x3ef   :  { %v2737_v28 = vld [vmem:[#allocation6 + $0x398] sm:$0xff]  ;;  %v10380_v32 = vld [vmem:[#allocation9 + $0x184] ss:$24 sps:$4 sm:$0xff]  }
 0x3f0   :  { %6263 = vmatpush1.bf16.msra.mxu0 %v9805_v57  ;;  %v2693_v57 = vld [vmem:[#allocation6 + $0x238] sm:$0xff] }
 0x3f1   :  { %6264 = vmatprep.subr.bf16.mxu0 %v9814_v48  ;;  %6288 = vmatpush1.bf16.msra.mxu1 %v9359_v41  ;;  %v10354_v48 = vld [vmem:[#allocation9] ss:$24 sps:$4 sm:$0xff]   ;;  %v9416_v42 = vcombine.high %v2689_v5, %v2693_v57  ;;  %v9424_v41 = vcombine.high %v2697_v7, %v2701_v3  ;;  %v2741_v59 = vld [vmem:[#allocation6 + $0x3b8] sm:$0xff] }
 0x3f2   :  { %6289 = vmatprep.subr.bf16.mxu1 %v9368_v60  ;;  %v10360_v60 = vld [vmem:[#allocation9 + $0x60] ss:$24 sps:$4 sm:$0xff]   ;;  %v9463_v55 = vcombine.low %v2737_v28, %v2741_v59 }
 0x3f4   :  { %6265 = vmatpush1.bf16.msra.mxu0 %v9813_v0  ;;  %v10362_v0 = vld [vmem:[#allocation9 + $0x64] ss:$24 sps:$4 sm:$0xff]  }
 0x3f5   :  { %6266 = vmatprep.subr.bf16.mxu0 %v9822_v49  ;;  %6290 = vmatpush1.bf16.msra.mxu1 %v9367_v50  ;;  %v9415_v49 = vcombine.low %v2689_v5, %v2693_v57  ;;  %v2717_v50 = vld [vmem:[#allocation6 + $0x2f8] sm:$0xff] }
 0x3f6   :  { %6291 = vmatprep.subr.bf16.mxu1 %v9376_v4  ;;  %v9431_v4 = vcombine.low %v2705_v54, %v2709_v2 }
 0x3f8   :  { %6267 = vmatpush1.bf16.msra.mxu0 %v9821_v44  ;;  %v9432_v44 = vcombine.high %v2705_v54, %v2709_v2 }
 0x3f9   :  { %6268 = vmatprep.subr.bf16.mxu0 %v9830_v56  ;;  %6292 = vmatpush1.bf16.msra.mxu1 %v9375_v35  ;;  %v2713_v56 = vld [vmem:[#allocation6 + $0x2d8] sm:$0xff] }
 0x3fa   :  { %6293 = vmatprep.subr.bf16.mxu1 %v9384_v1  ;;  %v9440_v30 = vcombine.high %v2713_v56, %v2717_v50  ;;  %v10371_v35 = vld [vmem:[#allocation9 + $0xf4] ss:$24 sps:$4 sm:$0xff]   ;;  %v9439_v34 = vcombine.low %v2713_v56, %v2717_v50 }
 0x3fb   :  { %v2729_v1 = vld [vmem:[#allocation6 + $0x358] sm:$0xff] }
 0x3fc   :  { %6269 = vmatpush1.bf16.msra.mxu0 %v9829_v13  ;;  %v2725_v13 = vld [vmem:[#allocation6 + $0x338] sm:$0xff]  ;;  %v9455_v39 = vcombine.low %v2729_v1, %v2733_v9 }
 0x3fd   :  { %6270 = vmatprep.subr.bf16.mxu0 %v9838_v61  ;;  %6294 = vmatpush1.bf16.msra.mxu1 %v9383_v19  ;;  %v10366_v61 = vld [vmem:[#allocation9 + $0xc0] ss:$24 sps:$4 sm:$0xff]   ;;  %v9448_v37 = vcombine.high %v2721_v24, %v2725_v13  ;;  %v9456_v19 = vcombine.high %v2729_v1, %v2733_v9  ;;  %v2801_v1 = vld [vmem:[#allocation6 + $0x598] sm:$0xff] }
 0x3fe   :  { %6295 = vmatprep.subr.bf16.mxu1 %v9392_v15  ;;  %v10372_v15 = vld [vmem:[#allocation9 + $0x120] ss:$24 sps:$4 sm:$0xff]   ;;  %v2805_v9 = vld [vmem:[#allocation6 + $0x5b8] sm:$0xff] }
 0x400   :  { %6271 = vmatpush1.bf16.msra.mxu0 %v9837_v46  ;;  %v10374_v46 = vld [vmem:[#allocation9 + $0x124] ss:$24 sps:$4 sm:$0xff]  }
 0x401   :  { %6272 = vmatprep.subr.bf16.mxu0 %v9846_v23  ;;  %6296 = vmatpush1.bf16.msra.mxu1 %v9391_v17  ;;  %v9447_v23 = vcombine.low %v2721_v24, %v2725_v13  ;;  %v2749_v17 = vld [vmem:[#allocation6 + $0x3f8] sm:$0xff] }
 0x402   :  { %6297 = vmatprep.subr.bf16.mxu1 %v9400_v16  ;;  %v10375_v16 = vld [vmem:[#allocation9 + $0x150] ss:$24 sps:$4 sm:$0xff]  }
 0x403   :  { %v2793_v24 = vld [vmem:[#allocation6 + $0x558] sm:$0xff] }
 0x404   :  { %6273 = vmatpush1.bf16.msra.mxu0 %v9845_v31  ;;  %v9464_v31 = vcombine.high %v2737_v28, %v2741_v59  ;;  %v2797_v13 = vld [vmem:[#allocation6 + $0x578] sm:$0xff] }
 0x405   :  { %6274 = vmatprep.subr.bf16.mxu0 %v9854_v33  ;;  %6298 = vmatpush1.bf16.msra.mxu1 %v9399_v18  ;;  %v2745_v33 = vld [vmem:[#allocation6 + $0x3d8] sm:$0xff] }
 0x406   :  { %6299 = vmatprep.subr.bf16.mxu1 %v9408_v11  ;;  %v2757_v18 = vld [vmem:[#allocation6 + $0x438] sm:$0xff]  ;;  %v9471_v5 = vcombine.low %v2745_v33, %v2749_v17 }
 0x407   :  { %v10383_v11 = vld [vmem:[#allocation9 + $0x1b4] ss:$24 sps:$4 sm:$0xff]  }
 0x408   :  { %6275 = vmatpush1.bf16.msra.mxu0 %v9853_v22  ;;  %v9472_v22 = vcombine.high %v2745_v33, %v2749_v17  ;;  %v2809_v28 = vld [vmem:[#allocation6 + $0x5d8] sm:$0xff] }
 0x409   :  { %8801 = vmatprep.subr.bf16.mxu0 %v10356_v52  ;;  %6300 = vmatpush1.bf16.msra.mxu1 %v9407_v43  ;;  %v2753_v52 = vld [vmem:[#allocation6 + $0x418] sm:$0xff] }
 0x40a   :  { %6301 = vmatprep.subr.bf16.mxu1 %v9416_v42  ;;  %v9480_v57 = vcombine.high %v2753_v52, %v2757_v18  ;;  %v10381_v43 = vld [vmem:[#allocation9 + $0x1b0] ss:$24 sps:$4 sm:$0xff]   ;;  %v10386_v42 = vld [vmem:[#allocation9 + $0x1e4] ss:$24 sps:$4 sm:$0xff]   ;;  %v9479_v7 = vcombine.low %v2753_v52, %v2757_v18  ;;  %v10407_v52 = vld [vmem:[#allocation9 + $0x334] ss:$24 sps:$4 sm:$0xff]  }
 0x40b   :  { %6277 = vmatmul.mubr.bf16.vlgmr.msra.gmra.mrb[4].mxu0 %v12343_v12  ;;  %v2813_v59 = vld [vmem:[#allocation6 + $0x5f8] sm:$0xff] }
 0x40c   :  { %8802 = vmatpush1.bf16.msra.mxu0 %v10354_v48  ;;  %8833 = vmatprep.mubr.bf16.mxu0 %v12380_v21  ;;  %v2761_v48 = vld [vmem:[#allocation6 + $0x458] sm:$0xff]  ;;  %v9536_v33 = vcombine.high %v2809_v28, %v2813_v59 }
 0x40d   :  { %8803 = vmatprep.subr.bf16.mxu0 %v10359_v62  ;;  %6302 = vmatpush1.bf16.msra.mxu1 %v9415_v49  ;;  %v2765_v62 = vld [vmem:[#allocation6 + $0x478] sm:$0xff]  ;;  %v10384_v49 = vld [vmem:[#allocation9 + $0x1e0] ss:$24 sps:$4 sm:$0xff]  }
 0x40e   :  { %6303 = vmatprep.subr.bf16.mxu1 %v9424_v41  ;;  %v9488_v3 = vcombine.high %v2761_v48, %v2765_v62  ;;  %v10389_v41 = vld [vmem:[#allocation9 + $0x214] ss:$24 sps:$4 sm:$0xff]   ;;  %v9487_v54 = vcombine.low %v2761_v48, %v2765_v62 }
 0x40f   :  { %v2817_v17 = vld [vmem:[#allocation6 + $0x618] sm:$0xff] }
 0x410   :  { %8804 = vmatpush1.bf16.msra.mxu0 %v10357_v36  ;;  %v2769_v36 = vld [vmem:[#allocation6 + $0x498] sm:$0xff] }
 0x411   :  { %8805 = vmatprep.subr.bf16.mxu0 %v10362_v0  ;;  %6304 = vmatpush1.bf16.msra.mxu1 %v9423_v14  ;;  %v2773_v0 = vld [vmem:[#allocation6 + $0x4b8] sm:$0xff] }
 0x412   :  { %6305 = vmatprep.subr.bf16.mxu1 %v9432_v44  ;;  %v9496_v2 = vcombine.high %v2769_v36, %v2773_v0  ;;  %v10387_v14 = vld [vmem:[#allocation9 + $0x210] ss:$24 sps:$4 sm:$0xff]   ;;  %v10392_v44 = vld [vmem:[#allocation9 + $0x244] ss:$24 sps:$4 sm:$0xff]   ;;  %v9495_v56 = vcombine.low %v2769_v36, %v2773_v0 }
 0x413   :  { %v2833_v62 = vld [vmem:[#allocation6 + $0x698] sm:$0xff] }
 0x414   :  { %8806 = vmatpush1.bf16.msra.mxu0 %v10360_v60  ;;  %v2777_v60 = vld [vmem:[#allocation6 + $0x4d8] sm:$0xff] }
 0x415   :  { %8807 = vmatprep.subr.bf16.mxu0 %v10365_v40  ;;  %6306 = vmatpush1.bf16.msra.mxu1 %v9431_v4  ;;  %v2781_v40 = vld [vmem:[#allocation6 + $0x4f8] sm:$0xff] }
 0x416   :  { %6307 = vmatprep.subr.bf16.mxu1 %v9440_v30  ;;  %v9504_v50 = vcombine.high %v2777_v60, %v2781_v40  ;;  %v10395_v4 = vld [vmem:[#allocation9 + $0x274] ss:$24 sps:$4 sm:$0xff]  }
 0x417   :  { %v2841_v0 = vld [vmem:[#allocation6 + $0x6d8] sm:$0xff] }
 0x418   :  { %8808 = vmatpush1.bf16.msra.mxu0 %v10363_v26  ;;  %v2785_v26 = vld [vmem:[#allocation6 + $0x518] sm:$0xff] }
 0x419   :  { %8809 = vmatprep.subr.bf16.mxu0 %v10368_v51  ;;  %6308 = vmatpush1.bf16.msra.mxu1 %v9439_v34  ;;  %v10390_v51 = vld [vmem:[#allocation9 + $0x240] ss:$24 sps:$4 sm:$0xff]  }
 0x41a   :  { %6309 = vmatprep.subr.bf16.mxu1 %v9448_v37  ;;  %v9520_v37 = vcombine.high %v2793_v24, %v2797_v13 }
 0x41c   :  { %8810 = vmatpush1.bf16.msra.mxu0 %v10366_v61  ;;  %v10393_v61 = vld [vmem:[#allocation9 + $0x270] ss:$24 sps:$4 sm:$0xff]  }
 0x41d   :  { %8811 = vmatprep.subr.bf16.mxu0 %v10371_v35  ;;  %6310 = vmatpush1.bf16.msra.mxu1 %v9447_v23  ;;  %v10398_v35 = vld [vmem:[#allocation9 + $0x2a4] ss:$24 sps:$4 sm:$0xff]   ;;  %v9519_v23 = vcombine.low %v2793_v24, %v2797_v13  ;;  %v2865_v13 = vld [vmem:[#allocation6 + $0x798] sm:$0xff] }
 0x41e   :  { %6311 = vmatprep.subr.bf16.mxu1 %v9456_v19  ;;  %v9528_v19 = vcombine.high %v2801_v1, %v2805_v9 }
 0x420   :  { %8812 = vmatpush1.bf16.msra.mxu0 %v10369_v25  ;;  %v10396_v25 = vld [vmem:[#allocation9 + $0x2a0] ss:$24 sps:$4 sm:$0xff]  }
 0x421   :  { %8813 = vmatprep.subr.bf16.mxu0 %v10374_v46  ;;  %6312 = vmatpush1.bf16.msra.mxu1 %v9455_v39  ;;  %v10401_v46 = vld [vmem:[#allocation9 + $0x2d4] ss:$24 sps:$4 sm:$0xff]   ;;  %v9527_v39 = vcombine.low %v2801_v1, %v2805_v9 }
 0x422   :  { %6313 = vmatprep.subr.bf16.mxu1 %v9464_v31  ;;  %v10404_v31 = vld [vmem:[#allocation9 + $0x304] ss:$24 sps:$4 sm:$0xff]   ;;  %v2873_v9 = vld [vmem:[#allocation6 + $0x7d8] sm:$0xff] }
 0x424   :  { %8814 = vmatpush1.bf16.msra.mxu0 %v10372_v15  ;;  %v10399_v15 = vld [vmem:[#allocation9 + $0x2d0] ss:$24 sps:$4 sm:$0xff]  }
 0x425   :  { %8815 = vmatprep.subr.bf16.mxu0 %v10377_v53  ;;  %6314 = vmatpush1.bf16.msra.mxu1 %v9463_v55  ;;  %v6449_v53 = vmax.f32 %v12373_v6, 0.0  ;;  %v2825_v6 = vld [vmem:[#allocation6 + $0x658] sm:$0xff] }
 0x426   :  { %6315 = vmatprep.subr.bf16.mxu1 %v9472_v22  ;;  %v9535_v22 = vcombine.low %v2809_v28, %v2813_v59  ;;  %v2881_v59 = vld [vmem:[#allocation6 + $0x818] sm:$0xff] }
 0x427   :  { %v12387_v55 = vpack.c.bf16 %v6449_v53, %v6449_v53  ;;  %v10426_v53 = vld [vmem:[#allocation9 + $0x480] ss:$24 sps:$4 sm:$0xff]  }
 0x428   :  { %8816 = vmatpush1.bf16.msra.mxu0 %v10375_v16  ;;  %v2821_v16 = vld [vmem:[#allocation6 + $0x638] sm:$0xff] }
 0x429   :  { %8817 = vmatprep.subr.bf16.mxu0 %v10380_v32  ;;  %6316 = vmatpush1.bf16.msra.mxu1 %v9471_v5  ;;  %v10402_v32 = vld [vmem:[#allocation9 + $0x300] ss:$24 sps:$4 sm:$0xff]   ;;  %v9544_v18 = vcombine.high %v2817_v17, %v2821_v16  ;;  %v9543_v5 = vcombine.low %v2817_v17, %v2821_v16  ;;  %v2889_v17 = vld [vmem:[#allocation6 + $0x858] sm:$0xff] }
 0x42a   :  { %6326 = vmatprep.subr.bf16.mxu1 %v9480_v57  ;;  %v10410_v57 = vld [vmem:[#allocation9 + $0x364] ss:$24 sps:$4 sm:$0xff]   ;;  %v2893_v16 = vld [vmem:[#allocation6 + $0x878] sm:$0xff] }
 0x42c   :  { %8818 = vmatpush1.bf16.msra.mxu0 %v10378_v58  ;;  %6318 = vmatmul.mubr.bf16.vlgmr.msra.gmra.mrb[8].mxu1 %v12795_v10  ;;  %v2789_v10 = vld [vmem:[#allocation6 + $0x538] sm:$0xff] }
 0x42d   :  { %8819 = vmatprep.subr.bf16.mxu0 %v10383_v11  ;;  %6327 = vmatpush1.bf16.msra.mxu1 %v9479_v7  ;;  %v9512_v30 = vcombine.high %v2785_v26, %v2789_v10  ;;  %v9511_v34 = vcombine.low %v2785_v26, %v2789_v10  ;;  %v2829_v58 = vld [vmem:[#allocation6 + $0x678] sm:$0xff] }
 0x42e   :  { %6358 = vmatprep.mubr.bf16.mxu1 %v12796_v29  ;;  %6328 = vmatprep.subr.bf16.mxu1 %v9488_v3  ;;  %v9503_v29 = vcombine.low %v2777_v60, %v2781_v40  ;;  %v10405_v11 = vld [vmem:[#allocation9 + $0x330] ss:$24 sps:$4 sm:$0xff]   ;;  %v9552_v48 = vcombine.high %v2825_v6, %v2829_v58  ;;  %v9551_v7 = vcombine.low %v2825_v6, %v2829_v58  ;;  %v10413_v3 = vld [vmem:[#allocation9 + $0x394] ss:$24 sps:$4 sm:$0xff]  }
 0x42f   :  { %v2849_v40 = vld [vmem:[#allocation6 + $0x718] sm:$0xff] }
 0x430   :  { %8820 = vmatpush1.bf16.msra.mxu0 %v10381_v43  ;;  %v2837_v43 = vld [vmem:[#allocation6 + $0x6b8] sm:$0xff] }
 0x431   :  { %8821 = vmatprep.subr.bf16.mxu0 %v10386_v42  ;;  %6329 = vmatpush1.bf16.msra.mxu1 %v9487_v54  ;;  %v10408_v42 = vld [vmem:[#allocation9 + $0x360] ss:$24 sps:$4 sm:$0xff]   ;;  %v9560_v36 = vcombine.high %v2833_v62, %v2837_v43  ;;  %v9559_v54 = vcombine.low %v2833_v62, %v2837_v43  ;;  %v2857_v10 = vld [vmem:[#allocation6 + $0x758] sm:$0xff] }
 0x432   :  { %6330 = vmatprep.subr.bf16.mxu1 %v9496_v2  ;;  %v10416_v2 = vld [vmem:[#allocation9 + $0x3c4] ss:$24 sps:$4 sm:$0xff]   ;;  %v2897_v6 = vld [vmem:[#allocation6 + $0x898] sm:$0xff] }
 0x433   :  { %v2901_v58 = vld [vmem:[#allocation6 + $0x8b8] sm:$0xff] }
 0x434   :  { %8822 = vmatpush1.bf16.msra.mxu0 %v10384_v49  ;;  %v2845_v49 = vld [vmem:[#allocation6 + $0x6f8] sm:$0xff] }
 0x435   :  { %8823 = vmatprep.subr.bf16.mxu0 %v10389_v41  ;;  %6331 = vmatpush1.bf16.msra.mxu1 %v9495_v56  ;;  %v10411_v41 = vld [vmem:[#allocation9 + $0x390] ss:$24 sps:$4 sm:$0xff]   ;;  %v9568_v60 = vcombine.high %v2841_v0, %v2845_v49  ;;  %v9567_v56 = vcombine.low %v2841_v0, %v2845_v49  ;;  %v10438_v49 = vld [vmem:[#allocation9 + $0x540] ss:$24 sps:$4 sm:$0xff]  }
 0x436   :  { %6332 = vmatprep.subr.bf16.mxu1 %v9504_v50  ;;  %v10419_v50 = vld [vmem:[#allocation9 + $0x3f4] ss:$24 sps:$4 sm:$0xff]  }
 0x437   :  { %v2905_v62 = vld [vmem:[#allocation6 + $0x8d8] sm:$0xff] }
 0x438   :  { %8824 = vmatpush1.bf16.msra.mxu0 %v10387_v14  ;;  %v2853_v14 = vld [vmem:[#allocation6 + $0x738] sm:$0xff] }
 0x439   :  { %8825 = vmatprep.subr.bf16.mxu0 %v10392_v44  ;;  %6333 = vmatpush1.bf16.msra.mxu1 %v9503_v29  ;;  %v10414_v44 = vld [vmem:[#allocation9 + $0x3c0] ss:$24 sps:$4 sm:$0xff]   ;;  %v9576_v26 = vcombine.high %v2849_v40, %v2853_v14  ;;  %v9575_v29 = vcombine.low %v2849_v40, %v2853_v14  ;;  %v2909_v43 = vld [vmem:[#allocation6 + $0x8f8] sm:$0xff] }
 0x43a   :  { %6334 = vmatprep.subr.bf16.mxu1 %v9512_v30  ;;  %v10422_v30 = vld [vmem:[#allocation9 + $0x424] ss:$24 sps:$4 sm:$0xff]   ;;  %v2917_v0 = vld [vmem:[#allocation6 + $0x938] sm:$0xff] }
 0x43b   :  { %v10441_v40 = vld [vmem:[#allocation9 + $0x570] ss:$24 sps:$4 sm:$0xff]  }
 0x43c   :  { %8826 = vmatpush1.bf16.msra.mxu0 %v10390_v51  ;;  %v2861_v51 = vld [vmem:[#allocation6 + $0x778] sm:$0xff] }
 0x43d   :  { %8827 = vmatprep.subr.bf16.mxu0 %v10395_v4  ;;  %6335 = vmatpush1.bf16.msra.mxu1 %v9511_v34  ;;  %v10417_v4 = vld [vmem:[#allocation9 + $0x3f0] ss:$24 sps:$4 sm:$0xff]   ;;  %v9584_v24 = vcombine.high %v2857_v10, %v2861_v51  ;;  %v9583_v34 = vcombine.low %v2857_v10, %v2861_v51  ;;  %v10444_v10 = vld [vmem:[#allocation9 + $0x5a0] ss:$24 sps:$4 sm:$0xff]  }
 0x43e   :  { %6336 = vmatprep.subr.bf16.mxu1 %v9520_v37  ;;  %v10425_v37 = vld [vmem:[#allocation9 + $0x454] ss:$24 sps:$4 sm:$0xff]  }
 0x440   :  { %8828 = vmatpush1.bf16.msra.mxu0 %v10393_v61  ;;  %v2869_v61 = vld [vmem:[#allocation6 + $0x7b8] sm:$0xff] }
 0x441   :  { %8829 = vmatprep.subr.bf16.mxu0 %v10398_v35  ;;  %6337 = vmatpush1.bf16.msra.mxu1 %v9519_v23  ;;  %v10420_v35 = vld [vmem:[#allocation9 + $0x420] ss:$24 sps:$4 sm:$0xff]   ;;  %v9592_v1 = vcombine.high %v2865_v13, %v2869_v61  ;;  %v9591_v23 = vcombine.low %v2865_v13, %v2869_v61  ;;  %v10447_v13 = vld [vmem:[#allocation9 + $0x5d0] ss:$24 sps:$4 sm:$0xff]  }
 0x442   :  { %6338 = vmatprep.subr.bf16.mxu1 %v9528_v19  ;;  %v10428_v19 = vld [vmem:[#allocation9 + $0x484] ss:$24 sps:$4 sm:$0xff]  }
 0x444   :  { %8830 = vmatpush1.bf16.msra.mxu0 %v10396_v25  ;;  %v2877_v25 = vld [vmem:[#allocation6 + $0x7f8] sm:$0xff] }
 0x445   :  { %8831 = vmatprep.subr.bf16.mxu0 %v10401_v46  ;;  %6339 = vmatpush1.bf16.msra.mxu1 %v9527_v39  ;;  %v10423_v46 = vld [vmem:[#allocation9 + $0x450] ss:$24 sps:$4 sm:$0xff]   ;;  %v9600_v28 = vcombine.high %v2873_v9, %v2877_v25  ;;  %v9599_v39 = vcombine.low %v2873_v9, %v2877_v25 }
 0x446   :  { %6340 = vmatprep.subr.bf16.mxu1 %v9536_v33 }
 0x448   :  { %8832 = vmatpush1.bf16.msra.mxu0 %v10399_v15  ;;  %v2885_v15 = vld [vmem:[#allocation6 + $0x838] sm:$0xff] }
 0x449   :  { %8842 = vmatprep.subr.bf16.mxu0 %v10404_v31  ;;  %6341 = vmatpush1.bf16.msra.mxu1 %v9535_v22  ;;  %v10431_v31 = vld [vmem:[#allocation9 + $0x4b4] ss:$24 sps:$4 sm:$0xff]   ;;  %v9608_v33 = vcombine.high %v2881_v59, %v2885_v15  ;;  %v9607_v22 = vcombine.low %v2881_v59, %v2885_v15 }
 0x44a   :  { %6342 = vmatprep.subr.bf16.mxu1 %v9544_v18  ;;  %v10434_v18 = vld [vmem:[#allocation9 + $0x4e4] ss:$24 sps:$4 sm:$0xff]   ;;  %v2961_v59 = vld [vmem:[#allocation6 + $0xa98] sm:$0xff] }
 0x44b   :  { %8834 = vmatmul.mubr.bf16.vlgmr.msra.gmra.mrb[8].mxu0 %v12387_v55  ;;  %v2965_v15 = vld [vmem:[#allocation6 + $0xab8] sm:$0xff] }
 0x44c   :  { %8843 = vmatpush1.bf16.msra.mxu0 %v10402_v32  ;;  %v10429_v32 = vld [vmem:[#allocation9 + $0x4b0] ss:$24 sps:$4 sm:$0xff]  }
 0x44d   :  { %8844 = vmatprep.subr.bf16.mxu0 %v10407_v52  ;;  %6343 = vmatpush1.bf16.msra.mxu1 %v9543_v5  ;;  %v9616_v52 = vcombine.high %v2889_v17, %v2893_v16  ;;  %v9615_v5 = vcombine.low %v2889_v17, %v2893_v16  ;;  %v9687_v17 = vcombine.low %v2961_v59, %v2965_v15 }
 0x44e   :  { %6344 = vmatprep.subr.bf16.mxu1 %v9552_v48  ;;  %v9624_v48 = vcombine.high %v2897_v6, %v2901_v58 }
 0x450   :  { %8845 = vmatpush1.bf16.msra.mxu0 %v10405_v11  ;;  %v10432_v11 = vld [vmem:[#allocation9 + $0x4e0] ss:$24 sps:$4 sm:$0xff]  }
 0x451   :  { %8846 = vmatprep.subr.bf16.mxu0 %v10410_v57  ;;  %6345 = vmatpush1.bf16.msra.mxu1 %v9551_v7  ;;  %v10437_v57 = vld [vmem:[#allocation9 + $0x514] ss:$24 sps:$4 sm:$0xff]   ;;  %v9623_v7 = vcombine.low %v2897_v6, %v2901_v58 }
 0x452   :  { %6346 = vmatprep.subr.bf16.mxu1 %v9560_v36  ;;  %v2913_v36 = vld [vmem:[#allocation6 + $0x918] sm:$0xff] }
 0x453   :  { %v9639_v14 = vcombine.low %v2913_v36, %v2917_v0  ;;  %v2985_v6 = vld [vmem:[#allocation6 + $0xb58] sm:$0xff] }
 0x454   :  { %8847 = vmatpush1.bf16.msra.mxu0 %v10408_v42  ;;  %v10435_v42 = vld [vmem:[#allocation9 + $0x510] ss:$24 sps:$4 sm:$0xff]  }
 0x455   :  { %8848 = vmatprep.subr.bf16.mxu0 %v10413_v3  ;;  %6347 = vmatpush1.bf16.msra.mxu1 %v9559_v54  ;;  %v10440_v3 = vld [vmem:[#allocation9 + $0x544] ss:$24 sps:$4 sm:$0xff]   ;;  %v9640_v54 = vcombine.high %v2913_v36, %v2917_v0  ;;  %v2989_v58 = vld [vmem:[#allocation6 + $0xb78] sm:$0xff] }
 0x456   :  { %6348 = vmatprep.subr.bf16.mxu1 %v9568_v60  ;;  %v2925_v60 = vld [vmem:[#allocation6 + $0x978] sm:$0xff] }
 0x457   :  { %v3009_v36 = vld [vmem:[#allocation6 + $0xc18] sm:$0xff] }
 0x458   :  { %8849 = vmatpush1.bf16.msra.mxu0 %v10411_v41  ;;  %v10443_v41 = vld [vmem:[#allocation9 + $0x574] ss:$24 sps:$4 sm:$0xff]  }
 0x459   :  { %8850 = vmatprep.subr.bf16.mxu0 %v10416_v2  ;;  %6349 = vmatpush1.bf16.msra.mxu1 %v9567_v56  ;;  %v2921_v2 = vld [vmem:[#allocation6 + $0x958] sm:$0xff] }
 0x45a   :  { %6350 = vmatprep.subr.bf16.mxu1 %v9576_v26  ;;  %v9648_v56 = vcombine.high %v2921_v2, %v2925_v60  ;;  %v2933_v26 = vld [vmem:[#allocation6 + $0x9b8] sm:$0xff]  ;;  %v9647_v51 = vcombine.low %v2921_v2, %v2925_v60 }
 0x45b   :  { %v3013_v0 = vld [vmem:[#allocation6 + $0xc38] sm:$0xff] }
 0x45c   :  { %8851 = vmatpush1.bf16.msra.mxu0 %v10414_v44  ;;  %v10446_v44 = vld [vmem:[#allocation9 + $0x5a4] ss:$24 sps:$4 sm:$0xff]   ;;  %v9735_v2 = vcombine.low %v3009_v36, %v3013_v0 }
 0x45d   :  { %8852 = vmatprep.subr.bf16.mxu0 %v10419_v50  ;;  %6351 = vmatpush1.bf16.msra.mxu1 %v9575_v29  ;;  %v2929_v50 = vld [vmem:[#allocation6 + $0x998] sm:$0xff] }
 0x45e   :  { %6352 = vmatprep.subr.bf16.mxu1 %v9584_v24  ;;  %v9656_v29 = vcombine.high %v2929_v50, %v2933_v26  ;;  %v2941_v24 = vld [vmem:[#allocation6 + $0x9f8] sm:$0xff]  ;;  %v9655_v61 = vcombine.low %v2929_v50, %v2933_v26 }
 0x45f   :  { %v3033_v50 = vld [vmem:[#allocation6 + $0xcd8] sm:$0xff] }
 0x460   :  { %8853 = vmatpush1.bf16.msra.mxu0 %v10417_v4  ;;  %v10449_v4 = vld [vmem:[#allocation9 + $0x5d4] ss:$24 sps:$4 sm:$0xff]  }
 0x461   :  { %8854 = vmatprep.subr.bf16.mxu0 %v10422_v30  ;;  %6353 = vmatpush1.bf16.msra.mxu1 %v9583_v34  ;;  %v2937_v30 = vld [vmem:[#allocation6 + $0x9d8] sm:$0xff] }
 0x462   :  { %6354 = vmatprep.subr.bf16.mxu1 %v9592_v1  ;;  %v9664_v34 = vcombine.high %v2937_v30, %v2941_v24  ;;  %v2949_v1 = vld [vmem:[#allocation6 + $0xa38] sm:$0xff]  ;;  %v9663_v9 = vcombine.low %v2937_v30, %v2941_v24 }
 0x463   :  { %v3037_v26 = vld [vmem:[#allocation6 + $0xcf8] sm:$0xff] }
 0x464   :  { %8855 = vmatpush1.bf16.msra.mxu0 %v10420_v35  ;;  %v10452_v35 = vld [vmem:[#allocation9 + $0x604] ss:$24 sps:$4 sm:$0xff]   ;;  %v9759_v30 = vcombine.low %v3033_v50, %v3037_v26 }
 0x465   :  { %8856 = vmatprep.subr.bf16.mxu0 %v10425_v37  ;;  %6355 = vmatpush1.bf16.msra.mxu1 %v9591_v23  ;;  %v2945_v37 = vld [vmem:[#allocation6 + $0xa18] sm:$0xff] }
 0x466   :  { %6356 = vmatprep.subr.bf16.mxu1 %v9600_v28  ;;  %v9672_v25 = vcombine.high %v2945_v37, %v2949_v1  ;;  %v2957_v23 = vld [vmem:[#allocation6 + $0xa78] sm:$0xff] }
 0x468   :  { %8857 = vmatpush1.bf16.msra.mxu0 %v10423_v46  ;;  %v2953_v46 = vld [vmem:[#allocation6 + $0xa58] sm:$0xff] }
 0x469   :  { %8858 = vmatprep.subr.bf16.mxu0 %v10428_v19  ;;  %6357 = vmatpush1.bf16.msra.mxu1 %v9599_v39  ;;  %v9671_v19 = vcombine.low %v2945_v37, %v2949_v1  ;;  %v9680_v28 = vcombine.high %v2953_v46, %v2957_v23  ;;  %v9688_v39 = vcombine.high %v2961_v59, %v2965_v15  ;;  %v3057_v37 = vld [vmem:[#allocation6 + $0xd98] sm:$0xff] }
 0x46a   :  { %6367 = vmatprep.subr.bf16.mxu1 %v9608_v33  ;;  %v2973_v33 = vld [vmem:[#allocation6 + $0xaf8] sm:$0xff] }
 0x46b   :  { %v3061_v1 = vld [vmem:[#allocation6 + $0xdb8] sm:$0xff] }
 0x46c   :  { %8859 = vmatpush1.bf16.msra.mxu0 %v10426_v53  ;;  %6359 = vmatmul.mubr.bf16.vlgmr.msra.gmra.mrb[8].mxu1 %v12273_v47  ;;  %v9632_v47 = vcombine.high %v2905_v62, %v2909_v43  ;;  %v9679_v53 = vcombine.low %v2953_v46, %v2957_v23  ;;  %v3065_v59 = vld [vmem:[#allocation6 + $0xdd8] sm:$0xff] }
 0x46d   :  { %8860 = vmatprep.subr.bf16.mxu0 %v10431_v31  ;;  %6368 = vmatpush1.bf16.msra.mxu1 %v9607_v22  ;;  %v2969_v31 = vld [vmem:[#allocation6 + $0xad8] sm:$0xff] }
 0x46e   :  { %6399 = vmatprep.mubr.bf16.mxu1 %v12797_v45  ;;  %6369 = vmatprep.subr.bf16.mxu1 %v9616_v52  ;;  %v9631_v45 = vcombine.low %v2905_v62, %v2909_v43  ;;  %v9696_v16 = vcombine.high %v2969_v31, %v2973_v33  ;;  %v2981_v22 = vld [vmem:[#allocation6 + $0xb38] sm:$0xff]  ;;  %v9695_v52 = vcombine.low %v2969_v31, %v2973_v33 }
 0x46f   :  { %v9711_v62 = vcombine.low %v2985_v6, %v2989_v58  ;;  %v3069_v15 = vld [vmem:[#allocation6 + $0xdf8] sm:$0xff] }
 0x470   :  { %8861 = vmatpush1.bf16.msra.mxu0 %v10429_v32  ;;  %v2977_v32 = vld [vmem:[#allocation6 + $0xb18] sm:$0xff] }
 0x471   :  { %8862 = vmatprep.subr.bf16.mxu0 %v10434_v18  ;;  %6370 = vmatpush1.bf16.msra.mxu1 %v9615_v5  ;;  %v9704_v18 = vcombine.high %v2977_v32, %v2981_v22  ;;  %v9712_v5 = vcombine.high %v2985_v6, %v2989_v58  ;;  %v3077_v6 = vld [vmem:[#allocation6 + $0xe38] sm:$0xff] }
 0x472   :  { %6371 = vmatprep.subr.bf16.mxu1 %v9624_v48  ;;  %v2997_v48 = vld [vmem:[#allocation6 + $0xbb8] sm:$0xff] }
 0x474   :  { %8863 = vmatpush1.bf16.msra.mxu0 %v10432_v11  ;;  %v9703_v11 = vcombine.low %v2977_v32, %v2981_v22  ;;  %v9792_v22 = vcombine.high %v3065_v59, %v3069_v15 }
 0x475   :  { %8864 = vmatprep.subr.bf16.mxu0 %v10437_v57  ;;  %6372 = vmatpush1.bf16.msra.mxu1 %v9623_v7  ;;  %v2993_v57 = vld [vmem:[#allocation6 + $0xb98] sm:$0xff] }
 0x476   :  { %6373 = vmatprep.subr.bf16.mxu1 %v9632_v47  ;;  %v9720_v43 = vcombine.high %v2993_v57, %v2997_v48  ;;  %v3005_v7 = vld [vmem:[#allocation6 + $0xbf8] sm:$0xff] }
 0x478   :  { %8865 = vmatpush1.bf16.msra.mxu0 %v10435_v42  ;;  %v3001_v42 = vld [vmem:[#allocation6 + $0xbd8] sm:$0xff] }
 0x479   :  { %8866 = vmatprep.subr.bf16.mxu0 %v10440_v3  ;;  %6374 = vmatpush1.bf16.msra.mxu1 %v9631_v45  ;;  %v9719_v3 = vcombine.low %v2993_v57, %v2997_v48  ;;  %v9728_v47 = vcombine.high %v3001_v42, %v3005_v7  ;;  %v9736_v45 = vcombine.high %v3009_v36, %v3013_v0  ;;  %v10455_v48 = vld [vmem:[#allocation9 + $0x634] ss:$24 sps:$4 sm:$0xff]  }
 0x47a   :  { %6375 = vmatprep.subr.bf16.mxu1 %v9640_v54  ;;  %v3021_v54 = vld [vmem:[#allocation6 + $0xc78] sm:$0xff] }
 0x47b   :  { %v3089_v0 = vld [vmem:[#allocation6 + $0xe98] sm:$0xff] }
 0x47c   :  { %8867 = vmatpush1.bf16.msra.mxu0 %v10438_v49  ;;  %v9727_v49 = vcombine.low %v3001_v42, %v3005_v7  ;;  %v3085_v42 = vld [vmem:[#allocation6 + $0xe78] sm:$0xff] }
 0x47d   :  { %8868 = vmatprep.subr.bf16.mxu0 %v10443_v41  ;;  %6376 = vmatpush1.bf16.msra.mxu1 %v9639_v14  ;;  %v3017_v41 = vld [vmem:[#allocation6 + $0xc58] sm:$0xff] }
 0x47e   :  { %6377 = vmatprep.subr.bf16.mxu1 %v9648_v56  ;;  %v9744_v60 = vcombine.high %v3017_v41, %v3021_v54  ;;  %v3029_v14 = vld [vmem:[#allocation6 + $0xcb8] sm:$0xff] }
 0x47f   :  { %v10453_v7 = vld [vmem:[#allocation9 + $0x630] ss:$24 sps:$4 sm:$0xff]  }
 0x480   :  { %8869 = vmatpush1.bf16.msra.mxu0 %v10441_v40  ;;  %v3025_v40 = vld [vmem:[#allocation6 + $0xc98] sm:$0xff] }
 0x481   :  { %8870 = vmatprep.subr.bf16.mxu0 %v10446_v44  ;;  %6378 = vmatpush1.bf16.msra.mxu1 %v9647_v51  ;;  %v9743_v44 = vcombine.low %v3017_v41, %v3021_v54  ;;  %v9752_v56 = vcombine.high %v3025_v40, %v3029_v14  ;;  %v9760_v51 = vcombine.high %v3033_v50, %v3037_v26  ;;  %v10461_v54 = vld [vmem:[#allocation9 + $0x694] ss:$24 sps:$4 sm:$0xff]  }
 0x482   :  { %6379 = vmatprep.subr.bf16.mxu1 %v9656_v29  ;;  %v3045_v29 = vld [vmem:[#allocation6 + $0xd38] sm:$0xff] }
 0x483   :  { %v3105_v26 = vld [vmem:[#allocation6 + $0xf18] sm:$0xff] }
 0x484   :  { %8871 = vmatpush1.bf16.msra.mxu0 %v10444_v10  ;;  %v9751_v10 = vcombine.low %v3025_v40, %v3029_v14  ;;  %v3101_v40 = vld [vmem:[#allocation6 + $0xef8] sm:$0xff] }
 0x485   :  { %8872 = vmatprep.subr.bf16.mxu0 %v10449_v4  ;;  %6380 = vmatpush1.bf16.msra.mxu1 %v9655_v61  ;;  %v3041_v4 = vld [vmem:[#allocation6 + $0xd18] sm:$0xff]  ;;  %v3146_v61 = vsub.s32 2, %v12363_v20 }
 0x486   :  { %6381 = vmatprep.subr.bf16.mxu1 %v9664_v34  ;;  %v9768_v24 = vcombine.high %v3041_v4, %v3045_v29  ;;  %v10459_v14 = vld [vmem:[#allocation9 + $0x690] ss:$24 sps:$4 sm:$0xff]  }
 0x488   :  { %8873 = vmatpush1.bf16.msra.mxu0 %v10447_v13  ;;  %v3049_v13 = vld [vmem:[#allocation6 + $0xd58] sm:$0xff] }
 0x489   :  { %8883 = vmatprep.subr.bf16.mxu0 %v10452_v35  ;;  %6382 = vmatpush1.bf16.msra.mxu1 %v9663_v9  ;;  %v3150_v35 = vsub.s32 3, %v12363_v20  ;;  %v12396_v9 = vld [vmem:[#allocation8] sm:$0xff] }
 0x48a   :  { %6383 = vmatprep.subr.bf16.mxu1 %v9672_v25  ;;  %v3147_v25 = vrot.slane %v12396_v9, %v3146_v61 }
 0x48b   :  { %v3151_v46 = vrot.slane %v12396_v9, %v3150_v35 }
 0x48d   :  { %6384 = vmatpush1.bf16.msra.mxu1 %v9671_v19  ;;  %v9784_v19 = vcombine.high %v3057_v37, %v3061_v1 }
 0x48e   :  { %6385 = vmatprep.subr.bf16.mxu1 %v9680_v28 }
 0x491   :  { %6386 = vmatpush1.bf16.msra.mxu1 %v9679_v53 }
 0x492   :  { %6387 = vmatprep.subr.bf16.mxu1 %v9688_v39 }
 0x495   :  { %6388 = vmatpush1.bf16.msra.mxu1 %v9687_v17  ;;  %v9783_v17 = vcombine.low %v3057_v37, %v3061_v1 }
 0x496   :  { %6389 = vmatprep.subr.bf16.mxu1 %v9696_v16 }
 0x499   :  { %6390 = vmatpush1.bf16.msra.mxu1 %v9695_v52 }
 0x49a   :  { %6391 = vmatprep.subr.bf16.mxu1 %v9704_v18  ;;  %v3073_v18 = vld [vmem:[#allocation6 + $0xe18] sm:$0xff] }
 0x49d   :  { %6392 = vmatpush1.bf16.msra.mxu1 %v9703_v11  ;;  %v10450_v11 = vld [vmem:[#allocation9 + $0x600] ss:$24 sps:$4 sm:$0xff]  }
 0x49e   :  { %6393 = vmatprep.subr.bf16.mxu1 %v9712_v5  ;;  %v9791_v5 = vcombine.low %v3065_v59, %v3069_v15  ;;  %v3121_v59 = vld [vmem:[#allocation6 + $0xf98] sm:$0xff] }
 0x49f   :  { %v3125_v15 = vld [vmem:[#allocation6 + $0xfb8] sm:$0xff] }
 0x4a1   :  { %6394 = vmatpush1.bf16.msra.mxu1 %v9711_v62  ;;  %v9800_v62 = vcombine.high %v3073_v18, %v3077_v6 }
 0x4a2   :  { %6395 = vmatprep.subr.bf16.mxu1 %v9720_v43  ;;  %v3081_v43 = vld [vmem:[#allocation6 + $0xe58] sm:$0xff] }
 0x4a3   :  { %v9808_v36 = vcombine.high %v3081_v43, %v3085_v42  ;;  %v9807_v41 = vcombine.low %v3081_v43, %v3085_v42  ;;  %v10479_v43 = vld [vmem:[#allocation9 + $0x7b4] ss:$24 sps:$4 sm:$0xff]  }
 0x4a4   :  { %v10482_v42 = vld [vmem:[#allocation9 + $0xc] ss:$24 sps:$4 sm:$0xff]  }
 0x4a5   :  { %6396 = vmatpush1.bf16.msra.mxu1 %v9719_v3  ;;  %v9799_v3 = vcombine.low %v3073_v18, %v3077_v6  ;;  %v10471_v18 = vld [vmem:[#allocation9 + $0x750] ss:$24 sps:$4 sm:$0xff]   ;;  %v9847_v6 = vcombine.low %v3121_v59, %v3125_v15 }
 0x4a6   :  { %6397 = vmatprep.subr.bf16.mxu1 %v9728_v47  ;;  %v10458_v47 = vld [vmem:[#allocation9 + $0x664] ss:$24 sps:$4 sm:$0xff]  }
 0x4a9   :  { %6398 = vmatpush1.bf16.msra.mxu1 %v9727_v49  ;;  %v3093_v49 = vld [vmem:[#allocation6 + $0xeb8] sm:$0xff] }
 0x4aa   :  { %6408 = vmatprep.subr.bf16.mxu1 %v9736_v45  ;;  %v10456_v45 = vld [vmem:[#allocation9 + $0x660] ss:$24 sps:$4 sm:$0xff]  }
 0x4ac   :  { %6400 = vmatmul.mubr.bf16.vlgmr.msra.gmra.mrb[8].mxu1 %v12798_v63  ;;  %v3053_v63 = vld [vmem:[#allocation6 + $0xd78] sm:$0xff] }
 0x4ad   :  { %6409 = vmatpush1.bf16.msra.mxu1 %v9735_v2  ;;  %6440 = vmatprep.mubr.bf16.mxu1 %v12799_v27  ;;  %v9767_v27 = vcombine.low %v3041_v4, %v3045_v29  ;;  %v9776_v34 = vcombine.high %v3049_v13, %v3053_v63  ;;  %v9775_v23 = vcombine.low %v3049_v13, %v3053_v63  ;;  %v10462_v4 = vld [vmem:[#allocation9 + $0x6c0] ss:$24 sps:$4 sm:$0xff]   ;;  %v3113_v13 = vld [vmem:[#allocation6 + $0xf58] sm:$0xff] }
 0x4ae   :  { %6410 = vmatprep.subr.bf16.mxu1 %v9744_v60  ;;  %v9816_v2 = vcombine.high %v3089_v0, %v3093_v49  ;;  %v3097_v60 = vld [vmem:[#allocation6 + $0xed8] sm:$0xff] }
 0x4af   :  { %v9824_v50 = vcombine.high %v3097_v60, %v3101_v40  ;;  %v9823_v29 = vcombine.low %v3097_v60, %v3101_v40  ;;  %v3117_v63 = vld [vmem:[#allocation6 + $0xf78] sm:$0xff]  ;;  %v10497_v60 = vld [vmem:[#allocation9 + $0x844] ss:$24 sps:$4 sm:$0xff]  }
 0x4b0   :  { %v10500_v40 = vld [vmem:[#allocation9 + $0x9c] ss:$24 sps:$4 sm:$0xff]  }
 0x4b1   :  { %6411 = vmatpush1.bf16.msra.mxu1 %v9743_v44  ;;  %v9815_v44 = vcombine.low %v3089_v0, %v3093_v49  ;;  %v10483_v0 = vld [vmem:[#allocation9 + $0x7e0] ss:$24 sps:$4 sm:$0xff]  }
 0x4b2   :  { %6412 = vmatprep.subr.bf16.mxu1 %v9752_v56  ;;  %v10464_v56 = vld [vmem:[#allocation9 + $0x6c4] ss:$24 sps:$4 sm:$0xff]   ;;  %v10486_v49 = vld [vmem:[#allocation9 + $0x38] ss:$24 sps:$4 sm:$0xff]  }
 0x4b5   :  { %6413 = vmatpush1.bf16.msra.mxu1 %v9751_v10  ;;  %v3109_v10 = vld [vmem:[#allocation6 + $0xf38] sm:$0xff] }
 0x4b6   :  { %6414 = vmatprep.subr.bf16.mxu1 %v9760_v51  ;;  %v3158_v51 = vsub.s32 5, %v12363_v20  ;;  %v9831_v37 = vcombine.low %v3105_v26, %v3109_v10 }
 0x4b9   :  { %6415 = vmatpush1.bf16.msra.mxu1 %v9759_v30  ;;  %v10467_v30 = vld [vmem:[#allocation9 + $0x6f4] ss:$24 sps:$4 sm:$0xff]  }
 0x4ba   :  { %6416 = vmatprep.subr.bf16.mxu1 %v9768_v24  ;;  %v9832_v24 = vcombine.high %v3105_v26, %v3109_v10  ;;  %v10501_v26 = vld [vmem:[#allocation9 + $0x870] ss:$24 sps:$4 sm:$0xff]  }
 0x4bb   :  { %v10504_v10 = vld [vmem:[#allocation9 + $0xc8] ss:$24 sps:$4 sm:$0xff]  }
 0x4bd   :  { %6417 = vmatpush1.bf16.msra.mxu1 %v9767_v27  ;;  %v3159_v27 = vrot.slane %v12396_v9, %v3158_v51 }
 0x4be   :  { %6418 = vmatprep.subr.bf16.mxu1 %v9776_v34  ;;  %v10465_v34 = vld [vmem:[#allocation9 + $0x6f0] ss:$24 sps:$4 sm:$0xff]  }
 0x4bf   :  { %v6114_v28 = vpop.f32.mrb[4].mxu1 }
 0x4c0   :  { %v10246_v53 = vadd.f32 %v6114_v28, %v3147_v25  ;;  %v6116_v39 = vpop.f32.mrb[5].mxu1  ;;  %v10470_v25 = vld [vmem:[#allocation9 + $0x724] ss:$24 sps:$4 sm:$0xff]  }
 0x4c1   :  { %v10247_v31 = vadd.f32 %v6116_v39, %v3151_v46  ;;  %v6118_v33 = vpop.f32.mrb[6].mxu1  ;;  %6419 = vmatpush1.bf16.msra.mxu1 %v9775_v23  ;;  %v9840_v46 = vcombine.high %v3113_v13, %v3117_v63  ;;  %v10468_v39 = vld [vmem:[#allocation9 + $0x720] ss:$24 sps:$4 sm:$0xff]  }
 0x4c2   :  { %v6451_v16 = vmax.f32 %v10246_v53, 0.0  ;;  %v6119_v32 = vpop.f32.mrb[7].mxu1  ;;  %6420 = vmatprep.subr.bf16.mxu1 %v9784_v19 }
 0x4c3   :  { %v6452_v52 = vmax.f32 %v10247_v31, 0.0  ;;  %v9839_v31 = vcombine.low %v3113_v13, %v3117_v63  ;;  %v3129_v32 = vld [vmem:[#allocation6 + $0xfd8] sm:$0xff] }
 0x4c4   :  { %v12406_v57 = vpack.c.bf16 %v6451_v16, %v6451_v16  ;;  %v9848_v16 = vcombine.high %v3121_v59, %v3125_v15  ;;  %v10510_v13 = vld [vmem:[#allocation9 + $0xf8] ss:$24 sps:$4 sm:$0xff]   ;;  %v10617_v59 = vld [vmem:[#allocation9 + $0x904] ss:$24 sps:$4 sm:$0xff]  }
 0x4c5   :  { %v12404_v58 = vpack.c.bf16 %v6452_v52, %v6452_v52  ;;  %6421 = vmatpush1.bf16.msra.mxu1 %v9783_v17  ;;  %v10473_v17 = vld [vmem:[#allocation9 + $0x754] ss:$24 sps:$4 sm:$0xff]  }
 0x4c6   :  { %6422 = vmatprep.subr.bf16.mxu1 %v9792_v22  ;;  %v3133_v22 = vld [vmem:[#allocation6 + $0xff8] sm:$0xff] }
 0x4c7   :  { %8874 = vmatprep.mubr.bf16.mxu0 %v12404_v58 }
 0x4c8   :  { %8875 = vmatmul.mubr.bf16.vlgmr.msra.gmra.mrb[8].mxu0 %v12406_v57 }
 0x4c9   :  { %8884 = vmatpush1.bf16.msra.mxu0 %v10450_v11  ;;  %6423 = vmatpush1.bf16.msra.mxu1 %v9791_v5  ;;  %v10476_v11 = vld [vmem:[#allocation9 + $0x784] ss:$24 sps:$4 sm:$0xff]   ;;  %v9856_v5 = vcombine.high %v3129_v32, %v3133_v22 }
 0x4ca   :  { %8885 = vmatprep.subr.bf16.mxu0 %v10455_v48  ;;  %6424 = vmatprep.subr.bf16.mxu1 %v9800_v62  ;;  %v10474_v48 = vld [vmem:[#allocation9 + $0x780] ss:$24 sps:$4 sm:$0xff]   ;;  %v9855_v62 = vcombine.low %v3129_v32, %v3133_v22  ;;  %v10629_v32 = vld [vmem:[#allocation9 + $0x964] ss:$24 sps:$4 sm:$0xff]  }
 0x4cb   :  { %v10530_v22 = vld [vmem:[#allocation9 + $0x1ec] ss:$24 sps:$4 sm:$0xff]  }
 0x4cd   :  { %8886 = vmatpush1.bf16.msra.mxu0 %v10453_v7  ;;  %6425 = vmatpush1.bf16.msra.mxu1 %v9799_v3  ;;  %v10477_v7 = vld [vmem:[#allocation9 + $0x7b0] ss:$24 sps:$4 sm:$0xff]  }
 0x4ce   :  { %8887 = vmatprep.subr.bf16.mxu0 %v10458_v47  ;;  %6426 = vmatprep.subr.bf16.mxu1 %v9808_v36  ;;  %v10480_v3 = vld [vmem:[#allocation9 + $0x8] ss:$24 sps:$4 sm:$0xff]   ;;  %v10485_v47 = vld [vmem:[#allocation9 + $0x7e4] ss:$24 sps:$4 sm:$0xff]  }
 0x4cf   :  { %v10488_v36 = vld [vmem:[#allocation9 + $0x3c] ss:$24 sps:$4 sm:$0xff]  }
 0x4d1   :  { %8888 = vmatpush1.bf16.msra.mxu0 %v10456_v45  ;;  %6427 = vmatpush1.bf16.msra.mxu1 %v9807_v41  ;;  %v10491_v45 = vld [vmem:[#allocation9 + $0x814] ss:$24 sps:$4 sm:$0xff]  }
 0x4d2   :  { %8889 = vmatprep.subr.bf16.mxu0 %v10461_v54  ;;  %6428 = vmatprep.subr.bf16.mxu1 %v9816_v2  ;;  %v10494_v41 = vld [vmem:[#allocation9 + $0x6c] ss:$24 sps:$4 sm:$0xff]   ;;  %v10489_v54 = vld [vmem:[#allocation9 + $0x810] ss:$24 sps:$4 sm:$0xff]  }
 0x4d3   :  { %v10492_v2 = vld [vmem:[#allocation9 + $0x68] ss:$24 sps:$4 sm:$0xff]  }
 0x4d5   :  { %8890 = vmatpush1.bf16.msra.mxu0 %v10459_v14  ;;  %6429 = vmatpush1.bf16.msra.mxu1 %v9815_v44  ;;  %v10498_v14 = vld [vmem:[#allocation9 + $0x98] ss:$24 sps:$4 sm:$0xff]   ;;  %v3154_v44 = vsub.s32 4, %v12363_v20 }
 0x4d6   :  { %8891 = vmatprep.subr.bf16.mxu0 %v10464_v56  ;;  %6430 = vmatprep.subr.bf16.mxu1 %v9824_v50  ;;  %v10503_v56 = vld [vmem:[#allocation9 + $0x874] ss:$24 sps:$4 sm:$0xff]  }
 0x4d7   :  { %v10506_v50 = vld [vmem:[#allocation9 + $0xcc] ss:$24 sps:$4 sm:$0xff]  }
 0x4d9   :  { %8892 = vmatpush1.bf16.msra.mxu0 %v10462_v4  ;;  %6431 = vmatpush1.bf16.msra.mxu1 %v9823_v29  ;;  %v3155_v4 = vrot.slane %v12396_v9, %v3154_v44  ;;  %v10509_v29 = vld [vmem:[#allocation9 + $0x8a4] ss:$24 sps:$4 sm:$0xff]  }
 0x4da   :  { %8893 = vmatprep.subr.bf16.mxu0 %v10467_v30  ;;  %6432 = vmatprep.subr.bf16.mxu1 %v9832_v24  ;;  %v10512_v30 = vld [vmem:[#allocation9 + $0xfc] ss:$24 sps:$4 sm:$0xff]   ;;  %v10507_v24 = vld [vmem:[#allocation9 + $0x8a0] ss:$24 sps:$4 sm:$0xff]  }
 0x4dd   :  { %8894 = vmatpush1.bf16.msra.mxu0 %v10465_v34  ;;  %6433 = vmatpush1.bf16.msra.mxu1 %v9831_v37  ;;  %v10518_v34 = vld [vmem:[#allocation9 + $0x12c] ss:$24 sps:$4 sm:$0xff]   ;;  %v10513_v37 = vld [vmem:[#allocation9 + $0x8d0] ss:$24 sps:$4 sm:$0xff]  }
 0x4de   :  { %v12414_v1 = vpop.f32.mrb[4].mxu0  ;;  %8895 = vmatprep.subr.bf16.mxu0 %v10470_v25  ;;  %6434 = vmatprep.subr.bf16.mxu1 %v9840_v46  ;;  %v10516_v25 = vld [vmem:[#allocation9 + $0x128] ss:$24 sps:$4 sm:$0xff]  }
 0x4df   :  { %v6280_v23 = vpop.f32.mrb[5].mxu0  ;;  %v10248_v63 = vadd.f32 %v12414_v1, %v3155_v4  ;;  %v10524_v1 = vld [vmem:[#allocation9 + $0x18c] ss:$24 sps:$4 sm:$0xff]   ;;  %v10551_v4 = vld [vmem:[#allocation9 + $0x33c] ss:$24 sps:$4 sm:$0xff]  }
 0x4e0   :  { %v10249_v19 = vadd.f32 %v6280_v23, %v3159_v27  ;;  %v6282_v28 = vpop.f32.mrb[6].mxu0  ;;  %v10515_v27 = vld [vmem:[#allocation9 + $0x8d4] ss:$24 sps:$4 sm:$0xff]  }
 0x4e1   :  { %v6283_v53 = vpop.f32.mrb[7].mxu0  ;;  %8896 = vmatpush1.bf16.msra.mxu0 %v10468_v39  ;;  %6435 = vmatpush1.bf16.msra.mxu1 %v9839_v31  ;;  %v6453_v46 = vmax.f32 %v10248_v63, 0.0  ;;  %v10521_v23 = vld [vmem:[#allocation9 + $0x15c] ss:$24 sps:$4 sm:$0xff]   ;;  %v10615_v28 = vld [vmem:[#allocation9 + $0x900] ss:$24 sps:$4 sm:$0xff]  }
 0x4e2   :  { %v6454_v33 = vmax.f32 %v10249_v19, 0.0  ;;  %8897 = vmatprep.subr.bf16.mxu0 %v10473_v17  ;;  %6436 = vmatprep.subr.bf16.mxu1 %v9848_v16  ;;  %v10519_v19 = vld [vmem:[#allocation9 + $0x158] ss:$24 sps:$4 sm:$0xff]   ;;  %v10522_v53 = vld [vmem:[#allocation9 + $0x188] ss:$24 sps:$4 sm:$0xff]  }
 0x4e3   :  { %v12426_v15 = vpack.c.bf16 %v6453_v46, %v6453_v46  ;;  %v10621_v39 = vld [vmem:[#allocation9 + $0x930] ss:$24 sps:$4 sm:$0xff]   ;;  %v10623_v31 = vld [vmem:[#allocation9 + $0x934] ss:$24 sps:$4 sm:$0xff]   ;;  %v10627_v16 = vld [vmem:[#allocation9 + $0x960] ss:$24 sps:$4 sm:$0xff]  }
 0x4e4   :  { %v12416_v52 = vpack.c.bf16 %v6454_v33, %v6454_v33  ;;  %v10527_v33 = vld [vmem:[#allocation9 + $0x1bc] ss:$24 sps:$4 sm:$0xff]   ;;  %v10525_v17 = vld [vmem:[#allocation9 + $0x1b8] ss:$24 sps:$4 sm:$0xff]  }
 0x4e5   :  { %8898 = vmatpush1.bf16.msra.mxu0 %v10471_v18  ;;  %6437 = vmatpush1.bf16.msra.mxu1 %v9847_v6  ;;  %v10528_v18 = vld [vmem:[#allocation9 + $0x1e8] ss:$24 sps:$4 sm:$0xff]   ;;  %v10555_v46 = vld [vmem:[#allocation9 + $0x398] ss:$24 sps:$4 sm:$0xff]  }
 0x4e6   :  { %8915 = vmatprep.mubr.bf16.mxu0 %v12416_v52  ;;  %8899 = vmatprep.subr.bf16.mxu0 %v10476_v11  ;;  %v10633_v6 = vld [vmem:[#allocation9 + $0x990] ss:$24 sps:$4 sm:$0xff]   ;;  %v10635_v11 = vld [vmem:[#allocation9 + $0x994] ss:$24 sps:$4 sm:$0xff]   ;;  %v10675_v63 = vld [vmem:[#allocation9 + $0xae0] ss:$24 sps:$4 sm:$0xff]  }
 0x4e7   :  { %6438 = vmatprep.subr.bf16.mxu1 %v9856_v5  ;;  %v10533_v5 = vld [vmem:[#allocation9 + $0x21c] ss:$24 sps:$4 sm:$0xff]  }
 0x4e9   :  { %8900 = vmatpush1.bf16.msra.mxu0 %v10474_v48  ;;  %6439 = vmatpush1.bf16.msra.mxu1 %v9855_v62  ;;  %v10531_v48 = vld [vmem:[#allocation9 + $0x218] ss:$24 sps:$4 sm:$0xff]  }
 0x4ea   :  { %8901 = vmatprep.subr.bf16.mxu0 %v10479_v43  ;;  %8965 = vmatprep.subr.bf16.mxu1 %v10482_v42  ;;  %v10639_v62 = vld [vmem:[#allocation9 + $0x9c0] ss:$24 sps:$4 sm:$0xff]   ;;  %v10641_v43 = vld [vmem:[#allocation9 + $0x9c4] ss:$24 sps:$4 sm:$0xff]  }
 0x4eb   :  { %v10536_v42 = vld [vmem:[#allocation9 + $0x24c] ss:$24 sps:$4 sm:$0xff]  }
 0x4ec   :  { %6441 = vmatmul.mubr.bf16.vlgmr.msra.gmra.mrb[8].mxu1 %v12343_v12  ;;  %v10495_v12 = vld [vmem:[#allocation9 + $0x840] ss:$24 sps:$4 sm:$0xff]  }
 0x4ed   :  { %8902 = vmatpush1.bf16.msra.mxu0 %v10477_v7  ;;  %8966 = vmatpush1.bf16.msra.mxu1 %v10480_v3  ;;  %v10534_v7 = vld [vmem:[#allocation9 + $0x248] ss:$24 sps:$4 sm:$0xff]  }
 0x4ee   :  { %8997 = vmatprep.mubr.bf16.mxu1 %v12380_v21  ;;  %8903 = vmatprep.subr.bf16.mxu0 %v10485_v47  ;;  %v10645_v3 = vld [vmem:[#allocation9 + $0x9f0] ss:$24 sps:$4 sm:$0xff]   ;;  %v10647_v47 = vld [vmem:[#allocation9 + $0x9f4] ss:$24 sps:$4 sm:$0xff]  }
 0x4ef   :  { %8967 = vmatprep.subr.bf16.mxu1 %v10488_v36  ;;  %v10539_v36 = vld [vmem:[#allocation9 + $0x27c] ss:$24 sps:$4 sm:$0xff]  }
 0x4f1   :  { %8904 = vmatpush1.bf16.msra.mxu0 %v10483_v0  ;;  %8968 = vmatpush1.bf16.msra.mxu1 %v10486_v49  ;;  %v10537_v0 = vld [vmem:[#allocation9 + $0x278] ss:$24 sps:$4 sm:$0xff]  }
 0x4f2   :  { %8905 = vmatprep.subr.bf16.mxu0 %v10491_v45  ;;  %8969 = vmatprep.subr.bf16.mxu1 %v10494_v41  ;;  %v10651_v49 = vld [vmem:[#allocation9 + $0xa20] ss:$24 sps:$4 sm:$0xff]   ;;  %v10653_v45 = vld [vmem:[#allocation9 + $0xa24] ss:$24 sps:$4 sm:$0xff]  }
 0x4f3   :  { %v10542_v41 = vld [vmem:[#allocation9 + $0x2ac] ss:$24 sps:$4 sm:$0xff]  }
 0x4f5   :  { %8906 = vmatpush1.bf16.msra.mxu0 %v10489_v54  ;;  %8970 = vmatpush1.bf16.msra.mxu1 %v10492_v2  ;;  %v10540_v54 = vld [vmem:[#allocation9 + $0x2a8] ss:$24 sps:$4 sm:$0xff]  }
 0x4f6   :  { %8907 = vmatprep.subr.bf16.mxu0 %v10497_v60  ;;  %8971 = vmatprep.subr.bf16.mxu1 %v10500_v40  ;;  %v10657_v2 = vld [vmem:[#allocation9 + $0xa50] ss:$24 sps:$4 sm:$0xff]   ;;  %v10659_v60 = vld [vmem:[#allocation9 + $0xa54] ss:$24 sps:$4 sm:$0xff]  }
 0x4f7   :  { %v10545_v40 = vld [vmem:[#allocation9 + $0x2dc] ss:$24 sps:$4 sm:$0xff]  }
 0x4f9   :  { %8908 = vmatpush1.bf16.msra.mxu0 %v10495_v12  ;;  %8972 = vmatpush1.bf16.msra.mxu1 %v10498_v14  ;;  %v10543_v12 = vld [vmem:[#allocation9 + $0x2d8] ss:$24 sps:$4 sm:$0xff]  }
 0x4fa   :  { %8909 = vmatprep.subr.bf16.mxu0 %v10503_v56  ;;  %8973 = vmatprep.subr.bf16.mxu1 %v10506_v50  ;;  %v10663_v14 = vld [vmem:[#allocation9 + $0xa80] ss:$24 sps:$4 sm:$0xff]   ;;  %v10665_v56 = vld [vmem:[#allocation9 + $0xa84] ss:$24 sps:$4 sm:$0xff]  }
 0x4fb   :  { %v10548_v50 = vld [vmem:[#allocation9 + $0x30c] ss:$24 sps:$4 sm:$0xff]  }
 0x4fd   :  { %8910 = vmatpush1.bf16.msra.mxu0 %v10501_v26  ;;  %8974 = vmatpush1.bf16.msra.mxu1 %v10504_v10  ;;  %v10546_v26 = vld [vmem:[#allocation9 + $0x308] ss:$24 sps:$4 sm:$0xff]   ;;  %v10671_v10 = vld [vmem:[#allocation9 + $0xab4] ss:$24 sps:$4 sm:$0xff]  }
 0x4fe   :  { %8911 = vmatprep.subr.bf16.mxu0 %v10509_v29  ;;  %8975 = vmatprep.subr.bf16.mxu1 %v10512_v30  ;;  %v10669_v29 = vld [vmem:[#allocation9 + $0xab0] ss:$24 sps:$4 sm:$0xff]  }
 0x4ff   :  { %v10549_v30 = vld [vmem:[#allocation9 + $0x338] ss:$24 sps:$4 sm:$0xff]  }
 0x501   :  { %8912 = vmatpush1.bf16.msra.mxu0 %v10507_v24  ;;  %8976 = vmatpush1.bf16.msra.mxu1 %v10510_v13  ;;  %v10677_v24 = vld [vmem:[#allocation9 + $0xae4] ss:$24 sps:$4 sm:$0xff]  }
 0x502   :  { %8913 = vmatprep.subr.bf16.mxu0 %v10515_v27  ;;  %8977 = vmatprep.subr.bf16.mxu1 %v10518_v34  ;;  %v10554_v13 = vld [vmem:[#allocation9 + $0x36c] ss:$24 sps:$4 sm:$0xff]   ;;  %v10552_v27 = vld [vmem:[#allocation9 + $0x368] ss:$24 sps:$4 sm:$0xff]  }
 0x503   :  { %v10683_v34 = vld [vmem:[#allocation9 + $0xb14] ss:$24 sps:$4 sm:$0xff]  }
 0x505   :  { %8914 = vmatpush1.bf16.msra.mxu0 %v10513_v37  ;;  %8978 = vmatpush1.bf16.msra.mxu1 %v10516_v25  ;;  %v10557_v37 = vld [vmem:[#allocation9 + $0x39c] ss:$24 sps:$4 sm:$0xff]   ;;  %v10681_v25 = vld [vmem:[#allocation9 + $0xb10] ss:$24 sps:$4 sm:$0xff]  }
 0x506   :  { %8979 = vmatprep.subr.bf16.mxu1 %v10521_v23  ;;  %8924 = vmatprep.subr.bf16.mxu0 %v10617_v59  ;;  %v10689_v23 = vld [vmem:[#allocation9 + $0xb44] ss:$24 sps:$4 sm:$0xff]   ;;  %v10558_v59 = vld [vmem:[#allocation9 + $0x3c8] ss:$24 sps:$4 sm:$0xff]  }
 0x508   :  { %8916 = vmatmul.mubr.bf16.vlgmr.msra.gmra.mrb[8].mxu0 %v12426_v15 }
 0x509   :  { %8980 = vmatpush1.bf16.msra.mxu1 %v10519_v19  ;;  %8925 = vmatpush1.bf16.msra.mxu0 %v10615_v28  ;;  %v10560_v19 = vld [vmem:[#allocation9 + $0x3cc] ss:$24 sps:$4 sm:$0xff]   ;;  %v10687_v28 = vld [vmem:[#allocation9 + $0xb40] ss:$24 sps:$4 sm:$0xff]  }
 0x50a   :  { %8981 = vmatprep.subr.bf16.mxu1 %v10524_v1  ;;  %8926 = vmatprep.subr.bf16.mxu0 %v10623_v31  ;;  %v10695_v1 = vld [vmem:[#allocation9 + $0xb74] ss:$24 sps:$4 sm:$0xff]   ;;  %v10561_v31 = vld [vmem:[#allocation9 + $0x3f8] ss:$24 sps:$4 sm:$0xff]  }
 0x50d   :  { %8982 = vmatpush1.bf16.msra.mxu1 %v10522_v53  ;;  %8927 = vmatpush1.bf16.msra.mxu0 %v10621_v39  ;;  %v10563_v53 = vld [vmem:[#allocation9 + $0x3fc] ss:$24 sps:$4 sm:$0xff]   ;;  %v10693_v39 = vld [vmem:[#allocation9 + $0xb70] ss:$24 sps:$4 sm:$0xff]  }
 0x50e   :  { %8983 = vmatprep.subr.bf16.mxu1 %v10527_v33  ;;  %8928 = vmatprep.subr.bf16.mxu0 %v10629_v32  ;;  %v10566_v33 = vld [vmem:[#allocation9 + $0x42c] ss:$24 sps:$4 sm:$0xff]   ;;  %v10699_v32 = vld [vmem:[#allocation9 + $0xba0] ss:$24 sps:$4 sm:$0xff]  }
 0x511   :  { %8984 = vmatpush1.bf16.msra.mxu1 %v10525_v17  ;;  %8929 = vmatpush1.bf16.msra.mxu0 %v10627_v16  ;;  %v10564_v17 = vld [vmem:[#allocation9 + $0x428] ss:$24 sps:$4 sm:$0xff]   ;;  %v10569_v16 = vld [vmem:[#allocation9 + $0x45c] ss:$24 sps:$4 sm:$0xff]  }
 0x512   :  { %8985 = vmatprep.subr.bf16.mxu1 %v10530_v22  ;;  %8930 = vmatprep.subr.bf16.mxu0 %v10635_v11  ;;  %v10701_v22 = vld [vmem:[#allocation9 + $0xba4] ss:$24 sps:$4 sm:$0xff]   ;;  %v10707_v11 = vld [vmem:[#allocation9 + $0xbd4] ss:$24 sps:$4 sm:$0xff]  }
 0x515   :  { %8986 = vmatpush1.bf16.msra.mxu1 %v10528_v18  ;;  %8931 = vmatpush1.bf16.msra.mxu0 %v10633_v6  ;;  %v10567_v18 = vld [vmem:[#allocation9 + $0x458] ss:$24 sps:$4 sm:$0xff]   ;;  %v10572_v6 = vld [vmem:[#allocation9 + $0x48c] ss:$24 sps:$4 sm:$0xff]  }
 0x516   :  { %8987 = vmatprep.subr.bf16.mxu1 %v10533_v5  ;;  %8932 = vmatprep.subr.bf16.mxu0 %v10641_v43  ;;  %v10705_v5 = vld [vmem:[#allocation9 + $0xbd0] ss:$24 sps:$4 sm:$0xff]   ;;  %v10575_v43 = vld [vmem:[#allocation9 + $0x4bc] ss:$24 sps:$4 sm:$0xff]  }
 0x519   :  { %8988 = vmatpush1.bf16.msra.mxu1 %v10531_v48  ;;  %8933 = vmatpush1.bf16.msra.mxu0 %v10639_v62  ;;  %v10713_v48 = vld [vmem:[#allocation9 + $0x14] ss:$24 sps:$4 sm:$0xff]   ;;  %v10570_v62 = vld [vmem:[#allocation9 + $0x488] ss:$24 sps:$4 sm:$0xff]  }
 0x51a   :  { %8989 = vmatprep.subr.bf16.mxu1 %v10536_v42  ;;  %8934 = vmatprep.subr.bf16.mxu0 %v10647_v47  ;;  %v10573_v42 = vld [vmem:[#allocation9 + $0x4b8] ss:$24 sps:$4 sm:$0xff]   ;;  %v10581_v47 = vld [vmem:[#allocation9 + $0x51c] ss:$24 sps:$4 sm:$0xff]  }
 0x51d   :  { %8990 = vmatpush1.bf16.msra.mxu1 %v10534_v7  ;;  %8935 = vmatpush1.bf16.msra.mxu0 %v10645_v3  ;;  %v10578_v7 = vld [vmem:[#allocation9 + $0x4ec] ss:$24 sps:$4 sm:$0xff]   ;;  %v10576_v3 = vld [vmem:[#allocation9 + $0x4e8] ss:$24 sps:$4 sm:$0xff]  }
 0x51e   :  { %8991 = vmatprep.subr.bf16.mxu1 %v10539_v36  ;;  %8936 = vmatprep.subr.bf16.mxu0 %v10653_v45  ;;  %v10579_v36 = vld [vmem:[#allocation9 + $0x518] ss:$24 sps:$4 sm:$0xff]   ;;  %v10587_v45 = vld [vmem:[#allocation9 + $0x57c] ss:$24 sps:$4 sm:$0xff]  }
 0x521   :  { %8992 = vmatpush1.bf16.msra.mxu1 %v10537_v0  ;;  %8937 = vmatpush1.bf16.msra.mxu0 %v10651_v49  ;;  %v10584_v0 = vld [vmem:[#allocation9 + $0x54c] ss:$24 sps:$4 sm:$0xff]   ;;  %v10582_v49 = vld [vmem:[#allocation9 + $0x548] ss:$24 sps:$4 sm:$0xff]  }
 0x522   :  { %8993 = vmatprep.subr.bf16.mxu1 %v10542_v41  ;;  %8938 = vmatprep.subr.bf16.mxu0 %v10659_v60  ;;  %v10585_v41 = vld [vmem:[#allocation9 + $0x578] ss:$24 sps:$4 sm:$0xff]   ;;  %v10593_v60 = vld [vmem:[#allocation9 + $0x5dc] ss:$24 sps:$4 sm:$0xff]  }
 0x525   :  { %8994 = vmatpush1.bf16.msra.mxu1 %v10540_v54  ;;  %8939 = vmatpush1.bf16.msra.mxu0 %v10657_v2  ;;  %v10590_v54 = vld [vmem:[#allocation9 + $0x5ac] ss:$24 sps:$4 sm:$0xff]   ;;  %v10588_v2 = vld [vmem:[#allocation9 + $0x5a8] ss:$24 sps:$4 sm:$0xff]  }
 0x526   :  { %8995 = vmatprep.subr.bf16.mxu1 %v10545_v40  ;;  %8940 = vmatprep.subr.bf16.mxu0 %v10665_v56  ;;  %v10591_v40 = vld [vmem:[#allocation9 + $0x5d8] ss:$24 sps:$4 sm:$0xff]   ;;  %v10599_v56 = vld [vmem:[#allocation9 + $0x63c] ss:$24 sps:$4 sm:$0xff]  }
 0x529   :  { %8996 = vmatpush1.bf16.msra.mxu1 %v10543_v12  ;;  %8941 = vmatpush1.bf16.msra.mxu0 %v10663_v14  ;;  %v10596_v12 = vld [vmem:[#allocation9 + $0x60c] ss:$24 sps:$4 sm:$0xff]   ;;  %v10594_v14 = vld [vmem:[#allocation9 + $0x608] ss:$24 sps:$4 sm:$0xff]  }
 0x52a   :  { %9006 = vmatprep.subr.bf16.mxu1 %v10548_v50  ;;  %8942 = vmatprep.subr.bf16.mxu0 %v10671_v10  ;;  %v10597_v50 = vld [vmem:[#allocation9 + $0x638] ss:$24 sps:$4 sm:$0xff]   ;;  %v10600_v10 = vld [vmem:[#allocation9 + $0x668] ss:$24 sps:$4 sm:$0xff]  }
 0x52c   :  { %8998 = vmatmul.mubr.bf16.vlgmr.msra.gmra.mrb[12].mxu1 %v12387_v55 }
 0x52d   :  { %9007 = vmatpush1.bf16.msra.mxu1 %v10546_v26  ;;  %9038 = vmatprep.mubr.bf16.mxu1 %v12404_v58  ;;  %v10602_v26 = vld [vmem:[#allocation9 + $0x66c] ss:$24 sps:$4 sm:$0xff]  }
 0x52e   :  { %9008 = vmatprep.subr.bf16.mxu1 %v10551_v4  ;;  %8943 = vmatpush1.bf16.msra.mxu0 %v10669_v29  ;;  %v10605_v4 = vld [vmem:[#allocation9 + $0x69c] ss:$24 sps:$4 sm:$0xff]   ;;  %v10603_v29 = vld [vmem:[#allocation9 + $0x698] ss:$24 sps:$4 sm:$0xff]  }
 0x52f   :  { %8944 = vmatprep.subr.bf16.mxu0 %v10677_v24  ;;  %v10606_v24 = vld [vmem:[#allocation9 + $0x6c8] ss:$24 sps:$4 sm:$0xff]  }
 0x531   :  { %9009 = vmatpush1.bf16.msra.mxu1 %v10549_v30  ;;  %v10608_v30 = vld [vmem:[#allocation9 + $0x6cc] ss:$24 sps:$4 sm:$0xff]  }
 0x532   :  { %9010 = vmatprep.subr.bf16.mxu1 %v10554_v13  ;;  %8945 = vmatpush1.bf16.msra.mxu0 %v10675_v63  ;;  %v10611_v13 = vld [vmem:[#allocation9 + $0x6fc] ss:$24 sps:$4 sm:$0xff]   ;;  %v10609_v63 = vld [vmem:[#allocation9 + $0x6f8] ss:$24 sps:$4 sm:$0xff]  }
 0x533   :  { %8946 = vmatprep.subr.bf16.mxu0 %v10683_v34  ;;  %v10612_v34 = vld [vmem:[#allocation9 + $0x728] ss:$24 sps:$4 sm:$0xff]  }
 0x535   :  { %9011 = vmatpush1.bf16.msra.mxu1 %v10552_v27  ;;  %v10614_v27 = vld [vmem:[#allocation9 + $0x72c] ss:$24 sps:$4 sm:$0xff]  }
 0x536   :  { %9012 = vmatprep.subr.bf16.mxu1 %v10557_v37  ;;  %8947 = vmatpush1.bf16.msra.mxu0 %v10681_v25  ;;  %v10620_v37 = vld [vmem:[#allocation9 + $0x75c] ss:$24 sps:$4 sm:$0xff]   ;;  %v10618_v25 = vld [vmem:[#allocation9 + $0x758] ss:$24 sps:$4 sm:$0xff]  }
 0x537   :  { %8948 = vmatprep.subr.bf16.mxu0 %v10689_v23  ;;  %v10624_v23 = vld [vmem:[#allocation9 + $0x788] ss:$24 sps:$4 sm:$0xff]  }
 0x539   :  { %9013 = vmatpush1.bf16.msra.mxu1 %v10555_v46  ;;  %v10626_v46 = vld [vmem:[#allocation9 + $0x78c] ss:$24 sps:$4 sm:$0xff]  }
 0x53a   :  { %9014 = vmatprep.subr.bf16.mxu1 %v10560_v19  ;;  %8949 = vmatpush1.bf16.msra.mxu0 %v10687_v28  ;;  %v10632_v19 = vld [vmem:[#allocation9 + $0x7bc] ss:$24 sps:$4 sm:$0xff]   ;;  %v10630_v28 = vld [vmem:[#allocation9 + $0x7b8] ss:$24 sps:$4 sm:$0xff]  }
 0x53b   :  { %8950 = vmatprep.subr.bf16.mxu0 %v10695_v1  ;;  %v10636_v1 = vld [vmem:[#allocation9 + $0x7e8] ss:$24 sps:$4 sm:$0xff]  }
 0x53d   :  { %9015 = vmatpush1.bf16.msra.mxu1 %v10558_v59  ;;  %v10638_v59 = vld [vmem:[#allocation9 + $0x7ec] ss:$24 sps:$4 sm:$0xff]  }
 0x53e   :  { %9016 = vmatprep.subr.bf16.mxu1 %v10563_v53  ;;  %8951 = vmatpush1.bf16.msra.mxu0 %v10693_v39  ;;  %v10644_v53 = vld [vmem:[#allocation9 + $0x81c] ss:$24 sps:$4 sm:$0xff]   ;;  %v10642_v39 = vld [vmem:[#allocation9 + $0x818] ss:$24 sps:$4 sm:$0xff]  }
 0x53f   :  { %8952 = vmatprep.subr.bf16.mxu0 %v10701_v22  ;;  %v10660_v22 = vld [vmem:[#allocation9 + $0x8a8] ss:$24 sps:$4 sm:$0xff]  }
 0x541   :  { %9017 = vmatpush1.bf16.msra.mxu1 %v10561_v31  ;;  %v10650_v31 = vld [vmem:[#allocation9 + $0x84c] ss:$24 sps:$4 sm:$0xff]  }
 0x542   :  { %9018 = vmatprep.subr.bf16.mxu1 %v10566_v33  ;;  %8953 = vmatpush1.bf16.msra.mxu0 %v10699_v32  ;;  %v10648_v33 = vld [vmem:[#allocation9 + $0x848] ss:$24 sps:$4 sm:$0xff]   ;;  %v10662_v32 = vld [vmem:[#allocation9 + $0x8ac] ss:$24 sps:$4 sm:$0xff]  }
 0x543   :  { %8954 = vmatprep.subr.bf16.mxu0 %v10707_v11  ;;  %v10674_v11 = vld [vmem:[#allocation9 + $0x90c] ss:$24 sps:$4 sm:$0xff]  }
 0x545   :  { %9019 = vmatpush1.bf16.msra.mxu1 %v10564_v17  ;;  %v10656_v17 = vld [vmem:[#allocation9 + $0x87c] ss:$24 sps:$4 sm:$0xff]  }
 0x546   :  { %9020 = vmatprep.subr.bf16.mxu1 %v10569_v16  ;;  %8955 = vmatpush1.bf16.msra.mxu0 %v10705_v5  ;;  %v10654_v16 = vld [vmem:[#allocation9 + $0x878] ss:$24 sps:$4 sm:$0xff]   ;;  %v10672_v5 = vld [vmem:[#allocation9 + $0x908] ss:$24 sps:$4 sm:$0xff]  }
 0x547   :  { %9129 = vmatprep.subr.bf16.mxu0 %v10713_v48  ;;  %v10680_v48 = vld [vmem:[#allocation9 + $0x93c] ss:$24 sps:$4 sm:$0xff]  }
 0x549   :  { %9021 = vmatpush1.bf16.msra.mxu1 %v10567_v18  ;;  %v10668_v18 = vld [vmem:[#allocation9 + $0x8dc] ss:$24 sps:$4 sm:$0xff]  }
 0x54a   :  { %9022 = vmatprep.subr.bf16.mxu1 %v10572_v6  ;;  %v10666_v6 = vld [vmem:[#allocation9 + $0x8d8] ss:$24 sps:$4 sm:$0xff]  }
 0x54d   :  { %9023 = vmatpush1.bf16.msra.mxu1 %v10570_v62  ;;  %v10678_v62 = vld [vmem:[#allocation9 + $0x938] ss:$24 sps:$4 sm:$0xff]  }
 0x54e   :  { %9024 = vmatprep.subr.bf16.mxu1 %v10575_v43  ;;  %v10686_v43 = vld [vmem:[#allocation9 + $0x96c] ss:$24 sps:$4 sm:$0xff]  }
 0x551   :  { %9025 = vmatpush1.bf16.msra.mxu1 %v10573_v42  ;;  %v10684_v42 = vld [vmem:[#allocation9 + $0x968] ss:$24 sps:$4 sm:$0xff]  }
 0x552   :  { %9026 = vmatprep.subr.bf16.mxu1 %v10578_v7  ;;  %v10692_v7 = vld [vmem:[#allocation9 + $0x99c] ss:$24 sps:$4 sm:$0xff]  }
 0x555   :  { %9027 = vmatpush1.bf16.msra.mxu1 %v10576_v3  ;;  %v10690_v3 = vld [vmem:[#allocation9 + $0x998] ss:$24 sps:$4 sm:$0xff]  }
 0x556   :  { %9028 = vmatprep.subr.bf16.mxu1 %v10581_v47  ;;  %v10698_v47 = vld [vmem:[#allocation9 + $0x9cc] ss:$24 sps:$4 sm:$0xff]  }
 0x559   :  { %9029 = vmatpush1.bf16.msra.mxu1 %v10579_v36  ;;  %v3162_v36 = vsub.s32 6, %v12363_v20 }
 0x55a   :  { %9030 = vmatprep.subr.bf16.mxu1 %v10584_v0  ;;  %v10696_v0 = vld [vmem:[#allocation9 + $0x9c8] ss:$24 sps:$4 sm:$0xff]  }
 0x55d   :  { %9031 = vmatpush1.bf16.msra.mxu1 %v10582_v49  ;;  %v3166_v49 = vsub.s32 7, %v12363_v20 }
 0x55e   :  { %9032 = vmatprep.subr.bf16.mxu1 %v10587_v45  ;;  %v10704_v45 = vld [vmem:[#allocation9 + $0x9fc] ss:$24 sps:$4 sm:$0xff]  }
 0x561   :  { %9033 = vmatpush1.bf16.msra.mxu1 %v10585_v41  ;;  %v3163_v41 = vrot.slane %v12396_v9, %v3162_v36  ;;  %v10759_v36 = vld [vmem:[#allocation9 + $0x190] ss:$24 sps:$4 sm:$0xff]  }
 0x562   :  { %9034 = vmatprep.subr.bf16.mxu1 %v10590_v54  ;;  %v3167_v54 = vrot.slane %v12396_v9, %v3166_v49  ;;  %v10714_v9 = vld [vmem:[#allocation9 + $0xa58] ss:$24 sps:$4 sm:$0xff]   ;;  %v10767_v49 = vld [vmem:[#allocation9 + $0x1c4] ss:$24 sps:$4 sm:$0xff]  }
 0x565   :  { %9035 = vmatpush1.bf16.msra.mxu1 %v10588_v2  ;;  %v10702_v2 = vld [vmem:[#allocation9 + $0x9f8] ss:$24 sps:$4 sm:$0xff]  }
 0x566   :  { %9036 = vmatprep.subr.bf16.mxu1 %v10593_v60  ;;  %v10710_v60 = vld [vmem:[#allocation9 + $0xa2c] ss:$24 sps:$4 sm:$0xff]  }
 0x569   :  { %9037 = vmatpush1.bf16.msra.mxu1 %v10591_v40 }
 0x56a   :  { %9047 = vmatprep.subr.bf16.mxu1 %v10596_v12 }
 0x56c   :  { %9039 = vmatmul.mubr.bf16.vlgmr.msra.gmra.mrb[12].mxu1 %v12406_v57 }
 0x56d   :  { %9048 = vmatpush1.bf16.msra.mxu1 %v10594_v14  ;;  %9079 = vmatprep.mubr.bf16.mxu1 %v12416_v52 }
 0x56e   :  { %9049 = vmatprep.subr.bf16.mxu1 %v10599_v56 }
 0x571   :  { %9050 = vmatpush1.bf16.msra.mxu1 %v10597_v50 }
 0x572   :  { %9051 = vmatprep.subr.bf16.mxu1 %v10602_v26  ;;  %v10708_v26 = vld [vmem:[#allocation9 + $0xa28] ss:$24 sps:$4 sm:$0xff]  }
 0x575   :  { %9052 = vmatpush1.bf16.msra.mxu1 %v10600_v10 }
 0x576   :  { %9053 = vmatprep.subr.bf16.mxu1 %v10605_v4 }
 0x579   :  { %9054 = vmatpush1.bf16.msra.mxu1 %v10603_v29  ;;  %v10716_v29 = vld [vmem:[#allocation9 + $0xa5c] ss:$24 sps:$4 sm:$0xff]  }
 0x57a   :  { %9055 = vmatprep.subr.bf16.mxu1 %v10608_v30 }
 0x57d   :  { %9056 = vmatpush1.bf16.msra.mxu1 %v10606_v24 }
 0x57e   :  { %9057 = vmatprep.subr.bf16.mxu1 %v10611_v13  ;;  %v10711_v13 = vld [vmem:[#allocation9 + $0x10] ss:$24 sps:$4 sm:$0xff]  }
 0x581   :  { %9058 = vmatpush1.bf16.msra.mxu1 %v10609_v63 }
 0x582   :  { %9059 = vmatprep.subr.bf16.mxu1 %v10614_v27  ;;  %v10719_v27 = vld [vmem:[#allocation9 + $0x44] ss:$24 sps:$4 sm:$0xff]  }
 0x585   :  { %9060 = vmatpush1.bf16.msra.mxu1 %v10612_v34  ;;  %v10722_v34 = vld [vmem:[#allocation9 + $0xa8c] ss:$24 sps:$4 sm:$0xff]  }
 0x586   :  { %9061 = vmatprep.subr.bf16.mxu1 %v10620_v37  ;;  %v10717_v37 = vld [vmem:[#allocation9 + $0x40] ss:$24 sps:$4 sm:$0xff]  }
 0x589   :  { %9062 = vmatpush1.bf16.msra.mxu1 %v10618_v25  ;;  %v10720_v25 = vld [vmem:[#allocation9 + $0xa88] ss:$24 sps:$4 sm:$0xff]  }
 0x58a   :  { %9063 = vmatprep.subr.bf16.mxu1 %v10626_v46  ;;  %v10725_v46 = vld [vmem:[#allocation9 + $0x74] ss:$24 sps:$4 sm:$0xff]  }
 0x58d   :  { %9064 = vmatpush1.bf16.msra.mxu1 %v10624_v23  ;;  %v10728_v23 = vld [vmem:[#allocation9 + $0xabc] ss:$24 sps:$4 sm:$0xff]  }
 0x58e   :  { %9065 = vmatprep.subr.bf16.mxu1 %v10632_v19  ;;  %v10723_v19 = vld [vmem:[#allocation9 + $0x70] ss:$24 sps:$4 sm:$0xff]  }
 0x591   :  { %9066 = vmatpush1.bf16.msra.mxu1 %v10630_v28  ;;  %v10726_v28 = vld [vmem:[#allocation9 + $0xab8] ss:$24 sps:$4 sm:$0xff]  }
 0x592   :  { %9067 = vmatprep.subr.bf16.mxu1 %v10638_v59  ;;  %v10731_v59 = vld [vmem:[#allocation9 + $0xa4] ss:$24 sps:$4 sm:$0xff]  }
 0x595   :  { %9068 = vmatpush1.bf16.msra.mxu1 %v10636_v1  ;;  %v10734_v1 = vld [vmem:[#allocation9 + $0xaec] ss:$24 sps:$4 sm:$0xff]  }
 0x596   :  { %9069 = vmatprep.subr.bf16.mxu1 %v10644_v53  ;;  %v10729_v53 = vld [vmem:[#allocation9 + $0xa0] ss:$24 sps:$4 sm:$0xff]  }
 0x599   :  { %9070 = vmatpush1.bf16.msra.mxu1 %v10642_v39  ;;  %v10732_v39 = vld [vmem:[#allocation9 + $0xae8] ss:$24 sps:$4 sm:$0xff]  }
 0x59a   :  { %9071 = vmatprep.subr.bf16.mxu1 %v10650_v31  ;;  %v10737_v31 = vld [vmem:[#allocation9 + $0xd4] ss:$24 sps:$4 sm:$0xff]  }
 0x59d   :  { %9072 = vmatpush1.bf16.msra.mxu1 %v10648_v33  ;;  %v10735_v33 = vld [vmem:[#allocation9 + $0xd0] ss:$24 sps:$4 sm:$0xff]  }
 0x59e   :  { %9073 = vmatprep.subr.bf16.mxu1 %v10656_v17  ;;  %v10738_v17 = vld [vmem:[#allocation9 + $0xb18] ss:$24 sps:$4 sm:$0xff]  }
 0x5a1   :  { %9074 = vmatpush1.bf16.msra.mxu1 %v10654_v16  ;;  %v10743_v16 = vld [vmem:[#allocation9 + $0x104] ss:$24 sps:$4 sm:$0xff]  }
 0x5a2   :  { %9075 = vmatprep.subr.bf16.mxu1 %v10662_v32  ;;  %v10746_v32 = vld [vmem:[#allocation9 + $0xb4c] ss:$24 sps:$4 sm:$0xff]  }
 0x5a5   :  { %9076 = vmatpush1.bf16.msra.mxu1 %v10660_v22  ;;  %v10741_v22 = vld [vmem:[#allocation9 + $0x100] ss:$24 sps:$4 sm:$0xff]  }
 0x5a6   :  { %9077 = vmatprep.subr.bf16.mxu1 %v10668_v18  ;;  %v10744_v18 = vld [vmem:[#allocation9 + $0xb48] ss:$24 sps:$4 sm:$0xff]  }
 0x5a9   :  { %9078 = vmatpush1.bf16.msra.mxu1 %v10666_v6  ;;  %v10749_v6 = vld [vmem:[#allocation9 + $0x134] ss:$24 sps:$4 sm:$0xff]  }
 0x5aa   :  { %9088 = vmatprep.subr.bf16.mxu1 %v10674_v11  ;;  %v10752_v11 = vld [vmem:[#allocation9 + $0xb7c] ss:$24 sps:$4 sm:$0xff]  }
 0x5ac   :  { %9080 = vmatmul.mubr.bf16.vlgmr.msra.gmra.mrb[12].mxu1 %v12426_v15 }
 0x5ad   :  { %9089 = vmatpush1.bf16.msra.mxu1 %v10672_v5  ;;  %v10747_v5 = vld [vmem:[#allocation9 + $0x130] ss:$24 sps:$4 sm:$0xff]  }
 0x5ae   :  { %9090 = vmatprep.subr.bf16.mxu1 %v10680_v48  ;;  %v10750_v48 = vld [vmem:[#allocation9 + $0xb78] ss:$24 sps:$4 sm:$0xff]  }
 0x5b1   :  { %9091 = vmatpush1.bf16.msra.mxu1 %v10678_v62  ;;  %v10755_v62 = vld [vmem:[#allocation9 + $0x164] ss:$24 sps:$4 sm:$0xff]  }
 0x5b2   :  { %9092 = vmatprep.subr.bf16.mxu1 %v10686_v43  ;;  %v10758_v43 = vld [vmem:[#allocation9 + $0xbac] ss:$24 sps:$4 sm:$0xff]  }
 0x5b5   :  { %9093 = vmatpush1.bf16.msra.mxu1 %v10684_v42  ;;  %v10753_v42 = vld [vmem:[#allocation9 + $0x160] ss:$24 sps:$4 sm:$0xff]  }
 0x5b6   :  { %9094 = vmatprep.subr.bf16.mxu1 %v10692_v7  ;;  %v10756_v7 = vld [vmem:[#allocation9 + $0xba8] ss:$24 sps:$4 sm:$0xff]  }
 0x5b9   :  { %9095 = vmatpush1.bf16.msra.mxu1 %v10690_v3  ;;  %v10761_v3 = vld [vmem:[#allocation9 + $0x194] ss:$24 sps:$4 sm:$0xff]  }
 0x5ba   :  { %9096 = vmatprep.subr.bf16.mxu1 %v10698_v47  ;;  %v10764_v47 = vld [vmem:[#allocation9 + $0xbdc] ss:$24 sps:$4 sm:$0xff]  }
 0x5bd   :  { %9097 = vmatpush1.bf16.msra.mxu1 %v10696_v0  ;;  %v10762_v0 = vld [vmem:[#allocation9 + $0xbd8] ss:$24 sps:$4 sm:$0xff]  }
 0x5be   :  { %9098 = vmatprep.subr.bf16.mxu1 %v10704_v45  ;;  %v10765_v45 = vld [vmem:[#allocation9 + $0x1c0] ss:$24 sps:$4 sm:$0xff]  }
 0x5bf   :  { %v6442_v40 = vpop.f32.mrb[8].mxu1 }
 0x5c0   :  { %v10250_v12 = vadd.f32 %v6442_v40, %v3163_v41  ;;  %v6444_v14 = vpop.f32.mrb[9].mxu1  ;;  %v10770_v41 = vld [vmem:[#allocation9 + $0x1f4] ss:$24 sps:$4 sm:$0xff]  }
 0x5c1   :  { %v10251_v56 = vadd.f32 %v6444_v14, %v3167_v54  ;;  %v6446_v50 = vpop.f32.mrb[10].mxu1  ;;  %9099 = vmatpush1.bf16.msra.mxu1 %v10702_v2  ;;  %v10768_v54 = vld [vmem:[#allocation9 + $0x1f0] ss:$24 sps:$4 sm:$0xff]   ;;  %v10773_v2 = vld [vmem:[#allocation9 + $0x224] ss:$24 sps:$4 sm:$0xff]  }
 0x5c2   :  { %v6455_v10 = vmax.f32 %v10250_v12, 0.0  ;;  %v6447_v4 = vpop.f32.mrb[11].mxu1  ;;  %9100 = vmatprep.subr.bf16.mxu1 %v10710_v60  ;;  %v10771_v60 = vld [vmem:[#allocation9 + $0x220] ss:$24 sps:$4 sm:$0xff]   ;;  %v10776_v40 = vld [vmem:[#allocation9 + $0x254] ss:$24 sps:$4 sm:$0xff]  }
 0x5c3   :  { %v6456_v30 = vmax.f32 %v10251_v56, 0.0  ;;  %v10774_v12 = vld [vmem:[#allocation9 + $0x250] ss:$24 sps:$4 sm:$0xff]   ;;  %v10779_v14 = vld [vmem:[#allocation9 + $0x284] ss:$24 sps:$4 sm:$0xff]  }
 0x5c4   :  { %v12440_v63 = vpack.c.bf16 %v6455_v10, %v6455_v10  ;;  %v10777_v56 = vld [vmem:[#allocation9 + $0x280] ss:$24 sps:$4 sm:$0xff]   ;;  %v10782_v50 = vld [vmem:[#allocation9 + $0x2b4] ss:$24 sps:$4 sm:$0xff]   ;;  %v10785_v10 = vld [vmem:[#allocation9 + $0x2e4] ss:$24 sps:$4 sm:$0xff]  }
 0x5c5   :  { %v12438_v24 = vpack.c.bf16 %v6456_v30, %v6456_v30  ;;  %9101 = vmatpush1.bf16.msra.mxu1 %v10708_v26  ;;  %v10780_v26 = vld [vmem:[#allocation9 + $0x2b0] ss:$24 sps:$4 sm:$0xff]   ;;  %v10783_v4 = vld [vmem:[#allocation9 + $0x2e0] ss:$24 sps:$4 sm:$0xff]  }
 0x5c6   :  { %9102 = vmatprep.subr.bf16.mxu1 %v10716_v29  ;;  %v10788_v29 = vld [vmem:[#allocation9 + $0x314] ss:$24 sps:$4 sm:$0xff]   ;;  %v10786_v30 = vld [vmem:[#allocation9 + $0x310] ss:$24 sps:$4 sm:$0xff]  }
 0x5c7   :  { %8956 = vmatprep.mubr.bf16.mxu0 %v12438_v24  ;;  %9120 = vmatprep.mubr.bf16.mxu1 %v12438_v24 }
 0x5c8   :  { %8957 = vmatmul.mubr.bf16.vlgmr.msra.gmra.mrb[8].mxu0 %v12440_v63 }
 0x5c9   :  { %9130 = vmatpush1.bf16.msra.mxu0 %v10711_v13  ;;  %9103 = vmatpush1.bf16.msra.mxu1 %v10714_v9  ;;  %v10791_v13 = vld [vmem:[#allocation9 + $0x344] ss:$24 sps:$4 sm:$0xff]   ;;  %v10789_v9 = vld [vmem:[#allocation9 + $0x340] ss:$24 sps:$4 sm:$0xff]  }
 0x5ca   :  { %9161 = vmatprep.mubr.bf16.mxu0 %v12380_v21  ;;  %9131 = vmatprep.subr.bf16.mxu0 %v10719_v27  ;;  %v10740_v21 = vld [vmem:[#allocation9 + $0xb1c] ss:$24 sps:$4 sm:$0xff]  }
 0x5cb   :  { %9104 = vmatprep.subr.bf16.mxu1 %v10722_v34  ;;  %v10794_v27 = vld [vmem:[#allocation9 + $0x374] ss:$24 sps:$4 sm:$0xff]   ;;  %v10792_v34 = vld [vmem:[#allocation9 + $0x370] ss:$24 sps:$4 sm:$0xff]  }
 0x5cd   :  { %9132 = vmatpush1.bf16.msra.mxu0 %v10717_v37  ;;  %9105 = vmatpush1.bf16.msra.mxu1 %v10720_v25  ;;  %v10797_v37 = vld [vmem:[#allocation9 + $0x3a4] ss:$24 sps:$4 sm:$0xff]   ;;  %v10795_v25 = vld [vmem:[#allocation9 + $0x3a0] ss:$24 sps:$4 sm:$0xff]  }
 0x5ce   :  { %9133 = vmatprep.subr.bf16.mxu0 %v10725_v46  ;;  %9106 = vmatprep.subr.bf16.mxu1 %v10728_v23  ;;  %v10800_v46 = vld [vmem:[#allocation9 + $0x3d4] ss:$24 sps:$4 sm:$0xff]   ;;  %v10798_v23 = vld [vmem:[#allocation9 + $0x3d0] ss:$24 sps:$4 sm:$0xff]  }
 0x5d1   :  { %9134 = vmatpush1.bf16.msra.mxu0 %v10723_v19  ;;  %9107 = vmatpush1.bf16.msra.mxu1 %v10726_v28  ;;  %v10803_v19 = vld [vmem:[#allocation9 + $0x404] ss:$24 sps:$4 sm:$0xff]   ;;  %v10806_v28 = vld [vmem:[#allocation9 + $0x434] ss:$24 sps:$4 sm:$0xff]  }
 0x5d2   :  { %9135 = vmatprep.subr.bf16.mxu0 %v10731_v59  ;;  %9108 = vmatprep.subr.bf16.mxu1 %v10734_v1  ;;  %v10809_v59 = vld [vmem:[#allocation9 + $0x464] ss:$24 sps:$4 sm:$0xff]   ;;  %v10807_v1 = vld [vmem:[#allocation9 + $0x460] ss:$24 sps:$4 sm:$0xff]  }
 0x5d5   :  { %9136 = vmatpush1.bf16.msra.mxu0 %v10729_v53  ;;  %9109 = vmatpush1.bf16.msra.mxu1 %v10732_v39  ;;  %v10812_v53 = vld [vmem:[#allocation9 + $0x494] ss:$24 sps:$4 sm:$0xff]   ;;  %v10810_v39 = vld [vmem:[#allocation9 + $0x490] ss:$24 sps:$4 sm:$0xff]  }
 0x5d6   :  { %9137 = vmatprep.subr.bf16.mxu0 %v10737_v31  ;;  %9110 = vmatprep.subr.bf16.mxu1 %v10740_v21  ;;  %v10815_v31 = vld [vmem:[#allocation9 + $0x4c4] ss:$24 sps:$4 sm:$0xff]   ;;  %v10813_v21 = vld [vmem:[#allocation9 + $0x4c0] ss:$24 sps:$4 sm:$0xff]  }
 0x5d9   :  { %9138 = vmatpush1.bf16.msra.mxu0 %v10735_v33  ;;  %9111 = vmatpush1.bf16.msra.mxu1 %v10738_v17  ;;  %v10818_v33 = vld [vmem:[#allocation9 + $0x4f4] ss:$24 sps:$4 sm:$0xff]   ;;  %v10816_v17 = vld [vmem:[#allocation9 + $0x4f0] ss:$24 sps:$4 sm:$0xff]  }
 0x5da   :  { %9139 = vmatprep.subr.bf16.mxu0 %v10743_v16  ;;  %9112 = vmatprep.subr.bf16.mxu1 %v10746_v32  ;;  %v10821_v16 = vld [vmem:[#allocation9 + $0x524] ss:$24 sps:$4 sm:$0xff]   ;;  %v10819_v32 = vld [vmem:[#allocation9 + $0x520] ss:$24 sps:$4 sm:$0xff]  }
 0x5dd   :  { %9140 = vmatpush1.bf16.msra.mxu0 %v10741_v22  ;;  %9113 = vmatpush1.bf16.msra.mxu1 %v10744_v18  ;;  %v10824_v22 = vld [vmem:[#allocation9 + $0x554] ss:$24 sps:$4 sm:$0xff]   ;;  %v10822_v18 = vld [vmem:[#allocation9 + $0x550] ss:$24 sps:$4 sm:$0xff]  }
 0x5de   :  { %9141 = vmatprep.subr.bf16.mxu0 %v10749_v6  ;;  %9114 = vmatprep.subr.bf16.mxu1 %v10752_v11  ;;  %v10827_v6 = vld [vmem:[#allocation9 + $0x584] ss:$24 sps:$4 sm:$0xff]   ;;  %v10825_v11 = vld [vmem:[#allocation9 + $0x580] ss:$24 sps:$4 sm:$0xff]  }
 0x5e1   :  { %9142 = vmatpush1.bf16.msra.mxu0 %v10747_v5  ;;  %9115 = vmatpush1.bf16.msra.mxu1 %v10750_v48  ;;  %v10830_v5 = vld [vmem:[#allocation9 + $0x5b4] ss:$24 sps:$4 sm:$0xff]   ;;  %v10828_v48 = vld [vmem:[#allocation9 + $0x5b0] ss:$24 sps:$4 sm:$0xff]  }
 0x5e2   :  { %9143 = vmatprep.subr.bf16.mxu0 %v10755_v62  ;;  %9116 = vmatprep.subr.bf16.mxu1 %v10758_v43  ;;  %v10833_v62 = vld [vmem:[#allocation9 + $0x5e4] ss:$24 sps:$4 sm:$0xff]   ;;  %v10831_v43 = vld [vmem:[#allocation9 + $0x5e0] ss:$24 sps:$4 sm:$0xff]  }
 0x5e5   :  { %9144 = vmatpush1.bf16.msra.mxu0 %v10753_v42  ;;  %9117 = vmatpush1.bf16.msra.mxu1 %v10756_v7  ;;  %v10836_v42 = vld [vmem:[#allocation9 + $0x614] ss:$24 sps:$4 sm:$0xff]   ;;  %v10834_v7 = vld [vmem:[#allocation9 + $0x610] ss:$24 sps:$4 sm:$0xff]  }
 0x5e6   :  { %9145 = vmatprep.subr.bf16.mxu0 %v10761_v3  ;;  %9118 = vmatprep.subr.bf16.mxu1 %v10764_v47  ;;  %v10839_v3 = vld [vmem:[#allocation9 + $0x644] ss:$24 sps:$4 sm:$0xff]   ;;  %v10837_v47 = vld [vmem:[#allocation9 + $0x640] ss:$24 sps:$4 sm:$0xff]  }
 0x5e9   :  { %9146 = vmatpush1.bf16.msra.mxu0 %v10759_v36  ;;  %9119 = vmatpush1.bf16.msra.mxu1 %v10762_v0  ;;  %v10842_v36 = vld [vmem:[#allocation9 + $0x674] ss:$24 sps:$4 sm:$0xff]   ;;  %v10840_v0 = vld [vmem:[#allocation9 + $0x670] ss:$24 sps:$4 sm:$0xff]  }
 0x5ea   :  { %9147 = vmatprep.subr.bf16.mxu0 %v10767_v49  ;;  %v10845_v49 = vld [vmem:[#allocation9 + $0x6a4] ss:$24 sps:$4 sm:$0xff]  }
 0x5ec   :  { %9121 = vmatmul.mubr.bf16.vlgmr.msra.gmra.mrb[12].mxu1 %v12440_v63 }
 0x5ed   :  { %9148 = vmatpush1.bf16.msra.mxu0 %v10765_v45  ;;  %v10843_v45 = vld [vmem:[#allocation9 + $0x6a0] ss:$24 sps:$4 sm:$0xff]  }
 0x5ee   :  { %9149 = vmatprep.subr.bf16.mxu0 %v10770_v41  ;;  %v10848_v41 = vld [vmem:[#allocation9 + $0x6d4] ss:$24 sps:$4 sm:$0xff]  }
 0x5f1   :  { %9150 = vmatpush1.bf16.msra.mxu0 %v10768_v54  ;;  %v10846_v54 = vld [vmem:[#allocation9 + $0x6d0] ss:$24 sps:$4 sm:$0xff]  }
 0x5f2   :  { %9151 = vmatprep.subr.bf16.mxu0 %v10773_v2  ;;  %v10851_v2 = vld [vmem:[#allocation9 + $0x704] ss:$24 sps:$4 sm:$0xff]  }
 0x5f5   :  { %9152 = vmatpush1.bf16.msra.mxu0 %v10771_v60  ;;  %v10854_v60 = vld [vmem:[#allocation9 + $0x734] ss:$24 sps:$4 sm:$0xff]  }
 0x5f6   :  { %9153 = vmatprep.subr.bf16.mxu0 %v10776_v40  ;;  %v10857_v40 = vld [vmem:[#allocation9 + $0x764] ss:$24 sps:$4 sm:$0xff]  }
 0x5f9   :  { %9154 = vmatpush1.bf16.msra.mxu0 %v10774_v12  ;;  %v10855_v12 = vld [vmem:[#allocation9 + $0x760] ss:$24 sps:$4 sm:$0xff]  }
 0x5fa   :  { %9155 = vmatprep.subr.bf16.mxu0 %v10779_v14  ;;  %v10860_v14 = vld [vmem:[#allocation9 + $0x794] ss:$24 sps:$4 sm:$0xff]  }
 0x5fd   :  { %9156 = vmatpush1.bf16.msra.mxu0 %v10777_v56  ;;  %v10858_v56 = vld [vmem:[#allocation9 + $0x790] ss:$24 sps:$4 sm:$0xff]  }
 0x5fe   :  { %9157 = vmatprep.subr.bf16.mxu0 %v10782_v50  ;;  %v10863_v50 = vld [vmem:[#allocation9 + $0x7c4] ss:$24 sps:$4 sm:$0xff]  }
 0x601   :  { %9158 = vmatpush1.bf16.msra.mxu0 %v10780_v26  ;;  %v10861_v26 = vld [vmem:[#allocation9 + $0x7c0] ss:$24 sps:$4 sm:$0xff]  }
 0x602   :  { %9159 = vmatprep.subr.bf16.mxu0 %v10785_v10  ;;  %v10866_v10 = vld [vmem:[#allocation9 + $0x7f4] ss:$24 sps:$4 sm:$0xff]  }
 0x605   :  { %9160 = vmatpush1.bf16.msra.mxu0 %v10783_v4  ;;  %v10864_v4 = vld [vmem:[#allocation9 + $0x7f0] ss:$24 sps:$4 sm:$0xff]  }
 0x606   :  { %9170 = vmatprep.subr.bf16.mxu0 %v10788_v29  ;;  %v10869_v29 = vld [vmem:[#allocation9 + $0x824] ss:$24 sps:$4 sm:$0xff]  }
 0x608   :  { %9162 = vmatmul.mubr.bf16.vlgmr.msra.gmra.mrb[12].mxu0 %v12387_v55  ;;  %v10801_v55 = vld [vmem:[#allocation9 + $0x400] ss:$24 sps:$4 sm:$0xff]  }
 0x609   :  { %9171 = vmatpush1.bf16.msra.mxu0 %v10786_v30  ;;  %9202 = vmatprep.mubr.bf16.mxu0 %v12404_v58  ;;  %v10804_v58 = vld [vmem:[#allocation9 + $0x430] ss:$24 sps:$4 sm:$0xff]   ;;  %v10867_v30 = vld [vmem:[#allocation9 + $0x820] ss:$24 sps:$4 sm:$0xff]  }
 0x60a   :  { %9172 = vmatprep.subr.bf16.mxu0 %v10791_v13  ;;  %v10872_v13 = vld [vmem:[#allocation9 + $0x854] ss:$24 sps:$4 sm:$0xff]  }
 0x60d   :  { %9173 = vmatpush1.bf16.msra.mxu0 %v10789_v9  ;;  %v10870_v9 = vld [vmem:[#allocation9 + $0x850] ss:$24 sps:$4 sm:$0xff]  }
 0x60e   :  { %9174 = vmatprep.subr.bf16.mxu0 %v10794_v27  ;;  %v10875_v27 = vld [vmem:[#allocation9 + $0x884] ss:$24 sps:$4 sm:$0xff]  }
 0x611   :  { %9175 = vmatpush1.bf16.msra.mxu0 %v10792_v34  ;;  %v10873_v34 = vld [vmem:[#allocation9 + $0x880] ss:$24 sps:$4 sm:$0xff]  }
 0x612   :  { %9176 = vmatprep.subr.bf16.mxu0 %v10797_v37  ;;  %v10878_v37 = vld [vmem:[#allocation9 + $0x8b4] ss:$24 sps:$4 sm:$0xff]  }
 0x615   :  { %9177 = vmatpush1.bf16.msra.mxu0 %v10795_v25  ;;  %v10876_v25 = vld [vmem:[#allocation9 + $0x8b0] ss:$24 sps:$4 sm:$0xff]  }
 0x616   :  { %9178 = vmatprep.subr.bf16.mxu0 %v10800_v46  ;;  %v10881_v46 = vld [vmem:[#allocation9 + $0x8e4] ss:$24 sps:$4 sm:$0xff]  }
 0x619   :  { %9179 = vmatpush1.bf16.msra.mxu0 %v10798_v23  ;;  %v10879_v23 = vld [vmem:[#allocation9 + $0x8e0] ss:$24 sps:$4 sm:$0xff]  }
 0x61a   :  { %9180 = vmatprep.subr.bf16.mxu0 %v10803_v19  ;;  %v10884_v19 = vld [vmem:[#allocation9 + $0x914] ss:$24 sps:$4 sm:$0xff]  }
 0x61d   :  { %9181 = vmatpush1.bf16.msra.mxu0 %v10801_v55  ;;  %v10882_v55 = vld [vmem:[#allocation9 + $0x910] ss:$24 sps:$4 sm:$0xff]  }
 0x61e   :  { %9182 = vmatprep.subr.bf16.mxu0 %v10806_v28  ;;  %v10887_v28 = vld [vmem:[#allocation9 + $0x944] ss:$24 sps:$4 sm:$0xff]  }
 0x621   :  { %9183 = vmatpush1.bf16.msra.mxu0 %v10804_v58  ;;  %v10885_v58 = vld [vmem:[#allocation9 + $0x940] ss:$24 sps:$4 sm:$0xff]  }
 0x622   :  { %9184 = vmatprep.subr.bf16.mxu0 %v10809_v59  ;;  %v10890_v59 = vld [vmem:[#allocation9 + $0x974] ss:$24 sps:$4 sm:$0xff]  }
 0x625   :  { %9185 = vmatpush1.bf16.msra.mxu0 %v10807_v1  ;;  %v10888_v1 = vld [vmem:[#allocation9 + $0x970] ss:$24 sps:$4 sm:$0xff]  }
 0x626   :  { %9186 = vmatprep.subr.bf16.mxu0 %v10812_v53  ;;  %v10893_v53 = vld [vmem:[#allocation9 + $0x9a4] ss:$24 sps:$4 sm:$0xff]  }
 0x629   :  { %9187 = vmatpush1.bf16.msra.mxu0 %v10810_v39  ;;  %v10891_v39 = vld [vmem:[#allocation9 + $0x9a0] ss:$24 sps:$4 sm:$0xff]  }
 0x62a   :  { %9188 = vmatprep.subr.bf16.mxu0 %v10815_v31  ;;  %v10896_v31 = vld [vmem:[#allocation9 + $0x9d4] ss:$24 sps:$4 sm:$0xff]  }
 0x62d   :  { %9189 = vmatpush1.bf16.msra.mxu0 %v10813_v21  ;;  %v10894_v21 = vld [vmem:[#allocation9 + $0x9d0] ss:$24 sps:$4 sm:$0xff]  }
 0x62e   :  { %9190 = vmatprep.subr.bf16.mxu0 %v10818_v33  ;;  %v12453_v33 = vld [vmem:[#allocation11] sm:$0x3f] }
 0x631   :  { %9191 = vmatpush1.bf16.msra.mxu0 %v10816_v17  ;;  %v10897_v17 = vld [vmem:[#allocation9 + $0xa00] ss:$24 sps:$4 sm:$0xff]  }
 0x632   :  { %9192 = vmatprep.subr.bf16.mxu0 %v10821_v16  ;;  %v6858_v16 = vrot.slane %v12453_v33, %v3142_v8  ;;  %v10911_v8 = vld [vmem:[#allocation9 + $0xac4] ss:$24 sps:$4 sm:$0xff]  }
 0x635   :  { %9193 = vmatpush1.bf16.msra.mxu0 %v10819_v32  ;;  %v10902_v32 = vld [vmem:[#allocation9 + $0xa34] ss:$24 sps:$4 sm:$0xff]  }
 0x636   :  { %9194 = vmatprep.subr.bf16.mxu0 %v10824_v22 }
 0x639   :  { %9195 = vmatpush1.bf16.msra.mxu0 %v10822_v18 }
 0x63a   :  { %9196 = vmatprep.subr.bf16.mxu0 %v10827_v6 }
 0x63d   :  { %9197 = vmatpush1.bf16.msra.mxu0 %v10825_v11 }
 0x63e   :  { %9198 = vmatprep.subr.bf16.mxu0 %v10830_v5 }
 0x641   :  { %9199 = vmatpush1.bf16.msra.mxu0 %v10828_v48  ;;  %v10900_v48 = vld [vmem:[#allocation9 + $0xa30] ss:$24 sps:$4 sm:$0xff]  }
 0x642   :  { %9200 = vmatprep.subr.bf16.mxu0 %v10833_v62 }
 0x645   :  { %9201 = vmatpush1.bf16.msra.mxu0 %v10831_v43  ;;  %v10905_v43 = vld [vmem:[#allocation9 + $0xa64] ss:$24 sps:$4 sm:$0xff]  }
 0x646   :  { %9211 = vmatprep.subr.bf16.mxu0 %v10836_v42 }
 0x648   :  { %9203 = vmatmul.mubr.bf16.vlgmr.msra.gmra.mrb[12].mxu0 %v12406_v57  ;;  %v10849_v57 = vld [vmem:[#allocation9 + $0x700] ss:$24 sps:$4 sm:$0xff]  }
 0x649   :  { %9212 = vmatpush1.bf16.msra.mxu0 %v10834_v7  ;;  %9243 = vmatprep.mubr.bf16.mxu0 %v12416_v52  ;;  %v10852_v52 = vld [vmem:[#allocation9 + $0x730] ss:$24 sps:$4 sm:$0xff]   ;;  %v10908_v7 = vld [vmem:[#allocation9 + $0xa94] ss:$24 sps:$4 sm:$0xff]  }
 0x64a   :  { %9213 = vmatprep.subr.bf16.mxu0 %v10839_v3  ;;  %v10906_v3 = vld [vmem:[#allocation9 + $0xa90] ss:$24 sps:$4 sm:$0xff]  }
 0x64d   :  { %9214 = vmatpush1.bf16.msra.mxu0 %v10837_v47  ;;  %v10909_v47 = vld [vmem:[#allocation9 + $0xac0] ss:$24 sps:$4 sm:$0xff]  }
 0x64e   :  { %9215 = vmatprep.subr.bf16.mxu0 %v10842_v36  ;;  %v10914_v36 = vld [vmem:[#allocation9 + $0xaf4] ss:$24 sps:$4 sm:$0xff]  }
 0x651   :  { %9216 = vmatpush1.bf16.msra.mxu0 %v10840_v0  ;;  %v10912_v0 = vld [vmem:[#allocation9 + $0xaf0] ss:$24 sps:$4 sm:$0xff]  }
 0x652   :  { %9217 = vmatprep.subr.bf16.mxu0 %v10845_v49  ;;  %v10917_v49 = vld [vmem:[#allocation9 + $0xb24] ss:$24 sps:$4 sm:$0xff]  }
 0x655   :  { %9218 = vmatpush1.bf16.msra.mxu0 %v10843_v45  ;;  %v10915_v45 = vld [vmem:[#allocation9 + $0xb20] ss:$24 sps:$4 sm:$0xff]  }
 0x656   :  { %9219 = vmatprep.subr.bf16.mxu0 %v10848_v41  ;;  %v10920_v41 = vld [vmem:[#allocation9 + $0xb54] ss:$24 sps:$4 sm:$0xff]  }
 0x659   :  { %9220 = vmatpush1.bf16.msra.mxu0 %v10846_v54  ;;  %v10918_v54 = vld [vmem:[#allocation9 + $0xb50] ss:$24 sps:$4 sm:$0xff]  }
 0x65a   :  { %9221 = vmatprep.subr.bf16.mxu0 %v10851_v2  ;;  %v10923_v2 = vld [vmem:[#allocation9 + $0xb84] ss:$24 sps:$4 sm:$0xff]  }
 0x65d   :  { %9222 = vmatpush1.bf16.msra.mxu0 %v10849_v57  ;;  %v11083_v57 = vmov 1983009808  }
 0x65e   :  { %9223 = vmatprep.subr.bf16.mxu0 %v10854_v60  ;;  %v9302_v60 = vunpack.c.l.s4 %v11083_v57 }
 0x661   :  { %9224 = vmatpush1.bf16.msra.mxu0 %v10852_v52  ;;  %v10921_v52 = vld [vmem:[#allocation9 + $0xb80] ss:$24 sps:$4 sm:$0xff]  }
 0x662   :  { %9225 = vmatprep.subr.bf16.mxu0 %v10857_v40  ;;  %v10926_v40 = vld [vmem:[#allocation9 + $0xbb4] ss:$24 sps:$4 sm:$0xff]  }
 0x665   :  { %9226 = vmatpush1.bf16.msra.mxu0 %v10855_v12  ;;  %v6862_v12 = vrot.slane %v12453_v33, %v3146_v61 }
 0x666   :  { %9227 = vmatprep.subr.bf16.mxu0 %v10860_v14  ;;  %v9303_v14 = vunpack.c.0.s8 %v9302_v60 }
 0x669   :  { %9228 = vmatpush1.bf16.msra.mxu0 %v10858_v56  ;;  %v10924_v56 = vld [vmem:[#allocation9 + $0xbb0] ss:$24 sps:$4 sm:$0xff]  }
 0x66a   :  { %9229 = vmatprep.subr.bf16.mxu0 %v10863_v50  ;;  %v6866_v50 = vrot.slane %v12453_v33, %v3150_v35  ;;  %v6870_v35 = vrot.slane %v12453_v33, %v3154_v44 }
 0x66d   :  { %9230 = vmatpush1.bf16.msra.mxu0 %v10861_v26  ;;  %v10929_v26 = vld [vmem:[#allocation9 + $0xbe4] ss:$24 sps:$4 sm:$0xff]  }
 0x66e   :  { %9231 = vmatprep.subr.bf16.mxu0 %v10866_v10 }
 0x671   :  { %9232 = vmatpush1.bf16.msra.mxu0 %v10864_v4 }
 0x672   :  { %9233 = vmatprep.subr.bf16.mxu0 %v10869_v29 }
 0x675   :  { %9234 = vmatpush1.bf16.msra.mxu0 %v10867_v30  ;;  %v9306_v30 = vsub.s32 %v9303_v14, %v12363_v20 }
 0x676   :  { %9235 = vmatprep.subr.bf16.mxu0 %v10872_v13 }
 0x679   :  { %9236 = vmatpush1.bf16.msra.mxu0 %v10870_v9 }
 0x67a   :  { %9237 = vmatprep.subr.bf16.mxu0 %v10875_v27  ;;  %v10927_v27 = vld [vmem:[#allocation9 + $0xbe0] ss:$24 sps:$4 sm:$0xff]  }
 0x67d   :  { %9238 = vmatpush1.bf16.msra.mxu0 %v10873_v34 }
 0x67e   :  { %9239 = vmatprep.subr.bf16.mxu0 %v10878_v37 }
 0x681   :  { %9240 = vmatpush1.bf16.msra.mxu0 %v10876_v25 }
 0x682   :  { %9241 = vmatprep.subr.bf16.mxu0 %v10881_v46 }
 0x685   :  { %9242 = vmatpush1.bf16.msra.mxu0 %v10879_v23  ;;  %v6874_v23 = vrot.slane %v12453_v33, %v3158_v51 }
 0x686   :  { %9252 = vmatprep.subr.bf16.mxu0 %v10884_v19 }
 0x688   :  { %9244 = vmatmul.mubr.bf16.vlgmr.msra.gmra.mrb[12].mxu0 %v12426_v15  ;;  %v10899_v15 = vld [vmem:[#allocation9 + $0xa04] ss:$24 sps:$4 sm:$0xff]  }
 0x689   :  { %9253 = vmatpush1.bf16.msra.mxu0 %v10882_v55  ;;  %9284 = vmatprep.mubr.bf16.mxu0 %v12438_v24  ;;  %v6854_v24 = vrot.slane %v12453_v33, %v3138_v38  ;;  %v10903_v38 = vld [vmem:[#allocation9 + $0xa60] ss:$24 sps:$4 sm:$0xff]  }
 0x68a   :  { %9254 = vmatprep.subr.bf16.mxu0 %v10887_v28 }
 0x68d   :  { %9255 = vmatpush1.bf16.msra.mxu0 %v10885_v58 }
 0x68e   :  { %9256 = vmatprep.subr.bf16.mxu0 %v10890_v59 }
 0x691   :  { %9257 = vmatpush1.bf16.msra.mxu0 %v10888_v1 }
 0x692   :  { %9258 = vmatprep.subr.bf16.mxu0 %v10893_v53 }
 0x695   :  { %9259 = vmatpush1.bf16.msra.mxu0 %v10891_v39 }
 0x696   :  { %9260 = vmatprep.subr.bf16.mxu0 %v10896_v31 }
 0x699   :  { %9261 = vmatpush1.bf16.msra.mxu0 %v10894_v21 }
 0x69a   :  { %9262 = vmatprep.subr.bf16.mxu0 %v10899_v15 }
 0x69b   :  { %v8958_v22 = vpop.f32.mrb[8].mxu0 }
 0x69c   :  { %v10252_v18 = vadd.f32 %v8958_v22, %v6854_v24  ;;  %v8960_v6 = vpop.f32.mrb[9].mxu0 }
 0x69d   :  { %v10253_v11 = vadd.f32 %v8960_v6, %v6858_v16  ;;  %9263 = vmatpush1.bf16.msra.mxu0 %v10897_v17  ;;  %v8962_v5 = vpop.f32.mrb[10].mxu0 }
 0x69e   :  { %v8963_v62 = vpop.f32.mrb[11].mxu0  ;;  %9264 = vmatprep.subr.bf16.mxu0 %v10902_v32 }
 0x69f   :  { %v9299_v42 = vcombine.low %v10252_v18, %v10253_v11 }
 0x6a1   :  { %9265 = vmatpush1.bf16.msra.mxu0 %v10900_v48  ;;  %v9307_v37 = vrot.slane %v9299_v42, %v9306_v30 }
 0x6a2   :  { %9266 = vmatprep.subr.bf16.mxu0 %v10905_v43 }
 0x6a5   :  { %9267 = vmatpush1.bf16.msra.mxu0 %v10903_v38 }
 0x6a6   :  { %9268 = vmatprep.subr.bf16.mxu0 %v10908_v7 }
 0x6a9   :  { %9269 = vmatpush1.bf16.msra.mxu0 %v10906_v3 }
 0x6aa   :  { %9270 = vmatprep.subr.bf16.mxu0 %v10911_v8 }
 0x6ad   :  { %9271 = vmatpush1.bf16.msra.mxu0 %v10909_v47 }
 0x6ae   :  { %9272 = vmatprep.subr.bf16.mxu0 %v10914_v36 }
 0x6b1   :  { %9273 = vmatpush1.bf16.msra.mxu0 %v10912_v0 }
 0x6b2   :  { %9274 = vmatprep.subr.bf16.mxu0 %v10917_v49 }
 0x6b5   :  { %9275 = vmatpush1.bf16.msra.mxu0 %v10915_v45 }
 0x6b6   :  { %9276 = vmatprep.subr.bf16.mxu0 %v10920_v41 }
 0x6b9   :  { %9277 = vmatpush1.bf16.msra.mxu0 %v10918_v54 }
 0x6ba   :  { %9278 = vmatprep.subr.bf16.mxu0 %v10923_v2 }
 0x6bd   :  { %9279 = vmatpush1.bf16.msra.mxu0 %v10921_v52 }
 0x6be   :  { %9280 = vmatprep.subr.bf16.mxu0 %v10926_v40 }
 0x6bf   :  { %v9122_v10 = vpop.f32.mrb[12].mxu1 }
 0x6c0   :  { %v10254_v4 = vadd.f32 %v9122_v10, %v6862_v12  ;;  %v9124_v29 = vpop.f32.mrb[13].mxu1 }
 0x6c1   :  { %v10255_v13 = vadd.f32 %v9124_v29, %v6866_v50  ;;  %9281 = vmatpush1.bf16.msra.mxu0 %v10924_v56  ;;  %v9126_v9 = vpop.f32.mrb[14].mxu1 }
 0x6c2   :  { %v9127_v34 = vpop.f32.mrb[15].mxu1  ;;  %9282 = vmatprep.subr.bf16.mxu0 %v10929_v26 }
 0x6c3   :  { %v9300_v61 = vcombine.low %v10254_v4, %v10255_v13 }
 0x6c5   :  { %v9314_v25 = vrot.slane %v9300_v61, %v9306_v30  ;;  %9283 = vmatpush1.bf16.msra.mxu0 %v10927_v27 }
 0x6c7   :  { %v9315_v46 = vcombine.low %v9307_v37, %v9314_v25 }
 0x6c8   :  { %9285 = vmatmul.mubr.bf16.vlgmr.msra.gmra.mrb[12].mxu0 %v12440_v63 }
 0x6c9   :  { %9326 = vst [vmem:[#allocation12] sm:$0xff] %v9315_v46 }
 0x79b   :  { %v9286_v19 = vpop.f32.mrb[12].mxu0 }
 0x79c   :  { %v10256_v55 = vadd.f32 %v9286_v19, %v6870_v35  ;;  %v9288_v28 = vpop.f32.mrb[13].mxu0 }
 0x79d   :  { %v10257_v58 = vadd.f32 %v9288_v28, %v6874_v23  ;;  %v9290_v59 = vpop.f32.mrb[14].mxu0 }
 0x79e   :  { %v9291_v1 = vpop.f32.mrb[15].mxu0 }
 0x79f   :  { %v9316_v53 = vcombine.low %v10256_v55, %v10257_v58 }
 0x7a1   :  { %10241 = vst.sshfl [vmem:[#allocation12 + $0x8] sm:$0x33 pattern:$0x76325410] %v9316_v53 }
 0x7a2   :  { %11052 = shalt.err (!%p11049_p2)
}
 0x7a3   :  { %s11053_s26 = scalar_lea.hbm %s12494_s7, 192 }
 0x7a4   :  { %p11054_p3 = scmp.ne.s32.totalorder %s12494_s7, %s11053_s26  ;;  %p11057_p4 = scmp.lt.u32.totalorder %s11053_s26, %s12494_s7 }
 0x7a6   :  { %p11059_p5 = pnand %p11057_p4, %p11054_p3 }
 0x7a8   :  { %11062 = shalt.err (!%p11059_p5)
}
 0x7a9   :  { %9337 = dma.vmem_to_hbm [thread:$0]  %s9335_s23, 192, %s12494_s7, [#allocation5]  }
 0x7aa   :  { %11069 = dma.done.wait [#allocation5], 192  }
 0x7ab   :  { %11070 = vsyncadd [#allocation5], 4294967104 }
 0x7ac   :  { %9341 = vsyncpa [#allocation4], 1 }
 0x7ad   :  { %9342 = vsyncpa [#allocation7], 1 }
 0x7ae   :  { %9343 = vsyncpa [#allocation10], 1 }
 0x7af   :  { %9344 = vsyncpa [#allocation5], 1 }

</bundles_post_ra>
